<compile_context>
chip_gen: v7x
topology: tpu7x:2x2x1
jax: 0.10.0
libtpu: 0.0.40
codegen_flags: <defaults>
</compile_context>

<pallas_src>
import numpy as np
import jax
import jax.numpy as jnp
from jax import lax
from jax.experimental import pallas as pl
from jax.experimental.pallas import tpu as pltpu


def _round_up(x, m):
    return (x + m - 1) // m * m


def _vmem_limit(blocks, headroom=8 << 20, cap=40 << 20):
    # 2x (double buffering) the per-step pipeline blocks + compiler-scratch
    # headroom, floored at 16 MiB and capped below v7x's 64 MiB physical VMEM.
    need = 2 * sum(int(np.prod(s)) * jnp.dtype(d).itemsize for s, d in blocks)
    return int(min(cap, max(16 << 20, need + headroom)))


# ---------------------------------------------------------------------------
# Kernel A: fused 3x3 conv (padding=1, no bias) + BatchNorm batch statistics.
# ---------------------------------------------------------------------------
def _make_conv_bn_kernel(H, W):
    def kernel(x_ref, w_ref, f_ref, st_ref):
        # x_ref : (1, 1, H+2, Wp, Cin) bf16  zero-padded image (halo included)
        # w_ref : (1, 9, Cin, Cout)    bf16  per-branch weights, tap = 3*dy+dx
        # f_ref : (1, 1, H*W, Cout)    bf16  flat conv output
        # st_ref: (1, 2, Cout)         f32   [sum, sum_sq] resident accumulator
        n = pl.program_id(1)

        # Nine accumulating MXU matmuls with K = Cin (no im2col patch).
        acc = None
        for dy in range(3):
            rows = x_ref[0, 0, pl.ds(dy, H)]                   # (H, Wp, Cin)
            for dx in range(3):
                tap = rows[:, dx:dx + W, :].reshape(H * W, rows.shape[-1])
                p = jnp.dot(tap, w_ref[0, 3 * dy + dx],
                            preferred_element_type=jnp.float32)
                acc = p if acc is None else acc + p            # (H*W, Cout) f32

        # Fused BatchNorm batch statistics, accumulated over the batch axis.
        @pl.when(n == 0)
        def _():
            st_ref[...] = jnp.zeros_like(st_ref)

        s1 = jnp.sum(acc, axis=0, keepdims=True)               # (1, Cout)
        s2 = jnp.sum(acc * acc, axis=0, keepdims=True)         # (1, Cout)
        st_ref[0] = st_ref[0] + jnp.concatenate([s1, s2], axis=0)

        # bf16 storage of the biggest HBM intermediate (stats stay f32).
        f_ref[0, 0] = acc.astype(f_ref.dtype)

    return kernel


def conv3x3_bn_stats(x, w9, *, H, W):
    # x : (2, N, H+2, Wp, Cin) bf16 (zero-padded) ; w9 : (2, 9, Cin, Cout) bf16
    _, N, Hp, Wp, Cin = x.shape
    Cout = w9.shape[-1]
    HW = H * W
    blocks = [((1, 1, Hp, Wp, Cin), jnp.bfloat16),
              ((1, 9, Cin, Cout), jnp.bfloat16),
              ((1, 1, HW, Cout), jnp.bfloat16),
              ((1, 2, Cout), jnp.float32)]
    return pl.pallas_call(
        _make_conv_bn_kernel(H, W),
        out_shape=(
            jax.ShapeDtypeStruct((2, N, HW, Cout), jnp.bfloat16),
            jax.ShapeDtypeStruct((2, 2, Cout), jnp.float32),
        ),
        grid_spec=pltpu.PrefetchScalarGridSpec(
            num_scalar_prefetch=0,
            grid=(2, N),
            in_specs=[
                pl.BlockSpec((1, 1, Hp, Wp, Cin), lambda b, n: (b, n, 0, 0, 0)),
                pl.BlockSpec((1, 9, Cin, Cout), lambda b, n: (b, 0, 0, 0)),
            ],
            out_specs=[
                pl.BlockSpec((1, 1, HW, Cout), lambda b, n: (b, n, 0, 0)),
                pl.BlockSpec((1, 2, Cout), lambda b, n: (b, 0, 0)),
            ],
        ),
        compiler_params=pltpu.CompilerParams(
            # branch axis -> megacore; batch axis carries the stats accumulator.
            dimension_semantics=("parallel", "arbitrary"),
            vmem_limit_bytes=_vmem_limit(blocks),
        ),
    )(x, w9)


# ---------------------------------------------------------------------------
# Kernel B: BN affine + ReLU + 1x1 classifier (MXU) + separable bilinear
#           upsample (width-first) + sigmoid, lane-dense padded NCHW output.
# ---------------------------------------------------------------------------
def _make_head_kernel(H, W, K):
    def kernel(f_ref, sc_ref, sh_ref, wc_ref, bc_ref, rh_ref, rwT_ref, o_ref):
        # f_ref  : (1, 1, H*W, C)  bf16      sc_ref/sh_ref : (1, 1, C) f32
        # wc_ref : (1, C, Kp)      f32       bc_ref        : (2, K)    f32 (SMEM)
        # rh_ref : (Hout_p, H)     f32       rwT_ref       : (W, Wout_p) f32
        # o_ref  : (1, 1, K, Hout_p, Wout_p) f32
        b = pl.program_id(0)

        a = f_ref[0, 0].astype(jnp.float32)                    # (H*W, C)
        a = jnp.maximum(a * sc_ref[0, 0] + sh_ref[0, 0], 0.0)  # BN affine + ReLU

        # 1x1 classifier as a single MXU matmul (Kp padded to 128 lanes).
        y = jnp.dot(a, wc_ref[0], preferred_element_type=jnp.float32)  # (H*W, Kp)
        y3 = y.reshape(H, W, -1)                               # free (W % 8 == 0)

        rh = rh_ref[...]                                       # (Hout_p, H)
        rwT = rwT_ref[...]                                     # (W, Wout_p)
        for k in range(K):
            # classifier bias added before the interpolation (exact module order)
            m = y3[:, :, k] + bc_ref[b, k]                     # (H, W)
            # width-first separable bilinear upsample -> lane-dense intermediate
            u = jnp.dot(m, rwT, preferred_element_type=jnp.float32)   # (H, Wout_p)
            u = jnp.dot(rh, u, preferred_element_type=jnp.float32)    # (Hout_p, Wout_p)
            # sigmoid on the EUP slot (exp + approx reciprocal)
            o_ref[0, 0, k] = pl.reciprocal(1.0 + jnp.exp(-u), approx=True)

    return kernel


def head(f, scale, shift, wc, bc, Rh, RwT, *, H, W, K):
    _, N, HW, C = f.shape
    Kp = wc.shape[-1]
    Hout_p = Rh.shape[0]
    Wout_p = RwT.shape[1]
    blocks = [((1, 1, HW, C), jnp.bfloat16),
              ((1, 1, C), jnp.float32), ((1, 1, C), jnp.float32),
              ((1, C, Kp), jnp.float32),
              ((Hout_p, H), jnp.float32), ((W, Wout_p), jnp.float32),
              ((1, 1, K, Hout_p, Wout_p), jnp.float32)]
    return pl.pallas_call(
        _make_head_kernel(H, W, K),
        out_shape=jax.ShapeDtypeStruct((2, N, K, Hout_p, Wout_p), jnp.float32),
        grid_spec=pltpu.PrefetchScalarGridSpec(
            num_scalar_prefetch=0,
            grid=(2, N),
            in_specs=[
                pl.BlockSpec((1, 1, HW, C), lambda b, n: (b, n, 0, 0)),
                pl.BlockSpec((1, 1, C), lambda b, n: (b, 0, 0)),
                pl.BlockSpec((1, 1, C), lambda b, n: (b, 0, 0)),
                pl.BlockSpec((1, C, Kp), lambda b, n: (b, 0, 0)),
                pl.BlockSpec((2, K), lambda b, n: (0, 0),
                             memory_space=pltpu.MemorySpace.SMEM),
                pl.BlockSpec((Hout_p, H), lambda b, n: (0, 0)),
                pl.BlockSpec((W, Wout_p), lambda b, n: (0, 0)),
            ],
            out_specs=pl.BlockSpec((1, 1, K, Hout_p, Wout_p),
                                   lambda b, n: (b, n, 0, 0, 0)),
        ),
        compiler_params=pltpu.CompilerParams(
            dimension_semantics=("parallel", "parallel"),
            vmem_limit_bytes=_vmem_limit(blocks),
        ),
    )(f, scale, shift, wc, bc, Rh, RwT)


# ---------------------------------------------------------------------------
# Glue: bilinear (align_corners=True) interpolation matrices + full forward.
# ---------------------------------------------------------------------------
def bilinear_matrix(out_size, in_size):
    R = np.zeros((out_size, in_size), np.float32)
    if out_size == 1:
        R[0, 0] = 1.0
        return jnp.asarray(R)
    o = np.arange(out_size)
    s = o * (in_size - 1) / (out_size - 1)
    lo = np.floor(s).astype(np.int64)
    hi = np.minimum(lo + 1, in_size - 1)
    frac = (s - lo).astype(np.float32)
    R[o, lo] += (1.0 - frac)
    R[o, hi] += frac
    return jnp.asarray(R)


def segnet_forward(params, Va_att, Vb_att, input_size):
    # Va_att, Vb_att: NCHW (N, 2C, H, W)  ->  (Ya, Yb): NCHW (N, K, Hout, Wout)
    N, Cin, H, W = Va_att.shape
    Hout, Wout = input_size
    C = params["conv1_w"].shape[-1]
    K = params["cls1_w"].shape[-1]

    # Stack branches, channels-last, bf16 MXU operands; zero conv halo padded in
    # the wrapper, with the padded width rounded to a multiple of 16 so the
    # in-kernel dx slices stay tile-friendly.
    x = jnp.stack([Va_att, Vb_att], axis=0)                        # (2,N,Cin,H,W)
    x = jnp.transpose(x, (0, 1, 3, 4, 2)).astype(jnp.bfloat16)     # (2,N,H,W,Cin)
    Wp = _round_up(W + 2, 16)
    x = jnp.pad(x, ((0, 0), (0, 0), (1, 1), (1, Wp - W - 1), (0, 0)))

    w9 = jnp.stack([params["conv1_w"], params["conv2_w"]], axis=0)  # (2,3,3,Cin,C)
    w9 = w9.reshape(2, 9, Cin, C).astype(jnp.bfloat16)

    f, stats = conv3x3_bn_stats(x, w9, H=H, W=W)   # f:(2,N,H*W,C) bf16, stats:(2,2,C)

    # Training-mode BatchNorm scale/shift from the fused batch statistics.
    cnt = jnp.float32(N * H * W)
    mean = stats[:, 0, :] / cnt                                    # (2, C)
    var = stats[:, 1, :] / cnt - mean * mean                       # biased variance
    gamma = jnp.stack([params["bn1_gamma"], params["bn2_gamma"]], axis=0)
    beta = jnp.stack([params["bn1_beta"], params["bn2_beta"]], axis=0)
    scale = gamma * lax.rsqrt(var + 1e-5)                          # (2, C)
    shift = beta - mean * scale                                    # (2, C)

    # Classifier weights padded to 128 output lanes (dense MXU matmul).
    Kp = _round_up(K, 128)
    wc = jnp.stack([params["cls1_w"], params["cls2_w"]], axis=0)   # (2, C, K)
    wc = jnp.pad(wc, ((0, 0), (0, 0), (0, Kp - K)))                # (2, C, Kp)
    bc = jnp.stack([params["cls1_b"], params["cls2_b"]], axis=0)   # (2, K)

    # Bilinear matrices, padded so the kernel output is (8,128)-aligned.
    Hout_p = _round_up(Hout, 8)
    Wout_p = _round_up(Wout, 128)
    Rh = jnp.pad(bilinear_matrix(Hout, H), ((0, Hout_p - Hout), (0, 0)))
    RwT = jnp.pad(bilinear_matrix(Wout, W).T, ((0, 0), (0, Wout_p - Wout)))

    y = head(f, scale.reshape(2, 1, C), shift.reshape(2, 1, C),
             wc, bc, Rh, RwT, H=H, W=W, K=K)       # (2, N, K, Hout_p, Wout_p)
    y = y[:, :, :, :Hout, :Wout]                   # drop alignment padding
    return y[0], y[1]                              # already NCHW


# ---------------------------------------------------------------------------
# Deterministic parameter init (mirrors the module's __init__ shapes/init).
# ---------------------------------------------------------------------------
def init_params(key, all_channel, num_classes):
    C = all_channel
    ks = jax.random.split(key, 6)
    p = {
        "conv1_w": 0.01 * jax.random.normal(ks[0], (3, 3, 2 * C, C), jnp.float32),
        "conv2_w": 0.01 * jax.random.normal(ks[1], (3, 3, 2 * C, C), jnp.float32),
        "cls1_w": 0.01 * jax.random.normal(ks[2], (C, num_classes), jnp.float32),
        "cls2_w": 0.01 * jax.random.normal(ks[3], (C, num_classes), jnp.float32),
        "bn1_gamma": jnp.ones((C,), jnp.float32),
        "bn1_beta": jnp.zeros((C,), jnp.float32),
        "bn2_gamma": jnp.ones((C,), jnp.float32),
        "bn2_beta": jnp.zeros((C,), jnp.float32),
    }
    bound = 1.0 / np.sqrt(C)
    p["cls1_b"] = jax.random.uniform(ks[4], (num_classes,), jnp.float32, -bound, bound)
    p["cls2_b"] = jax.random.uniform(ks[5], (num_classes,), jnp.float32, -bound, bound)
    return p


# ---------------------------------------------------------------------------
# Pure-JAX reference of the same forward pass (f32 end to end).
# ---------------------------------------------------------------------------
def reference_forward(params, Va_att, Vb_att, input_size):
    Hout, Wout = input_size
    H, W = Va_att.shape[2], Va_att.shape[3]
    Rh = bilinear_matrix(Hout, H)
    Rw = bilinear_matrix(Wout, W)

    def branch(x_nchw, conv_w, gamma, beta, cls_w, cls_b):
        x = jnp.transpose(x_nchw, (0, 2, 3, 1)).astype(jnp.float32)
        f = lax.conv_general_dilated(
            x, conv_w, window_strides=(1, 1), padding=((1, 1), (1, 1)),
            dimension_numbers=("NHWC", "HWIO", "NHWC"))
        mean = jnp.mean(f, axis=(0, 1, 2))
        var = jnp.mean((f - mean) ** 2, axis=(0, 1, 2))
        f = (f - mean) / jnp.sqrt(var + 1e-5) * gamma + beta
        f = jnp.maximum(f, 0.0)
        y = jnp.einsum("nhwc,ck->nhwk", f, cls_w) + cls_b
        y = jnp.einsum("oh,nhwk->nowk", Rh, y)
        y = jnp.einsum("pw,nowk->nopk", Rw, y)
        y = 1.0 / (1.0 + jnp.exp(-y))
        return jnp.transpose(y, (0, 3, 1, 2))

    Ya = branch(Va_att, params["conv1_w"], params["bn1_gamma"],
                params["bn1_beta"], params["cls1_w"], params["cls1_b"])
    Yb = branch(Vb_att, params["conv2_w"], params["bn2_gamma"],
                params["bn2_beta"], params["cls2_w"], params["cls2_b"])
    return Ya, Yb


if __name__ == "__main__":
    # Small shapes consistent with the module (all_channel scaled to 128 so the
    # channel lane dims stay 128-aligned; upsample x8 like 60 -> 473).
    N, all_channel, H, W = 2, 128, 16, 16
    num_classes = 3
    input_size = (128, 128)

    key = jax.random.PRNGKey(0)
    kp, ka, kb = jax.random.split(key, 3)
    params = init_params(kp, all_channel, num_classes)
    Va = jax.random.normal(ka, (N, 2 * all_channel, H, W), jnp.float32)
    Vb = jax.random.normal(kb, (N, 2 * all_channel, H, W), jnp.float32)

    fwd = jax.jit(segnet_forward, static_argnums=(3,))
    Ya, Yb = fwd(params, Va, Vb, input_size)
    jax.block_until_ready((Ya, Yb))

    Ya_ref, Yb_ref = reference_forward(params, Va, Vb, input_size)
    # bf16 conv operands + bf16 intermediate storage + approx-reciprocal sigmoid
    # -> compare at a slightly relaxed tolerance.
    np.testing.assert_allclose(np.asarray(Ya), np.asarray(Ya_ref),
                               rtol=2e-3, atol=2e-3)
    np.testing.assert_allclose(np.asarray(Yb), np.asarray(Yb_ref),
                               rtol=2e-3, atol=2e-3)

    assert Ya.shape == (N, num_classes, input_size[0], input_size[1])
    assert Yb.shape == (N, num_classes, input_size[0], input_size[1])
    print("KERNEL_OK")
</pallas_src>

<mosaic_0001>
module attributes {stable_mosaic.version = 11 : i64} {
  func.func @kernel(%arg0: i32, %arg1: i32, %arg2: memref<1x1x18x32x256xbf16, #tpu.memory_space<vmem>>, %arg3: memref<1x9x256x128xbf16, #tpu.memory_space<vmem>>, %arg4: memref<1x1x256x128xbf16, #tpu.memory_space<vmem>>, %arg5: memref<1x2x128xf32, #tpu.memory_space<vmem>>) attributes {dimension_semantics = [#tpu.dimension_semantics<parallel>, #tpu.dimension_semantics<arbitrary>], iteration_bounds = array<i64: 2, 2>, scalar_prefetch = 0 : i64, scratch_operands = 0 : i64, tpu.core_type = #tpu.core_type<tc>, window_params = [{transform_indices = @transform_0, window_bounds = array<i64: 1, 1, 18, 32, 256>}, {transform_indices = @transform_1, window_bounds = array<i64: 1, 9, 256, 128>}, {transform_indices = @transform_2, window_bounds = array<i64: 1, 1, 256, 128>}, {transform_indices = @transform_3, window_bounds = array<i64: 1, 2, 128>}]} {
    %c0 = arith.constant 0 : index
    %c0_0 = arith.constant 0 : index
    %c0_1 = arith.constant 0 : index
    %c0_2 = arith.constant 0 : index
    %c0_3 = arith.constant 0 : index
    %0 = vector.load %arg2[%c0, %c0_0, %c0_1, %c0_2, %c0_3] : memref<1x1x18x32x256xbf16, #tpu.memory_space<vmem>>, vector<1x1x16x32x256xbf16>
    %1 = vector.shape_cast %0 : vector<1x1x16x32x256xbf16> to vector<16x32x256xbf16>
    %2 = vector.extract_strided_slice %1 {offsets = [0, 0, 0], sizes = [16, 16, 256], strides = [1, 1, 1]} : vector<16x32x256xbf16> to vector<16x16x256xbf16>
    %3 = vector.shape_cast %2 : vector<16x16x256xbf16> to vector<256x256xbf16>
    %c0_4 = arith.constant 0 : index
    %c0_5 = arith.constant 0 : index
    %c0_6 = arith.constant 0 : index
    %c0_7 = arith.constant 0 : index
    %4 = vector.load %arg3[%c0_4, %c0_5, %c0_6, %c0_7] : memref<1x9x256x128xbf16, #tpu.memory_space<vmem>>, vector<1x1x256x128xbf16>
    %5 = vector.shape_cast %4 : vector<1x1x256x128xbf16> to vector<256x128xbf16>
    %cst = arith.constant dense<0.000000e+00> : vector<256x128xf32>
    %6 = tpu.matmul %3, %5, %cst {dimension_numbers = #tpu.dot_dimension_numbers<[1], [0], [0], [1], [0, 0, 1, 1], [], []>} : vector<256x256xbf16>, vector<256x128xbf16>, vector<256x128xf32> -> vector<256x128xf32>
    %7 = vector.extract_strided_slice %1 {offsets = [0, 1, 0], sizes = [16, 16, 256], strides = [1, 1, 1]} : vector<16x32x256xbf16> to vector<16x16x256xbf16>
    %8 = vector.shape_cast %7 : vector<16x16x256xbf16> to vector<256x256xbf16>
    %c0_8 = arith.constant 0 : index
    %c1 = arith.constant 1 : index
    %c0_9 = arith.constant 0 : index
    %c0_10 = arith.constant 0 : index
    %9 = vector.load %arg3[%c0_8, %c1, %c0_9, %c0_10] : memref<1x9x256x128xbf16, #tpu.memory_space<vmem>>, vector<1x1x256x128xbf16>
    %10 = vector.shape_cast %9 : vector<1x1x256x128xbf16> to vector<256x128xbf16>
    %cst_11 = arith.constant dense<0.000000e+00> : vector<256x128xf32>
    %11 = tpu.matmul %8, %10, %cst_11 {dimension_numbers = #tpu.dot_dimension_numbers<[1], [0], [0], [1], [0, 0, 1, 1], [], []>} : vector<256x256xbf16>, vector<256x128xbf16>, vector<256x128xf32> -> vector<256x128xf32>
    %12 = arith.addf %6, %11 : vector<256x128xf32>
    %13 = vector.extract_strided_slice %1 {offsets = [0, 2, 0], sizes = [16, 16, 256], strides = [1, 1, 1]} : vector<16x32x256xbf16> to vector<16x16x256xbf16>
    %14 = vector.shape_cast %13 : vector<16x16x256xbf16> to vector<256x256xbf16>
    %c0_12 = arith.constant 0 : index
    %c2 = arith.constant 2 : index
    %c0_13 = arith.constant 0 : index
    %c0_14 = arith.constant 0 : index
    %15 = vector.load %arg3[%c0_12, %c2, %c0_13, %c0_14] : memref<1x9x256x128xbf16, #tpu.memory_space<vmem>>, vector<1x1x256x128xbf16>
    %16 = vector.shape_cast %15 : vector<1x1x256x128xbf16> to vector<256x128xbf16>
    %cst_15 = arith.constant dense<0.000000e+00> : vector<256x128xf32>
    %17 = tpu.matmul %14, %16, %cst_15 {dimension_numbers = #tpu.dot_dimension_numbers<[1], [0], [0], [1], [0, 0, 1, 1], [], []>} : vector<256x256xbf16>, vector<256x128xbf16>, vector<256x128xf32> -> vector<256x128xf32>
    %18 = arith.addf %12, %17 : vector<256x128xf32>
    %c0_16 = arith.constant 0 : index
    %c0_17 = arith.constant 0 : index
    %c1_18 = arith.constant 1 : index
    %c0_19 = arith.constant 0 : index
    %c0_20 = arith.constant 0 : index
    %19 = vector.load %arg2[%c0_16, %c0_17, %c1_18, %c0_19, %c0_20] : memref<1x1x18x32x256xbf16, #tpu.memory_space<vmem>>, vector<1x1x16x32x256xbf16>
    %20 = vector.shape_cast %19 : vector<1x1x16x32x256xbf16> to vector<16x32x256xbf16>
    %21 = vector.extract_strided_slice %20 {offsets = [0, 0, 0], sizes = [16, 16, 256], strides = [1, 1, 1]} : vector<16x32x256xbf16> to vector<16x16x256xbf16>
    %22 = vector.shape_cast %21 : vector<16x16x256xbf16> to vector<256x256xbf16>
    %c0_21 = arith.constant 0 : index
    %c3 = arith.constant 3 : index
    %c0_22 = arith.constant 0 : index
    %c0_23 = arith.constant 0 : index
    %23 = vector.load %arg3[%c0_21, %c3, %c0_22, %c0_23] : memref<1x9x256x128xbf16, #tpu.memory_space<vmem>>, vector<1x1x256x128xbf16>
    %24 = vector.shape_cast %23 : vector<1x1x256x128xbf16> to vector<256x128xbf16>
    %cst_24 = arith.constant dense<0.000000e+00> : vector<256x128xf32>
    %25 = tpu.matmul %22, %24, %cst_24 {dimension_numbers = #tpu.dot_dimension_numbers<[1], [0], [0], [1], [0, 0, 1, 1], [], []>} : vector<256x256xbf16>, vector<256x128xbf16>, vector<256x128xf32> -> vector<256x128xf32>
    %26 = arith.addf %18, %25 : vector<256x128xf32>
    %27 = vector.extract_strided_slice %20 {offsets = [0, 1, 0], sizes = [16, 16, 256], strides = [1, 1, 1]} : vector<16x32x256xbf16> to vector<16x16x256xbf16>
    %28 = vector.shape_cast %27 : vector<16x16x256xbf16> to vector<256x256xbf16>
    %c0_25 = arith.constant 0 : index
    %c4 = arith.constant 4 : index
    %c0_26 = arith.constant 0 : index
    %c0_27 = arith.constant 0 : index
    %29 = vector.load %arg3[%c0_25, %c4, %c0_26, %c0_27] : memref<1x9x256x128xbf16, #tpu.memory_space<vmem>>, vector<1x1x256x128xbf16>
    %30 = vector.shape_cast %29 : vector<1x1x256x128xbf16> to vector<256x128xbf16>
    %cst_28 = arith.constant dense<0.000000e+00> : vector<256x128xf32>
    %31 = tpu.matmul %28, %30, %cst_28 {dimension_numbers = #tpu.dot_dimension_numbers<[1], [0], [0], [1], [0, 0, 1, 1], [], []>} : vector<256x256xbf16>, vector<256x128xbf16>, vector<256x128xf32> -> vector<256x128xf32>
    %32 = arith.addf %26, %31 : vector<256x128xf32>
    %33 = vector.extract_strided_slice %20 {offsets = [0, 2, 0], sizes = [16, 16, 256], strides = [1, 1, 1]} : vector<16x32x256xbf16> to vector<16x16x256xbf16>
    %34 = vector.shape_cast %33 : vector<16x16x256xbf16> to vector<256x256xbf16>
    %c0_29 = arith.constant 0 : index
    %c5 = arith.constant 5 : index
    %c0_30 = arith.constant 0 : index
    %c0_31 = arith.constant 0 : index
    %35 = vector.load %arg3[%c0_29, %c5, %c0_30, %c0_31] : memref<1x9x256x128xbf16, #tpu.memory_space<vmem>>, vector<1x1x256x128xbf16>
    %36 = vector.shape_cast %35 : vector<1x1x256x128xbf16> to vector<256x128xbf16>
    %cst_32 = arith.constant dense<0.000000e+00> : vector<256x128xf32>
    %37 = tpu.matmul %34, %36, %cst_32 {dimension_numbers = #tpu.dot_dimension_numbers<[1], [0], [0], [1], [0, 0, 1, 1], [], []>} : vector<256x256xbf16>, vector<256x128xbf16>, vector<256x128xf32> -> vector<256x128xf32>
    %38 = arith.addf %32, %37 : vector<256x128xf32>
    %c0_33 = arith.constant 0 : index
    %c0_34 = arith.constant 0 : index
    %c2_35 = arith.constant 2 : index
    %c0_36 = arith.constant 0 : index
    %c0_37 = arith.constant 0 : index
    %39 = vector.load %arg2[%c0_33, %c0_34, %c2_35, %c0_36, %c0_37] : memref<1x1x18x32x256xbf16, #tpu.memory_space<vmem>>, vector<1x1x16x32x256xbf16>
    %40 = vector.shape_cast %39 : vector<1x1x16x32x256xbf16> to vector<16x32x256xbf16>
    %41 = vector.extract_strided_slice %40 {offsets = [0, 0, 0], sizes = [16, 16, 256], strides = [1, 1, 1]} : vector<16x32x256xbf16> to vector<16x16x256xbf16>
    %42 = vector.shape_cast %41 : vector<16x16x256xbf16> to vector<256x256xbf16>
    %c0_38 = arith.constant 0 : index
    %c6 = arith.constant 6 : index
    %c0_39 = arith.constant 0 : index
    %c0_40 = arith.constant 0 : index
    %43 = vector.load %arg3[%c0_38, %c6, %c0_39, %c0_40] : memref<1x9x256x128xbf16, #tpu.memory_space<vmem>>, vector<1x1x256x128xbf16>
    %44 = vector.shape_cast %43 : vector<1x1x256x128xbf16> to vector<256x128xbf16>
    %cst_41 = arith.constant dense<0.000000e+00> : vector<256x128xf32>
    %45 = tpu.matmul %42, %44, %cst_41 {dimension_numbers = #tpu.dot_dimension_numbers<[1], [0], [0], [1], [0, 0, 1, 1], [], []>} : vector<256x256xbf16>, vector<256x128xbf16>, vector<256x128xf32> -> vector<256x128xf32>
    %46 = arith.addf %38, %45 : vector<256x128xf32>
    %47 = vector.extract_strided_slice %40 {offsets = [0, 1, 0], sizes = [16, 16, 256], strides = [1, 1, 1]} : vector<16x32x256xbf16> to vector<16x16x256xbf16>
    %48 = vector.shape_cast %47 : vector<16x16x256xbf16> to vector<256x256xbf16>
    %c0_42 = arith.constant 0 : index
    %c7 = arith.constant 7 : index
    %c0_43 = arith.constant 0 : index
    %c0_44 = arith.constant 0 : index
    %49 = vector.load %arg3[%c0_42, %c7, %c0_43, %c0_44] : memref<1x9x256x128xbf16, #tpu.memory_space<vmem>>, vector<1x1x256x128xbf16>
    %50 = vector.shape_cast %49 : vector<1x1x256x128xbf16> to vector<256x128xbf16>
    %cst_45 = arith.constant dense<0.000000e+00> : vector<256x128xf32>
    %51 = tpu.matmul %48, %50, %cst_45 {dimension_numbers = #tpu.dot_dimension_numbers<[1], [0], [0], [1], [0, 0, 1, 1], [], []>} : vector<256x256xbf16>, vector<256x128xbf16>, vector<256x128xf32> -> vector<256x128xf32>
    %52 = arith.addf %46, %51 : vector<256x128xf32>
    %53 = vector.extract_strided_slice %40 {offsets = [0, 2, 0], sizes = [16, 16, 256], strides = [1, 1, 1]} : vector<16x32x256xbf16> to vector<16x16x256xbf16>
    %54 = vector.shape_cast %53 : vector<16x16x256xbf16> to vector<256x256xbf16>
    %c0_46 = arith.constant 0 : index
    %c8 = arith.constant 8 : index
    %c0_47 = arith.constant 0 : index
    %c0_48 = arith.constant 0 : index
    %55 = vector.load %arg3[%c0_46, %c8, %c0_47, %c0_48] : memref<1x9x256x128xbf16, #tpu.memory_space<vmem>>, vector<1x1x256x128xbf16>
    %56 = vector.shape_cast %55 : vector<1x1x256x128xbf16> to vector<256x128xbf16>
    %cst_49 = arith.constant dense<0.000000e+00> : vector<256x128xf32>
    %57 = tpu.matmul %54, %56, %cst_49 {dimension_numbers = #tpu.dot_dimension_numbers<[1], [0], [0], [1], [0, 0, 1, 1], [], []>} : vector<256x256xbf16>, vector<256x128xbf16>, vector<256x128xf32> -> vector<256x128xf32>
    %58 = arith.addf %52, %57 : vector<256x128xf32>
    %c0_i32 = arith.constant 0 : i32
    %59 = arith.cmpi eq, %arg1, %c0_i32 : i32
    %60 = arith.extui %59 : i1 to i32
    %c0_i32_50 = arith.constant 0 : i32
    %61 = arith.cmpi ne, %60, %c0_i32_50 : i32
    scf.if %61 {
      %cst_63 = arith.constant 0.000000e+00 : f32
      %78 = vector.broadcast %cst_63 : f32 to vector<1x2x128xf32>
      %c0_64 = arith.constant 0 : index
      %c0_65 = arith.constant 0 : index
      %c0_66 = arith.constant 0 : index
      %79 = vector.load %arg5[%c0_64, %c0_65, %c0_66] : memref<1x2x128xf32, #tpu.memory_space<vmem>>, vector<1x2x128xf32>
      tpu.vector_store %arg5[%c0_64, %c0_65, %c0_66], %78 {strides = array<i32>} : memref<1x2x128xf32, #tpu.memory_space<vmem>>, vector<1x2x128xf32>,
    } else {
    }
    %cst_51 = arith.constant dense<0.000000e+00> : vector<128xf32>
    %62 = vector.multi_reduction <add>, %58, %cst_51 [0] : vector<256x128xf32> to vector<128xf32>
    %63 = vector.shape_cast %62 : vector<128xf32> to vector<1x128xf32>
    %64 = arith.mulf %58, %58 : vector<256x128xf32>
    %cst_52 = arith.constant dense<0.000000e+00> : vector<128xf32>
    %65 = vector.multi_reduction <add>, %64, %cst_52 [0] : vector<256x128xf32> to vector<128xf32>
    %66 = vector.shape_cast %65 : vector<128xf32> to vector<1x128xf32>
    %c0_53 = arith.constant 0 : index
    %c0_54 = arith.constant 0 : index
    %c0_55 = arith.constant 0 : index
    %67 = vector.load %arg5[%c0_53, %c0_54, %c0_55] : memref<1x2x128xf32, #tpu.memory_space<vmem>>, vector<1x2x128xf32>
    %68 = vector.shape_cast %67 : vector<1x2x128xf32> to vector<2x128xf32>
    %69 = tpu.concatenate %63, %66 in 0 : vector<1x128xf32>, vector<1x128xf32> -> vector<2x128xf32>
    %70 = arith.addf %68, %69 : vector<2x128xf32>
    %c0_56 = arith.constant 0 : index
    %c0_57 = arith.constant 0 : index
    %c0_58 = arith.constant 0 : index
    %71 = vector.load %arg5[%c0_56, %c0_57, %c0_58] : memref<1x2x128xf32, #tpu.memory_space<vmem>>, vector<1x2x128xf32>
    %72 = vector.shape_cast %71 : vector<1x2x128xf32> to vector<2x128xf32>
    %73 = vector.shape_cast %70 : vector<2x128xf32> to vector<1x2x128xf32>
    tpu.vector_store %arg5[%c0_56, %c0_57, %c0_58], %73 {strides = array<i32>} : memref<1x2x128xf32, #tpu.memory_space<vmem>>, vector<1x2x128xf32>,
    %74 = arith.truncf %58 : vector<256x128xf32> to vector<256x128xbf16>
    %c0_59 = arith.constant 0 : index
    %c0_60 = arith.constant 0 : index
    %c0_61 = arith.constant 0 : index
    %c0_62 = arith.constant 0 : index
    %75 = vector.load %arg4[%c0_59, %c0_60, %c0_61, %c0_62] : memref<1x1x256x128xbf16, #tpu.memory_space<vmem>>, vector<1x1x256x128xbf16>
    %76 = vector.shape_cast %75 : vector<1x1x256x128xbf16> to vector<256x128xbf16>
    %77 = vector.shape_cast %74 : vector<256x128xbf16> to vector<1x1x256x128xbf16>
    tpu.vector_store %arg4[%c0_59, %c0_60, %c0_61, %c0_62], %77 {strides = array<i32>} : memref<1x1x256x128xbf16, #tpu.memory_space<vmem>>, vector<1x1x256x128xbf16>,
    return
  }
  func.func @transform_0(%arg0: i32, %arg1: i32) -> (i32, i32, i32, i32, i32) {
    %c0_i32 = arith.constant 0 : i32
    %c0_i32_0 = arith.constant 0 : i32
    %c0_i32_1 = arith.constant 0 : i32
    %c0_i32_2 = arith.constant 0 : i32
    return %arg0, %arg1, %c0_i32, %c0_i32_0, %c0_i32_1 : i32, i32, i32, i32, i32
  }
  func.func @transform_1(%arg0: i32, %arg1: i32) -> (i32, i32, i32, i32) {
    %c0_i32 = arith.constant 0 : i32
    %c0_i32_0 = arith.constant 0 : i32
    %c0_i32_1 = arith.constant 0 : i32
    %c0_i32_2 = arith.constant 0 : i32
    return %arg0, %c0_i32, %c0_i32_0, %c0_i32_1 : i32, i32, i32, i32
  }
  func.func @transform_2(%arg0: i32, %arg1: i32) -> (i32, i32, i32, i32) {
    %c0_i32 = arith.constant 0 : i32
    %c0_i32_0 = arith.constant 0 : i32
    %c0_i32_1 = arith.constant 0 : i32
    return %arg0, %arg1, %c0_i32, %c0_i32_0 : i32, i32, i32, i32
  }
  func.func @transform_3(%arg0: i32, %arg1: i32) -> (i32, i32, i32) {
    %c0_i32 = arith.constant 0 : i32
    %c0_i32_0 = arith.constant 0 : i32
    %c0_i32_1 = arith.constant 0 : i32
    return %arg0, %c0_i32, %c0_i32_0 : i32, i32, i32
  }
}

module attributes {stable_mosaic.version = 11 : i64} {
  func.func @kernel(%arg0: i32, %arg1: i32, %arg2: memref<1x1x256x128xbf16, #tpu.memory_space<vmem>>, %arg3: memref<1x1x128xf32, #tpu.memory_space<vmem>>, %arg4: memref<1x1x128xf32, #tpu.memory_space<vmem>>, %arg5: memref<1x128x128xf32, #tpu.memory_space<vmem>>, %arg6: memref<2x3xf32, #tpu.memory_space<smem>>, %arg7: memref<128x16xf32, #tpu.memory_space<vmem>>, %arg8: memref<16x128xf32, #tpu.memory_space<vmem>>, %arg9: memref<1x1x3x128x128xf32, #tpu.memory_space<vmem>>) attributes {dimension_semantics = [#tpu.dimension_semantics<parallel>, #tpu.dimension_semantics<parallel>], iteration_bounds = array<i64: 2, 2>, scalar_prefetch = 0 : i64, scratch_operands = 0 : i64, tpu.core_type = #tpu.core_type<tc>, window_params = [{transform_indices = @transform_0, window_bounds = array<i64: 1, 1, 256, 128>}, {transform_indices = @transform_1, window_bounds = array<i64: 1, 1, 128>}, {transform_indices = @transform_2, window_bounds = array<i64: 1, 1, 128>}, {transform_indices = @transform_3, window_bounds = array<i64: 1, 128, 128>}, {transform_indices = @transform_4, window_bounds = array<i64: 2, 3>}, {pipeline_mode = #tpu.pipeline_mode<synchronous>, transform_indices = @transform_5, window_bounds = array<i64: 128, 16>}, {pipeline_mode = #tpu.pipeline_mode<synchronous>, transform_indices = @transform_6, window_bounds = array<i64: 16, 128>}, {transform_indices = @transform_7, window_bounds = array<i64: 1, 1, 3, 128, 128>}]} {
    %c0 = arith.constant 0 : index
    %c0_0 = arith.constant 0 : index
    %c0_1 = arith.constant 0 : index
    %c0_2 = arith.constant 0 : index
    %0 = vector.load %arg2[%c0, %c0_0, %c0_1, %c0_2] : memref<1x1x256x128xbf16, #tpu.memory_space<vmem>>, vector<1x1x256x128xbf16>
    %1 = vector.shape_cast %0 : vector<1x1x256x128xbf16> to vector<256x128xbf16>
    %2 = arith.extf %1 : vector<256x128xbf16> to vector<256x128xf32>
    %c0_3 = arith.constant 0 : index
    %c0_4 = arith.constant 0 : index
    %c0_5 = arith.constant 0 : index
    %3 = vector.load %arg3[%c0_3, %c0_4, %c0_5] : memref<1x1x128xf32, #tpu.memory_space<vmem>>, vector<1x1x128xf32>
    %4 = vector.shape_cast %3 : vector<1x1x128xf32> to vector<128xf32>
    %5 = vector.shape_cast %4 : vector<128xf32> to vector<1x128xf32>
    %6 = vector.broadcast %5 : vector<1x128xf32> to vector<256x128xf32>
    %7 = arith.mulf %2, %6 : vector<256x128xf32>
    %c0_6 = arith.constant 0 : index
    %c0_7 = arith.constant 0 : index
    %c0_8 = arith.constant 0 : index
    %8 = vector.load %arg4[%c0_6, %c0_7, %c0_8] : memref<1x1x128xf32, #tpu.memory_space<vmem>>, vector<1x1x128xf32>
    %9 = vector.shape_cast %8 : vector<1x1x128xf32> to vector<128xf32>
    %10 = vector.shape_cast %9 : vector<128xf32> to vector<1x128xf32>
    %11 = vector.broadcast %10 : vector<1x128xf32> to vector<256x128xf32>
    %12 = arith.addf %7, %11 : vector<256x128xf32>
    %cst = arith.constant 0.000000e+00 : f32
    %13 = vector.broadcast %cst : f32 to vector<256x128xf32>
    %14 = arith.maximumf %12, %13 : vector<256x128xf32>
    %c0_9 = arith.constant 0 : index
    %c0_10 = arith.constant 0 : index
    %c0_11 = arith.constant 0 : index
    %15 = vector.load %arg5[%c0_9, %c0_10, %c0_11] : memref<1x128x128xf32, #tpu.memory_space<vmem>>, vector<1x128x128xf32>
    %16 = vector.shape_cast %15 : vector<1x128x128xf32> to vector<128x128xf32>
    %cst_12 = arith.constant dense<0.000000e+00> : vector<256x128xf32>
    %17 = tpu.matmul %14, %16, %cst_12 {dimension_numbers = #tpu.dot_dimension_numbers<[1], [0], [0], [1], [0, 0, 1, 1], [], []>} : vector<256x128xf32>, vector<128x128xf32>, vector<256x128xf32> -> vector<256x128xf32>
    %18 = vector.shape_cast %17 : vector<256x128xf32> to vector<16x16x128xf32>
    %c0_13 = arith.constant 0 : index
    %c0_14 = arith.constant 0 : index
    %19 = vector.load %arg7[%c0_13, %c0_14] : memref<128x16xf32, #tpu.memory_space<vmem>>, vector<128x16xf32>
    %c0_15 = arith.constant 0 : index
    %c0_16 = arith.constant 0 : index
    %20 = vector.load %arg8[%c0_15, %c0_16] : memref<16x128xf32, #tpu.memory_space<vmem>>, vector<16x128xf32>
    %21 = vector.extract_strided_slice %18 {offsets = [0, 0, 0], sizes = [16, 16, 1], strides = [1, 1, 1]} : vector<16x16x128xf32> to vector<16x16x1xf32>
    %22 = vector.shape_cast %21 : vector<16x16x1xf32> to vector<16x16xf32>
    %23 = arith.index_cast %arg0 : i32 to index
    %c0_17 = arith.constant 0 : index
    %24 = memref.load %arg6[%23, %c0_17] : memref<2x3xf32, #tpu.memory_space<smem>>
    %25 = vector.broadcast %24 : f32 to vector<16x16xf32>
    %26 = arith.addf %22, %25 : vector<16x16xf32>
    %cst_18 = arith.constant dense<0.000000e+00> : vector<16x128xf32>
    %27 = tpu.matmul %26, %20, %cst_18 {dimension_numbers = #tpu.dot_dimension_numbers<[1], [0], [0], [1], [0, 0, 1, 1], [], []>} : vector<16x16xf32>, vector<16x128xf32>, vector<16x128xf32> -> vector<16x128xf32>
    %cst_19 = arith.constant dense<0.000000e+00> : vector<128x128xf32>
    %28 = tpu.matmul %19, %27, %cst_19 {dimension_numbers = #tpu.dot_dimension_numbers<[1], [0], [0], [1], [0, 0, 1, 1], [], []>} : vector<128x16xf32>, vector<16x128xf32>, vector<128x128xf32> -> vector<128x128xf32>
    %cst_20 = arith.constant 0.000000e+00 : f32
    %29 = vector.broadcast %cst_20 : f32 to vector<128x128xf32>
    %30 = arith.subf %29, %28 : vector<128x128xf32>
    %31 = math.exp %30 : vector<128x128xf32>
    %cst_21 = arith.constant 1.000000e+00 : f32
    %32 = vector.broadcast %cst_21 : f32 to vector<128x128xf32>
    %33 = arith.addf %32, %31 : vector<128x128xf32>
    %34 = tpu.reciprocal %33 {approx = true} : vector<128x128xf32> -> vector<128x128xf32>
    %c0_22 = arith.constant 0 : index
    %c0_23 = arith.constant 0 : index
    %c0_24 = arith.constant 0 : index
    %c0_25 = arith.constant 0 : index
    %c0_26 = arith.constant 0 : index
    %35 = vector.load %arg9[%c0_22, %c0_23, %c0_24, %c0_25, %c0_26] : memref<1x1x3x128x128xf32, #tpu.memory_space<vmem>>, vector<1x1x1x128x128xf32>
    %36 = vector.shape_cast %35 : vector<1x1x1x128x128xf32> to vector<128x128xf32>
    %37 = vector.shape_cast %34 : vector<128x128xf32> to vector<1x1x1x128x128xf32>
    tpu.vector_store %arg9[%c0_22, %c0_23, %c0_24, %c0_25, %c0_26], %37 {strides = array<i32>} : memref<1x1x3x128x128xf32, #tpu.memory_space<vmem>>, vector<1x1x1x128x128xf32>,
    %38 = vector.extract_strided_slice %18 {offsets = [0, 0, 1], sizes = [16, 16, 1], strides = [1, 1, 1]} : vector<16x16x128xf32> to vector<16x16x1xf32>
    %39 = vector.shape_cast %38 : vector<16x16x1xf32> to vector<16x16xf32>
    %40 = arith.index_cast %arg0 : i32 to index
    %c1 = arith.constant 1 : index
    %41 = memref.load %arg6[%40, %c1] : memref<2x3xf32, #tpu.memory_space<smem>>
    %42 = vector.broadcast %41 : f32 to vector<16x16xf32>
    %43 = arith.addf %39, %42 : vector<16x16xf32>
    %cst_27 = arith.constant dense<0.000000e+00> : vector<16x128xf32>
    %44 = tpu.matmul %43, %20, %cst_27 {dimension_numbers = #tpu.dot_dimension_numbers<[1], [0], [0], [1], [0, 0, 1, 1], [], []>} : vector<16x16xf32>, vector<16x128xf32>, vector<16x128xf32> -> vector<16x128xf32>
    %cst_28 = arith.constant dense<0.000000e+00> : vector<128x128xf32>
    %45 = tpu.matmul %19, %44, %cst_28 {dimension_numbers = #tpu.dot_dimension_numbers<[1], [0], [0], [1], [0, 0, 1, 1], [], []>} : vector<128x16xf32>, vector<16x128xf32>, vector<128x128xf32> -> vector<128x128xf32>
    %cst_29 = arith.constant 0.000000e+00 : f32
    %46 = vector.broadcast %cst_29 : f32 to vector<128x128xf32>
    %47 = arith.subf %46, %45 : vector<128x128xf32>
    %48 = math.exp %47 : vector<128x128xf32>
    %cst_30 = arith.constant 1.000000e+00 : f32
    %49 = vector.broadcast %cst_30 : f32 to vector<128x128xf32>
    %50 = arith.addf %49, %48 : vector<128x128xf32>
    %51 = tpu.reciprocal %50 {approx = true} : vector<128x128xf32> -> vector<128x128xf32>
    %c0_31 = arith.constant 0 : index
    %c0_32 = arith.constant 0 : index
    %c1_33 = arith.constant 1 : index
    %c0_34 = arith.constant 0 : index
    %c0_35 = arith.constant 0 : index
    %52 = vector.load %arg9[%c0_31, %c0_32, %c1_33, %c0_34, %c0_35] : memref<1x1x3x128x128xf32, #tpu.memory_space<vmem>>, vector<1x1x1x128x128xf32>
    %53 = vector.shape_cast %52 : vector<1x1x1x128x128xf32> to vector<128x128xf32>
    %54 = vector.shape_cast %51 : vector<128x128xf32> to vector<1x1x1x128x128xf32>
    tpu.vector_store %arg9[%c0_31, %c0_32, %c1_33, %c0_34, %c0_35], %54 {strides = array<i32>} : memref<1x1x3x128x128xf32, #tpu.memory_space<vmem>>, vector<1x1x1x128x128xf32>,
    %55 = vector.extract_strided_slice %18 {offsets = [0, 0, 2], sizes = [16, 16, 1], strides = [1, 1, 1]} : vector<16x16x128xf32> to vector<16x16x1xf32>
    %56 = vector.shape_cast %55 : vector<16x16x1xf32> to vector<16x16xf32>
    %57 = arith.index_cast %arg0 : i32 to index
    %c2 = arith.constant 2 : index
    %58 = memref.load %arg6[%57, %c2] : memref<2x3xf32, #tpu.memory_space<smem>>
    %59 = vector.broadcast %58 : f32 to vector<16x16xf32>
    %60 = arith.addf %56, %59 : vector<16x16xf32>
    %cst_36 = arith.constant dense<0.000000e+00> : vector<16x128xf32>
    %61 = tpu.matmul %60, %20, %cst_36 {dimension_numbers = #tpu.dot_dimension_numbers<[1], [0], [0], [1], [0, 0, 1, 1], [], []>} : vector<16x16xf32>, vector<16x128xf32>, vector<16x128xf32> -> vector<16x128xf32>
    %cst_37 = arith.constant dense<0.000000e+00> : vector<128x128xf32>
    %62 = tpu.matmul %19, %61, %cst_37 {dimension_numbers = #tpu.dot_dimension_numbers<[1], [0], [0], [1], [0, 0, 1, 1], [], []>} : vector<128x16xf32>, vector<16x128xf32>, vector<128x128xf32> -> vector<128x128xf32>
    %cst_38 = arith.constant 0.000000e+00 : f32
    %63 = vector.broadcast %cst_38 : f32 to vector<128x128xf32>
    %64 = arith.subf %63, %62 : vector<128x128xf32>
    %65 = math.exp %64 : vector<128x128xf32>
    %cst_39 = arith.constant 1.000000e+00 : f32
    %66 = vector.broadcast %cst_39 : f32 to vector<128x128xf32>
    %67 = arith.addf %66, %65 : vector<128x128xf32>
    %68 = tpu.reciprocal %67 {approx = true} : vector<128x128xf32> -> vector<128x128xf32>
    %c0_40 = arith.constant 0 : index
    %c0_41 = arith.constant 0 : index
    %c2_42 = arith.constant 2 : index
    %c0_43 = arith.constant 0 : index
    %c0_44 = arith.constant 0 : index
    %69 = vector.load %arg9[%c0_40, %c0_41, %c2_42, %c0_43, %c0_44] : memref<1x1x3x128x128xf32, #tpu.memory_space<vmem>>, vector<1x1x1x128x128xf32>
    %70 = vector.shape_cast %69 : vector<1x1x1x128x128xf32> to vector<128x128xf32>
    %71 = vector.shape_cast %68 : vector<128x128xf32> to vector<1x1x1x128x128xf32>
    tpu.vector_store %arg9[%c0_40, %c0_41, %c2_42, %c0_43, %c0_44], %71 {strides = array<i32>} : memref<1x1x3x128x128xf32, #tpu.memory_space<vmem>>, vector<1x1x1x128x128xf32>,
    return
  }
  func.func @transform_0(%arg0: i32, %arg1: i32) -> (i32, i32, i32, i32) {
    %c0_i32 = arith.constant 0 : i32
    %c0_i32_0 = arith.constant 0 : i32
    %c0_i32_1 = arith.constant 0 : i32
    return %arg0, %arg1, %c0_i32, %c0_i32_0 : i32, i32, i32, i32
  }
  func.func @transform_1(%arg0: i32, %arg1: i32) -> (i32, i32, i32) {
    %c0_i32 = arith.constant 0 : i32
    %c0_i32_0 = arith.constant 0 : i32
    %c0_i32_1 = arith.constant 0 : i32
    return %arg0, %c0_i32, %c0_i32_0 : i32, i32, i32
  }
  func.func @transform_2(%arg0: i32, %arg1: i32) -> (i32, i32, i32) {
    %c0_i32 = arith.constant 0 : i32
    %c0_i32_0 = arith.constant 0 : i32
    %c0_i32_1 = arith.constant 0 : i32
    return %arg0, %c0_i32, %c0_i32_0 : i32, i32, i32
  }
  func.func @transform_3(%arg0: i32, %arg1: i32) -> (i32, i32, i32) {
    %c0_i32 = arith.constant 0 : i32
    %c0_i32_0 = arith.constant 0 : i32
    %c0_i32_1 = arith.constant 0 : i32
    return %arg0, %c0_i32, %c0_i32_0 : i32, i32, i32
  }
  func.func @transform_4(%arg0: i32, %arg1: i32) -> (i32, i32) {
    %c0_i32 = arith.constant 0 : i32
    %c0_i32_0 = arith.constant 0 : i32
    %c0_i32_1 = arith.constant 0 : i32
    return %c0_i32, %c0_i32_0 : i32, i32
  }
  func.func @transform_5(%arg0: i32, %arg1: i32) -> (i32, i32) {
    %c0_i32 = arith.constant 0 : i32
    %c0_i32_0 = arith.constant 0 : i32
    %c0_i32_1 = arith.constant 0 : i32
    return %c0_i32, %c0_i32_0 : i32, i32
  }
  func.func @transform_6(%arg0: i32, %arg1: i32) -> (i32, i32) {
    %c0_i32 = arith.constant 0 : i32
    %c0_i32_0 = arith.constant 0 : i32
    %c0_i32_1 = arith.constant 0 : i32
    return %c0_i32, %c0_i32_0 : i32, i32
  }
  func.func @transform_7(%arg0: i32, %arg1: i32) -> (i32, i32, i32, i32, i32) {
    %c0_i32 = arith.constant 0 : i32
    %c0_i32_0 = arith.constant 0 : i32
    %c0_i32_1 = arith.constant 0 : i32
    %c0_i32_2 = arith.constant 0 : i32
    return %arg0, %arg1, %c0_i32, %c0_i32_0, %c0_i32_1 : i32, i32, i32, i32, i32
  }
}

</mosaic_0001>

<bundles_post_ra>
// kernel: segnet_forward.3
= control target key start
LH: loop header
LB: loop body
LE: loop exit
PB: predicated region body
PF: predicated region fallthrough
CT: control target
= control target key end

     0   :  { %12 = vsyncpa [#allocation3], 0  ;;  %s3831_s24 = smov 0   ;;  %s3833_s25 = smov 0   ;;  %s4923_s0 = inlined_call_operand.vmem [shape: bf16[2,2,256,128], index: 0, kind: input, shape index: {}]   ;;  %s4924_s1 = inlined_call_operand.vmem [shape: f32[2,1,128], index: 1, kind: input, shape index: {}]   ;;  %s4925_s2 = inlined_call_operand.vmem [shape: f32[2,1,128], index: 2, kind: input, shape index: {}]   ;;  %s4926_s3 = inlined_call_operand.vmem [shape: f32[2,128,128], index: 3, kind: input, shape index: {}]   ;;  %s4927_s4 = inlined_call_operand.vmem [shape: f32[2,3], index: 4, kind: input, shape index: {}]   ;;  %s4928_s5 = inlined_call_operand.vmem [shape: f32[128,16], index: 5, kind: input, shape index: {}]   ;;  %s4929_s6 = inlined_call_operand.vmem [shape: f32[16,128], index: 6, kind: input, shape index: {}]   ;;  %s4930_s7 = inlined_call_operand.vmem [shape: f32[2,2,3,128,128], index: 7, kind: output, shape index: {}]  }
   0x1   :  { %s3835_s26 = smov 0   ;;  %s3837_s27 = smov 0  }
   0x2   :  { %s3839_s28 = smov 0  }
   0x3 LB: > { %s2933_s29 = sadd.s32 4294967295, %s3785_s28   ;;  %s27_s30 = sadd.s32 1, %s3777_s26  ;;  %s3785_s28 = sphi %s3839_s28, %s18_s28   ;;  %s3781_s27 = sphi %s3837_s27, %s4958_s27   ;;  %s3777_s26 = sphi %s3835_s26, %s4957_s26   ;;  %s3773_s25 = sphi %s3833_s25, %s4956_s25   ;;  %s3769_s24 = sphi %s3831_s24, %s4955_s24  }
   0x4   : > { %p28_p0 = scmp.ge.s32.totalorder %s27_s30, 2  ;;  %s30_s8 = sadd.s32 1, %s3781_s27 }
   0x5   : > { %p2935_p1 = scmp.ge.s32.totalorder %s3785_s28, 1  ;;  %p232_p2 = scmp.lt.s32.totalorder %s3785_s28, 5 }
   0x6   : > { %s4960_s30 = smov (%p28_p0, %s27_s30), 0  ;;  %s4962_s8 = smov (!%p28_p0, %s30_s8), %s3781_s27 }
   0x7   : > { %p3864_p3 = pnand %p2935_p1, %p232_p2  ;;  %p32_p4 = scmp.ge.s32.totalorder %s4962_s8, 2 }
   0x8   : > { %p3868_p5 = scmp.eq.s32.totalorder %s2933_s29, 0  ;;  %s245_s13 = sshll.u32 %s4927_s4, 4  ;;  %s246_s13 = int_to_ptr.vmem [resolvable:$true] %s245_s13 }
   0x9   : > { %p3480_p6 = pneg %p3864_p3  ;;  %s4964_s8 = smov (%p32_p4, %s4962_s8), 0 }
   0xa   : > { %s3728_s14 = scalar_lea.vmem %s246_s13, 32  ;;  %p3736_p12 = scmp.lt.s32.totalorder %s246_s13, %s246_s13 }
   0xb   : > { %p3481_p7 = pnand %p3868_p5, %p3480_p6  ;;  %p3729_p8 = scmp.ne.s32.totalorder %s246_s13, %s3728_s14 }
   0xc   : > { %p3737_p13 = scmp.lt.s32.totalorder %s3728_s14, %s3728_s14 }
   0xd   : > { %p3730_p9 = pneg %p3481_p7 }
   0xe   : > { %p3738_p0 = por %p3737_p13, %p3736_p12 }
   0xf   : > { %p3731_p10 = pnand %p3730_p9, %p3729_p8 }
  0x11   : > { %p3732_p11 = pneg %p3731_p10 }
  0x13   : > { %p3739_p1 = pnand %p3738_p0, %p3732_p11 }
  0x15   : > { %3742 = shalt.err (!%p3739_p1)
}
  0x16   : > { %s3787_s15 = smov [#allocation2]   ;;  %296 = sbr.rel (%p3864_p3) target bundleno = 1468 (0x5bc), region = 48 }
  0x17   : > { %3483 = dma.vmem_to_smem (!%p3481_p7), %s246_s13, 32, %s3787_s15, [#allocation3]  }
  0x1d   : > { %3764 = dma.done.wait (%p3868_p5), [#allocation3], 32  }
  0x1e   : > { %3766 = vsyncadd (%p3868_p5), [#allocation3], 4294967264 }
  0x1f   : > { %302 = sfence }
  0x20   : > { %p348_p2 = scmp.lt.s32.totalorder %s3773_s25, 1  ;;  %p350_p4 = scmp.lt.s32.totalorder %s3769_s24, 1  ;;  %vm984_vm0 = vcmask 130112   ;;  %vm1121_vm1 = vcmask 1041409   ;;  %vm1123_vm2 = vcmask 1042434   ;;  %vm1125_vm3 = vcmask 1043459  }
  0x21   : > { %vm1127_vm4 = vcmask 1044484   ;;  %vm1129_vm5 = vcmask 1045509   ;;  %vm1131_vm6 = vcmask 1046534   ;;  %vm1133_vm7 = vcmask 1047559  }
  0x22   : > { %s3890_s16 = scalar_select %p348_p2, %s3773_s25, 1  ;;  %vm1142_vm8 = vcmask 130048  }
  0x23   : > { %s4966_s24 = smov (!%p350_p4, %s3769_s24), 1 }
  0x24   : > { %s3037_s17 = sshll.u32 %s3890_s16, 7  ;;  %s2940_s18 = sshll.u32 %s4966_s24, 5 }
  0x25   : > { %s3897_s21 = scalar_lea.vmem %s4926_s3, %s3037_s17  ;;  %s2941_s22 = sshll.u32 %s3890_s16, 6 }
  0x26   : > { %v551_v0 = vld [vmem:[%s3897_s21] sm:$0xff]  ;;  %v552_v1 = vld [vmem:[%s3897_s21 + $0x8] sm:$0xff]  ;;  %v553_v2 = vld [vmem:[%s3897_s21 + $0x10] sm:$0xff]  ;;  %s354_s23 = sadd.s32 %s2941_s22, %s2940_s18  ;;  %s3474_s29 = smul.u32 48, %s4966_s24 }
  0x27   : > { %v3416_v3 = vpack.c.bf16 %v552_v1, %v551_v0  ;;  %v554_v4 = vld [vmem:[%s3897_s21 + $0x18] sm:$0xff]  ;;  %s2942_s9 = sshll.u32 %s354_s23, 2  ;;  %s3475_s10 = smul.u32 96, %s3890_s16  ;;  %v555_v6 = vld [vmem:[%s3897_s21 + $0x20] sm:$0xff]  ;;  %v556_v7 = vld [vmem:[%s3897_s21 + $0x28] sm:$0xff] }
  0x28   : > { %s359_s13 = scalar_lea.vmem %s4924_s1, %s3890_s16  ;;  %v3420_v5 = vpack.c.bf16 %v554_v4, %v553_v2  ;;  %s3914_s17 = scalar_lea.vmem %s4923_s0, %s2942_s9  ;;  %v3424_v9 = vpack.c.bf16 %v556_v7, %v555_v6  ;;  %v557_v11 = vld [vmem:[%s3897_s21 + $0x30] sm:$0xff]  ;;  %v558_v12 = vld [vmem:[%s3897_s21 + $0x38] sm:$0xff]  ;;  %v559_v17 = vld [vmem:[%s3897_s21 + $0x40] sm:$0xff] }
  0x29   : > { %3417 = vmatprep.subr.bf16.mxu0 %v3416_v3  ;;  %s3916_s24 = sadd.s32 %s3475_s10, %s3474_s29  ;;  %s362_s20 = scalar_lea.vmem %s4925_s2, %s3890_s16  ;;  %v3922_v8 = vld [vmem:[%s359_s13] ss:$0 sm:$0xff]  ;;  %v3428_v16 = vpack.c.bf16 %v558_v12, %v557_v11  ;;  %v560_v18 = vld [vmem:[%s3897_s21 + $0x48] sm:$0xff]  ;;  %v561_v22 = vld [vmem:[%s3897_s21 + $0x50] sm:$0xff] }
  0x2a   : > { %3419 = vmatpush3.bf16.msra.mxu0 %v3416_v3  ;;  %v3039_v10 = vld [vmem:[%s3914_s17] sm:$0xff]   ;;  %v3432_v21 = vpack.c.bf16 %v560_v18, %v559_v17  ;;  %v562_v23 = vld [vmem:[%s3897_s21 + $0x58] sm:$0xff]  ;;  %v3102_v24 = vld [vmem:[%s3914_s17 + $0x8] sm:$0xff]   ;;  %s2948_s16 = sshll.u32 %s3773_s25, 7  ;;  %s2945_s11 = sshll.u32 %s3916_s24, 3 }
  0x2b   : > { %3421 = vmatprep.subr.bf16.mxu0 %v3420_v5  ;;  %v3040_v13 = vunpack.c.l.bf16 %v3039_v10  ;;  %v3927_v14 = vld [vmem:[%s362_s20] ss:$0 sm:$0xff]  ;;  %v3436_v25 = vpack.c.bf16 %v562_v23, %v561_v22  ;;  %v3041_v26 = vunpack.c.h.bf16 %v3039_v10  ;;  %v3044_v27 = vunpack.c.l.bf16 %v3102_v24  ;;  %v3103_v29 = vld [vmem:[%s3914_s17 + $0x10] sm:$0xff]   ;;  %v3104_v30 = vld [vmem:[%s3914_s17 + $0x18] sm:$0xff]   ;;  %s2153_s22 = sadd.s32 2, %s2948_s16  ;;  %s811_s9 = sld [smem:[#allocation2 + %s2948_s16]] }
  0x2c   : > { %v3045_v28 = vunpack.c.h.bf16 %v3102_v24  ;;  %v563_v31 = vld [vmem:[%s3897_s21 + $0x60] sm:$0xff]  ;;  %v564_v32 = vld [vmem:[%s3897_s21 + $0x68] sm:$0xff]  ;;  %v3048_v33 = vunpack.c.l.bf16 %v3103_v29  ;;  %v3049_v34 = vunpack.c.h.bf16 %v3103_v29  ;;  %v3052_v35 = vunpack.c.l.bf16 %v3104_v30  ;;  %v3944_v40 = vld [vmem:[%s3914_s17 + $0x58] sm:$0xff]   ;;  %s2154_s29 = sld [smem:[#allocation2 + %s2153_s22]]  ;;  %s4690_s14 = scalar_lea.vmem %s4930_s7, %s2945_s11 }
  0x2d   : > { %v448_v15 = vmul.f32 %v3040_v13, %v3922_v8  ;;  %v3440_v36 = vpack.c.bf16 %v564_v32, %v563_v31  ;;  %v449_v37 = vmul.f32 %v3041_v26, %v3922_v8  ;;  %v450_v38 = vmul.f32 %v3044_v27, %v3922_v8  ;;  %v565_v41 = vld [vmem:[%s3897_s21 + $0x70] sm:$0xff]  ;;  %v566_v42 = vld [vmem:[%s3897_s21 + $0x78] sm:$0xff]  ;;  %v3105_v52 = vld [vmem:[%s3914_s17 + $0x20] sm:$0xff]   ;;  %s1511_s21 = sadd.s32 1, %s2948_s16 }
  0x2e   : > { %3423 = vmatpush3.bf16.msra.mxu0 %v3420_v5  ;;  %v451_v39 = vmul.f32 %v3045_v28, %v3922_v8  ;;  %v3053_v43 = vunpack.c.h.bf16 %v3104_v30  ;;  %v452_v44 = vmul.f32 %v3048_v33, %v3922_v8  ;;  %v453_v45 = vmul.f32 %v3049_v34, %v3922_v8  ;;  %v3113_v55 = vld [vmem:[%s3914_s17 + $0x60] sm:$0xff]   ;;  %v3114_v56 = vld [vmem:[%s3914_s17 + $0x68] sm:$0xff]   ;;  %v3115_v61 = vld [vmem:[%s3914_s17 + $0x70] sm:$0xff]   ;;  %s1512_s23 = sld [smem:[#allocation2 + %s1511_s21]] }
  0x2f   : > { %3425 = vmatprep.subr.bf16.mxu0 %v3424_v9  ;;  %v487_v19 = vadd.f32 %v3927_v14, %v448_v15  ;;  %v454_v46 = vmul.f32 %v3052_v35, %v3922_v8  ;;  %v3085_v47 = vunpack.c.h.bf16 %v3944_v40  ;;  %v3444_v48 = vpack.c.bf16 %v566_v42, %v565_v41  ;;  %v3116_v62 = vld [vmem:[%s3914_s17 + $0x78] sm:$0xff]   ;;  %v3106_v17 = vld [vmem:[%s3914_s17 + $0x28] sm:$0xff]   ;;  %v3107_v34 = vld [vmem:[%s3914_s17 + $0x30] sm:$0xff]  }
  0x30   : > { %v488_v49 = vadd.f32 %v3927_v14, %v449_v37  ;;  %v489_v50 = vadd.f32 %v3927_v14, %v450_v38  ;;  %v490_v51 = vadd.f32 %v3927_v14, %v451_v39  ;;  %v455_v54 = vmul.f32 %v3053_v43, %v3922_v8 }
  0x31   : > { %v519_v20 = vmax.f32 %v487_v19, 0.0  ;;  %v471_v53 = vmul.f32 %v3085_v47, %v3922_v8  ;;  %v491_v57 = vadd.f32 %v3927_v14, %v452_v44  ;;  %v492_v58 = vadd.f32 %v3927_v14, %v453_v45  ;;  %v3108_v44 = vld [vmem:[%s3914_s17 + $0x38] sm:$0xff]  }
  0x32   : > { %3427 = vmatpush3.bf16.msra.mxu0 %v3424_v9  ;;  %v493_v59 = vadd.f32 %v3927_v14, %v454_v46  ;;  %v520_v63 = vmax.f32 %v488_v49, 0.0  ;;  %v521_v0 = vmax.f32 %v489_v50, 0.0  ;;  %v522_v1 = vmax.f32 %v490_v51, 0.0 }
  0x33   : > { %3429 = vmatprep.subr.bf16.mxu0 %v3428_v16  ;;  %3263 = vmatprep.mubr.f32.mxu0 %v519_v20  ;;  %v3964_v60 = vadd.f32 %v3927_v14, %v471_v53  ;;  %v3056_v2 = vunpack.c.l.bf16 %v3105_v52  ;;  %v3057_v3 = vunpack.c.h.bf16 %v3105_v52  ;;  %v3088_v4 = vunpack.c.l.bf16 %v3113_v55  ;;  %v3109_v53 = vld [vmem:[%s3914_s17 + $0x40] sm:$0xff]  }
  0x34   : > { %v3089_v5 = vunpack.c.h.bf16 %v3113_v55  ;;  %v3092_v6 = vunpack.c.l.bf16 %v3114_v56  ;;  %v3093_v7 = vunpack.c.h.bf16 %v3114_v56  ;;  %v3096_v9 = vunpack.c.l.bf16 %v3115_v61 }
  0x35   : > { %v3097_v10 = vunpack.c.h.bf16 %v3115_v61  ;;  %v3100_v11 = vunpack.c.l.bf16 %v3116_v62  ;;  %v472_v12 = vmul.f32 %v3088_v4, %v3922_v8  ;;  %v523_v30 = vmax.f32 %v491_v57, 0.0 }
  0x36   : > { %3431 = vmatpush3.bf16.msra.mxu0 %v3428_v16  ;;  %v473_v13 = vmul.f32 %v3089_v5, %v3922_v8  ;;  %v474_v15 = vmul.f32 %v3092_v6, %v3922_v8  ;;  %v3101_v16 = vunpack.c.h.bf16 %v3116_v62  ;;  %v475_v18 = vmul.f32 %v3093_v7, %v3922_v8 }
  0x37   : > { %3433 = vmatprep.subr.bf16.mxu0 %v3432_v21  ;;  %v476_v19 = vmul.f32 %v3096_v9, %v3922_v8  ;;  %v477_v20 = vmul.f32 %v3097_v10, %v3922_v8  ;;  %v3977_v22 = vadd.f32 %v3927_v14, %v472_v12  ;;  %v456_v31 = vmul.f32 %v3056_v2, %v3922_v8  ;;  %v3111_v9 = vld [vmem:[%s3914_s17 + $0x50] sm:$0xff]  }
  0x38   : > { %v3980_v23 = vadd.f32 %v3927_v14, %v473_v13  ;;  %v3983_v24 = vadd.f32 %v3927_v14, %v474_v15  ;;  %v3987_v26 = vadd.f32 %v3927_v14, %v475_v18  ;;  %v3060_v32 = vunpack.c.l.bf16 %v3106_v17 }
  0x39   : > { %v3990_v27 = vadd.f32 %v3927_v14, %v476_v19  ;;  %v3993_v28 = vadd.f32 %v3927_v14, %v477_v20  ;;  %v524_v35 = vmax.f32 %v492_v58, 0.0  ;;  %v457_v37 = vmul.f32 %v3057_v3, %v3922_v8 }
  0x3a   : > { %3435 = vmatpush3.bf16.msra.mxu0 %v3432_v21  ;;  %v478_v21 = vmul.f32 %v3100_v11, %v3922_v8  ;;  %v3061_v38 = vunpack.c.h.bf16 %v3106_v17  ;;  %v525_v39 = vmax.f32 %v493_v59, 0.0  ;;  %v495_v41 = vadd.f32 %v3927_v14, %v456_v31 }
  0x3b   : > { %3437 = vmatprep.subr.bf16.mxu0 %v3436_v25  ;;  %v458_v42 = vmul.f32 %v3060_v32, %v3922_v8  ;;  %v3064_v43 = vunpack.c.l.bf16 %v3107_v34  ;;  %v496_v46 = vadd.f32 %v3927_v14, %v457_v37  ;;  %v3068_v52 = vunpack.c.l.bf16 %v3108_v44 }
  0x3c   : > { %v3996_v29 = vadd.f32 %v3927_v14, %v478_v21  ;;  %v459_v47 = vmul.f32 %v3061_v38, %v3922_v8  ;;  %v527_v49 = vmax.f32 %v495_v41, 0.0  ;;  %v3069_v57 = vunpack.c.h.bf16 %v3108_v44 }
  0x3d   : > { %v497_v50 = vadd.f32 %v3927_v14, %v458_v42  ;;  %v460_v51 = vmul.f32 %v3064_v43, %v3922_v8  ;;  %v462_v61 = vmul.f32 %v3068_v52, %v3922_v8  ;;  %v3072_v62 = vunpack.c.l.bf16 %v3109_v53 }
  0x3e   : > { %3439 = vmatpush3.bf16.msra.mxu0 %v3436_v25  ;;  %v479_v25 = vmul.f32 %v3101_v16, %v3922_v8  ;;  %v498_v55 = vadd.f32 %v3927_v14, %v459_v47  ;;  %v463_v2 = vmul.f32 %v3069_v57, %v3922_v8  ;;  %v3073_v3 = vunpack.c.h.bf16 %v3109_v53 }
  0x3f   : > { %3441 = vmatprep.subr.bf16.mxu0 %v3440_v36  ;;  %v529_v58 = vmax.f32 %v497_v50, 0.0  ;;  %v499_v59 = vadd.f32 %v3927_v14, %v460_v51  ;;  %v501_v5 = vadd.f32 %v3927_v14, %v462_v61  ;;  %v464_v6 = vmul.f32 %v3072_v62, %v3922_v8 }
  0x40   : > { %v4000_v33 = vadd.f32 %v3927_v14, %v479_v25  ;;  %v502_v11 = vadd.f32 %v3927_v14, %v463_v2  ;;  %v465_v12 = vmul.f32 %v3073_v3, %v3922_v8  ;;  %v3080_v18 = vunpack.c.l.bf16 %v3111_v9 }
  0x41   : > { %v531_v4 = vmax.f32 %v499_v59, 0.0  ;;  %v533_v15 = vmax.f32 %v501_v5, 0.0  ;;  %v503_v16 = vadd.f32 %v3927_v14, %v464_v6  ;;  %v3081_v25 = vunpack.c.h.bf16 %v3111_v9 }
  0x42   : > { %3443 = vmatpush3.bf16.msra.mxu0 %v3440_v36  ;;  %v494_v36 = vadd.f32 %v3927_v14, %v455_v54  ;;  %v528_v54 = vmax.f32 %v496_v46, 0.0  ;;  %v534_v19 = vmax.f32 %v502_v11, 0.0  ;;  %v504_v20 = vadd.f32 %v3927_v14, %v465_v12 }
  0x43   : > { %3445 = vmatprep.subr.bf16.mxu0 %v3444_v48  ;;  %v468_v32 = vmul.f32 %v3080_v18, %v3922_v8  ;;  %v469_v37 = vmul.f32 %v3081_v25, %v3922_v8  ;;  %v542_v47 = vmax.f32 %v3964_v60, 0.0  ;;  %v547_v50 = vmax.f32 %v3990_v27, 0.0 }
  0x44   : > { %v526_v45 = vmax.f32 %v494_v36, 0.0  ;;  %v548_v51 = vmax.f32 %v3993_v28, 0.0  ;;  %v549_v60 = vmax.f32 %v3996_v29, 0.0  ;;  %v4052_v27 = vstv %s811_s9 }
  0x45   : > { %v508_v43 = vadd.f32 %v3927_v14, %v469_v37 }
  0x46   : > { %3447 = vmatpush3.bf16.msra.mxu0 %v3444_v48  ;;  %v3065_v48 = vunpack.c.h.bf16 %v3107_v34  ;;  %v3084_v34 = vunpack.c.l.bf16 %v3944_v40 }
  0x48   : > { %v461_v56 = vmul.f32 %v3065_v48, %v3922_v8  ;;  %v470_v41 = vmul.f32 %v3084_v34, %v3922_v8  ;;  %v543_v48 = vmax.f32 %v3977_v22, 0.0  ;;  %v550_v22 = vmax.f32 %v4000_v33, 0.0 }
  0x49   : > { %3264 = vmatmul.mubr.f32.vlgmr.msra.gmra.mrb[0].mxu0 %v520_v63  ;;  %v3110_v63 = vld [vmem:[%s3914_s17 + $0x48] sm:$0xff]  }
  0x4a   : > { %3266 = vmatprep.mubr.f32.mxu0 %v521_v0  ;;  %v530_v0 = vmax.f32 %v498_v55, 0.0  ;;  %v3076_v7 = vunpack.c.l.bf16 %v3110_v63  ;;  %v3077_v13 = vunpack.c.h.bf16 %v3110_v63  ;;  %v509_v40 = vadd.f32 %v3927_v14, %v470_v41 }
  0x4c   : > { %v466_v17 = vmul.f32 %v3076_v7, %v3922_v8  ;;  %v467_v21 = vmul.f32 %v3077_v13, %v3922_v8  ;;  %v541_v46 = vmax.f32 %v509_v40, 0.0  ;;  %v544_v8 = vmax.f32 %v3980_v23, 0.0 }
  0x4d   : > { %3267 = vmatmul.mubr.f32.gmra.mrb[2].mxu0 %v522_v1  ;;  %v500_v1 = vadd.f32 %v3927_v14, %v461_v56  ;;  %v3788_v23 = vmov 0  }
  0x4e   : > { %3269 = vmatprep.mubr.f32.mxu0 %v523_v30  ;;  %v535_v30 = vmax.f32 %v503_v16, 0.0  ;;  %v505_v31 = vadd.f32 %v3927_v14, %v466_v17  ;;  %v506_v36 = vadd.f32 %v3927_v14, %v467_v21  ;;  %3530 = vset.pattern.permute.xlu0 %v3788_v23 }
  0x4f   : > { %v532_v10 = vmax.f32 %v500_v1, 0.0  ;;  %3531 = vset.pattern.permute.xlu1 %v3788_v23 }
  0x50   : > { %v537_v38 = vmax.f32 %v505_v31, 0.0  ;;  %v538_v42 = vmax.f32 %v506_v36, 0.0 }
  0x51   : > { %3270 = vmatmul.mubr.f32.gmra.mrb[4].mxu0 %v524_v35  ;;  %v536_v35 = vmax.f32 %v504_v20, 0.0 }
  0x52   : > { %3272 = vmatprep.mubr.f32.mxu0 %v525_v39  ;;  %v507_v39 = vadd.f32 %v3927_v14, %v468_v32  ;;  %v546_v14 = vmax.f32 %v3987_v26, 0.0  ;;  %v4050_v26 = vstv %s2154_s29 }
  0x54   : > { %v539_v44 = vmax.f32 %v507_v39, 0.0 }
  0x55   : > { %3273 = vmatmul.mubr.f32.gmra.mrb[6].mxu0 %v526_v45  ;;  %v540_v45 = vmax.f32 %v508_v43, 0.0 }
  0x56   : > { %3275 = vmatprep.mubr.f32.mxu0 %v527_v49  ;;  %v545_v49 = vmax.f32 %v3983_v24, 0.0  ;;  %v4048_v24 = vstv %s1512_s23 }
  0x59   : > { %3276 = vmatmul.mubr.f32.gmra.mrb[8].mxu0 %v528_v54 }
  0x5a   : > { %3278 = vmatprep.mubr.f32.mxu0 %v529_v58 }
  0x5d   : > { %3279 = vmatmul.mubr.f32.gmra.mrb[10].mxu0 %v530_v0 }
  0x5e   : > { %3281 = vmatprep.mubr.f32.mxu0 %v531_v4 }
  0x61   : > { %3282 = vmatmul.mubr.f32.gmra.mrb[12].mxu0 %v532_v10 }
  0x62   : > { %3284 = vmatprep.mubr.f32.mxu0 %v533_v15 }
  0x65   : > { %3285 = vmatmul.mubr.f32.gmra.mrb[14].mxu0 %v534_v19 }
  0x66   : > { %3287 = vmatprep.mubr.f32.mxu0 %v535_v30 }
  0x69   : > { %3288 = vmatmul.mubr.f32.gmra.mrb[16].mxu0 %v536_v35 }
  0x6a   : > { %3290 = vmatprep.mubr.f32.mxu0 %v537_v38 }
  0x6d   : > { %3291 = vmatmul.mubr.f32.gmra.mrb[18].mxu0 %v538_v42 }
  0x6e   : > { %3293 = vmatprep.mubr.f32.mxu0 %v539_v44 }
  0x71   : > { %3294 = vmatmul.mubr.f32.gmra.mrb[20].mxu0 %v540_v45 }
  0x72   : > { %3296 = vmatprep.mubr.f32.mxu0 %v541_v46 }
  0x75   : > { %3297 = vmatmul.mubr.f32.gmra.mrb[22].mxu0 %v542_v47 }
  0x76   : > { %3299 = vmatprep.mubr.f32.mxu0 %v543_v48 }
  0x79   : > { %3300 = vmatmul.mubr.f32.gmra.mrb[24].mxu0 %v544_v8 }
  0x7a   : > { %3302 = vmatprep.mubr.f32.mxu0 %v545_v49 }
  0x7d   : > { %3303 = vmatmul.mubr.f32.gmra.mrb[26].mxu0 %v546_v14 }
  0x7e   : > { %3305 = vmatprep.mubr.f32.mxu0 %v547_v50 }
  0x81   : > { %3306 = vmatmul.mubr.f32.gmra.mrb[28].mxu0 %v548_v51 }
  0x82   : > { %3308 = vmatprep.mubr.f32.mxu0 %v549_v60 }
  0x85   : > { %3309 = vmatmul.mubr.f32.gmra.mrb[30].mxu0 %v550_v22 }
 0x11c   : > { %v3265_v28 = vpop.f32.mrb[0].mxu0 }
 0x11d   : > { %v4055_v29 = vadd.f32 %v3265_v28, %v4048_v24  ;;  %v4058_v33 = vadd.f32 %v3265_v28, %v4050_v26  ;;  %v633_v52 = vpop.f32.mrb[1].mxu0  ;;  %v814_v53 = vadd.f32 %v3265_v28, %v4052_v27 }
 0x11e   : > { %v4062_v54 = vadd.f32 %v4048_v24, %v633_v52  ;;  %v4065_v55 = vadd.f32 %v4050_v26, %v633_v52  ;;  %v813_v57 = vadd.f32 %v4052_v27, %v633_v52 }
 0x11f   : > { %881 = vperm.xlu0 %3530, %v814_v53  }
 0x120   : > { %v3268_v56 = vpop.f32.mrb[2].mxu0 }
 0x121   : > { %v4069_v58 = vadd.f32 %v3268_v56, %v4048_v24  ;;  %v4072_v59 = vadd.f32 %v3268_v56, %v4050_v26  ;;  %v643_v61 = vpop.f32.mrb[3].mxu0  ;;  %v816_v62 = vadd.f32 %v3268_v56, %v4052_v27 }
 0x122   : > { %v4076_v63 = vadd.f32 %v4048_v24, %v643_v61  ;;  %v4079_v0 = vadd.f32 %v4050_v26, %v643_v61  ;;  %v815_v2 = vadd.f32 %v4052_v27, %v643_v61 }
 0x123   : > { %878 = vperm.xlu0 %3530, %v813_v57   ;;  %887 = vperm.xlu1 %3531, %v816_v62  }
 0x124   : > { %v3271_v1 = vpop.f32.mrb[4].mxu0 }
 0x125   : > { %v4083_v3 = vadd.f32 %v3271_v1, %v4048_v24  ;;  %v4086_v4 = vadd.f32 %v3271_v1, %v4050_v26  ;;  %v653_v5 = vpop.f32.mrb[5].mxu0  ;;  %v818_v10 = vadd.f32 %v3271_v1, %v4052_v27 }
 0x126   : > { %v817_v6 = vadd.f32 %v4052_v27, %v653_v5  ;;  %v4090_v7 = vadd.f32 %v4048_v24, %v653_v5  ;;  %v4093_v9 = vadd.f32 %v4050_v26, %v653_v5 }
 0x127   : > { %884 = vperm.xlu1 %3531, %v815_v2  }
 0x128   : > { %890 = vperm.xlu0 %3530, %v817_v6   ;;  %v3274_v11 = vpop.f32.mrb[6].mxu0 }
 0x129   : > { %v4097_v12 = vadd.f32 %v3274_v11, %v4048_v24  ;;  %v4100_v13 = vadd.f32 %v3274_v11, %v4050_v26  ;;  %v663_v15 = vpop.f32.mrb[7].mxu0  ;;  %v820_v19 = vadd.f32 %v3274_v11, %v4052_v27 }
 0x12a   : > { %v819_v16 = vadd.f32 %v4052_v27, %v663_v15  ;;  %v4104_v17 = vadd.f32 %v4048_v24, %v663_v15  ;;  %v4107_v18 = vadd.f32 %v4050_v26, %v663_v15 }
 0x12b   : > { %893 = vperm.xlu1 %3531, %v818_v10  }
 0x12c   : > { %896 = vperm.xlu0 %3530, %v819_v16   ;;  %v3277_v20 = vpop.f32.mrb[8].mxu0 }
 0x12d   : > { %v4111_v21 = vadd.f32 %v3277_v20, %v4048_v24  ;;  %v4114_v25 = vadd.f32 %v3277_v20, %v4050_v26  ;;  %v673_v30 = vpop.f32.mrb[9].mxu0  ;;  %v822_v35 = vadd.f32 %v3277_v20, %v4052_v27 }
 0x12e   : > { %v821_v31 = vadd.f32 %v4052_v27, %v673_v30  ;;  %v4118_v32 = vadd.f32 %v4048_v24, %v673_v30  ;;  %v4121_v34 = vadd.f32 %v4050_v26, %v673_v30 }
 0x12f   : > { %899 = vperm.xlu1 %3531, %v820_v19  }
 0x130   : > { %902 = vperm.xlu0 %3530, %v821_v31   ;;  %v3280_v36 = vpop.f32.mrb[10].mxu0 }
 0x131   : > { %v4125_v37 = vadd.f32 %v3280_v36, %v4048_v24  ;;  %v4128_v38 = vadd.f32 %v3280_v36, %v4050_v26  ;;  %v683_v39 = vpop.f32.mrb[11].mxu0  ;;  %v824_v44 = vadd.f32 %v3280_v36, %v4052_v27 }
 0x132   : > { %v823_v41 = vadd.f32 %v4052_v27, %v683_v39  ;;  %v4132_v42 = vadd.f32 %v4048_v24, %v683_v39  ;;  %v4135_v43 = vadd.f32 %v4050_v26, %v683_v39 }
 0x133   : > { %4933 = vst [vmem:[#allocation5_spill] sm:$0xff] %v4128_v38  ;;  %905 = vperm.xlu1 %3531, %v822_v35  }
 0x134   : > { %908 = vperm.xlu0 %3530, %v823_v41   ;;  %v3283_v40 = vpop.f32.mrb[12].mxu0 }
 0x135   : > { %v4139_v45 = vadd.f32 %v3283_v40, %v4048_v24  ;;  %v4142_v46 = vadd.f32 %v3283_v40, %v4050_v26  ;;  %v693_v47 = vpop.f32.mrb[13].mxu0  ;;  %v826_v14 = vadd.f32 %v3283_v40, %v4052_v27 }
 0x136   : > { %v825_v48 = vadd.f32 %v4052_v27, %v693_v47  ;;  %v4146_v8 = vadd.f32 %v4048_v24, %v693_v47  ;;  %v4149_v49 = vadd.f32 %v4050_v26, %v693_v47 }
 0x137   : > { %4934 = vst [vmem:[#allocation6_spill] sm:$0xff] %v4142_v46  ;;  %911 = vperm.xlu1 %3531, %v824_v44  }
 0x138   : > { %4935 = vst [vmem:[#allocation7_spill] sm:$0xff] %v4149_v49  ;;  %914 = vperm.xlu0 %3530, %v825_v48   ;;  %v3286_v50 = vpop.f32.mrb[14].mxu0 }
 0x139   : > { %v4153_v51 = vadd.f32 %v3286_v50, %v4048_v24  ;;  %v4156_v60 = vadd.f32 %v3286_v50, %v4050_v26  ;;  %v703_v22 = vpop.f32.mrb[15].mxu0  ;;  %v828_v53 = vadd.f32 %v3286_v50, %v4052_v27 }
 0x13a   : > { %v827_v23 = vadd.f32 %v4052_v27, %v703_v22  ;;  %v4160_v28 = vadd.f32 %v4048_v24, %v703_v22  ;;  %v4163_v52 = vadd.f32 %v4050_v26, %v703_v22 }
 0x13b   : > { %4936 = vst [vmem:[#allocation8_spill] sm:$0xff] %v4156_v60  ;;  %917 = vperm.xlu1 %3531, %v826_v14  }
 0x13c   : > { %4937 = vst [vmem:[#allocation9_spill] sm:$0xff] %v4163_v52  ;;  %920 = vperm.xlu0 %3530, %v827_v23   ;;  %v3289_v56 = vpop.f32.mrb[16].mxu0 }
 0x13d   : > { %v4167_v57 = vadd.f32 %v3289_v56, %v4048_v24  ;;  %v4170_v61 = vadd.f32 %v3289_v56, %v4050_v26  ;;  %v713_v62 = vpop.f32.mrb[17].mxu0  ;;  %v830_v6 = vadd.f32 %v3289_v56, %v4052_v27 }
 0x13e   : > { %v829_v1 = vadd.f32 %v4052_v27, %v713_v62  ;;  %v4174_v2 = vadd.f32 %v4048_v24, %v713_v62  ;;  %v4177_v5 = vadd.f32 %v4050_v26, %v713_v62 }
 0x13f   : > { %923 = vperm.xlu1 %3531, %v828_v53  }
 0x140   : > { %926 = vperm.xlu0 %3530, %v829_v1   ;;  %v3292_v10 = vpop.f32.mrb[18].mxu0 }
 0x141   : > { %v4181_v11 = vadd.f32 %v3292_v10, %v4048_v24  ;;  %v4184_v15 = vadd.f32 %v3292_v10, %v4050_v26  ;;  %v723_v16 = vpop.f32.mrb[19].mxu0  ;;  %v832_v31 = vadd.f32 %v3292_v10, %v4052_v27 }
 0x142   : > { %v831_v19 = vadd.f32 %v4052_v27, %v723_v16  ;;  %v4188_v20 = vadd.f32 %v4048_v24, %v723_v16  ;;  %v4191_v30 = vadd.f32 %v4050_v26, %v723_v16 }
 0x143   : > { %929 = vperm.xlu1 %3531, %v830_v6  }
 0x144   : > { %932 = vperm.xlu0 %3530, %v831_v19   ;;  %v3295_v35 = vpop.f32.mrb[20].mxu0 }
 0x145   : > { %v4195_v36 = vadd.f32 %v3295_v35, %v4048_v24  ;;  %v4198_v39 = vadd.f32 %v3295_v35, %v4050_v26  ;;  %v733_v41 = vpop.f32.mrb[21].mxu0  ;;  %v834_v48 = vadd.f32 %v3295_v35, %v4052_v27 }
 0x146   : > { %v833_v44 = vadd.f32 %v4052_v27, %v733_v41  ;;  %v4202_v40 = vadd.f32 %v4048_v24, %v733_v41  ;;  %v4205_v47 = vadd.f32 %v4050_v26, %v733_v41 }
 0x147   : > { %935 = vperm.xlu1 %3531, %v832_v31  }
 0x148   : > { %938 = vperm.xlu0 %3530, %v833_v44   ;;  %v3298_v14 = vpop.f32.mrb[22].mxu0 }
 0x149   : > { %v4209_v50 = vadd.f32 %v3298_v14, %v4048_v24  ;;  %v4212_v22 = vadd.f32 %v3298_v14, %v4050_v26  ;;  %v743_v23 = vpop.f32.mrb[23].mxu0  ;;  %v836_v1 = vadd.f32 %v3298_v14, %v4052_v27 }
 0x14a   : > { %v835_v53 = vadd.f32 %v4052_v27, %v743_v23  ;;  %v4216_v56 = vadd.f32 %v4048_v24, %v743_v23  ;;  %v4219_v62 = vadd.f32 %v4050_v26, %v743_v23 }
 0x14b   : > { %4938 = vst [vmem:[#allocation10_spill] sm:$0xff] %v4212_v22  ;;  %941 = vperm.xlu1 %3531, %v834_v48  }
 0x14c   : > { %944 = vperm.xlu0 %3530, %v835_v53   ;;  %v3301_v6 = vpop.f32.mrb[24].mxu0 }
 0x14d   : > { %v4223_v10 = vadd.f32 %v3301_v6, %v4048_v24  ;;  %v4226_v16 = vadd.f32 %v3301_v6, %v4050_v26  ;;  %v753_v19 = vpop.f32.mrb[25].mxu0  ;;  %v838_v44 = vadd.f32 %v3301_v6, %v4052_v27 }
 0x14e   : > { %v837_v31 = vadd.f32 %v4052_v27, %v753_v19  ;;  %v4230_v35 = vadd.f32 %v4048_v24, %v753_v19  ;;  %v4233_v41 = vadd.f32 %v4050_v26, %v753_v19 }
 0x14f   : > { %4939 = vst [vmem:[#allocation11_spill] sm:$0xff] %v4226_v16  ;;  %947 = vperm.xlu1 %3531, %v836_v1  }
 0x150   : > { %4940 = vst [vmem:[#allocation12_spill] sm:$0xff] %v4233_v41  ;;  %950 = vperm.xlu0 %3530, %v837_v31   ;;  %v3304_v48 = vpop.f32.mrb[26].mxu0 }
 0x151   : > { %v1541_v14 = vadd.f32 %v3304_v48, %v4048_v24  ;;  %v4238_v23 = vadd.f32 %v3304_v48, %v4050_v26  ;;  %v763_v53 = vpop.f32.mrb[27].mxu0  ;;  %v840_v19 = vadd.f32 %v3304_v48, %v4052_v27 }
 0x152   : > { %v839_v60 = vadd.f32 %v4052_v27, %v763_v53  ;;  %v1540_v46 = vadd.f32 %v4048_v24, %v763_v53  ;;  %v4243_v52 = vadd.f32 %v4050_v26, %v763_v53 }
 0x153   : > { %4941 = vst [vmem:[#allocation13_spill] sm:$0xff] %v4238_v23  ;;  %953 = vperm.xlu1 %3531, %v838_v44  }
 0x154   : > { %4942 = vst [vmem:[#allocation14_spill] sm:$0xff] %v4243_v52  ;;  %956 = vperm.xlu0 %3530, %v839_v60   ;;  %v3307_v1 = vpop.f32.mrb[28].mxu0 }
 0x155   : > { %v1543_v6 = vadd.f32 %v3307_v1, %v4048_v24  ;;  %v4248_v31 = vadd.f32 %v3307_v1, %v4050_v26  ;;  %v773_v16 = vpop.f32.mrb[29].mxu0  ;;  %v842_v53 = vadd.f32 %v3307_v1, %v4052_v27 }
 0x156   : > { %v841_v23 = vadd.f32 %v4052_v27, %v773_v16  ;;  %v1542_v38 = vadd.f32 %v4048_v24, %v773_v16  ;;  %v4253_v49 = vadd.f32 %v4050_v26, %v773_v16 }
 0x157   : > { %4943 = vst [vmem:[#allocation15_spill] sm:$0xff] %v4248_v31  ;;  %959 = vperm.xlu1 %3531, %v840_v19   ;;  %v809_v19 = vld [vmem:[%s4929_s6 + $0x8] sm:$0xff] }
 0x158   : > { %962 = vperm.xlu0 %3530, %v841_v23   ;;  %v3310_v44 = vpop.f32.mrb[30].mxu0  ;;  %v808_v23 = vld [vmem:[%s4929_s6] sm:$0xff] }
 0x159   : > { %v844_v60 = vadd.f32 %v3310_v44, %v4052_v27  ;;  %v1545_v48 = vadd.f32 %v3310_v44, %v4048_v24  ;;  %v4259_v52 = vadd.f32 %v3310_v44, %v4050_v26  ;;  %v783_v31 = vpop.f32.mrb[31].mxu0  ;;  %v4272_v1 = vpack.c.bf16 %v809_v19, %v808_v23 }
 0x15a   : > { %v843_v22 = vadd.f32 %v4052_v27, %v783_v31  ;;  %v1544_v41 = vadd.f32 %v4048_v24, %v783_v31  ;;  %v4264_v16 = vadd.f32 %v4050_v26, %v783_v31  ;;  %v3789_v27 = vmov 1  }
 0x15b   : > { %965 = vperm.xlu1 %3531, %v842_v53   ;;  %3449 = vmatprep.subr.bf16.mxu1 %v4272_v1  ;;  %v3790_v26 = vmov 2  }
 0x15c   : > { %968 = vperm.xlu0 %3530, %v843_v22   ;;  %3451 = vmatpush3.bf16.msra.mxu1 %v4272_v1 }
 0x15f   : > { %971 = vperm.xlu1 %3531, %v844_v60  }
 0x160   : > { %3532 = vset.pattern.permute.xlu0 %v3789_v27 }
 0x161   : > { %1579 = vperm.xlu0 %3532, %v4062_v54  }
 0x163   : > { %3533 = vset.pattern.permute.xlu1 %v3789_v27 }
 0x164   : > { %1582 = vperm.xlu1 %3533, %v4055_v29  }
 0x165   : > { %1588 = vperm.xlu0 %3532, %v4069_v58  }
 0x168   : > { %1585 = vperm.xlu1 %3533, %v4076_v63  }
 0x169   : > { %1594 = vperm.xlu0 %3532, %v4083_v3   ;;  %v973_v3 = vlaneseq }
 0x16c   : > { %1591 = vperm.xlu1 %3533, %v4090_v7  }
 0x16d   : > { %1630 = vperm.xlu0 %3532, %v4167_v57  }
 0x170   : > { %1627 = vperm.xlu1 %3533, %v4174_v2  }
 0x171   : > { %1636 = vperm.xlu0 %3532, %v4181_v11  }
 0x174   : > { %1633 = vperm.xlu1 %3533, %v4188_v20  }
 0x175   : > { %1600 = vperm.xlu0 %3532, %v4097_v12  }
 0x178   : > { %1597 = vperm.xlu1 %3533, %v4104_v17   ;;  %v974_v17 = vand.u32 127, %v973_v3 }
 0x179   : > { %1642 = vperm.xlu0 %3532, %v4195_v36  }
 0x17c   : > { %1639 = vperm.xlu1 %3533, %v4202_v40  }
 0x17d   : > { %1606 = vperm.xlu0 %3532, %v4111_v21  }
 0x180   : > { %1603 = vperm.xlu1 %3533, %v4118_v32   ;;  %v976_v32 = vshrl.u32 %v973_v3, 7  ;;  %v4947_v3 = vld [vmem:[#allocation5_spill] sm:$0xff] }
 0x181   : > { %1648 = vperm.xlu0 %3532, %v4209_v50  }
 0x184   : > { %1645 = vperm.xlu1 %3533, %v4216_v56  }
 0x185   : > { %1612 = vperm.xlu0 %3532, %v4125_v37   ;;  %v4311_v37 = vsub.s32 %v974_v17, %v976_v32 }
 0x188   : > { %1609 = vperm.xlu1 %3533, %v4132_v42  }
 0x189   : > { %1654 = vperm.xlu0 %3532, %v4223_v10  }
 0x18c   : > { %1651 = vperm.xlu1 %3533, %v4230_v35  }
 0x18d   : > { %1618 = vperm.xlu0 %3532, %v4139_v45  }
 0x190   : > { %1615 = vperm.xlu1 %3533, %v4146_v8  }
 0x191   : > { %1660 = vperm.xlu0 %3532, %v1541_v14  }
 0x194   : > { %1657 = vperm.xlu1 %3533, %v1540_v46  }
 0x195   : > { %1624 = vperm.xlu0 %3532, %v4153_v51  }
 0x198   : > { %1621 = vperm.xlu1 %3533, %v4160_v28  }
 0x199   : > { %1666 = vperm.xlu0 %3532, %v1543_v6  }
 0x19c   : > { %1663 = vperm.xlu1 %3533, %v1542_v38  }
 0x19d   : > { %1672 = vperm.xlu0 %3532, %v1545_v48  }
 0x19e   : > { %v882_v24 = vpop.permute.xlu0 %881 }
 0x1a0   : > { %1669 = vperm.xlu1 %3533, %v1544_v41  }
 0x1a1   : > { %3535 = vset.pattern.permute.xlu0 %v3790_v26 }
 0x1a2   : > { %v879_v29 = vpop.permute.xlu0 %878  ;;  %v888_v54 = vpop.permute.xlu1 %887  ;;  %2224 = vperm.xlu0 %3535, %v4058_v33  }
 0x1a3   : > { %v978_v46 = vrot.slane %v879_v29, %v4311_v37 }
 0x1a4   : > { %3534 = vset.pattern.permute.xlu1 %v3790_v26  ;;  %v4944_v26 = vld [vmem:[#allocation12_spill] sm:$0xff] }
 0x1a5   : > { %2221 = vperm.xlu1 %3534, %v4065_v55   ;;  %v979_v55 = vadd.s32 4294967288, %v974_v17  ;;  %v4949_v17 = vld [vmem:[#allocation11_spill] sm:$0xff] }
 0x1a6   : > { %v885_v58 = vpop.permute.xlu1 %884  ;;  %2233 = vperm.xlu0 %3535, %v4093_v9  }
 0x1a7   : > { %v891_v63 = vpop.permute.xlu0 %890  ;;  %v4313_v38 = vsub.s32 %v979_v55, %v976_v32  ;;  %v989_v42 = vrot.slane %v885_v58, %v4311_v37  ;;  %v4946_v58 = vld [vmem:[#allocation7_spill] sm:$0xff]  ;;  %v4951_v55 = vld [vmem:[#allocation6_spill] sm:$0xff] }
 0x1a8   : > { %v998_v51 = vrot.slane %v891_v63, %v4311_v37 }
 0x1a9   : > { %2227 = vperm.xlu1 %3534, %v4079_v0   ;;  %v983_v57 = vrot.slane %v882_v24, %v4313_v38 }
 0x1aa   : > { %v894_v7 = vpop.permute.xlu1 %893  ;;  %2269 = vperm.xlu0 %3535, %v4177_v5  }
 0x1ab   : > { %v897_v12 = vpop.permute.xlu0 %896  ;;  %v985_v36 = vsel %vm984_vm0, %v983_v57, %v978_v46 }
 0x1ac   : > { %v1007_v2 = vrot.slane %v897_v12, %v4311_v37 }
 0x1ad   : > { %2230 = vperm.xlu1 %3534, %v4072_v59   ;;  %v1002_v59 = vrot.slane %v894_v7, %v4313_v38  ;;  %v4948_v7 = vld [vmem:[#allocation14_spill] sm:$0xff] }
 0x1ae   : > { %v900_v21 = vpop.permute.xlu1 %899  ;;  %2275 = vperm.xlu0 %3535, %v4191_v30  }
 0x1af   : > { %v903_v33 = vpop.permute.xlu0 %902  ;;  %v1003_v11 = vsel %vm984_vm0, %v1002_v59, %v998_v51 }
 0x1b0   : > { %v1016_v20 = vrot.slane %v903_v33, %v4311_v37 }
 0x1b1   : > { %2236 = vperm.xlu1 %3534, %v4086_v4   ;;  %v993_v4 = vrot.slane %v888_v54, %v4313_v38  ;;  %v4945_v54 = vld [vmem:[#allocation10_spill] sm:$0xff] }
 0x1b2   : > { %v906_v9 = vpop.permute.xlu1 %905  ;;  %2239 = vperm.xlu0 %3535, %v4107_v18   ;;  %v1011_v18 = vrot.slane %v900_v21, %v4313_v38 }
 0x1b3   : > { %v909_v0 = vpop.permute.xlu0 %908  ;;  %v1020_v28 = vrot.slane %v906_v9, %v4313_v38 }
 0x1b4   : > { %v1012_v40 = vsel %vm984_vm0, %v1011_v18, %v1007_v2 }
 0x1b5   : > { %2272 = vperm.xlu1 %3534, %v4170_v61   ;;  %v994_v61 = vsel %vm984_vm0, %v993_v4, %v989_v42  ;;  %v1021_v56 = vsel %vm984_vm0, %v1020_v28, %v1016_v20 }
 0x1b6   : > { %v912_v45 = vpop.permute.xlu1 %911  ;;  %2281 = vperm.xlu0 %3535, %v4205_v47   ;;  %v1025_v47 = vrot.slane %v909_v0, %v4311_v37 }
 0x1b7   : > { %v915_v8 = vpop.permute.xlu0 %914  ;;  %v1029_v5 = vrot.slane %v912_v45, %v4313_v38 }
 0x1b8   : > { %v1034_v10 = vrot.slane %v915_v8, %v4311_v37 }
 0x1b9   : > { %2278 = vperm.xlu1 %3534, %v4184_v15   ;;  %v1122_v15 = vsel %vm1121_vm1, %v994_v61, %v985_v36 }
 0x1ba   : > { %v918_v30 = vpop.permute.xlu1 %917  ;;  %2245 = vperm.xlu0 %3535, %v4121_v34   ;;  %v1124_v35 = vsel %vm1123_vm2, %v1003_v11, %v1122_v15  ;;  %v1030_v34 = vsel %vm984_vm0, %v1029_v5, %v1025_v47 }
 0x1bb   : > { %v1038_v50 = vrot.slane %v918_v30, %v4313_v38  ;;  %v921_v22 = vpop.permute.xlu0 %920  ;;  %v1126_v41 = vsel %vm1125_vm3, %v1012_v40, %v1124_v35 }
 0x1bc   : > { %v1043_v31 = vrot.slane %v921_v22, %v4311_v37  ;;  %v1128_v60 = vsel %vm1127_vm4, %v1021_v56, %v1126_v41 }
 0x1bd   : > { %2242 = vperm.xlu1 %3534, %v4100_v13   ;;  %v1039_v6 = vsel %vm984_vm0, %v1038_v50, %v1034_v10  ;;  %v1130_v48 = vsel %vm1129_vm5, %v1030_v34, %v1128_v60 }
 0x1be   : > { %v924_v14 = vpop.permute.xlu1 %923  ;;  %2287 = vperm.xlu0 %3535, %v4219_v62   ;;  %v1132_v62 = vsel %vm1131_vm6, %v1039_v6, %v1130_v48 }
 0x1bf   : > { %v1047_v53 = vrot.slane %v924_v14, %v4313_v38  ;;  %v927_v44 = vpop.permute.xlu0 %926 }
 0x1c0   : > { %v1052_v8 = vrot.slane %v927_v44, %v4311_v37  ;;  %v4954_v44 = vld [vmem:[#allocation15_spill] sm:$0xff] }
 0x1c1   : > { %2284 = vperm.xlu1 %3534, %v4198_v39   ;;  %v1048_v13 = vsel %vm984_vm0, %v1047_v53, %v1043_v31 }
 0x1c2   : > { %v930_v23 = vpop.permute.xlu1 %929  ;;  %2251 = vperm.xlu0 %3535, %v4135_v43   ;;  %v1134_v19 = vsel %vm1133_vm7, %v1048_v13, %v1132_v62  ;;  %v4405_v13 = vld [vmem:[%s4928_s5 + $0x20] sm:$0xff] }
 0x1c3   : > { %3315 = vmatprep.mubr.msk.f32.mxu1 %vm1142_vm8, %v1134_v19  ;;  %v933_v27 = vpop.permute.xlu0 %932  ;;  %v1056_v42 = vrot.slane %v930_v23, %v4313_v38 }
 0x1c4   : > { %v1061_v59 = vrot.slane %v933_v27, %v4311_v37 }
 0x1c5   : > { %2248 = vperm.xlu1 %3534, %v4114_v25   ;;  %v4950_v25 = vld [vmem:[#allocation9_spill] sm:$0xff]  ;;  %v1057_v11 = vsel %vm984_vm0, %v1056_v42, %v1052_v8  ;;  %v4454_v8 = vld [vmem:[%s4928_s5 + $0x30] sm:$0xff] }
 0x1c6   : > { %v936_v24 = vpop.permute.xlu1 %935  ;;  %2293 = vperm.xlu0 %3535, %v4944_v26  }
 0x1c7   : > { %v939_v29 = vpop.permute.xlu0 %938  ;;  %v1065_v32 = vrot.slane %v936_v24, %v4313_v38 }
 0x1c8   : > { %v1070_v4 = vrot.slane %v939_v29, %v4311_v37 }
 0x1c9   : > { %2290 = vperm.xlu1 %3534, %v4945_v54   ;;  %v1066_v51 = vsel %vm984_vm0, %v1065_v32, %v1061_v59 }
 0x1ca   : > { %v942_v39 = vpop.permute.xlu1 %941  ;;  %2257 = vperm.xlu0 %3535, %v4946_v58   ;;  %v1135_v40 = vsel %vm1121_vm1, %v1066_v51, %v1057_v11 }
 0x1cb   : > { %v945_v63 = vpop.permute.xlu0 %944  ;;  %v1074_v9 = vrot.slane %v942_v39, %v4313_v38 }
 0x1cc   : > { %v1079_v28 = vrot.slane %v945_v63, %v4311_v37 }
 0x1cd   : > { %2254 = vperm.xlu1 %3534, %v4947_v3   ;;  %v1075_v61 = vsel %vm984_vm0, %v1074_v9, %v1070_v4 }
 0x1ce   : > { %v948_v43 = vpop.permute.xlu1 %947  ;;  %2299 = vperm.xlu0 %3535, %v4948_v7   ;;  %v1136_v15 = vsel %vm1123_vm2, %v1075_v61, %v1135_v40 }
 0x1cf   : > { %v951_v12 = vpop.permute.xlu0 %950  ;;  %v1083_v45 = vrot.slane %v948_v43, %v4313_v38 }
 0x1d0   : > { %v1088_v2 = vrot.slane %v951_v12, %v4311_v37 }
 0x1d1   : > { %2296 = vperm.xlu1 %3534, %v4949_v17   ;;  %v1084_v20 = vsel %vm984_vm0, %v1083_v45, %v1079_v28  ;;  %v4466_v28 = vld [vmem:[%s4928_s5 + $0x38] sm:$0xff] }
 0x1d2   : > { %v954_v21 = vpop.permute.xlu1 %953  ;;  %2263 = vperm.xlu0 %3535, %v4950_v25   ;;  %v1137_v10 = vsel %vm1125_vm3, %v1084_v20, %v1136_v15 }
 0x1d3   : > { %v957_v33 = vpop.permute.xlu0 %956  ;;  %v1092_v18 = vrot.slane %v954_v21, %v4313_v38 }
 0x1d4   : > { %v1097_v30 = vrot.slane %v957_v33, %v4311_v37 }
 0x1d5   : > { %2260 = vperm.xlu1 %3534, %v4951_v55   ;;  %v1093_v47 = vsel %vm984_vm0, %v1092_v18, %v1088_v2  ;;  %v4448_v18 = vld [vmem:[%s4928_s5 + $0x28] sm:$0xff] }
 0x1d6   : > { %v960_v0 = vpop.permute.xlu1 %959  ;;  %2305 = vperm.xlu0 %3535, %v4253_v49   ;;  %v4952_v49 = vld [vmem:[#allocation13_spill] sm:$0xff]  ;;  %v1138_v41 = vsel %vm1127_vm4, %v1093_v47, %v1137_v10 }
 0x1d7   : > { %v963_v46 = vpop.permute.xlu0 %962  ;;  %v1101_v57 = vrot.slane %v960_v0, %v4313_v38 }
 0x1d8   : > { %v1106_v50 = vrot.slane %v963_v46, %v4311_v37 }
 0x1d9   : > { %2302 = vperm.xlu1 %3534, %v4952_v49   ;;  %v1102_v56 = vsel %vm984_vm0, %v1101_v57, %v1097_v30  ;;  %v4471_v57 = vld [vmem:[%s4928_s5 + $0x40] sm:$0xff] }
 0x1da   : > { %v966_v5 = vpop.permute.xlu1 %965  ;;  %2311 = vperm.xlu0 %3535, %v4264_v16   ;;  %v4953_v16 = vld [vmem:[#allocation8_spill] sm:$0xff]  ;;  %v1139_v31 = vsel %vm1129_vm5, %v1102_v56, %v1138_v41 }
 0x1db   : > { %v1110_v36 = vrot.slane %v966_v5, %v4313_v38  ;;  %v969_v22 = vpop.permute.xlu0 %968 }
 0x1dc   : > { %v1115_v14 = vrot.slane %v969_v22, %v4311_v37  ;;  %v4498_v22 = vld [vmem:[%s4928_s5 + $0x50] sm:$0xff] }
 0x1dd   : > { %2266 = vperm.xlu1 %3534, %v4953_v16   ;;  %v1111_v35 = vsel %vm984_vm0, %v1110_v36, %v1106_v50  ;;  %v4489_v36 = vld [vmem:[%s4928_s5 + $0x48] sm:$0xff] }
 0x1de   : > { %v972_v34 = vpop.permute.xlu1 %971  ;;  %v1140_v60 = vsel %vm1131_vm6, %v1111_v35, %v1139_v31 }
 0x1df   : > { %v1119_v6 = vrot.slane %v972_v34, %v4313_v38 }
 0x1e0   : > { %v4411_v23 = vpop.permute.xlu0 %1579 }
 0x1e1   : > { %v1120_v53 = vsel %vm984_vm0, %v1119_v6, %v1115_v14  ;;  %2308 = vperm.xlu1 %3534, %v4954_v44   ;;  %v1677_v15 = vrot.slane %v4411_v23, %v4311_v37  ;;  %v4519_v44 = vld [vmem:[%s4928_s5 + $0x58] sm:$0xff]  ;;  %v4528_v23 = vld [vmem:[%s4928_s5 + $0x60] sm:$0xff] }
 0x1e2   : > { %v1141_v48 = vsel %vm1133_vm7, %v1120_v53, %v1140_v60 }
 0x1e3   : > { %3316 = vmatmul.mubr.msk.f32.vlgmr.msra.gmra.mrb[0].mxu1 %vm1142_vm8, %v1141_v48  ;;  %v4409_v62 = vpop.permute.xlu1 %1582 }
 0x1e4   : > { %3328 = vmatprep.mubr.msk.f32.mxu1 %vm1142_vm8, %v4405_v13  ;;  %v1589_v27 = vpop.permute.xlu0 %1588  ;;  %v1681_v11 = vrot.slane %v4409_v62, %v4313_v38 }
 0x1e5   : > { %2314 = vperm.xlu1 %3534, %v4259_v52   ;;  %v1690_v20 = vrot.slane %v1589_v27, %v4313_v38 }
 0x1e6   : > { %v1682_v14 = vsel %vm984_vm0, %v1681_v11, %v1677_v15 }
 0x1e7   : > { %v1586_v19 = vpop.permute.xlu1 %1585 }
 0x1e8   : > { %v1595_v26 = vpop.permute.xlu0 %1594  ;;  %v1686_v49 = vrot.slane %v1586_v19, %v4311_v37 }
 0x1e9   : > { %v1699_v40 = vrot.slane %v1595_v26, %v4313_v38 }
 0x1ea   : > { %v1691_v56 = vsel %vm984_vm0, %v1690_v20, %v1686_v49 }
 0x1eb   : > { %v1592_v24 = vpop.permute.xlu1 %1591  ;;  %v1818_v60 = vsel %vm1121_vm1, %v1691_v56, %v1682_v14 }
 0x1ec   : > { %v4415_v54 = vpop.permute.xlu0 %1630  ;;  %v1695_v2 = vrot.slane %v1592_v24, %v4311_v37 }
 0x1ed   : > { %v1753_v34 = vrot.slane %v4415_v54, %v4313_v38 }
 0x1ee   : > { %v1700_v35 = vsel %vm984_vm0, %v1699_v40, %v1695_v2 }
 0x1ef   : > { %v4413_v29 = vpop.permute.xlu1 %1627  ;;  %v1819_v19 = vsel %vm1123_vm2, %v1700_v35, %v1818_v60  ;;  %v4636_v60 = vld [vmem:[%s4928_s5 + $0x18] sm:$0xff] }
 0x1f0   : > { %v1637_v39 = vpop.permute.xlu0 %1636  ;;  %v1749_v47 = vrot.slane %v4413_v29, %v4311_v37 }
 0x1f1   : > { %v1762_v50 = vrot.slane %v1637_v39, %v4313_v38 }
 0x1f2   : > { %v1754_v48 = vsel %vm984_vm0, %v1753_v34, %v1749_v47 }
 0x1f3   : > { %v1634_v52 = vpop.permute.xlu1 %1633 }
 0x1f4   : > { %v1601_v63 = vpop.permute.xlu0 %1600  ;;  %v1758_v5 = vrot.slane %v1634_v52, %v4311_v37 }
 0x1f5   : > { %v1708_v16 = vrot.slane %v1601_v63, %v4313_v38 }
 0x1f6   : > { %v1763_v41 = vsel %vm984_vm0, %v1762_v50, %v1758_v5 }
 0x1f7   : > { %v1598_v58 = vpop.permute.xlu1 %1597  ;;  %v1825_v27 = vsel %vm1121_vm1, %v1763_v41, %v1754_v48 }
 0x1f8   : > { %v4419_v43 = vpop.permute.xlu0 %1642  ;;  %v1704_v30 = vrot.slane %v1598_v58, %v4311_v37 }
 0x1f9   : > { %v1771_v24 = vrot.slane %v4419_v43, %v4313_v38 }
 0x1fa   : > { %v1709_v6 = vsel %vm984_vm0, %v1708_v16, %v1704_v30 }
 0x1fb   : > { %v4417_v3 = vpop.permute.xlu1 %1639  ;;  %v1820_v29 = vsel %vm1125_vm3, %v1709_v6, %v1819_v19  ;;  %v4615_v6 = vld [vmem:[%s4928_s5] sm:$0xff] }
 0x1fc   : > { %v4423_v12 = vpop.permute.xlu0 %1606  ;;  %v1767_v31 = vrot.slane %v4417_v3, %v4311_v37  ;;  %3322 = vmatprep.mubr.msk.f32.mxu0 %vm1142_vm8, %v4615_v6 }
 0x1fd   : > { %v1717_v54 = vrot.slane %v4423_v12, %v4313_v38  ;;  %v4557_v12 = vld [vmem:[%s4928_s5 + $0x68] sm:$0xff] }
 0x1fe   : > { %v1772_v58 = vsel %vm984_vm0, %v1771_v24, %v1767_v31  ;;  %v4622_v31 = vld [vmem:[%s4928_s5 + $0x8] sm:$0xff] }
 0x1ff   : > { %v4421_v7 = vpop.permute.xlu1 %1603  ;;  %v1826_v20 = vsel %vm1123_vm2, %v1772_v58, %v1825_v27 }
 0x200   : > { %v4427_v21 = vpop.permute.xlu0 %1648  ;;  %v1713_v62 = vrot.slane %v4421_v7, %v4311_v37 }
 0x203   : > { %v4425_v17 = vpop.permute.xlu1 %1645 }
 0x204   : > { %v4431_v33 = vpop.permute.xlu0 %1612  ;;  %v1776_v52 = vrot.slane %v4425_v17, %v4311_v37  ;;  %v1718_v17 = vsel %vm984_vm0, %v1717_v54, %v1713_v62 }
 0x205   : > { %v1726_v63 = vrot.slane %v4431_v33, %v4313_v38 }
 0x207   : > { %v4429_v25 = vpop.permute.xlu1 %1609 }
 0x208   : > { %v4435_v55 = vpop.permute.xlu0 %1654  ;;  %v1722_v26 = vrot.slane %v4429_v25, %v4311_v37  ;;  %v1780_v25 = vrot.slane %v4427_v21, %v4313_v38 }
 0x20b   : > { %v4433_v32 = vpop.permute.xlu1 %1651 }
 0x20c   : > { %v4439_v0 = vpop.permute.xlu0 %1618  ;;  %v1785_v3 = vrot.slane %v4433_v32, %v4311_v37 }
 0x20d   : > { %v1735_v33 = vrot.slane %v4439_v0, %v4313_v38  ;;  %v1781_v0 = vsel %vm984_vm0, %v1780_v25, %v1776_v52 }
 0x20e   : > { %v1827_v50 = vsel %vm1125_vm3, %v1781_v0, %v1826_v20 }
 0x20f   : > { %v4437_v9 = vpop.permute.xlu1 %1615 }
 0x210   : > { %v4443_v4 = vpop.permute.xlu0 %1660  ;;  %v1731_v39 = vrot.slane %v4437_v9, %v4311_v37  ;;  %v4569_v9 = vld [vmem:[%s4928_s5 + $0x70] sm:$0xff] }
 0x211   : > { %v1798_v49 = vrot.slane %v4443_v4, %v4313_v38  ;;  %v4593_v4 = vld [vmem:[%s4928_s5 + $0x78] sm:$0xff] }
 0x213   : > { %v4441_v46 = vpop.permute.xlu1 %1657 }
 0x214   : > { %v4474_v61 = vpop.permute.xlu0 %1624  ;;  %v1794_v32 = vrot.slane %v4441_v46, %v4311_v37  ;;  %v1736_v46 = vsel %vm984_vm0, %v1735_v33, %v1731_v39 }
 0x216   : > { %v1799_v40 = vsel %vm984_vm0, %v1798_v49, %v1794_v32 }
 0x217   : > { %v4458_v51 = vpop.permute.xlu1 %1621 }
 0x218   : > { %v1667_v53 = vpop.permute.xlu0 %1666  ;;  %v1740_v43 = vrot.slane %v4458_v51, %v4311_v37 }
 0x219   : > { %v1807_v11 = vrot.slane %v1667_v53, %v4313_v38  ;;  %v4631_v53 = vld [vmem:[%s4928_s5 + $0x10] sm:$0xff] }
 0x21b   : > { %v1664_v10 = vpop.permute.xlu1 %1663 }
 0x21c   : > { %v1803_v21 = vrot.slane %v1664_v10, %v4311_v37  ;;  %v1673_v51 = vpop.permute.xlu0 %1672 }
 0x21d   : > { %v1816_v47 = vrot.slane %v1673_v51, %v4313_v38 }
 0x21e   : > { %v1808_v15 = vsel %vm984_vm0, %v1807_v11, %v1803_v21 }
 0x21f   : > { %v1670_v7 = vpop.permute.xlu1 %1669 }
 0x220   : > { %v1812_v2 = vrot.slane %v1670_v7, %v4311_v37 }
 0x221   : > { %v4648_v27 = vpop.permute.xlu0 %2224 }
 0x222   : > { %v1817_v10 = vsel %vm984_vm0, %v1816_v47, %v1812_v2 }
 0x224   : > { %v4642_v48 = vpop.permute.xlu1 %2221 }
 0x228   : > { %v4644_v62 = vpop.permute.xlu1 %2227 }
 0x22c   : > { %v4646_v19 = vpop.permute.xlu1 %2230 }
 0x230   : > { %v4650_v24 = vpop.permute.xlu1 %2236 }
 0x2b6   : > { %v3317_v42 = vpop.f32.mrb[0].mxu1 }
 0x2b7   : > { %v1213_v59 = vpop.f32.mrb[1].mxu1 }
 0x2b8   : > { %v3452_v45 = vpack.c.bf16 %v3317_v42, %v1213_v59  ;;  %v1727_v42 = vsel %vm984_vm0, %v1726_v63, %v1722_v26  ;;  %v1789_v59 = vrot.slane %v4435_v55, %v4313_v38  ;;  %v1821_v55 = vsel %vm1127_vm4, %v1718_v17, %v1820_v29  ;;  %v4652_v26 = vpop.permute.xlu0 %2233  ;;  %v4654_v29 = vpop.permute.xlu1 %2272 }
 0x2b9   : > { %v1822_v30 = vsel %vm1129_vm5, %v1727_v42, %v1821_v55 }
 0x2ba   : > { %3453 = vmatprep.subr.bf16.mxu0 %v3452_v45  ;;  %3472 = vmatprep.subr.bf16.mxu1 %v3452_v45  ;;  %v1790_v5 = vsel %vm984_vm0, %v1789_v59, %v1785_v3  ;;  %v1823_v56 = vsel %vm1131_vm6, %v1736_v46, %v1822_v30 }
 0x2bb   : > { %3455 = vmatpush3.bf16.msra.mxu0 %v3452_v45  ;;  %3473 = vmatpush3.bf16.msra.mxu1 %v3452_v45  ;;  %v1744_v45 = vrot.slane %v4474_v61, %v4313_v38  ;;  %v1828_v16 = vsel %vm1127_vm4, %v1790_v5, %v1827_v50 }
 0x2bc   : > { %3457 = vmatprep.subr.bf16.mxu1 %v4272_v1  ;;  %v1829_v34 = vsel %vm1129_vm5, %v1799_v40, %v1828_v16  ;;  %v4656_v54 = vpop.permute.xlu0 %2269  ;;  %v4658_v52 = vpop.permute.xlu1 %2278 }
 0x2bd   : > { %v1745_v61 = vsel %vm984_vm0, %v1744_v45, %v1740_v43  ;;  %v1830_v41 = vsel %vm1131_vm6, %v1808_v15, %v1829_v34 }
 0x2be   : > { %3329 = vmatmul.mubr.msk.f32.vlgmr.msra.gmra.mrb[2].mxu1 %vm1142_vm8, %v4448_v18  ;;  %v1824_v35 = vsel %vm1133_vm7, %v1745_v61, %v1823_v56  ;;  %v1831_v14 = vsel %vm1133_vm7, %v1817_v10, %v1830_v41  ;;  %3323 = vmatmul.mubr.msk.f32.vlgmr.msra.gmra.mrb[32].mxu0 %vm1142_vm8, %v4622_v31 }
 0x2bf   : > { %3459 = vmatpush3.bf16.msra.mxu1 %v4272_v1  ;;  %3331 = vmatprep.mubr.msk.f32.mxu1 %vm1142_vm8, %v4454_v8 }
 0x2c0   : > { %3325 = vmatprep.mubr.msk.f32.mxu0 %vm1142_vm8, %v4631_v53  ;;  %v4660_v39 = vpop.permute.xlu0 %2275  ;;  %v4662_v58 = vpop.permute.xlu1 %2242 }
 0x2c2   : > { %3332 = vmatmul.mubr.msk.f32.gmra.mrb[4].mxu1 %vm1142_vm8, %v4466_v28  ;;  %3326 = vmatmul.mubr.msk.f32.gmra.mrb[34].mxu0 %vm1142_vm8, %v4636_v60 }
 0x2c3   : > { %3334 = vmatprep.mubr.msk.f32.mxu1 %vm1142_vm8, %v4471_v57 }
 0x2c4   : > { %v4664_v63 = vpop.permute.xlu0 %2239  ;;  %v4666_v3 = vpop.permute.xlu1 %2284 }
 0x2c6   : > { %3335 = vmatmul.mubr.msk.f32.gmra.mrb[6].mxu1 %vm1142_vm8, %v4489_v36 }
 0x2c7   : > { %3337 = vmatprep.mubr.msk.f32.mxu1 %vm1142_vm8, %v4498_v22 }
 0x2c8   : > { %v4668_v7 = vpop.permute.xlu0 %2281  ;;  %v4670_v45 = vpop.permute.xlu1 %2248 }
 0x2ca   : > { %3338 = vmatmul.mubr.msk.f32.gmra.mrb[8].mxu1 %vm1142_vm8, %v4519_v44 }
 0x2cb   : > { %3340 = vmatprep.mubr.msk.f32.mxu1 %vm1142_vm8, %v4528_v23 }
 0x2cc   : > { %v4672_v46 = vpop.permute.xlu0 %2245  ;;  %v4674_v20 = vpop.permute.xlu1 %2290 }
 0x2ce   : > { %3341 = vmatmul.mubr.msk.f32.gmra.mrb[10].mxu1 %vm1142_vm8, %v4557_v12 }
 0x2cf   : > { %3343 = vmatprep.mubr.msk.f32.mxu1 %vm1142_vm8, %v4569_v9 }
 0x2d0   : > { %v4676_v50 = vpop.permute.xlu0 %2287 }
 0x2d2   : > { %3344 = vmatmul.mubr.msk.f32.gmra.mrb[12].mxu1 %vm1142_vm8, %v4593_v4 }
 0x2d3   : > { %3350 = vmatprep.mubr.msk.f32.mxu1 %vm1142_vm8, %v1824_v35 }
 0x2d6   : > { %3351 = vmatmul.mubr.msk.f32.vlgmr.msra.gmra.mrb[14].mxu1 %vm1142_vm8, %v1831_v14 }
 0x2d7   : > { %3357 = vmatprep.mubr.msk.f32.mxu1 %vm1142_vm8, %v4615_v6 }
 0x391   : > { %v3330_v43 = vpop.f32.mrb[2].mxu1 }
 0x392   : > { %v1420_v17 = vsub.f32 0.0, %v3330_v43  ;;  %v1356_v25 = vpop.f32.mrb[3].mxu1 }
 0x393   : > { %v1419_v33 = vsub.f32 0.0, %v1356_v25 }
 0x394   : > { %v1441_v32 = vmul.f32 1.442695, %v1420_v17  ;;  %v4678_v17 = vpop.permute.xlu1 %2254 }
 0x395   : > { %v1439_v42 = vmul.f32 1.442695, %v1419_v33  ;;  %v3333_v59 = vpop.f32.mrb[4].mxu1 }
 0x396   : > { %3536 = vpow2.f32 %v1441_v32  ;;  %v1422_v21 = vsub.f32 0.0, %v3333_v59  ;;  %v1366_v51 = vpop.f32.mrb[5].mxu1 }
 0x397   : > { %3538 = vpow2.f32 %v1439_v42  ;;  %v1421_v0 = vsub.f32 0.0, %v1366_v51 }
 0x398   : > { %v1445_v49 = vmul.f32 1.442695, %v1422_v21  ;;  %v4680_v21 = vpop.permute.xlu0 %2251 }
 0x399   : > { %v1443_v2 = vmul.f32 1.442695, %v1421_v0  ;;  %v3336_v55 = vpop.f32.mrb[6].mxu1 }
 0x39a   : > { %3540 = vpow2.f32 %v1445_v49  ;;  %v1424_v5 = vsub.f32 0.0, %v3336_v55  ;;  %v1376_v61 = vpop.f32.mrb[7].mxu1 }
 0x39b   : > { %3542 = vpow2.f32 %v1443_v2  ;;  %v1423_v11 = vsub.f32 0.0, %v1376_v61 }
 0x39c   : > { %v1449_v30 = vmul.f32 1.442695, %v1424_v5 }
 0x39d   : > { %v1447_v40 = vmul.f32 1.442695, %v1423_v11  ;;  %v3339_v47 = vpop.f32.mrb[8].mxu1 }
 0x39e   : > { %3544 = vpow2.f32 %v1449_v30  ;;  %v1426_v15 = vsub.f32 0.0, %v3339_v47  ;;  %v1386_v56 = vpop.f32.mrb[9].mxu1  ;;  %v4683_v47 = vpop.permute.xlu1 %2296 }
 0x39f   : > { %3546 = vpow2.f32 %v1447_v40  ;;  %v1425_v16 = vsub.f32 0.0, %v1386_v56 }
 0x3a0   : > { %v3537_v10 = vpop.eup %3536  ;;  %v1453_v35 = vmul.f32 1.442695, %v1426_v15 }
 0x3a1   : > { %v3539_v34 = vpop.eup %3538  ;;  %v1468_v41 = vadd.f32 1.0, %v3537_v10  ;;  %v1451_v14 = vmul.f32 1.442695, %v1425_v16  ;;  %v3342_v43 = vpop.f32.mrb[10].mxu1 }
 0x3a2   : > { %v1467_v25 = vadd.f32 1.0, %v3539_v34  ;;  %3548 = vpow2.f32 %v1453_v35  ;;  %v1428_v33 = vsub.f32 0.0, %v3342_v43  ;;  %v1396_v32 = vpop.f32.mrb[11].mxu1  ;;  %v4685_v34 = vpop.permute.xlu0 %2293 }
 0x3a3   : > { %3550 = vrcp.f32 %v1468_v41  ;;  %v1427_v42 = vsub.f32 0.0, %v1396_v32 }
 0x3a4   : > { %v3541_v59 = vpop.eup %3540  ;;  %3552 = vrcp.f32 %v1467_v25  ;;  %v1457_v51 = vmul.f32 1.442695, %v1428_v33 }
 0x3a5   : > { %v3543_v0 = vpop.eup %3542  ;;  %v1470_v49 = vadd.f32 1.0, %v3541_v59  ;;  %3554 = vpow2.f32 %v1451_v14  ;;  %v1455_v2 = vmul.f32 1.442695, %v1427_v42  ;;  %v3345_v55 = vpop.f32.mrb[12].mxu1 }
 0x3a6   : > { %v1469_v5 = vadd.f32 1.0, %v3543_v0  ;;  %3556 = vpow2.f32 %v1457_v51  ;;  %v1430_v61 = vsub.f32 0.0, %v3345_v55  ;;  %v1406_v11 = vpop.f32.mrb[13].mxu1  ;;  %v4692_v59 = vpop.permute.xlu1 %2260 }
 0x3a7   : > { %3558 = vrcp.f32 %v1470_v49  ;;  %v1429_v30 = vsub.f32 0.0, %v1406_v11  ;;  %v4697_v49 = vpop.permute.xlu0 %2257 }
 0x3a8   : > { %v3545_v40 = vpop.eup %3544  ;;  %3560 = vrcp.f32 %v1469_v5  ;;  %v1461_v15 = vmul.f32 1.442695, %v1430_v61 }
 0x3a9   : > { %v3547_v56 = vpop.eup %3546  ;;  %v1472_v16 = vadd.f32 1.0, %v3545_v40  ;;  %3562 = vpow2.f32 %v1455_v2  ;;  %v1459_v10 = vmul.f32 1.442695, %v1429_v30  ;;  %v3352_v35 = vpop.f32.mrb[14].mxu1 }
 0x3aa   : > { %v1471_v41 = vadd.f32 1.0, %v3547_v56  ;;  %3564 = vpow2.f32 %v1461_v15  ;;  %v1902_v14 = vpop.f32.mrb[15].mxu1  ;;  %v4706_v40 = vpop.permute.xlu1 %2302 }
 0x3ab   : > { %3566 = vrcp.f32 %v1472_v16  ;;  %v3460_v43 = vpack.c.bf16 %v3352_v35, %v1902_v14  ;;  %v4710_v35 = vpop.permute.xlu0 %2299 }
 0x3ac   : > { %v3549_v25 = vpop.eup %3548  ;;  %3568 = vrcp.f32 %v1471_v41 }
 0x3ad   : > { %v3551_v33 = vpop.eup %3550  ;;  %v1474_v32 = vadd.f32 1.0, %v3549_v25  ;;  %3570 = vpow2.f32 %v1459_v10  ;;  %3461 = vmatprep.subr.bf16.mxu1 %v3460_v43  ;;  %v2332_v25 = vrot.slane %v4646_v19, %v4313_v38  ;;  %v2337_v19 = vrot.slane %v4652_v26, %v4311_v37 }
 0x3ae   : > { %v3553_v42 = vpop.eup %3552  ;;  %1500 = vst [vmem:[%s4690_s14 + $0x28] sm:$0xff] %v3551_v33  ;;  %3463 = vmatpush3.bf16.msra.mxu1 %v3460_v43  ;;  %v4718_v43 = vpop.permute.xlu1 %2266  ;;  %v2400_v26 = vrot.slane %v4660_v39, %v4311_v37 }
 0x3af   : > { %v3555_v51 = vpop.eup %3554  ;;  %1499 = vst [vmem:[%s4690_s14 + $0x20] sm:$0xff] %v3553_v42  ;;  %3572 = vrcp.f32 %v1474_v32  ;;  %3465 = vmatprep.subr.bf16.mxu1 %v4272_v1  ;;  %v2341_v32 = vrot.slane %v4650_v24, %v4313_v38  ;;  %v4727_v42 = vpop.permute.xlu0 %2263  ;;  %v2404_v24 = vrot.slane %v4658_v52, %v4313_v38  ;;  %v2395_v52 = vrot.slane %v4654_v29, %v4313_v38 }
 0x3b0   : > { %v3557_v0 = vpop.eup %3556  ;;  %v1473_v2 = vadd.f32 1.0, %v3555_v51 }
 0x3b1   : > { %v3559_v55 = vpop.eup %3558  ;;  %v1476_v5 = vadd.f32 1.0, %v3557_v0  ;;  %3358 = vmatmul.mubr.msk.f32.vlgmr.msra.gmra.mrb[16].mxu1 %vm1142_vm8, %v4622_v31  ;;  %v2319_v0 = vrot.slane %v4642_v48, %v4311_v37  ;;  %v2323_v48 = vrot.slane %v4648_v27, %v4313_v38  ;;  %v2346_v27 = vrot.slane %v4664_v63, %v4311_v37 }
 0x3b2   : > { %v3561_v61 = vpop.eup %3560  ;;  %1502 = vst [vmem:[%s4690_s14 + $0x38] sm:$0xff] %v3559_v55  ;;  %3574 = vrcp.f32 %v1473_v2  ;;  %3467 = vmatpush3.bf16.msra.mxu1 %v4272_v1  ;;  %3360 = vmatprep.mubr.msk.f32.mxu1 %vm1142_vm8, %v4631_v53  ;;  %v2328_v2 = vrot.slane %v4644_v62, %v4311_v37  ;;  %v2350_v55 = vrot.slane %v4662_v58, %v4313_v38 }
 0x3b3   : > { %v3563_v11 = vpop.eup %3562  ;;  %1501 = vst [vmem:[%s4690_s14 + $0x30] sm:$0xff] %v3561_v61  ;;  %3576 = vrcp.f32 %v1476_v5  ;;  %v2342_v61 = vsel %vm984_vm0, %v2341_v32, %v2337_v19  ;;  %v2391_v58 = vrot.slane %v4656_v54, %v4311_v37  ;;  %v2359_v54 = vrot.slane %v4670_v45, %v4313_v38 }
 0x3b4   : > { %v3565_v30 = vpop.eup %3564  ;;  %v1475_v15 = vadd.f32 1.0, %v3563_v11  ;;  %v2333_v62 = vsel %vm984_vm0, %v2332_v25, %v2328_v2  ;;  %v2309_v11 = vpop.permute.xlu1 %2308  ;;  %v2351_v63 = vsel %vm984_vm0, %v2350_v55, %v2346_v27  ;;  %v2355_v25 = vrot.slane %v4672_v46, %v4311_v37 }
 0x3b5   : > { %v3567_v56 = vpop.eup %3566  ;;  %v1478_v16 = vadd.f32 1.0, %v3565_v30  ;;  %3361 = vmatmul.mubr.msk.f32.gmra.mrb[18].mxu1 %vm1142_vm8, %v4636_v60  ;;  %v2422_v45 = vrot.slane %v4674_v20, %v4313_v38  ;;  %v2364_v46 = vrot.slane %v4680_v21, %v4311_v37  ;;  %v2373_v2 = vrot.slane %v4697_v49, %v4311_v37 }
 0x3b6   : > { %v3569_v10 = vpop.eup %3568  ;;  %1504 = vst [vmem:[%s4690_s14 + $0x48] sm:$0xff] %v3567_v56  ;;  %3578 = vrcp.f32 %v1475_v15  ;;  %3363 = vmatprep.mubr.msk.f32.mxu1 %vm1142_vm8, %v4405_v13  ;;  %v2324_v15 = vsel %vm984_vm0, %v2323_v48, %v2319_v0  ;;  %v2405_v56 = vsel %vm984_vm0, %v2404_v24, %v2400_v26  ;;  %v2440_v21 = vrot.slane %v4706_v40, %v4313_v38 }
 0x3b7   : > { %v3571_v1 = vpop.eup %3570  ;;  %1503 = vst [vmem:[%s4690_s14 + $0x40] sm:$0xff] %v3569_v10  ;;  %3580 = vrcp.f32 %v1478_v16  ;;  %v2460_v39 = vsel %vm1121_vm1, %v2333_v62, %v2324_v15  ;;  %v2306_v16 = vpop.permute.xlu0 %2305  ;;  %v2413_v10 = vrot.slane %v4666_v3, %v4313_v38  ;;  %v2418_v3 = vrot.slane %v4676_v50, %v4311_v37 }
 0x3b8   : > { %v1477_v41 = vadd.f32 1.0, %v3571_v1  ;;  %v2461_v29 = vsel %vm1123_vm2, %v2342_v61, %v2460_v39  ;;  %v2386_v50 = vrot.slane %v4718_v43, %v4313_v38  ;;  %v2315_v0 = vpop.permute.xlu1 %2314  ;;  %v2382_v43 = vrot.slane %v4727_v42, %v4311_v37 }
 0x3b9   : > { %v3573_v14 = vpop.eup %3572  ;;  %3364 = vmatmul.mubr.msk.f32.gmra.mrb[20].mxu1 %vm1142_vm8, %v4448_v18  ;;  %v2449_v48 = vrot.slane %v2309_v11, %v4313_v38  ;;  %v2423_v62 = vsel %vm984_vm0, %v2422_v45, %v2418_v3  ;;  %v2436_v55 = vrot.slane %v4710_v35, %v4311_v37  ;;  %v2458_v40 = vrot.slane %v2315_v0, %v4313_v38 }
 0x3ba   : > { %1506 = vst [vmem:[%s4690_s14 + $0x58] sm:$0xff] %v3573_v14  ;;  %3582 = vrcp.f32 %v1477_v41  ;;  %3366 = vmatprep.mubr.msk.f32.mxu1 %vm1142_vm8, %v4454_v8  ;;  %v2396_v41 = vsel %vm984_vm0, %v2395_v52, %v2391_v58  ;;  %v2409_v14 = vrot.slane %v4668_v7, %v4311_v37  ;;  %v2462_v7 = vsel %vm1125_vm3, %v2351_v63, %v2461_v29 }
 0x3bb   : > { %v2467_v32 = vsel %vm1121_vm1, %v2405_v56, %v2396_v41  ;;  %v2312_v24 = vpop.permute.xlu0 %2311  ;;  %v2445_v42 = vrot.slane %v2306_v16, %v4311_v37  ;;  %v2387_v26 = vsel %vm984_vm0, %v2386_v50, %v2382_v43 }
 0x3bc   : > { %v3575_v33 = vpop.eup %3574  ;;  %v2414_v20 = vsel %vm984_vm0, %v2413_v10, %v2409_v14  ;;  %v2454_v52 = vrot.slane %v2312_v24, %v4311_v37 }
 0x3bd   : > { %v3577_v51 = vpop.eup %3576  ;;  %1505 = vst [vmem:[%s4690_s14 + $0x50] sm:$0xff] %v3575_v33  ;;  %3367 = vmatmul.mubr.msk.f32.gmra.mrb[22].mxu1 %vm1142_vm8, %v4466_v28  ;;  %v2368_v33 = vrot.slane %v4678_v17, %v4313_v38  ;;  %v2431_v17 = vrot.slane %v4683_v47, %v4313_v38  ;;  %v2427_v47 = vrot.slane %v4685_v34, %v4311_v37 }
 0x3be   : > { %1508 = vst [vmem:[%s4690_s14 + $0x68] sm:$0xff] %v3577_v51  ;;  %3369 = vmatprep.mubr.msk.f32.mxu1 %vm1142_vm8, %v4471_v57  ;;  %v2377_v51 = vrot.slane %v4692_v59, %v4313_v38  ;;  %v2360_v59 = vsel %vm984_vm0, %v2359_v54, %v2355_v25  ;;  %v2468_v35 = vsel %vm1123_vm2, %v2414_v20, %v2467_v32 }
 0x3bf   : > { %v2369_v19 = vsel %vm984_vm0, %v2368_v33, %v2364_v46  ;;  %v2463_v34 = vsel %vm1127_vm4, %v2360_v59, %v2462_v7  ;;  %v2441_v38 = vsel %vm984_vm0, %v2440_v21, %v2436_v55  ;;  %v2469_v11 = vsel %vm1125_vm3, %v2423_v62, %v2468_v35 }
 0x3c0   : > { %v3579_v5 = vpop.eup %3578  ;;  %v2378_v49 = vsel %vm984_vm0, %v2377_v51, %v2373_v2  ;;  %v2464_v61 = vsel %vm1129_vm5, %v2369_v19, %v2463_v34  ;;  %v2459_v58 = vsel %vm984_vm0, %v2458_v40, %v2454_v52 }
 0x3c1   : > { %v3581_v30 = vpop.eup %3580  ;;  %1507 = vst [vmem:[%s4690_s14 + $0x60] sm:$0xff] %v3579_v5  ;;  %3370 = vmatmul.mubr.msk.f32.gmra.mrb[24].mxu1 %vm1142_vm8, %v4489_v36  ;;  %v2432_v5 = vsel %vm984_vm0, %v2431_v17, %v2427_v47  ;;  %v2465_v15 = vsel %vm1131_vm6, %v2378_v49, %v2464_v61 }
 0x3c2   : > { %1510 = vst [vmem:[%s4690_s14 + $0x78] sm:$0xff] %v3581_v30  ;;  %3372 = vmatprep.mubr.msk.f32.mxu1 %vm1142_vm8, %v4498_v22  ;;  %v2450_v30 = vsel %vm984_vm0, %v2449_v48, %v2445_v42  ;;  %v2470_v27 = vsel %vm1127_vm4, %v2432_v5, %v2469_v11  ;;  %v2466_v39 = vsel %vm1133_vm7, %v2387_v26, %v2465_v15 }
 0x3c3   : > { %v2471_v56 = vsel %vm1129_vm5, %v2441_v38, %v2470_v27 }
 0x3c4   : > { %v3583_v1 = vpop.eup %3582  ;;  %v2472_v37 = vsel %vm1131_vm6, %v2450_v30, %v2471_v56 }
 0x3c5   : > { %1509 = vst [vmem:[%s4690_s14 + $0x70] sm:$0xff] %v3583_v1  ;;  %3373 = vmatmul.mubr.msk.f32.gmra.mrb[26].mxu1 %vm1142_vm8, %v4519_v44  ;;  %v2473_v16 = vsel %vm1133_vm7, %v2459_v58, %v2472_v37 }
 0x3c6   : > { %3375 = vmatprep.mubr.msk.f32.mxu1 %vm1142_vm8, %v4528_v23 }
 0x3c9   : > { %3376 = vmatmul.mubr.msk.f32.gmra.mrb[28].mxu1 %vm1142_vm8, %v4557_v12 }
 0x3ca   : > { %3378 = vmatprep.mubr.msk.f32.mxu1 %vm1142_vm8, %v4569_v9 }
 0x3cd   : > { %3379 = vmatmul.mubr.msk.f32.gmra.mrb[30].mxu1 %vm1142_vm8, %v4593_v4 }
 0x3ce   : > { %3385 = vmatprep.mubr.msk.f32.mxu1 %vm1142_vm8, %v2466_v39 }
 0x3d1   : > { %3386 = vmatmul.mubr.msk.f32.vlgmr.msra.gmra.mrb[32].mxu1 %vm1142_vm8, %v2473_v16 }
 0x3d2   : > { %3392 = vmatprep.mubr.msk.f32.mxu1 %vm1142_vm8, %v4615_v6 }
 0x484   : > { %v3359_v29 = vpop.f32.mrb[16].mxu1 }
 0x485   : > { %v2057_v63 = vsub.f32 0.0, %v3359_v29  ;;  %v1977_v10 = vpop.f32.mrb[17].mxu1 }
 0x486   : > { %v2056_v54 = vsub.f32 0.0, %v1977_v10 }
 0x487   : > { %v2074_v1 = vmul.f32 1.442695, %v2057_v63 }
 0x488   : > { %v2072_v41 = vmul.f32 1.442695, %v2056_v54  ;;  %v3362_v14 = vpop.f32.mrb[18].mxu1 }
 0x489   : > { %3584 = vpow2.f32 %v2074_v1  ;;  %v2059_v25 = vsub.f32 0.0, %v3362_v14  ;;  %v1987_v33 = vpop.f32.mrb[19].mxu1 }
 0x48a   : > { %3586 = vpow2.f32 %v2072_v41  ;;  %v2058_v32 = vsub.f32 0.0, %v1987_v33 }
 0x48b   : > { %v2078_v3 = vmul.f32 1.442695, %v2059_v25 }
 0x48c   : > { %v2076_v45 = vmul.f32 1.442695, %v2058_v32  ;;  %v3365_v51 = vpop.f32.mrb[20].mxu1 }
 0x48d   : > { %3588 = vpow2.f32 %v2078_v3  ;;  %v2061_v7 = vsub.f32 0.0, %v3365_v51  ;;  %v1997_v46 = vpop.f32.mrb[21].mxu1 }
 0x48e   : > { %3590 = vpow2.f32 %v2076_v45  ;;  %v2060_v6 = vsub.f32 0.0, %v1997_v46 }
 0x48f   : > { %v2082_v17 = vmul.f32 1.442695, %v2061_v7 }
 0x490   : > { %v2080_v50 = vmul.f32 1.442695, %v2060_v6  ;;  %v3368_v0 = vpop.f32.mrb[22].mxu1 }
 0x491   : > { %3592 = vpow2.f32 %v2082_v17  ;;  %v2063_v20 = vsub.f32 0.0, %v3368_v0  ;;  %v2007_v59 = vpop.f32.mrb[23].mxu1 }
 0x492   : > { %3594 = vpow2.f32 %v2080_v50  ;;  %v2062_v2 = vsub.f32 0.0, %v2007_v59 }
 0x493   : > { %v3585_v21 = vpop.eup %3584  ;;  %v2086_v47 = vmul.f32 1.442695, %v2063_v20 }
 0x494   : > { %v3587_v19 = vpop.eup %3586  ;;  %v2105_v43 = vadd.f32 1.0, %v3585_v21  ;;  %v2084_v24 = vmul.f32 1.442695, %v2062_v2  ;;  %v3371_v48 = vpop.f32.mrb[24].mxu1 }
 0x495   : > { %v2104_v62 = vadd.f32 1.0, %v3587_v19  ;;  %3596 = vpow2.f32 %v2086_v47  ;;  %v2065_v55 = vsub.f32 0.0, %v3371_v48  ;;  %v2017_v49 = vpop.f32.mrb[25].mxu1 }
 0x496   : > { %3598 = vrcp.f32 %v2105_v43  ;;  %v2064_v40 = vsub.f32 0.0, %v2017_v49 }
 0x497   : > { %v3589_v34 = vpop.eup %3588  ;;  %3600 = vrcp.f32 %v2104_v62  ;;  %v2090_v5 = vmul.f32 1.442695, %v2065_v55 }
 0x498   : > { %v3591_v42 = vpop.eup %3590  ;;  %v2107_v26 = vadd.f32 1.0, %v3589_v34  ;;  %3602 = vpow2.f32 %v2084_v24  ;;  %v2088_v35 = vmul.f32 1.442695, %v2064_v40  ;;  %v3374_v61 = vpop.f32.mrb[26].mxu1 }
 0x499   : > { %v2106_v38 = vadd.f32 1.0, %v3591_v42  ;;  %3604 = vpow2.f32 %v2090_v5  ;;  %v2067_v52 = vsub.f32 0.0, %v3374_v61  ;;  %v2027_v11 = vpop.f32.mrb[27].mxu1 }
 0x49a   : > { %3606 = vrcp.f32 %v2107_v26  ;;  %v2066_v30 = vsub.f32 0.0, %v2027_v11 }
 0x49b   : > { %v3593_v15 = vpop.eup %3592  ;;  %3608 = vrcp.f32 %v2106_v38  ;;  %v2094_v27 = vmul.f32 1.442695, %v2067_v52 }
 0x49c   : > { %v3595_v58 = vpop.eup %3594  ;;  %v2109_v39 = vadd.f32 1.0, %v3593_v15  ;;  %3610 = vpow2.f32 %v2088_v35  ;;  %v2092_v56 = vmul.f32 1.442695, %v2066_v30  ;;  %v3377_v37 = vpop.f32.mrb[28].mxu1 }
 0x49d   : > { %v2108_v16 = vadd.f32 1.0, %v3595_v58  ;;  %3612 = vpow2.f32 %v2094_v27  ;;  %v2069_v29 = vsub.f32 0.0, %v3377_v37  ;;  %v2037_v63 = vpop.f32.mrb[29].mxu1 }
 0x49e   : > { %3614 = vrcp.f32 %v2109_v39  ;;  %v2068_v10 = vsub.f32 0.0, %v2037_v63 }
 0x49f   : > { %v3597_v54 = vpop.eup %3596  ;;  %3616 = vrcp.f32 %v2108_v16  ;;  %v2098_v1 = vmul.f32 1.442695, %v2069_v29 }
 0x4a0   : > { %v3599_v41 = vpop.eup %3598  ;;  %v2111_v14 = vadd.f32 1.0, %v3597_v54  ;;  %3618 = vpow2.f32 %v2092_v56  ;;  %v2096_v25 = vmul.f32 1.442695, %v2068_v10  ;;  %v3380_v33 = vpop.f32.mrb[30].mxu1 }
 0x4a1   : > { %v3601_v32 = vpop.eup %3600  ;;  %2986 = vst [vmem:[%s4690_s14 + $0x88] sm:$0xff] %v3599_v41  ;;  %3620 = vpow2.f32 %v2098_v1  ;;  %v2071_v3 = vsub.f32 0.0, %v3380_v33  ;;  %v2047_v45 = vpop.f32.mrb[31].mxu1 }
 0x4a2   : > { %v3603_v51 = vpop.eup %3602  ;;  %2985 = vst [vmem:[%s4690_s14 + $0x80] sm:$0xff] %v3601_v32  ;;  %3622 = vrcp.f32 %v2111_v14  ;;  %v2070_v7 = vsub.f32 0.0, %v2047_v45 }
 0x4a3   : > { %v3605_v46 = vpop.eup %3604  ;;  %v2110_v6 = vadd.f32 1.0, %v3603_v51  ;;  %3624 = vpow2.f32 %v2096_v25  ;;  %v2102_v17 = vmul.f32 1.442695, %v2071_v3 }
 0x4a4   : > { %v3607_v50 = vpop.eup %3606  ;;  %v2113_v0 = vadd.f32 1.0, %v3605_v46  ;;  %v2100_v20 = vmul.f32 1.442695, %v2070_v7  ;;  %v3387_v59 = vpop.f32.mrb[32].mxu1 }
 0x4a5   : > { %v3609_v2 = vpop.eup %3608  ;;  %2988 = vst [vmem:[%s4690_s14 + $0x98] sm:$0xff] %v3607_v50  ;;  %3626 = vrcp.f32 %v2110_v6  ;;  %v2544_v21 = vpop.f32.mrb[33].mxu1 }
 0x4a6   : > { %v3611_v47 = vpop.eup %3610  ;;  %2987 = vst [vmem:[%s4690_s14 + $0x90] sm:$0xff] %v3609_v2  ;;  %3628 = vrcp.f32 %v2113_v0  ;;  %v3468_v19 = vpack.c.bf16 %v3387_v59, %v2544_v21 }
 0x4a7   : > { %v3613_v43 = vpop.eup %3612  ;;  %v2112_v24 = vadd.f32 1.0, %v3611_v47  ;;  %3630 = vpow2.f32 %v2102_v17 }
 0x4a8   : > { %v3615_v48 = vpop.eup %3614  ;;  %v2115_v62 = vadd.f32 1.0, %v3613_v43  ;;  %3632 = vpow2.f32 %v2100_v20  ;;  %3469 = vmatprep.subr.bf16.mxu1 %v3468_v19 }
 0x4a9   : > { %v3617_v55 = vpop.eup %3616  ;;  %2990 = vst [vmem:[%s4690_s14 + $0xa8] sm:$0xff] %v3615_v48  ;;  %3634 = vrcp.f32 %v2112_v24  ;;  %3471 = vmatpush3.bf16.msra.mxu1 %v3468_v19 }
 0x4aa   : > { %v3619_v49 = vpop.eup %3618  ;;  %2989 = vst [vmem:[%s4690_s14 + $0xa0] sm:$0xff] %v3617_v55  ;;  %3636 = vrcp.f32 %v2115_v62 }
 0x4ab   : > { %v3621_v40 = vpop.eup %3620  ;;  %v2114_v34 = vadd.f32 1.0, %v3619_v49 }
 0x4ac   : > { %v3623_v5 = vpop.eup %3622  ;;  %v2117_v42 = vadd.f32 1.0, %v3621_v40  ;;  %3393 = vmatmul.mubr.msk.f32.vlgmr.msra.gmra.mrb[34].mxu1 %vm1142_vm8, %v4622_v31 }
 0x4ad   : > { %v3625_v26 = vpop.eup %3624  ;;  %2992 = vst [vmem:[%s4690_s14 + $0xb8] sm:$0xff] %v3623_v5  ;;  %3638 = vrcp.f32 %v2114_v34  ;;  %3395 = vmatprep.mubr.msk.f32.mxu1 %vm1142_vm8, %v4631_v53 }
 0x4ae   : > { %3640 = vrcp.f32 %v2117_v42  ;;  %v2116_v35 = vadd.f32 1.0, %v3625_v26 }
 0x4af   : > { %v3627_v61 = vpop.eup %3626 }
 0x4b0   : > { %v3629_v38 = vpop.eup %3628  ;;  %2991 = vst [vmem:[%s4690_s14 + $0xb0] sm:$0xff] %v3627_v61  ;;  %3642 = vrcp.f32 %v2116_v35  ;;  %3396 = vmatmul.mubr.msk.f32.gmra.mrb[36].mxu1 %vm1142_vm8, %v4636_v60 }
 0x4b1   : > { %v3631_v52 = vpop.eup %3630  ;;  %2994 = vst [vmem:[%s4690_s14 + $0xc8] sm:$0xff] %v3629_v38  ;;  %3398 = vmatprep.mubr.msk.f32.mxu1 %vm1142_vm8, %v4405_v13 }
 0x4b2   : > { %v3633_v31 = vpop.eup %3632  ;;  %v2119_v53 = vadd.f32 1.0, %v3631_v52 }
 0x4b3   : > { %v3635_v11 = vpop.eup %3634  ;;  %v2118_v30 = vadd.f32 1.0, %v3633_v31 }
 0x4b4   : > { %v3637_v15 = vpop.eup %3636  ;;  %2993 = vst [vmem:[%s4690_s14 + $0xc0] sm:$0xff] %v3635_v11  ;;  %3644 = vrcp.f32 %v2119_v53  ;;  %3399 = vmatmul.mubr.msk.f32.gmra.mrb[38].mxu1 %vm1142_vm8, %v4448_v18 }
 0x4b5   : > { %2996 = vst [vmem:[%s4690_s14 + $0xd8] sm:$0xff] %v3637_v15  ;;  %3646 = vrcp.f32 %v2118_v30  ;;  %3401 = vmatprep.mubr.msk.f32.mxu1 %vm1142_vm8, %v4454_v8 }
 0x4b7   : > { %v3639_v13 = vpop.eup %3638 }
 0x4b8   : > { %v3641_v60 = vpop.eup %3640  ;;  %2995 = vst [vmem:[%s4690_s14 + $0xd0] sm:$0xff] %v3639_v13  ;;  %3402 = vmatmul.mubr.msk.f32.gmra.mrb[40].mxu1 %vm1142_vm8, %v4466_v28  ;;  %v3324_v28 = vpop.f32.mrb[32].mxu0 }
 0x4b9   : > { %2998 = vst [vmem:[%s4690_s14 + $0xe8] sm:$0xff] %v3641_v60  ;;  %3404 = vmatprep.mubr.msk.f32.mxu1 %vm1142_vm8, %v4471_v57  ;;  %v1336_v57 = vpop.f32.mrb[33].mxu0 }
 0x4ba   : > { %v3643_v27 = vpop.eup %3642  ;;  %v3327_v56 = vpop.f32.mrb[34].mxu0 }
 0x4bb   : > { %2997 = vst [vmem:[%s4690_s14 + $0xe0] sm:$0xff] %v3643_v27  ;;  %v1418_v37 = vsub.f32 0.0, %v3327_v56 }
 0x4bc   : > { %3405 = vmatmul.mubr.msk.f32.gmra.mrb[42].mxu1 %vm1142_vm8, %v4489_v36  ;;  %v1416_v36 = vsub.f32 0.0, %v3324_v28 }
 0x4bd   : > { %3407 = vmatprep.mubr.msk.f32.mxu1 %vm1142_vm8, %v4498_v22  ;;  %v1415_v22 = vsub.f32 0.0, %v1336_v57  ;;  %v1437_v16 = vmul.f32 1.442695, %v1418_v37 }
 0x4be   : > { %v3645_v18 = vpop.eup %3644  ;;  %v1433_v58 = vmul.f32 1.442695, %v1416_v36 }
 0x4bf   : > { %v3647_v8 = vpop.eup %3646  ;;  %3000 = vst [vmem:[%s4690_s14 + $0xf8] sm:$0xff] %v3645_v18  ;;  %v1431_v39 = vmul.f32 1.442695, %v1415_v22 }
 0x4c0   : > { %2999 = vst [vmem:[%s4690_s14 + $0xf0] sm:$0xff] %v3647_v8  ;;  %3408 = vmatmul.mubr.msk.f32.gmra.mrb[44].mxu1 %vm1142_vm8, %v4519_v44  ;;  %v1346_v44 = vpop.f32.mrb[35].mxu0  ;;  %3648 = vpow2.f32 %v1433_v58 }
 0x4c1   : > { %3410 = vmatprep.mubr.msk.f32.mxu1 %vm1142_vm8, %v4528_v23  ;;  %v1417_v23 = vsub.f32 0.0, %v1346_v44  ;;  %3650 = vpow2.f32 %v1431_v39 }
 0x4c2   : > { %3652 = vpow2.f32 %v1437_v16 }
 0x4c4   : > { %3411 = vmatmul.mubr.msk.f32.gmra.mrb[46].mxu1 %vm1142_vm8, %v4557_v12  ;;  %v1435_v12 = vmul.f32 1.442695, %v1417_v23 }
 0x4c5   : > { %3413 = vmatprep.mubr.msk.f32.mxu1 %vm1142_vm8, %v4569_v9 }
 0x4c6   : > { %3654 = vpow2.f32 %v1435_v12 }
 0x4c8   : > { %3414 = vmatmul.mubr.msk.f32.gmra.mrb[48].mxu1 %vm1142_vm8, %v4593_v4 }
 0x4ca   : > { %v3649_v9 = vpop.eup %3648 }
 0x4cb   : > { %v3651_v4 = vpop.eup %3650  ;;  %v1464_v29 = vadd.f32 1.0, %v3649_v9 }
 0x4cc   : > { %v1463_v63 = vadd.f32 1.0, %v3651_v4  ;;  %v3653_v10 = vpop.eup %3652 }
 0x4cd   : > { %3656 = vrcp.f32 %v1464_v29  ;;  %v1466_v1 = vadd.f32 1.0, %v3653_v10 }
 0x4ce   : > { %3658 = vrcp.f32 %v1463_v63 }
 0x4cf   : > { %3660 = vrcp.f32 %v1466_v1 }
 0x4d0   : > { %v3655_v54 = vpop.eup %3654 }
 0x4d1   : > { %v1465_v41 = vadd.f32 1.0, %v3655_v54 }
 0x4d3   : > { %3662 = vrcp.f32 %v1465_v41 }
 0x4d7   : > { %v3657_v14 = vpop.eup %3656 }
 0x4d8   : > { %v3659_v25 = vpop.eup %3658  ;;  %1496 = vst [vmem:[%s4690_s14 + $0x8] sm:$0xff] %v3657_v14 }
 0x4d9   : > { %1495 = vst [vmem:[%s4690_s14] sm:$0xff] %v3659_v25  ;;  %v3661_v33 = vpop.eup %3660 }
 0x4da   : > { %1498 = vst [vmem:[%s4690_s14 + $0x18] sm:$0xff] %v3661_v33 }
 0x4dd   : > { %v3663_v32 = vpop.eup %3662 }
 0x4de   : > { %1497 = vst [vmem:[%s4690_s14 + $0x10] sm:$0xff] %v3663_v32 }
 0x57f   : > { %v3394_v3 = vpop.f32.mrb[34].mxu1 }
 0x580   : > { %v2699_v45 = vsub.f32 0.0, %v3394_v3  ;;  %v2619_v51 = vpop.f32.mrb[35].mxu1 }
 0x581   : > { %v2698_v7 = vsub.f32 0.0, %v2619_v51 }
 0x582   : > { %v2716_v46 = vmul.f32 1.442695, %v2699_v45 }
 0x583   : > { %v2714_v6 = vmul.f32 1.442695, %v2698_v7  ;;  %v3397_v17 = vpop.f32.mrb[36].mxu1 }
 0x584   : > { %3664 = vpow2.f32 %v2716_v46  ;;  %v2701_v50 = vsub.f32 0.0, %v3397_v17  ;;  %v2629_v0 = vpop.f32.mrb[37].mxu1 }
 0x585   : > { %3666 = vpow2.f32 %v2714_v6  ;;  %v2700_v20 = vsub.f32 0.0, %v2629_v0 }
 0x586   : > { %v2720_v59 = vmul.f32 1.442695, %v2701_v50 }
 0x587   : > { %v2718_v2 = vmul.f32 1.442695, %v2700_v20  ;;  %v3400_v21 = vpop.f32.mrb[38].mxu1 }
 0x588   : > { %3668 = vpow2.f32 %v2720_v59  ;;  %v2703_v47 = vsub.f32 0.0, %v3400_v21  ;;  %v2639_v19 = vpop.f32.mrb[39].mxu1 }
 0x589   : > { %3670 = vpow2.f32 %v2718_v2  ;;  %v2702_v43 = vsub.f32 0.0, %v2639_v19 }
 0x58a   : > { %v2724_v24 = vmul.f32 1.442695, %v2703_v47 }
 0x58b   : > { %v2722_v48 = vmul.f32 1.442695, %v2702_v43  ;;  %v3403_v62 = vpop.f32.mrb[40].mxu1 }
 0x58c   : > { %3672 = vpow2.f32 %v2724_v24  ;;  %v2705_v55 = vsub.f32 0.0, %v3403_v62  ;;  %v2649_v49 = vpop.f32.mrb[41].mxu1 }
 0x58d   : > { %3674 = vpow2.f32 %v2722_v48  ;;  %v2704_v40 = vsub.f32 0.0, %v2649_v49 }
 0x58e   : > { %v3665_v34 = vpop.eup %3664  ;;  %v2728_v5 = vmul.f32 1.442695, %v2705_v55 }
 0x58f   : > { %v3667_v42 = vpop.eup %3666  ;;  %v2747_v26 = vadd.f32 1.0, %v3665_v34  ;;  %v2726_v35 = vmul.f32 1.442695, %v2704_v40  ;;  %v3406_v61 = vpop.f32.mrb[42].mxu1 }
 0x590   : > { %v2746_v38 = vadd.f32 1.0, %v3667_v42  ;;  %3676 = vpow2.f32 %v2728_v5  ;;  %v2707_v52 = vsub.f32 0.0, %v3406_v61  ;;  %v2659_v31 = vpop.f32.mrb[43].mxu1 }
 0x591   : > { %3678 = vrcp.f32 %v2747_v26  ;;  %v2706_v53 = vsub.f32 0.0, %v2659_v31 }
 0x592   : > { %v3669_v11 = vpop.eup %3668  ;;  %3680 = vrcp.f32 %v2746_v38  ;;  %v2732_v30 = vmul.f32 1.442695, %v2707_v52 }
 0x593   : > { %v3671_v15 = vpop.eup %3670  ;;  %v2749_v13 = vadd.f32 1.0, %v3669_v11  ;;  %3682 = vpow2.f32 %v2726_v35  ;;  %v2730_v60 = vmul.f32 1.442695, %v2706_v53  ;;  %v3409_v27 = vpop.f32.mrb[44].mxu1 }
 0x594   : > { %v2748_v18 = vadd.f32 1.0, %v3671_v15  ;;  %3684 = vpow2.f32 %v2732_v30  ;;  %v2709_v8 = vsub.f32 0.0, %v3409_v27  ;;  %v2669_v28 = vpop.f32.mrb[45].mxu1 }
 0x595   : > { %3686 = vrcp.f32 %v2749_v13  ;;  %v2708_v57 = vsub.f32 0.0, %v2669_v28 }
 0x596   : > { %v3673_v36 = vpop.eup %3672  ;;  %3688 = vrcp.f32 %v2748_v18  ;;  %v2736_v22 = vmul.f32 1.442695, %v2709_v8 }
 0x597   : > { %v3675_v58 = vpop.eup %3674  ;;  %v2751_v39 = vadd.f32 1.0, %v3673_v36  ;;  %3690 = vpow2.f32 %v2730_v60  ;;  %v2734_v56 = vmul.f32 1.442695, %v2708_v57  ;;  %v3412_v44 = vpop.f32.mrb[46].mxu1 }
 0x598   : > { %v2750_v37 = vadd.f32 1.0, %v3675_v58  ;;  %3692 = vpow2.f32 %v2736_v22  ;;  %v2711_v23 = vsub.f32 0.0, %v3412_v44  ;;  %v2679_v16 = vpop.f32.mrb[47].mxu1 }
 0x599   : > { %3694 = vrcp.f32 %v2751_v39  ;;  %v2710_v12 = vsub.f32 0.0, %v2679_v16 }
 0x59a   : > { %v3677_v9 = vpop.eup %3676  ;;  %3696 = vrcp.f32 %v2750_v37  ;;  %v2740_v4 = vmul.f32 1.442695, %v2711_v23 }
 0x59b   : > { %v3679_v29 = vpop.eup %3678  ;;  %v2753_v63 = vadd.f32 1.0, %v3677_v9  ;;  %3698 = vpow2.f32 %v2734_v56  ;;  %v2738_v10 = vmul.f32 1.442695, %v2710_v12  ;;  %v3415_v54 = vpop.f32.mrb[48].mxu1 }
 0x59c   : > { %v3681_v1 = vpop.eup %3680  ;;  %3020 = vst [vmem:[%s4690_s14 + $0x108] sm:$0xff] %v3679_v29  ;;  %3700 = vpow2.f32 %v2740_v4  ;;  %v2713_v41 = vsub.f32 0.0, %v3415_v54  ;;  %v2689_v14 = vpop.f32.mrb[49].mxu1 }
 0x59d   : > { %v3683_v25 = vpop.eup %3682  ;;  %3019 = vst [vmem:[%s4690_s14 + $0x100] sm:$0xff] %v3681_v1  ;;  %3702 = vrcp.f32 %v2753_v63  ;;  %v2712_v33 = vsub.f32 0.0, %v2689_v14 }
 0x59e   : > { %v3685_v32 = vpop.eup %3684  ;;  %v2752_v3 = vadd.f32 1.0, %v3683_v25  ;;  %3704 = vpow2.f32 %v2738_v10  ;;  %v2744_v45 = vmul.f32 1.442695, %v2713_v41 }
 0x59f   : > { %v3687_v51 = vpop.eup %3686  ;;  %v2755_v7 = vadd.f32 1.0, %v3685_v32  ;;  %v2742_v46 = vmul.f32 1.442695, %v2712_v33 }
 0x5a0   : > { %v3689_v6 = vpop.eup %3688  ;;  %3022 = vst [vmem:[%s4690_s14 + $0x118] sm:$0xff] %v3687_v51  ;;  %3706 = vrcp.f32 %v2752_v3 }
 0x5a1   : > { %v3691_v17 = vpop.eup %3690  ;;  %3021 = vst [vmem:[%s4690_s14 + $0x110] sm:$0xff] %v3689_v6  ;;  %3708 = vrcp.f32 %v2755_v7 }
 0x5a2   : > { %v3693_v50 = vpop.eup %3692  ;;  %v2754_v0 = vadd.f32 1.0, %v3691_v17  ;;  %3710 = vpow2.f32 %v2744_v45 }
 0x5a3   : > { %v3695_v20 = vpop.eup %3694  ;;  %v2757_v59 = vadd.f32 1.0, %v3693_v50  ;;  %3712 = vpow2.f32 %v2742_v46 }
 0x5a4   : > { %v3697_v2 = vpop.eup %3696  ;;  %3024 = vst [vmem:[%s4690_s14 + $0x128] sm:$0xff] %v3695_v20  ;;  %3714 = vrcp.f32 %v2754_v0 }
 0x5a5   : > { %v3699_v21 = vpop.eup %3698  ;;  %3023 = vst [vmem:[%s4690_s14 + $0x120] sm:$0xff] %v3697_v2  ;;  %3716 = vrcp.f32 %v2757_v59 }
 0x5a6   : > { %v3701_v47 = vpop.eup %3700  ;;  %v2756_v19 = vadd.f32 1.0, %v3699_v21 }
 0x5a7   : > { %v3703_v43 = vpop.eup %3702  ;;  %v2759_v24 = vadd.f32 1.0, %v3701_v47 }
 0x5a8   : > { %v3705_v48 = vpop.eup %3704  ;;  %3026 = vst [vmem:[%s4690_s14 + $0x138] sm:$0xff] %v3703_v43  ;;  %3718 = vrcp.f32 %v2756_v19 }
 0x5a9   : > { %3720 = vrcp.f32 %v2759_v24  ;;  %v2758_v62 = vadd.f32 1.0, %v3705_v48 }
 0x5aa   : > { %v3707_v55 = vpop.eup %3706 }
 0x5ab   : > { %v3709_v49 = vpop.eup %3708  ;;  %3025 = vst [vmem:[%s4690_s14 + $0x130] sm:$0xff] %v3707_v55  ;;  %3722 = vrcp.f32 %v2758_v62 }
 0x5ac   : > { %v3711_v40 = vpop.eup %3710  ;;  %3028 = vst [vmem:[%s4690_s14 + $0x148] sm:$0xff] %v3709_v49 }
 0x5ad   : > { %v3713_v34 = vpop.eup %3712  ;;  %v2761_v5 = vadd.f32 1.0, %v3711_v40 }
 0x5ae   : > { %v3715_v42 = vpop.eup %3714  ;;  %v2760_v26 = vadd.f32 1.0, %v3713_v34 }
 0x5af   : > { %v3717_v35 = vpop.eup %3716  ;;  %3027 = vst [vmem:[%s4690_s14 + $0x140] sm:$0xff] %v3715_v42  ;;  %3724 = vrcp.f32 %v2761_v5 }
 0x5b0   : > { %3030 = vst [vmem:[%s4690_s14 + $0x158] sm:$0xff] %v3717_v35  ;;  %3726 = vrcp.f32 %v2760_v26 }
 0x5b2   : > { %v3719_v61 = vpop.eup %3718 }
 0x5b3   : > { %v3721_v38 = vpop.eup %3720  ;;  %3029 = vst [vmem:[%s4690_s14 + $0x150] sm:$0xff] %v3719_v61 }
 0x5b4   : > { %3032 = vst [vmem:[%s4690_s14 + $0x168] sm:$0xff] %v3721_v38 }
 0x5b5   : > { %v3723_v52 = vpop.eup %3722 }
 0x5b6   : > { %3031 = vst [vmem:[%s4690_s14 + $0x160] sm:$0xff] %v3723_v52 }
 0x5b9   : > { %v3725_v31 = vpop.eup %3724 }
 0x5ba   : > { %v3727_v53 = vpop.eup %3726  ;;  %3034 = vst [vmem:[%s4690_s14 + $0x178] sm:$0xff] %v3725_v31 }
 0x5bb   : > { %3033 = vst [vmem:[%s4690_s14 + $0x170] sm:$0xff] %v3727_v53 }
 0x5bc PF: > { %s18_s28 = sadd.s32 1, %s3785_s28   ;;  %s4955_s24 = smov %s3777_s26 }
 0x5bd   : > { %p15_p3 = scmp.ge.s32.totalorder %s18_s28, 6   ;;  %s4956_s25 = smov %s3781_s27 }
 0x5be   : > { %s4957_s26 = smov %s4960_s30  ;;  %s4958_s27 = smov %s4964_s8 }
 0x5bf   :  { %17 = sbr.rel (!%p15_p3) target bundleno = 3 (0x3), region = 94 }
 0x5c6   :  { %2824 = vsyncpa [#allocation3], 1 }
 0x5c7   :  { %2826 = vsyncpa [#allocation3 + $0x1], 1 }

// kernel: segnet_forward.2
= control target key start
LH: loop header
LB: loop body
LE: loop exit
PB: predicated region body
PF: predicated region fallthrough
CT: control target
= control target key end

     0   :  { %s8892_s12 = smov 0   ;;  %s8894_s13 = smov 0   ;;  %s11756_s0 = inlined_call_operand.vmem [shape: bf16[2,2,18,32,256], index: 0, kind: input, shape index: {}]   ;;  %s11757_s1 = inlined_call_operand.vmem [shape: bf16[2,9,256,128], index: 1, kind: input, shape index: {}]   ;;  %s11758_s2 = inlined_call_operand.vmem [shape: bf16[2,2,256,128], index: 2, kind: output, shape index: {0}]   ;;  %s11759_s3 = inlined_call_operand.vmem [shape: f32[2,2,128], index: 3, kind: output, shape index: {1}]  }
   0x1   :  { %s8896_s14 = smov 0   ;;  %s8898_s15 = smov 0  }
   0x2   :  { %s8900_s16 = smov 0  }
   0x3 LB: > { %s23_s17 = sadd.s32 1, %s8861_s14  ;;  %s26_s18 = sadd.s32 1, %s8865_s15  ;;  %s8869_s16 = sphi %s8900_s16, %s14_s16   ;;  %s8865_s15 = sphi %s8898_s15, %s11868_s15   ;;  %s8861_s14 = sphi %s8896_s14, %s11867_s14   ;;  %s8857_s13 = sphi %s8894_s13, %s11866_s13   ;;  %s8853_s12 = sphi %s8892_s12, %s11865_s12  }
   0x4   : > { %p24_p0 = scmp.ge.s32.totalorder %s23_s17, 2  ;;  %p6426_p1 = scmp.ge.s32.totalorder %s8869_s16, 1 }
   0x5   : > { %p170_p2 = scmp.lt.s32.totalorder %s8869_s16, 5 }
   0x6   : > { %s11870_s17 = smov (%p24_p0, %s23_s17), 0  ;;  %s11872_s18 = smov (!%p24_p0, %s26_s18), %s8865_s15 }
   0x7   : > { %p171_p3 = pnand %p6426_p1, %p170_p2  ;;  %p28_p4 = scmp.ge.s32.totalorder %s11872_s18, 2 }
   0x9   : > { %s11874_s18 = smov (%p28_p4, %s11872_s18), 0  ;;  %174 = sbr.rel (%p171_p3) target bundleno = 929 (0x3a1), region = 28 }
  0x10   : > { %p211_p5 = scmp.lt.s32.totalorder %s8857_s13, 1  ;;  %p213_p6 = scmp.lt.s32.totalorder %s8853_s12, 1  ;;  %vm319_vm0 = vsmask.f32 3328  ;;  %vm320_vm1 = vsmask.f32 7440 }
  0x11   : > { %vm8978_vm2 = vmor %vm319_vm0, %vm320_vm1  ;;  %vm1557_vm3 = vcmask 1042432   ;;  %vm1558_vm4 = vcmask 1046532   ;;  %p7265_p7 = scmp.ne.s32.totalorder %s8853_s12, 0 }
  0x12   : > { %s11876_s13 = smov (!%p211_p5, %s8857_s13), 1  ;;  %vm9250_vm5 = vmor %vm1557_vm3, %vm1558_vm4 }
  0x13   : > { %s214_s19 = scalar_select %p213_p6, %s8853_s12, 1 }
  0x14   : > { %s8453_s20 = smul.u32 1152, %s11876_s13  ;;  %s6432_s21 = sshll.u32 %s11876_s13, 1 }
  0x15   : > { %s8929_s24 = scalar_lea.vmem %s11759_s3, %s6432_s21  ;;  %s8451_s28 = smul.u32 144, %s214_s19 }
  0x16   : > { %s8934_s27 = scalar_lea.vmem %s11757_s1, %s8453_s20  ;;  %s6429_s29 = sshll.u32 %s214_s19, 5 }
  0x17   : > { %v8495_v0 = vld [vmem:[%s8934_s27 + $0xc0] sm:$0xff]   ;;  %s6430_s30 = sshll.u32 %s11876_s13, 6  ;;  %v8497_v2 = vld [vmem:[%s8934_s27 + $0xc8] sm:$0xff]   ;;  %s8452_s4 = smul.u32 288, %s11876_s13  ;;  %v8499_v4 = vld [vmem:[%s8934_s27 + $0xd0] sm:$0xff]  }
  0x18   : > { %v8496_v1 = vld [vmem:[%s8934_s27 + $0x80] sm:$0xff]   ;;  %7427 = vmatprep.subr.bf16.mxu0 %v8495_v0  ;;  %8435 = vmatprep.subr.bf16.mxu1 %v8495_v0  ;;  %s231_s5 = sadd.s32 %s6430_s30, %s6429_s29  ;;  %v8498_v3 = vld [vmem:[%s8934_s27 + $0x88] sm:$0xff]   ;;  %v8500_v5 = vld [vmem:[%s8934_s27 + $0x90] sm:$0xff]  }
  0x19   : > { %7428 = vmatpush3.bf16.msra.mxu0 %v8496_v1  ;;  %8443 = vmatpush3.bf16.msra.mxu1 %v8496_v1  ;;  %s6431_s6 = sshll.u32 %s231_s5, 2  ;;  %s217_s10 = sadd.s32 %s8452_s4, %s8451_s28  ;;  %v8501_v6 = vld [vmem:[%s8934_s27 + $0xd8] sm:$0xff]   ;;  %v8503_v8 = vld [vmem:[%s8934_s27 + $0xe0] sm:$0xff]   ;;  %v8505_v10 = vld [vmem:[%s8934_s27 + $0xe8] sm:$0xff]  }
  0x1a   : > { %7429 = vmatprep.subr.bf16.mxu0 %v8497_v2  ;;  %8436 = vmatprep.subr.bf16.mxu1 %v8497_v2  ;;  %s8944_s9 = scalar_lea.vmem %s11758_s2, %s6431_s6  ;;  %s6427_s11 = sshll.u32 %s217_s10, 2  ;;  %v8502_v7 = vld [vmem:[%s8934_s27 + $0x98] sm:$0xff]   ;;  %v8504_v9 = vld [vmem:[%s8934_s27 + $0xa0] sm:$0xff]   ;;  %v8506_v20 = vld [vmem:[%s8934_s27 + $0xa8] sm:$0xff]  }
  0x1b   : > { %s8953_s20 = scalar_lea.vmem %s11756_s0, %s6427_s11  ;;  %v8507_v21 = vld [vmem:[%s8934_s27 + $0xf0] sm:$0xff]   ;;  %v8509_v40 = vld [vmem:[%s8934_s27 + $0xf8] sm:$0xff]   ;;  %v8511_v61 = vld [vmem:[%s8934_s27 + $0x40] sm:$0xff]  }
  0x1c   : > { %v8958_v11 = vld [vmem:[%s8953_s20] sm:$0xff]  ;;  %v8961_v12 = vld [vmem:[%s8953_s20 + $0x8] sm:$0xff]  ;;  %v8964_v13 = vld [vmem:[%s8953_s20 + $0x10] sm:$0xff] }
  0x1d   : > { %7430 = vmatpush3.bf16.msra.mxu0 %v8498_v3  ;;  %8444 = vmatpush3.bf16.msra.mxu1 %v8498_v3  ;;  %v323_v14 = vshrl.u32 %v8958_v11, 16  ;;  %v326_v15 = vshll.u32 %v8958_v11, 16  ;;  %v332_v16 = vshll.u32 %v8961_v12, 16  ;;  %v336_v17 = vshrl.u32 %v8961_v12, 16  ;;  %v263_v18 = vld [vmem:[%s8953_s20 + $0x100] sm:$0xff]  ;;  %v264_v19 = vld [vmem:[%s8953_s20 + $0x108] sm:$0xff] }
  0x1e   : > { %7431 = vmatprep.subr.bf16.mxu0 %v8499_v4  ;;  %8437 = vmatprep.subr.bf16.mxu1 %v8499_v4  ;;  %v342_v22 = vshll.u32 %v8964_v13, 16  ;;  %v265_v23 = vld [vmem:[%s8953_s20 + $0x110] sm:$0xff]  ;;  %v515_v24 = vshrl.u32 %v263_v18, 16  ;;  %v518_v25 = vshll.u32 %v263_v18, 16  ;;  %v524_v33 = vshll.u32 %v264_v19, 16  ;;  %v8510_v50 = vld [vmem:[%s8934_s27 + $0xb8] sm:$0xff]  }
  0x1f   : > { %v325_v26 = vrot.slane %v323_v14, 4  ;;  %v328_v27 = vrot.slane %v326_v15, 5  ;;  %v334_v28 = vrot.slane %v332_v16, 5  ;;  %v338_v29 = vrot.slane %v336_v17, 4  ;;  %v8508_v39 = vld [vmem:[%s8934_s27 + $0xb0] sm:$0xff]   ;;  %v8993_v54 = vld [vmem:[%s8953_s20 + $0x20] sm:$0xff] }
  0x20   : > { %v344_v30 = vrot.slane %v342_v22, 5  ;;  %v517_v31 = vrot.slane %v515_v24, 4  ;;  %v520_v32 = vrot.slane %v518_v25, 5  ;;  %v528_v37 = vshrl.u32 %v264_v19, 16  ;;  %v8996_v55 = vld [vmem:[%s8953_s20 + $0x28] sm:$0xff]  ;;  %v8999_v56 = vld [vmem:[%s8953_s20 + $0x30] sm:$0xff] }
  0x21   : > { %7432 = vmatpush3.bf16.msra.mxu0 %v8500_v5  ;;  %8445 = vmatpush3.bf16.msra.mxu1 %v8500_v5  ;;  %v329_v35 = vor.u32 %v328_v27, %v325_v26  ;;  %v339_v36 = vor.u32 %v338_v29, %v334_v28  ;;  %v534_v38 = vshll.u32 %v265_v23, 16  ;;  %v526_v42 = vrot.slane %v524_v33, 5  ;;  %v266_v63 = vld [vmem:[%s8953_s20 + $0x120] sm:$0xff]  ;;  %v267_v0 = vld [vmem:[%s8953_s20 + $0x128] sm:$0xff]  ;;  %v268_v19 = vld [vmem:[%s8953_s20 + $0x130] sm:$0xff] }
  0x22   : > { %7433 = vmatprep.subr.bf16.mxu0 %v8501_v6  ;;  %8438 = vmatprep.subr.bf16.mxu1 %v8501_v6  ;;  %v521_v41 = vor.u32 %v520_v32, %v517_v31  ;;  %v530_v46 = vrot.slane %v528_v37, 4  ;;  %v6561_v57 = vrot.slane %v8958_v11, 9  ;;  %v347_v62 = vshrl.u32 %v8993_v54, 16  ;;  %v8513_v2 = vld [vmem:[%s8934_s27 + $0x140] sm:$0xff]   ;;  %v8515_v24 = vld [vmem:[%s8934_s27 + $0x48] sm:$0xff]  }
  0x23   : > { %v330_v43 = vrot.slane %v329_v35, 4  ;;  %v340_v44 = vrot.slane %v339_v36, 4  ;;  %v536_v48 = vrot.slane %v534_v38, 5  ;;  %v350_v3 = vshll.u32 %v8993_v54, 16  ;;  %v8512_v14 = vld [vmem:[%s8934_s27] sm:$0xff]   ;;  %v8517_v25 = vld [vmem:[%s8934_s27 + $0x148] sm:$0xff]  }
  0x24   : > { %v522_v47 = vrot.slane %v521_v41, 4  ;;  %v531_v53 = vor.u32 %v530_v46, %v526_v42  ;;  %v356_v4 = vshll.u32 %v8996_v55, 16  ;;  %v360_v5 = vshrl.u32 %v8996_v55, 16  ;;  %v8514_v15 = vld [vmem:[%s8934_s27 + $0x100] sm:$0xff]   ;;  %v9029_v41 = vld [vmem:[%s8953_s20 + $0x48] sm:$0xff]  ;;  %v9033_v46 = vld [vmem:[%s8953_s20 + $0x50] sm:$0xff] }
  0x25   : > { %7434 = vmatpush3.bf16.msra.mxu0 %v8502_v7  ;;  %8446 = vmatpush3.bf16.msra.mxu1 %v8502_v7  ;;  %v335_v51 = vsel %vm8978_vm2, %v330_v43, %v334_v28  ;;  %v345_v52 = vsel %vm8978_vm2, %v340_v44, %v344_v30  ;;  %v349_v6 = vrot.slane %v347_v62, 4  ;;  %v366_v7 = vshll.u32 %v8999_v56, 16  ;;  %v8518_v44 = vld [vmem:[%s8934_s27 + $0x108] sm:$0xff]  }
  0x26   : > { %7435 = vmatprep.subr.bf16.mxu0 %v8503_v8  ;;  %8439 = vmatprep.subr.bf16.mxu1 %v8503_v8  ;;  %v6465_v58 = vcombine.low %v335_v51, %v345_v52  ;;  %v6466_v59 = vcombine.high %v335_v51, %v345_v52  ;;  %v527_v60 = vsel %vm8978_vm2, %v522_v47, %v526_v42  ;;  %v532_v1 = vrot.slane %v531_v53, 4 }
  0x27   : > { %v539_v8 = vshrl.u32 %v266_v63, 16  ;;  %v352_v16 = vrot.slane %v350_v3, 5  ;;  %v358_v17 = vrot.slane %v356_v4, 5  ;;  %v362_v18 = vrot.slane %v360_v5, 4  ;;  %v271_v5 = vld [vmem:[%s8953_s20 + $0x150] sm:$0xff] }
  0x28   : > { %995 = vmatprep.mubr.bf16.mxu0 %v6466_v59  ;;  %v368_v22 = vrot.slane %v366_v7, 5  ;;  %v548_v29 = vshll.u32 %v267_v0, 16  ;;  %v552_v30 = vshrl.u32 %v267_v0, 16  ;;  %v558_v31 = vshll.u32 %v268_v19, 16  ;;  %v270_v59 = vld [vmem:[%s8953_s20 + $0x148] sm:$0xff]  ;;  %v8519_v0 = vld [vmem:[%s8934_s27 + $0x50] sm:$0xff]  }
  0x29   : > { %7436 = vmatpush3.bf16.msra.mxu0 %v8504_v9  ;;  %8447 = vmatpush3.bf16.msra.mxu1 %v8504_v9  ;;  %v542_v9 = vshll.u32 %v266_v63, 16  ;;  %v541_v23 = vrot.slane %v539_v8, 4  ;;  %v353_v26 = vor.u32 %v352_v16, %v349_v6  ;;  %v363_v27 = vor.u32 %v362_v18, %v358_v17  ;;  %v8520_v6 = vld [vmem:[%s8934_s27 + $0x10] sm:$0xff]  }
  0x2a   : > { %7437 = vmatprep.subr.bf16.mxu0 %v8505_v10  ;;  %8440 = vmatprep.subr.bf16.mxu1 %v8505_v10  ;;  %v537_v10 = vsel %vm8978_vm2, %v532_v1, %v536_v48  ;;  %v550_v38 = vrot.slane %v548_v29, 5  ;;  %v554_v42 = vrot.slane %v552_v30, 4  ;;  %v560_v43 = vrot.slane %v558_v31, 5  ;;  %v8521_v18 = vld [vmem:[%s8934_s27 + $0x150] sm:$0xff]   ;;  %v9059_v29 = vld [vmem:[%s8953_s20 + $0x68] sm:$0xff] }
  0x2b   : > { %v544_v28 = vrot.slane %v542_v9, 5  ;;  %v354_v35 = vrot.slane %v353_v26, 4  ;;  %v364_v36 = vrot.slane %v363_v27, 4  ;;  %v380_v53 = vshll.u32 %v9029_v41, 16 }
  0x2c   : > { %v384_v4 = vshrl.u32 %v9029_v41, 16  ;;  %v390_v8 = vshll.u32 %v9033_v46, 16  ;;  %v572_v16 = vshll.u32 %v270_v59, 16 }
  0x2d   : > { %7438 = vmatpush3.bf16.msra.mxu0 %v8506_v20  ;;  %8448 = vmatpush3.bf16.msra.mxu1 %v8506_v20  ;;  %v6481_v20 = vcombine.low %v527_v60, %v537_v10  ;;  %v545_v37 = vor.u32 %v544_v28, %v541_v23  ;;  %v369_v51 = vsel %vm8978_vm2, %v364_v36, %v368_v22  ;;  %v382_v3 = vrot.slane %v380_v53, 5  ;;  %v8522_v23 = vld [vmem:[%s8934_s27 + $0x110] sm:$0xff]   ;;  %v9056_v28 = vld [vmem:[%s8953_s20 + $0x60] sm:$0xff]  ;;  %v8523_v53 = vld [vmem:[%s8934_s27 + $0x58] sm:$0xff]  }
  0x2e   : > { %7439 = vmatprep.subr.bf16.mxu0 %v8507_v21  ;;  %8441 = vmatprep.subr.bf16.mxu1 %v8507_v21  ;;  %v6482_v21 = vcombine.high %v527_v60, %v537_v10  ;;  %v574_v31 = vrot.slane %v572_v16, 5  ;;  %v582_v36 = vshll.u32 %v271_v5, 16 }
  0x2f   : > { %v546_v52 = vrot.slane %v545_v37, 4  ;;  %v9062_v37 = vld [vmem:[%s8953_s20 + $0x70] sm:$0xff] }
  0x30   : > { %1059 = vmatprep.mubr.bf16.mxu1 %v6482_v21 }
  0x31   : > { %7440 = vmatpush3.bf16.msra.mxu0 %v8508_v39  ;;  %8449 = vmatpush3.bf16.msra.mxu1 %v8508_v39  ;;  %v8516_v39 = vld [vmem:[%s8934_s27 + $0x8] sm:$0xff]   ;;  %v551_v1 = vsel %vm8978_vm2, %v546_v52, %v550_v38  ;;  %v404_v52 = vshll.u32 %v9059_v29, 16 }
  0x32   : > { %7441 = vmatprep.subr.bf16.mxu0 %v8509_v40  ;;  %8442 = vmatprep.subr.bf16.mxu1 %v8509_v40  ;;  %v9026_v40 = vld [vmem:[%s8953_s20 + $0x40] sm:$0xff] }
  0x33   : > { %v371_v47 = vshrl.u32 %v9026_v40, 16  ;;  %v374_v48 = vshll.u32 %v9026_v40, 16  ;;  %v406_v5 = vrot.slane %v404_v52, 5 }
  0x35   : > { %7442 = vmatpush3.bf16.msra.mxu0 %v8510_v50  ;;  %8450 = vmatpush3.bf16.msra.mxu1 %v8510_v50  ;;  %v359_v50 = vsel %vm8978_vm2, %v354_v35, %v358_v17  ;;  %v373_v63 = vrot.slane %v371_v47, 4  ;;  %v576_v17 = vshrl.u32 %v270_v59, 16  ;;  %v273_v47 = vld [vmem:[%s8953_s20 + $0x168] sm:$0xff] }
  0x36   : > { %7539 = vmatprep.subr.bf16.mxu1 %v8511_v61  ;;  %7651 = vmatprep.subr.bf16.mxu0 %v8513_v2  ;;  %v6468_v60 = vcombine.high %v359_v50, %v369_v51  ;;  %v555_v61 = vor.u32 %v554_v42, %v550_v38  ;;  %v6467_v62 = vcombine.low %v359_v50, %v369_v51  ;;  %v376_v2 = vrot.slane %v374_v48, 5 }
  0x37   : > { %v578_v35 = vrot.slane %v576_v17, 4  ;;  %v395_v42 = vshrl.u32 %v9056_v28, 16  ;;  %v584_v51 = vrot.slane %v582_v36, 5  ;;  %v596_v16 = vshll.u32 %v273_v47, 16  ;;  %v9093_v36 = vld [vmem:[%s8953_s20 + $0x90] sm:$0xff] }
  0x38   : > { %996 = vmatmul.mubr.bf16.vlgmr.msra.gmra.mrb[0].mxu0 %v6465_v58  ;;  %1060 = vmatmul.mubr.bf16.vlgmr.msra.gmra.mrb[0].mxu1 %v6481_v20  ;;  %v269_v58 = vld [vmem:[%s8953_s20 + $0x140] sm:$0xff]  ;;  %v556_v7 = vrot.slane %v555_v61, 4  ;;  %v392_v20 = vrot.slane %v390_v8, 5  ;;  %v408_v61 = vshrl.u32 %v9059_v29, 16  ;;  %v8526_v8 = vld [vmem:[%s8934_s27 + $0x118] sm:$0xff]  }
  0x39   : > { %7540 = vmatpush3.bf16.msra.mxu1 %v8512_v14  ;;  %7652 = vmatpush3.bf16.msra.mxu0 %v8514_v15  ;;  %v563_v9 = vshrl.u32 %v269_v58, 16  ;;  %v566_v10 = vshll.u32 %v269_v58, 16  ;;  %v377_v14 = vor.u32 %v376_v2, %v373_v63  ;;  %v386_v15 = vrot.slane %v384_v4, 4 }
  0x3a   : > { %7541 = vmatprep.subr.bf16.mxu1 %v8515_v24  ;;  %7653 = vmatprep.subr.bf16.mxu0 %v8517_v25  ;;  %v561_v19 = vsel %vm8978_vm2, %v556_v7, %v560_v43  ;;  %v398_v43 = vshll.u32 %v9056_v28, 16  ;;  %v579_v50 = vor.u32 %v578_v35, %v574_v31  ;;  %v397_v59 = vrot.slane %v395_v42, 4 }
  0x3b   : > { %1003 = vmatprep.mubr.bf16.mxu0 %v6468_v60  ;;  %v565_v21 = vrot.slane %v563_v9, 4  ;;  %v568_v22 = vrot.slane %v566_v10, 5  ;;  %v6484_v24 = vcombine.high %v551_v1, %v561_v19  ;;  %v6483_v25 = vcombine.low %v551_v1, %v561_v19  ;;  %v274_v10 = vld [vmem:[%s8953_s20 + $0x170] sm:$0xff] }
  0x3c   : > { %v378_v26 = vrot.slane %v377_v14, 4  ;;  %v387_v27 = vor.u32 %v386_v15, %v382_v3  ;;  %v400_v60 = vrot.slane %v398_v43, 5  ;;  %v580_v1 = vrot.slane %v579_v50, 4  ;;  %v8527_v50 = vld [vmem:[%s8934_s27 + $0x60] sm:$0xff]  }
  0x3d   : > { %7542 = vmatpush3.bf16.msra.mxu1 %v8516_v39  ;;  %7654 = vmatpush3.bf16.msra.mxu0 %v8518_v44  ;;  %v569_v30 = vor.u32 %v568_v22, %v565_v21  ;;  %v272_v44 = vld [vmem:[%s8953_s20 + $0x160] sm:$0xff]  ;;  %v414_v7 = vshll.u32 %v9062_v37, 16  ;;  %v9088_v22 = vld [vmem:[%s8953_s20 + $0x88] sm:$0xff]  ;;  %v606_v35 = vshll.u32 %v274_v10, 16 }
  0x3e   : > { %7543 = vmatprep.subr.bf16.mxu1 %v8519_v0  ;;  %7655 = vmatprep.subr.bf16.mxu0 %v8521_v18  ;;  %v383_v38 = vsel %vm8978_vm2, %v378_v26, %v382_v3  ;;  %v388_v39 = vrot.slane %v387_v27, 4  ;;  %v8525_v3 = vld [vmem:[%s8934_s27 + $0x158] sm:$0xff]   ;;  %v401_v4 = vor.u32 %v400_v60, %v397_v59  ;;  %v585_v9 = vsel %vm8978_vm2, %v580_v1, %v584_v51  ;;  %v9085_v21 = vld [vmem:[%s8953_s20 + $0x80] sm:$0xff] }
  0x3f   : > { %1067 = vmatprep.mubr.bf16.mxu1 %v6484_v24  ;;  %v570_v48 = vrot.slane %v569_v30, 4  ;;  %v587_v14 = vshrl.u32 %v272_v44, 16  ;;  %v590_v15 = vshll.u32 %v272_v44, 16  ;;  %v598_v26 = vrot.slane %v596_v16, 5 }
  0x40   : > { %1004 = vmatmul.mubr.bf16.gmra.mrb[4].mxu0 %v6467_v62  ;;  %1068 = vmatmul.mubr.bf16.gmra.mrb[4].mxu1 %v6483_v25  ;;  %v393_v58 = vsel %vm8978_vm2, %v388_v39, %v392_v20  ;;  %v8524_v62 = vld [vmem:[%s8934_s27 + $0x18] sm:$0xff]   ;;  %v402_v19 = vrot.slane %v401_v4, 4  ;;  %v419_v42 = vshrl.u32 %v9085_v21, 16  ;;  %v422_v43 = vshll.u32 %v9085_v21, 16 }
  0x41   : > { %7544 = vmatpush3.bf16.msra.mxu1 %v8520_v6  ;;  %7656 = vmatpush3.bf16.msra.mxu0 %v8522_v23  ;;  %v6470_v63 = vcombine.high %v383_v38, %v393_v58  ;;  %v575_v0 = vsel %vm8978_vm2, %v570_v48, %v574_v31  ;;  %v6469_v2 = vcombine.low %v383_v38, %v393_v58  ;;  %v410_v6 = vrot.slane %v408_v61, 4  ;;  %v9096_v38 = vld [vmem:[%s8953_s20 + $0x180] sm:$0xff]  ;;  %v9102_v48 = vld [vmem:[%s8953_s20 + $0x188] sm:$0xff] }
  0x42   : > { %7545 = vmatprep.subr.bf16.mxu1 %v8523_v53  ;;  %7657 = vmatprep.subr.bf16.mxu0 %v8525_v3  ;;  %v6486_v17 = vcombine.high %v575_v0, %v585_v9  ;;  %v6485_v18 = vcombine.low %v575_v0, %v585_v9  ;;  %v416_v23 = vrot.slane %v414_v7, 5  ;;  %v589_v24 = vrot.slane %v587_v14, 4  ;;  %v8528_v58 = vld [vmem:[%s8934_s27 + $0x20] sm:$0xff]  }
  0x43   : > { %1011 = vmatprep.mubr.bf16.mxu0 %v6470_v63  ;;  %v411_v20 = vor.u32 %v410_v6, %v406_v5  ;;  %v592_v25 = vrot.slane %v590_v15, 5  ;;  %v407_v27 = vsel %vm8978_vm2, %v402_v19, %v406_v5  ;;  %v600_v31 = vshrl.u32 %v273_v47, 16  ;;  %v8529_v3 = vld [vmem:[%s8934_s27 + $0x160] sm:$0xff]  }
  0x44   : > { %1075 = vmatprep.mubr.bf16.mxu1 %v6486_v17  ;;  %v428_v44 = vshll.u32 %v9088_v22, 16  ;;  %v608_v52 = vrot.slane %v606_v35, 5  ;;  %v432_v53 = vshrl.u32 %v9088_v22, 16  ;;  %v424_v0 = vrot.slane %v422_v43, 5  ;;  %v9118_v17 = vld [vmem:[%s8953_s20 + $0x190] sm:$0xff]  ;;  %v8531_v35 = vld [vmem:[%s8934_s27 + $0x68] sm:$0xff]  }
  0x45   : > { %7546 = vmatpush3.bf16.msra.mxu1 %v8524_v62  ;;  %7658 = vmatpush3.bf16.msra.mxu0 %v8526_v8  ;;  %v412_v30 = vrot.slane %v411_v20, 4  ;;  %v593_v39 = vor.u32 %v592_v25, %v589_v24  ;;  %v602_v51 = vrot.slane %v600_v31, 4  ;;  %v421_v62 = vrot.slane %v419_v42, 4  ;;  %v8530_v8 = vld [vmem:[%s8934_s27 + $0x120] sm:$0xff]   ;;  %v9130_v31 = vld [vmem:[%s8953_s20 + $0xb0] sm:$0xff] }
  0x46   : > { %7547 = vmatprep.subr.bf16.mxu1 %v8527_v50  ;;  %v430_v1 = vrot.slane %v428_v44, 5  ;;  %v438_v5 = vshll.u32 %v9093_v36, 16  ;;  %v611_v6 = vshrl.u32 %v9096_v38, 16  ;;  %v614_v7 = vshll.u32 %v9096_v38, 16  ;;  %7659 = vmatprep.subr.bf16.mxu0 %v8529_v3  ;;  %v9134_v50 = vld [vmem:[%s8953_s20 + $0x1a0] sm:$0xff] }
  0x47   : > { %v417_v47 = vsel %vm8978_vm2, %v412_v30, %v416_v23  ;;  %v594_v60 = vrot.slane %v593_v39, 4  ;;  %v603_v63 = vor.u32 %v602_v51, %v598_v26  ;;  %v425_v10 = vor.u32 %v424_v0, %v421_v62  ;;  %v9122_v23 = vld [vmem:[%s8953_s20 + $0xa0] sm:$0xff]  ;;  %v9127_v30 = vld [vmem:[%s8953_s20 + $0xa8] sm:$0xff] }
  0x48   : > { %1012 = vmatmul.mubr.bf16.gmra.mrb[8].mxu0 %v6469_v2  ;;  %1076 = vmatmul.mubr.bf16.gmra.mrb[8].mxu1 %v6485_v18  ;;  %v6472_v59 = vcombine.high %v407_v27, %v417_v47  ;;  %v6471_v61 = vcombine.low %v407_v27, %v417_v47  ;;  %v434_v2 = vrot.slane %v432_v53, 4  ;;  %v620_v15 = vshll.u32 %v9102_v48, 16  ;;  %v8532_v47 = vld [vmem:[%s8934_s27 + $0x28] sm:$0xff]  }
  0x49   : > { %7548 = vmatpush3.bf16.msra.mxu1 %v8528_v58  ;;  %v599_v4 = vsel %vm8978_vm2, %v594_v60, %v598_v26  ;;  %v604_v9 = vrot.slane %v603_v63, 4  ;;  %v440_v16 = vrot.slane %v438_v5, 5  ;;  %v613_v18 = vrot.slane %v611_v6, 4  ;;  %7660 = vmatpush3.bf16.msra.mxu0 %v8530_v8  ;;  %v8533_v0 = vld [vmem:[%s8934_s27 + $0x168] sm:$0xff]  }
  0x4a   : > { %1019 = vmatprep.mubr.bf16.mxu0 %v6472_v59  ;;  %v435_v14 = vor.u32 %v434_v2, %v430_v1  ;;  %v616_v19 = vrot.slane %v614_v7, 5  ;;  %v624_v20 = vshrl.u32 %v9102_v48, 16  ;;  %v426_v25 = vrot.slane %v425_v10, 4  ;;  %v9144_v59 = vld [vmem:[%s8953_s20 + $0x1a8] sm:$0xff]  ;;  %7549 = vmatprep.subr.bf16.mxu1 %v8531_v35 }
  0x4b   : > { %v609_v24 = vsel %vm8978_vm2, %v604_v9, %v608_v52  ;;  %v622_v27 = vrot.slane %v620_v15, 5  ;;  %v630_v53 = vshll.u32 %v9118_v17, 16  ;;  %v443_v58 = vshrl.u32 %v9122_v23, 16  ;;  %7661 = vmatprep.subr.bf16.mxu0 %v8533_v0  ;;  %v8534_v9 = vld [vmem:[%s8934_s27 + $0x128] sm:$0xff]   ;;  %v9177_v0 = vld [vmem:[%s8953_s20 + $0x1c0] sm:$0xff] }
  0x4c   : > { %v436_v26 = vrot.slane %v435_v14, 4  ;;  %v6488_v39 = vcombine.high %v599_v4, %v609_v24  ;;  %v6487_v42 = vcombine.low %v599_v4, %v609_v24  ;;  %v617_v43 = vor.u32 %v616_v19, %v613_v18  ;;  %v9159_v24 = vld [vmem:[%s8953_s20 + $0x1b0] sm:$0xff] }
  0x4d   : > { %v626_v44 = vrot.slane %v624_v20, 4  ;;  %v431_v51 = vsel %vm8978_vm2, %v426_v25, %v430_v1  ;;  %7550 = vmatpush3.bf16.msra.mxu1 %v8532_v47  ;;  %v632_v1 = vrot.slane %v630_v53, 5  ;;  %v445_v2 = vrot.slane %v443_v58, 4  ;;  %7662 = vmatpush3.bf16.msra.mxu0 %v8534_v9  ;;  %v8535_v53 = vld [vmem:[%s8934_s27 + $0x70] sm:$0xff]  }
  0x4e   : > { %v441_v52 = vsel %vm8978_vm2, %v436_v26, %v440_v16  ;;  %1083 = vmatprep.mubr.bf16.mxu1 %v6488_v39  ;;  %v446_v3 = vshll.u32 %v9122_v23, 16  ;;  %v452_v4 = vshll.u32 %v9127_v30, 16  ;;  %v456_v7 = vshrl.u32 %v9127_v30, 16  ;;  %v9163_v26 = vld [vmem:[%s8953_s20 + $0xc0] sm:$0xff]  ;;  %7551 = vmatprep.subr.bf16.mxu1 %v8535_v53 }
  0x4f   : > { %v6474_v60 = vcombine.high %v431_v51, %v441_v52  ;;  %v627_v62 = vor.u32 %v626_v44, %v622_v27  ;;  %v6473_v63 = vcombine.low %v431_v51, %v441_v52  ;;  %v462_v8 = vshll.u32 %v9130_v31, 16 }
  0x50   : > { %1020 = vmatmul.mubr.bf16.gmra.mrb[12].mxu0 %v6471_v61  ;;  %v618_v61 = vrot.slane %v617_v43, 4  ;;  %1084 = vmatmul.mubr.bf16.gmra.mrb[12].mxu1 %v6487_v42  ;;  %v448_v10 = vrot.slane %v446_v3, 5  ;;  %v454_v14 = vrot.slane %v452_v4, 5  ;;  %v635_v15 = vshrl.u32 %v9134_v50, 16  ;;  %v9166_v43 = vld [vmem:[%s8953_s20 + $0xc8] sm:$0xff] }
  0x51   : > { %1027 = vmatprep.mubr.bf16.mxu0 %v6474_v60  ;;  %v628_v6 = vrot.slane %v627_v62, 4  ;;  %v638_v16 = vshll.u32 %v9134_v50, 16  ;;  %v458_v19 = vrot.slane %v456_v7, 4  ;;  %v464_v20 = vrot.slane %v462_v8, 5 }
  0x52   : > { %v623_v5 = vsel %vm8978_vm2, %v618_v61, %v622_v27  ;;  %v644_v25 = vshll.u32 %v9144_v59, 16  ;;  %v449_v39 = vor.u32 %v448_v10, %v445_v2  ;;  %v637_v42 = vrot.slane %v635_v15, 4  ;;  %v9172_v61 = vld [vmem:[%s8953_s20 + $0xd0] sm:$0xff] }
  0x53   : > { %v633_v18 = vsel %vm8978_vm2, %v628_v6, %v632_v1  ;;  %v459_v44 = vor.u32 %v458_v19, %v454_v14  ;;  %v640_v47 = vrot.slane %v638_v16, 5  ;;  %v648_v52 = vshrl.u32 %v9144_v59, 16  ;;  %v8536_v6 = vld [vmem:[%s8934_s27 + $0x30] sm:$0xff]  }
  0x54   : > { %v6490_v27 = vcombine.high %v623_v5, %v633_v18  ;;  %v6489_v35 = vcombine.low %v623_v5, %v633_v18  ;;  %v646_v51 = vrot.slane %v644_v25, 5  ;;  %v450_v58 = vrot.slane %v449_v39, 4  ;;  %v9181_v5 = vld [vmem:[%s8953_s20 + $0x1c8] sm:$0xff]  ;;  %v8537_v15 = vld [vmem:[%s8934_s27 + $0x170] sm:$0xff]   ;;  %7552 = vmatpush3.bf16.msra.mxu1 %v8536_v6 }
  0x55   : > { %v654_v60 = vshll.u32 %v9159_v24, 16  ;;  %v467_v62 = vshrl.u32 %v9163_v26, 16  ;;  %v460_v1 = vrot.slane %v459_v44, 4  ;;  %v641_v2 = vor.u32 %v640_v47, %v637_v42  ;;  %7663 = vmatprep.subr.bf16.mxu0 %v8537_v15 }
  0x56   : > { %1091 = vmatprep.mubr.bf16.mxu1 %v6490_v27  ;;  %v650_v3 = vrot.slane %v648_v52, 4  ;;  %v476_v4 = vshll.u32 %v9166_v43, 16  ;;  %v455_v7 = vsel %vm8978_vm2, %v450_v58, %v454_v14  ;;  %v480_v42 = vshrl.u32 %v9166_v43, 16  ;;  %v8538_v14 = vld [vmem:[%s8934_s27 + $0x130] sm:$0xff]   ;;  %v9199_v58 = vld [vmem:[%s8953_s20 + $0xe0] sm:$0xff] }
  0x57   : > { %v656_v8 = vrot.slane %v654_v60, 5  ;;  %v469_v9 = vrot.slane %v467_v62, 4  ;;  %v465_v16 = vsel %vm8978_vm2, %v460_v1, %v464_v20  ;;  %v642_v18 = vrot.slane %v641_v2, 4  ;;  %v9195_v52 = vld [vmem:[%s8953_s20 + $0x1d0] sm:$0xff]  ;;  %7664 = vmatpush3.bf16.msra.mxu0 %v8538_v14  ;;  %v9204_v2 = vld [vmem:[%s8953_s20 + $0xe8] sm:$0xff] }
  0x58   : > { %1028 = vmatmul.mubr.bf16.gmra.mrb[16].mxu0 %v6473_v63  ;;  %v470_v63 = vshll.u32 %v9163_v26, 16  ;;  %1092 = vmatmul.mubr.bf16.gmra.mrb[16].mxu1 %v6489_v35  ;;  %v651_v19 = vor.u32 %v650_v3, %v646_v51  ;;  %v478_v25 = vrot.slane %v476_v4, 5  ;;  %v6476_v27 = vcombine.high %v455_v7, %v465_v16 }
  0x59   : > { %v6475_v39 = vcombine.low %v455_v7, %v465_v16  ;;  %v647_v44 = vsel %vm8978_vm2, %v642_v18, %v646_v51  ;;  %v486_v20 = vshll.u32 %v9172_v61, 16  ;;  %v659_v53 = vshrl.u32 %v9177_v0, 16  ;;  %v8539_v51 = vld [vmem:[%s8934_s27 + $0x78] sm:$0xff]  }
  0x5a   : > { %v472_v10 = vrot.slane %v470_v63, 5  ;;  %v652_v47 = vrot.slane %v651_v19, 4  ;;  %1035 = vmatprep.mubr.bf16.mxu0 %v6476_v27  ;;  %v482_v62 = vrot.slane %v480_v42, 4  ;;  %v662_v63 = vshll.u32 %v9177_v0, 16  ;;  %7553 = vmatprep.subr.bf16.mxu1 %v8539_v51  ;;  %v9218_v42 = vld [vmem:[%s8953_s20 + $0x1e0] sm:$0xff]  ;;  %v8542_v51 = vld [vmem:[%s8934_s27 + $0x138] sm:$0xff]  }
  0x5b   : > { %v668_v1 = vshll.u32 %v9181_v5, 16  ;;  %v488_v4 = vrot.slane %v486_v20, 5  ;;  %v661_v6 = vrot.slane %v659_v53, 4  ;;  %v672_v7 = vshrl.u32 %v9181_v5, 16  ;;  %v9224_v20 = vld [vmem:[%s8953_s20 + $0x1e8] sm:$0xff] }
  0x5c   : > { %v473_v35 = vor.u32 %v472_v10, %v469_v9  ;;  %v657_v3 = vsel %vm8978_vm2, %v652_v47, %v656_v8  ;;  %v8540_v9 = vld [vmem:[%s8934_s27 + $0x38] sm:$0xff]   ;;  %v483_v18 = vor.u32 %v482_v62, %v478_v25  ;;  %v664_v19 = vrot.slane %v662_v63, 5 }
  0x5d   : > { %v6492_v10 = vcombine.high %v647_v44, %v657_v3  ;;  %v6491_v15 = vcombine.low %v647_v44, %v657_v3  ;;  %v670_v8 = vrot.slane %v668_v1, 5  ;;  %v674_v27 = vrot.slane %v672_v7, 4  ;;  %7554 = vmatpush3.bf16.msra.mxu1 %v8540_v9  ;;  %v8541_v1 = vld [vmem:[%s8934_s27 + $0x178] sm:$0xff]  }
  0x5e   : > { %v474_v60 = vrot.slane %v473_v35, 4  ;;  %v9215_v35 = vld [vmem:[%s8953_s20 + $0xf0] sm:$0xff]  ;;  %v484_v14 = vrot.slane %v483_v18, 4  ;;  %v491_v44 = vshrl.u32 %v9199_v58, 16  ;;  %v500_v47 = vshll.u32 %v9204_v2, 16  ;;  %v8545_v18 = vld [vmem:[%s8934_s27 + $0x1c0] sm:$0xff]   ;;  %7665 = vmatprep.subr.bf16.mxu0 %v8541_v1 }
  0x5f   : > { %1099 = vmatprep.mubr.bf16.mxu1 %v6492_v10  ;;  %v665_v53 = vor.u32 %v664_v19, %v661_v6  ;;  %v504_v63 = vshrl.u32 %v9204_v2, 16  ;;  %v510_v19 = vshll.u32 %v9215_v35, 16  ;;  %7666 = vmatpush3.bf16.msra.mxu0 %v8542_v51 }
  0x60   : > { %1036 = vmatmul.mubr.bf16.gmra.mrb[20].mxu0 %v6475_v39  ;;  %v479_v16 = vsel %vm8978_vm2, %v474_v60, %v478_v25  ;;  %v678_v39 = vshll.u32 %v9195_v52, 16  ;;  %v494_v25 = vshll.u32 %v9199_v58, 16  ;;  %1100 = vmatmul.mubr.bf16.gmra.mrb[20].mxu1 %v6491_v15  ;;  %v675_v60 = vor.u32 %v674_v27, %v670_v8  ;;  %v9234_v27 = vld [vmem:[%s8953_s20 + $0x1f0] sm:$0xff] }
  0x61   : > { %v489_v3 = vsel %vm8978_vm2, %v484_v14, %v488_v4  ;;  %v493_v7 = vrot.slane %v491_v44, 4  ;;  %v502_v10 = vrot.slane %v500_v47, 5  ;;  %v666_v32 = vrot.slane %v665_v53, 4  ;;  %7763 = vmatprep.subr.bf16.mxu1 %v8545_v18 }
  0x62   : > { %v680_v62 = vrot.slane %v678_v39, 5  ;;  %v496_v9 = vrot.slane %v494_v25, 5  ;;  %v6478_v33 = vcombine.high %v479_v16, %v489_v3  ;;  %v676_v49 = vrot.slane %v675_v60, 4 }
  0x63   : > { %v6477_v45 = vcombine.low %v479_v16, %v489_v3  ;;  %v506_v15 = vrot.slane %v504_v63, 4  ;;  %v683_v39 = vshrl.u32 %v9218_v42, 16  ;;  %v671_v4 = vsel %vm8978_vm2, %v666_v32, %v670_v8  ;;  %v8547_v63 = vld [vmem:[%s8934_s27 + $0x240] sm:$0xff]  }
  0x64   : > { %v497_v6 = vor.u32 %v496_v9, %v493_v7  ;;  %1043 = vmatprep.mubr.bf16.mxu0 %v6478_v33  ;;  %v681_v14 = vsel %vm8978_vm2, %v676_v49, %v680_v62  ;;  %v686_v16 = vshll.u32 %v9218_v42, 16  ;;  %v692_v44 = vshll.u32 %v9224_v20, 16  ;;  %7875 = vmatprep.subr.bf16.mxu0 %v8547_v63  ;;  %v9255_v9 = vld [vmem:[%s8953_s20 + $0x8] sm:$0xff] }
  0x65   : > { %v6494_v25 = vcombine.high %v671_v4, %v681_v14  ;;  %v6493_v47 = vcombine.low %v671_v4, %v681_v14  ;;  %v507_v60 = vor.u32 %v506_v15, %v502_v10  ;;  %v512_v1 = vrot.slane %v510_v19, 5 }
  0x66   : > { %v498_v53 = vrot.slane %v497_v6, 4  ;;  %v685_v51 = vrot.slane %v683_v39, 4  ;;  %v688_v33 = vrot.slane %v686_v16, 5  ;;  %v694_v3 = vrot.slane %v692_v44, 5 }
  0x67   : > { %1107 = vmatprep.mubr.bf16.mxu1 %v6494_v25  ;;  %v508_v49 = vrot.slane %v507_v60, 4  ;;  %v696_v8 = vshrl.u32 %v9224_v20, 16  ;;  %v702_v62 = vshll.u32 %v9234_v27, 16  ;;  %v1562_v18 = vrot.slane %v9255_v9, 5 }
  0x68   : > { %1044 = vmatmul.mubr.bf16.gmra.mrb[24].mxu0 %v6477_v45  ;;  %v503_v32 = vsel %vm8978_vm2, %v498_v53, %v502_v10  ;;  %1108 = vmatmul.mubr.bf16.gmra.mrb[24].mxu1 %v6493_v47  ;;  %v689_v7 = vor.u32 %v688_v33, %v685_v51  ;;  %v6562_v10 = vrot.slane %v8993_v54, 9  ;;  %v1569_v6 = vrot.slane %v8996_v55, 5 }
  0x69   : > { %v513_v15 = vsel %vm8978_vm2, %v508_v49, %v512_v1  ;;  %v698_v19 = vrot.slane %v696_v8, 4  ;;  %v704_v39 = vrot.slane %v702_v62, 5  ;;  %v1572_v4 = vrot.slane %v8999_v56, 5 }
  0x6a   : > { %v6480_v14 = vcombine.high %v503_v32, %v513_v15  ;;  %v690_v16 = vrot.slane %v689_v7, 4  ;;  %v6479_v44 = vcombine.low %v503_v32, %v513_v15  ;;  %v1563_v25 = vsel %vm9250_vm5, %v6561_v57, %v1562_v18 }
  0x6b   : > { %v699_v47 = vor.u32 %v698_v19, %v694_v3  ;;  %v1564_v53 = vrot.slane %v1562_v18, 4  ;;  %v9269_v60 = vsel %vm9250_vm5, %v6562_v10, %v1569_v6  ;;  %v1571_v63 = vrot.slane %v1569_v6, 4 }
  0x6c   : > { %1051 = vmatprep.mubr.bf16.mxu0 %v6480_v14  ;;  %v695_v1 = vsel %vm8978_vm2, %v690_v16, %v694_v3  ;;  %v6518_v56 = vcombine.high %v9026_v40, %v9029_v41  ;;  %v6563_v51 = vrot.slane %v9026_v40, 9  ;;  %v1576_v33 = vrot.slane %v9029_v41, 5 }
  0x6d   : > { %v700_v32 = vrot.slane %v699_v47, 4  ;;  %v11764_v57 = vrot.slane %v8964_v13, 5  ;;  %v9283_v8 = vsel %vm9250_vm5, %v1571_v63, %v1572_v4  ;;  %v1579_v3 = vrot.slane %v9033_v46, 5 }
  0x6e   : > { %v6612_v18 = vcombine.high %v9269_v60, %v9283_v8  ;;  %v6611_v10 = vcombine.low %v9269_v60, %v9283_v8  ;;  %v9294_v6 = vsel %vm9250_vm5, %v6563_v51, %v1576_v33  ;;  %v1578_v15 = vrot.slane %v1576_v33, 4  ;;  %v8555_v33 = vld [vmem:[%s8934_s27 + $0x248] sm:$0xff]  }
  0x6f   : > { %v1566_v49 = vsel %vm9250_vm5, %v1564_v53, %v11764_v57  ;;  %v705_v13 = vsel %vm8978_vm2, %v700_v32, %v704_v39  ;;  %v6517_v46 = vcombine.low %v9026_v40, %v9029_v41  ;;  %v6520_v14 = vcombine.high %v9056_v28, %v9059_v29  ;;  %v8548_v53 = vld [vmem:[%s8934_s27 + $0x200] sm:$0xff]   ;;  %v8586_v40 = vld [vmem:[%s8934_s27 + $0x1a8] sm:$0xff]  }
  0x70   : > { %1052 = vmatmul.mubr.bf16.gmra.mrb[28].mxu0 %v6479_v44  ;;  %v6609_v62 = vcombine.low %v1563_v25, %v1566_v49  ;;  %v6610_v7 = vcombine.high %v1563_v25, %v1566_v49  ;;  %v6496_v19 = vcombine.high %v695_v1, %v705_v13  ;;  %v6495_v4 = vcombine.low %v695_v1, %v705_v13 }
  0x71   : > { %v6564_v16 = vrot.slane %v9056_v28, 9  ;;  %v9303_v39 = vsel %vm9250_vm5, %v1578_v15, %v1579_v3  ;;  %v1583_v44 = vrot.slane %v9059_v29, 5  ;;  %v1586_v25 = vrot.slane %v9062_v37, 5 }
  0x72   : > { %1961 = vmatprep.mubr.bf16.mxu0 %v6610_v7  ;;  %v6519_v47 = vcombine.low %v9056_v28, %v9059_v29  ;;  %1115 = vmatprep.mubr.bf16.mxu1 %v6496_v19  ;;  %v6614_v60 = vcombine.high %v9294_v6, %v9303_v39  ;;  %v6613_v63 = vcombine.low %v9294_v6, %v9303_v39  ;;  %v6565_v51 = vrot.slane %v9085_v21, 9  ;;  %v8736_v19 = vld [vmem:[%s8953_s20] sm:$0xff]  ;;  %v8595_v6 = vld [vmem:[%s8934_s27 + $0x270] sm:$0xff]  }
  0x73   : > { %v6522_v1 = vcombine.high %v9085_v21, %v9088_v22  ;;  %1116 = vmatmul.mubr.bf16.gmra.mrb[28].mxu1 %v6495_v4  ;;  %v9320_v37 = vsel %vm9250_vm5, %v6564_v16, %v1583_v44  ;;  %v1585_v32 = vrot.slane %v1583_v44, 4  ;;  %v1590_v57 = vrot.slane %v9088_v22, 5  ;;  %v8563_v44 = vld [vmem:[%s8934_s27 + $0x250] sm:$0xff]   ;;  %v8609_v28 = vld [vmem:[%s8934_s27 + $0x2c0] sm:$0xff]  }
  0x74   : > { %v1593_v49 = vrot.slane %v9093_v36, 5  ;;  %v11765_v8 = vcombine.high %v8958_v11, %v8961_v12  ;;  %v6521_v3 = vcombine.low %v9085_v21, %v9088_v22  ;;  %v6524_v7 = vcombine.high %v9122_v23, %v9127_v30  ;;  %v8556_v11 = vld [vmem:[%s8934_s27 + $0x208] sm:$0xff]  }
  0x75   : > { %v9333_v13 = vsel %vm9250_vm5, %v1585_v32, %v1586_v25  ;;  %v9337_v36 = vsel %vm9250_vm5, %v6565_v51, %v1590_v57  ;;  %v1592_v15 = vrot.slane %v1590_v57, 4  ;;  %v6513_v4 = vcombine.low %v8736_v19, %v9255_v9  ;;  %v8564_v57 = vld [vmem:[%s8934_s27 + $0x210] sm:$0xff]   ;;  %v8737_v21 = vld [vmem:[%s8953_s20 + $0x108] sm:$0xff] }
  0x76   : > { %1412 = vmatprep.mubr.bf16.mxu1 %v11765_v8  ;;  %v6616_v12 = vcombine.high %v9320_v37, %v9333_v13  ;;  %v6526_v25 = vcombine.high %v9163_v26, %v9166_v43  ;;  %v8571_v8 = vld [vmem:[%s8934_s27 + $0x258] sm:$0xff]   ;;  %v11766_v19 = vcombine.high %v8993_v54, %v8996_v55  ;;  %v8561_v32 = vld [vmem:[%s8934_s27 + $0x1d0] sm:$0xff]   ;;  %v6575_v41 = vrot.slane %v9177_v0, 9 }
  0x77   : > { %v9348_v16 = vsel %vm9250_vm5, %v1592_v15, %v1593_v49  ;;  %v8562_v15 = vld [vmem:[%s8934_s27 + $0x190] sm:$0xff]   ;;  %v8580_v49 = vld [vmem:[%s8934_s27 + $0x220] sm:$0xff]   ;;  %v1618_v22 = vrot.slane %v8737_v21, 5 }
  0x78   : > { %1962 = vmatmul.mubr.bf16.vlgmr.msra.gmra.mrb[32].mxu0 %v6609_v62  ;;  %v6615_v62 = vcombine.low %v9320_v37, %v9333_v13  ;;  %v6618_v51 = vcombine.high %v9337_v36, %v9348_v16  ;;  %v6617_v9 = vcombine.low %v9337_v36, %v9348_v16  ;;  %v6568_v16 = vrot.slane %v9199_v58, 9 }
  0x79   : > { %7876 = vmatpush3.bf16.msra.mxu0 %v8548_v53  ;;  %1969 = vmatprep.mubr.bf16.mxu0 %v6612_v18  ;;  %v6523_v18 = vcombine.low %v9122_v23, %v9127_v30  ;;  %v8546_v53 = vld [vmem:[%s8934_s27 + $0x180] sm:$0xff]  }
  0x7a   : > { %7877 = vmatprep.subr.bf16.mxu0 %v8555_v33  ;;  %v8553_v33 = vld [vmem:[%s8934_s27 + $0x1c8] sm:$0xff]  }
  0x7b   : > { %1413 = vmatmul.mubr.bf16.vlgmr.msra.gmra.mrb[32].mxu1 %v6513_v4  ;;  %v8572_v4 = vld [vmem:[%s8934_s27 + $0x218] sm:$0xff]  }
  0x7c   : > { %7764 = vmatpush3.bf16.msra.mxu1 %v8546_v53  ;;  %1420 = vmatprep.mubr.bf16.mxu1 %v11766_v19  ;;  %v1597_v53 = vrot.slane %v9127_v30, 5  ;;  %v8569_v19 = vld [vmem:[%s8934_s27 + $0x1d8] sm:$0xff]  }
  0x7d   : > { %7878 = vmatpush3.bf16.msra.mxu0 %v8556_v11  ;;  %v8554_v11 = vld [vmem:[%s8934_s27 + $0x188] sm:$0xff]   ;;  %7765 = vmatprep.subr.bf16.mxu1 %v8553_v33  ;;  %v6566_v33 = vrot.slane %v9122_v23, 9 }
  0x7e   : > { %7879 = vmatprep.subr.bf16.mxu0 %v8563_v44  ;;  %v8579_v44 = vld [vmem:[%s8934_s27 + $0x260] sm:$0xff]  }
  0x7f   : > { %v9401_v39 = vsel %vm9250_vm5, %v6566_v33, %v1597_v53  ;;  %v6542_v33 = vcombine.high %v9177_v0, %v9181_v5 }
  0x80   : > { %1970 = vmatmul.mubr.bf16.gmra.mrb[36].mxu0 %v6611_v10  ;;  %7766 = vmatpush3.bf16.msra.mxu1 %v8554_v11  ;;  %v11767_v10 = vcombine.low %v8993_v54, %v8996_v55  ;;  %v1600_v54 = vrot.slane %v9130_v31, 5  ;;  %v8577_v55 = vld [vmem:[%s8934_s27 + $0x1e0] sm:$0xff]   ;;  %v1649_v11 = vrot.slane %v9118_v17, 5  ;;  %v1604_v31 = vrot.slane %v9166_v43, 5 }
  0x81   : > { %1977 = vmatprep.mubr.bf16.mxu0 %v6614_v60  ;;  %7880 = vmatpush3.bf16.msra.mxu0 %v8564_v57  ;;  %v8587_v60 = vld [vmem:[%s8934_s27 + $0x268] sm:$0xff]   ;;  %v1599_v57 = vrot.slane %v1597_v53, 4  ;;  %v6540_v17 = vcombine.high %v9134_v50, %v9144_v59 }
  0x82   : > { %7881 = vmatprep.subr.bf16.mxu0 %v8571_v8  ;;  %7767 = vmatprep.subr.bf16.mxu1 %v8561_v32  ;;  %v8570_v32 = vld [vmem:[%s8934_s27 + $0x198] sm:$0xff]   ;;  %v8588_v8 = vld [vmem:[%s8934_s27 + $0x228] sm:$0xff]  }
  0x83   : > { %1421 = vmatmul.mubr.bf16.gmra.mrb[36].mxu1 %v11767_v10  ;;  %v1656_v10 = vrot.slane %v9159_v24, 5 }
  0x84   : > { %1428 = vmatprep.mubr.bf16.mxu1 %v6518_v56  ;;  %7768 = vmatpush3.bf16.msra.mxu1 %v8562_v15  ;;  %v6573_v56 = vrot.slane %v9096_v38, 9  ;;  %v1646_v15 = vrot.slane %v9102_v48, 5  ;;  %v9412_v48 = vsel %vm9250_vm5, %v1599_v57, %v1600_v54 }
  0x85   : > { %7882 = vmatpush3.bf16.msra.mxu0 %v8572_v4  ;;  %7769 = vmatprep.subr.bf16.mxu1 %v8569_v19  ;;  %v8585_v4 = vld [vmem:[%s8934_s27 + $0x1e8] sm:$0xff]   ;;  %v8596_v19 = vld [vmem:[%s8934_s27 + $0x230] sm:$0xff]  }
  0x86   : > { %7883 = vmatprep.subr.bf16.mxu0 %v8579_v44  ;;  %v1648_v38 = vrot.slane %v1646_v15, 4  ;;  %v1653_v44 = vrot.slane %v9144_v59, 5 }
  0x88   : > { %1978 = vmatmul.mubr.bf16.gmra.mrb[40].mxu0 %v6613_v63  ;;  %7770 = vmatpush3.bf16.msra.mxu1 %v8570_v32  ;;  %v8578_v63 = vld [vmem:[%s8934_s27 + $0x1a0] sm:$0xff]   ;;  %v9420_v53 = vsel %vm9250_vm5, %v1648_v38, %v1649_v11  ;;  %v1655_v54 = vrot.slane %v1653_v44, 4  ;;  %v6544_v11 = vcombine.high %v9218_v42, %v9224_v20 }
  0x89   : > { %1985 = vmatprep.mubr.bf16.mxu0 %v6616_v12  ;;  %7884 = vmatpush3.bf16.msra.mxu0 %v8580_v49  ;;  %v9408_v12 = vsel %vm9250_vm5, %v6573_v56, %v1646_v15  ;;  %v6574_v49 = vrot.slane %v9134_v50, 9  ;;  %v6541_v56 = vcombine.low %v9177_v0, %v9181_v5  ;;  %v8593_v15 = vld [vmem:[%s8934_s27 + $0x1f0] sm:$0xff]  }
  0x8a   : > { %7885 = vmatprep.subr.bf16.mxu0 %v8587_v60  ;;  %7771 = vmatprep.subr.bf16.mxu1 %v8577_v55  ;;  %v6539_v60 = vcombine.low %v9134_v50, %v9144_v59  ;;  %v6634_v32 = vcombine.high %v9408_v12, %v9420_v53  ;;  %v6633_v57 = vcombine.low %v9408_v12, %v9420_v53  ;;  %v8603_v55 = vld [vmem:[%s8934_s27 + $0x278] sm:$0xff]   ;;  %v9606_v12 = vld [vmem:[%s8953_s20 + $0x48] sm:$0xff] }
  0x8b   : > { %1429 = vmatmul.mubr.bf16.gmra.mrb[40].mxu1 %v6517_v46  ;;  %v9437_v24 = vsel %vm9250_vm5, %v6574_v49, %v1653_v44  ;;  %v1660_v46 = vrot.slane %v9181_v5, 5  ;;  %v1670_v49 = vrot.slane %v9234_v27, 5  ;;  %v6543_v44 = vcombine.low %v9218_v42, %v9224_v20 }
  0x8c   : > { %1436 = vmatprep.mubr.bf16.mxu1 %v6520_v14  ;;  %7772 = vmatpush3.bf16.msra.mxu1 %v8578_v63  ;;  %v9455_v14 = vsel %vm9250_vm5, %v1655_v54, %v1656_v10  ;;  %v8594_v10 = vld [vmem:[%s8934_s27 + $0x1b0] sm:$0xff]  }
  0x8d   : > { %7886 = vmatpush3.bf16.msra.mxu0 %v8588_v8  ;;  %v1663_v8 = vrot.slane %v9195_v52, 5  ;;  %7773 = vmatprep.subr.bf16.mxu1 %v8585_v4  ;;  %v1667_v52 = vrot.slane %v9224_v20, 5  ;;  %v6636_v37 = vcombine.high %v9437_v24, %v9455_v14  ;;  %v6635_v13 = vcombine.low %v9437_v24, %v9455_v14  ;;  %v8604_v4 = vld [vmem:[%s8934_s27 + $0x238] sm:$0xff]   ;;  %v9623_v24 = vld [vmem:[%s8953_s20 + $0x60] sm:$0xff] }
  0x8e   : > { %7887 = vmatprep.subr.bf16.mxu0 %v8595_v6  ;;  %v6576_v6 = vrot.slane %v9218_v42, 9  ;;  %v1662_v63 = vrot.slane %v1660_v46, 4 }
  0x90   : > { %1986 = vmatmul.mubr.bf16.gmra.mrb[44].mxu0 %v6615_v62  ;;  %v9470_v62 = vsel %vm9250_vm5, %v6575_v41, %v1660_v46  ;;  %v9475_v38 = vsel %vm9250_vm5, %v6576_v6, %v1667_v52  ;;  %7774 = vmatpush3.bf16.msra.mxu1 %v8586_v40  ;;  %v9484_v54 = vsel %vm9250_vm5, %v1662_v63, %v1663_v8  ;;  %v8601_v46 = vld [vmem:[%s8934_s27 + $0x1f8] sm:$0xff]   ;;  %v6567_v6 = vrot.slane %v9163_v26, 9 }
  0x91   : > { %1993 = vmatprep.mubr.bf16.mxu0 %v6618_v51  ;;  %7888 = vmatpush3.bf16.msra.mxu0 %v8596_v19  ;;  %v1669_v51 = vrot.slane %v1667_v52, 4  ;;  %v8611_v19 = vld [vmem:[%s8934_s27 + $0x340] sm:$0xff]   ;;  %v6637_v41 = vcombine.low %v9470_v62, %v9484_v54  ;;  %v6620_v40 = vcombine.high %v9401_v39, %v9412_v48  ;;  %v1606_v52 = vrot.slane %v1604_v31, 4 }
  0x92   : > { %7889 = vmatprep.subr.bf16.mxu0 %v8603_v55  ;;  %7775 = vmatprep.subr.bf16.mxu1 %v8593_v15  ;;  %v6638_v55 = vcombine.high %v9470_v62, %v9484_v54  ;;  %v1607_v63 = vrot.slane %v9172_v61, 5  ;;  %v1605_v29 = vsel %vm9250_vm5, %v6567_v6, %v1604_v31  ;;  %v1614_v31 = vrot.slane %v9215_v35, 5  ;;  %v8740_v6 = vld [vmem:[%s8953_s20 + $0x128] sm:$0xff] }
  0x93   : > { %v9493_v27 = vsel %vm9250_vm5, %v1669_v51, %v1670_v49  ;;  %1437 = vmatmul.mubr.bf16.gmra.mrb[44].mxu1 %v6519_v47  ;;  %v1611_v47 = vrot.slane %v9204_v2, 5  ;;  %v8738_v51 = vld [vmem:[%s8953_s20 + $0x110] sm:$0xff]  ;;  %v1625_v23 = vrot.slane %v8740_v6, 5 }
  0x94   : > { %v6640_v8 = vcombine.high %v9475_v38, %v9493_v27  ;;  %v6639_v15 = vcombine.low %v9475_v38, %v9493_v27  ;;  %1444 = vmatprep.mubr.bf16.mxu1 %v6522_v1  ;;  %7776 = vmatpush3.bf16.msra.mxu1 %v8594_v10  ;;  %v1608_v61 = vsel %vm9250_vm5, %v1606_v52, %v1607_v63  ;;  %v1621_v49 = vrot.slane %v8738_v51, 5  ;;  %v8741_v63 = vld [vmem:[%s8953_s20 + $0x120] sm:$0xff] }
  0x95   : > { %7890 = vmatpush3.bf16.msra.mxu0 %v8604_v4  ;;  %v8602_v4 = vld [vmem:[%s8934_s27 + $0x1b8] sm:$0xff]   ;;  %7777 = vmatprep.subr.bf16.mxu1 %v8601_v46  ;;  %v6619_v1 = vcombine.low %v9401_v39, %v9412_v48  ;;  %v6622_v36 = vcombine.high %v1605_v29, %v1608_v61  ;;  %v1612_v39 = vsel %vm9250_vm5, %v6568_v16, %v1611_v47  ;;  %v1620_v10 = vrot.slane %v1618_v22, 4 }
  0x96   : > { %8099 = vmatprep.subr.bf16.mxu0 %v8611_v19  ;;  %v11768_v52 = vcombine.low %v9163_v26, %v9166_v43  ;;  %v8743_v43 = vld [vmem:[%s8953_s20 + $0x148] sm:$0xff] }
  0x98   : > { %1994 = vmatmul.mubr.bf16.gmra.mrb[48].mxu0 %v6617_v9  ;;  %7778 = vmatpush3.bf16.msra.mxu1 %v8602_v4  ;;  %v1613_v9 = vrot.slane %v1611_v47, 4  ;;  %v1627_v4 = vrot.slane %v1625_v23, 4 }
  0x99   : > { %2001 = vmatprep.mubr.bf16.mxu0 %v6620_v40  ;;  %7987 = vmatprep.subr.bf16.mxu1 %v8609_v28  ;;  %v1622_v40 = vsel %vm9250_vm5, %v1620_v10, %v1621_v49  ;;  %v8742_v28 = vld [vmem:[%s8953_s20 + $0x130] sm:$0xff]  ;;  %v8746_v10 = vld [vmem:[%s8953_s20 + $0x168] sm:$0xff] }
  0x9a   : > { %v1615_v48 = vsel %vm9250_vm5, %v1613_v9, %v1614_v31  ;;  %v8744_v31 = vld [vmem:[%s8953_s20 + $0x140] sm:$0xff] }
  0x9b   : > { %1445 = vmatmul.mubr.bf16.gmra.mrb[48].mxu1 %v6521_v3  ;;  %v6621_v3 = vcombine.low %v1605_v29, %v1608_v61  ;;  %v6624_v35 = vcombine.high %v1612_v39, %v1615_v48  ;;  %v6623_v30 = vcombine.low %v1612_v39, %v1615_v48  ;;  %v1628_v29 = vrot.slane %v8742_v28, 5 }
  0x9c   : > { %1452 = vmatprep.mubr.bf16.mxu1 %v6524_v7  ;;  %v8739_v7 = vld [vmem:[%s8953_s20 + $0x100] sm:$0xff]  ;;  %v11769_v61 = vcombine.high %v9199_v58, %v9204_v2  ;;  %v6571_v39 = vrot.slane %v8744_v31, 9  ;;  %v11770_v48 = vcombine.low %v9199_v58, %v9204_v2  ;;  %v6534_v28 = vcombine.high %v8744_v31, %v8743_v43 }
  0x9d   : > { %v6569_v19 = vrot.slane %v8739_v7, 9  ;;  %v1629_v26 = vsel %vm9250_vm5, %v1627_v4, %v1628_v29  ;;  %v6529_v49 = vcombine.low %v8739_v7, %v8737_v21 }
  0x9f   : > { %v1619_v46 = vsel %vm9250_vm5, %v6569_v19, %v1618_v22 }
  0xa0   : > { %2002 = vmatmul.mubr.bf16.gmra.mrb[52].mxu0 %v6619_v1  ;;  %v1632_v1 = vrot.slane %v8743_v43, 5  ;;  %v6625_v16 = vcombine.low %v1619_v46, %v1622_v40 }
  0xa1   : > { %2009 = vmatprep.mubr.bf16.mxu0 %v6622_v36  ;;  %v6530_v36 = vcombine.high %v8739_v7, %v8737_v21  ;;  %v6531_v21 = vcombine.low %v8741_v63, %v8740_v6 }
  0xa2   : > { %v1634_v22 = vrot.slane %v1632_v1, 4 }
  0xa3   : > { %1453 = vmatmul.mubr.bf16.gmra.mrb[52].mxu1 %v6523_v18  ;;  %v6626_v18 = vcombine.high %v1619_v46, %v1622_v40  ;;  %v1639_v46 = vrot.slane %v8746_v10, 5  ;;  %v6532_v40 = vcombine.high %v8741_v63, %v8740_v6 }
  0xa4   : > { %1460 = vmatprep.mubr.bf16.mxu1 %v6526_v25  ;;  %v6570_v25 = vrot.slane %v8741_v63, 9 }
  0xa6   : > { %v1626_v47 = vsel %vm9250_vm5, %v6570_v25, %v1625_v23  ;;  %v8747_v23 = vld [vmem:[%s8953_s20 + $0x160] sm:$0xff] }
  0xa7   : > { %v6628_v9 = vcombine.high %v1626_v47, %v1629_v26  ;;  %v6627_v58 = vcombine.low %v1626_v47, %v1629_v26  ;;  %v6533_v47 = vcombine.low %v8744_v31, %v8743_v43  ;;  %v6536_v26 = vcombine.high %v8747_v23, %v8746_v10  ;;  %v9589_v43 = vld [vmem:[%s8953_s20 + $0x28] sm:$0xff] }
  0xa8   : > { %2010 = vmatmul.mubr.bf16.gmra.mrb[56].mxu0 %v6621_v3  ;;  %v8745_v3 = vld [vmem:[%s8953_s20 + $0x150] sm:$0xff]  ;;  %v6535_v63 = vcombine.low %v8747_v23, %v8746_v10 }
  0xa9   : > { %2017 = vmatprep.mubr.bf16.mxu0 %v6624_v35  ;;  %v1635_v51 = vrot.slane %v8745_v3, 5  ;;  %v1633_v35 = vsel %vm9250_vm5, %v6571_v39, %v1632_v1  ;;  %v8749_v1 = vld [vmem:[%s8953_s20 + $0x180] sm:$0xff]  ;;  %v6659_v3 = vld [vmem:[%s8953_s20 + $0x30] sm:$0xff] }
  0xab   : > { %1461 = vmatmul.mubr.bf16.gmra.mrb[56].mxu1 %v11768_v52  ;;  %v1636_v19 = vsel %vm9250_vm5, %v1634_v22, %v1635_v51  ;;  %v8748_v52 = vld [vmem:[%s8953_s20 + $0x170] sm:$0xff]  ;;  %v2667_v22 = vshrl.u32 %v9589_v43, 16 }
  0xac   : > { %1468 = vmatprep.mubr.bf16.mxu1 %v11769_v61  ;;  %v6630_v2 = vcombine.high %v1633_v35, %v1636_v19  ;;  %v1642_v25 = vrot.slane %v8748_v52, 5  ;;  %v6629_v29 = vcombine.low %v1633_v35, %v1636_v19  ;;  %v9603_v35 = vld [vmem:[%s8953_s20 + $0x40] sm:$0xff] }
  0xad   : > { %v2678_v10 = vshrl.u32 %v9603_v35, 16 }
  0xb0   : > { %2018 = vmatmul.mubr.bf16.gmra.mrb[60].mxu0 %v6623_v30  ;;  %v6572_v30 = vrot.slane %v8747_v23, 9 }
  0xb1   : > { %2025 = vmatprep.mubr.bf16.mxu0 %v6626_v18  ;;  %v1641_v18 = vrot.slane %v1639_v46, 4 }
  0xb2   : > { %v1640_v7 = vsel %vm9250_vm5, %v6572_v30, %v1639_v46  ;;  %v2681_v46 = vshll.u32 %v9603_v35, 16 }
  0xb3   : > { %1469 = vmatmul.mubr.bf16.gmra.mrb[60].mxu1 %v11770_v48  ;;  %v1643_v4 = vsel %vm9250_vm5, %v1641_v18, %v1642_v25  ;;  %v2663_v48 = vshll.u32 %v9589_v43, 16  ;;  %v9632_v25 = vld [vmem:[%s8953_s20 + $0x68] sm:$0xff] }
  0xb4   : > { %1476 = vmatprep.mubr.bf16.mxu1 %v6530_v36  ;;  %v6632_v61 = vcombine.high %v1640_v7, %v1643_v4  ;;  %v6631_v6 = vcombine.low %v1640_v7, %v1643_v4  ;;  %v8750_v36 = vld [vmem:[%s8953_s20 + $0x188] sm:$0xff]  ;;  %v2683_v30 = vrot.slane %v2681_v46, 5  ;;  %v2711_v54 = vshll.u32 %v9632_v25, 16 }
  0xb5   : > { %v6537_v39 = vcombine.low %v8749_v1, %v8750_v36  ;;  %v2665_v53 = vrot.slane %v2663_v48, 5  ;;  %v8612_v48 = vld [vmem:[%s8934_s27 + $0x300] sm:$0xff]  }
  0xb8   : > { %2026 = vmatmul.mubr.bf16.gmra.mrb[64].mxu0 %v6625_v16  ;;  %v6538_v16 = vcombine.high %v8749_v1, %v8750_v36  ;;  %v9653_v1 = vld [vmem:[%s8953_s20 + $0x80] sm:$0xff]  ;;  %v9659_v36 = vld [vmem:[%s8953_s20 + $0x88] sm:$0xff] }
  0xb9   : > { %2033 = vmatprep.mubr.bf16.mxu0 %v6628_v9  ;;  %v9586_v9 = vld [vmem:[%s8953_s20 + $0x20] sm:$0xff]  ;;  %v2735_v38 = vshll.u32 %v9659_v36, 16  ;;  %v2739_v27 = vshrl.u32 %v9659_v36, 16 }
  0xba   : > { %v2657_v31 = vshll.u32 %v9586_v9, 16  ;;  %v6737_v42 = vcombine.low %v9586_v9, %v9589_v43 }
  0xbb   : > { %1477 = vmatmul.mubr.bf16.gmra.mrb[64].mxu1 %v6529_v49  ;;  %v2737_v46 = vrot.slane %v2735_v38, 5 }
  0xbc   : > { %1484 = vmatprep.mubr.bf16.mxu1 %v6532_v40  ;;  %v2659_v49 = vrot.slane %v2657_v31, 5  ;;  %v2687_v40 = vshll.u32 %v9606_v12, 16 }
  0xbe   : > { %v2689_v18 = vrot.slane %v2687_v40, 5  ;;  %v2741_v40 = vrot.slane %v2739_v27, 4  ;;  %v8643_v27 = vld [vmem:[%s8934_s27 + $0x360] sm:$0xff]  }
  0xc0   : > { %2034 = vmatmul.mubr.bf16.gmra.mrb[68].mxu0 %v6627_v58 }
  0xc1   : > { %2041 = vmatprep.mubr.bf16.mxu0 %v6630_v2  ;;  %v6662_v2 = vld [vmem:[%s8953_s20 + $0x50] sm:$0xff] }
  0xc3   : > { %1485 = vmatmul.mubr.bf16.gmra.mrb[68].mxu1 %v6531_v21  ;;  %v2697_v21 = vshll.u32 %v6662_v2, 16 }
  0xc4   : > { %1492 = vmatprep.mubr.bf16.mxu1 %v6534_v28  ;;  %v6665_v28 = vld [vmem:[%s8953_s20 + $0x70] sm:$0xff] }
  0xc8   : > { %2042 = vmatmul.mubr.bf16.gmra.mrb[72].mxu0 %v6629_v29 }
  0xc9   : > { %2049 = vmatprep.mubr.bf16.mxu0 %v6632_v61 }
  0xcb   : > { %1493 = vmatmul.mubr.bf16.gmra.mrb[72].mxu1 %v6533_v47 }
  0xcc   : > { %1500 = vmatprep.mubr.bf16.mxu1 %v6536_v26  ;;  %v2699_v26 = vrot.slane %v2697_v21, 5 }
  0xd0   : > { %2050 = vmatmul.mubr.bf16.gmra.mrb[76].mxu0 %v6631_v6  ;;  %v2713_v6 = vrot.slane %v2711_v54, 5  ;;  %v8628_v54 = vld [vmem:[%s8934_s27 + $0x310] sm:$0xff]  }
  0xd1   : > { %2057 = vmatprep.mubr.bf16.mxu0 %v6634_v32  ;;  %v2654_v32 = vshrl.u32 %v9586_v9, 16 }
  0xd3   : > { %1501 = vmatmul.mubr.bf16.gmra.mrb[76].mxu1 %v6535_v63  ;;  %v2656_v51 = vrot.slane %v2654_v32, 4  ;;  %v2729_v32 = vshll.u32 %v9653_v1, 16 }
  0xd4   : > { %1508 = vmatprep.mubr.bf16.mxu1 %v6538_v16  ;;  %v2721_v16 = vshll.u32 %v6665_v28, 16 }
  0xd5   : > { %v2660_v19 = vor.u32 %v2659_v49, %v2656_v51  ;;  %v2731_v49 = vrot.slane %v2729_v32, 5 }
  0xd7   : > { %v2661_v14 = vrot.slane %v2660_v19, 4  ;;  %v8619_v19 = vld [vmem:[%s8934_s27 + $0x348] sm:$0xff]  }
  0xd8   : > { %2058 = vmatmul.mubr.bf16.gmra.mrb[80].mxu0 %v6633_v57  ;;  %v2669_v57 = vrot.slane %v2667_v22, 4 }
  0xd9   : > { %2065 = vmatprep.mubr.bf16.mxu0 %v6636_v37  ;;  %v2673_v37 = vshll.u32 %v6659_v3, 16  ;;  %v2666_v50 = vsel %vm8978_vm2, %v2661_v14, %v2665_v53 }
  0xda   : > { %v2670_v58 = vor.u32 %v2669_v57, %v2665_v53  ;;  %v9679_v53 = vld [vmem:[%s8953_s20 + $0xa0] sm:$0xff] }
  0xdb   : > { %1509 = vmatmul.mubr.bf16.gmra.mrb[80].mxu1 %v6537_v39  ;;  %v2675_v23 = vrot.slane %v2673_v37, 5  ;;  %v2723_v37 = vrot.slane %v2721_v16, 5  ;;  %v2753_v2 = vshll.u32 %v9679_v53, 16  ;;  %v8625_v16 = vld [vmem:[%s8934_s27 + $0x2d0] sm:$0xff]  }
  0xdc   : > { %1516 = vmatprep.mubr.bf16.mxu1 %v6540_v17  ;;  %v2691_v17 = vshrl.u32 %v9606_v12, 16 }
  0xde   : > { %v2693_v52 = vrot.slane %v2691_v17, 4  ;;  %v2750_v17 = vshrl.u32 %v9679_v53, 16 }
  0xe0   : > { %2066 = vmatmul.mubr.bf16.gmra.mrb[84].mxu0 %v6635_v13  ;;  %v2680_v13 = vrot.slane %v2678_v10, 4  ;;  %v2694_v62 = vor.u32 %v2693_v52, %v2689_v18  ;;  %v6668_v10 = vld [vmem:[%s8953_s20 + $0x90] sm:$0xff]  ;;  %v6740_v52 = vcombine.high %v9603_v35, %v9606_v12 }
  0xe1   : > { %2073 = vmatprep.mubr.bf16.mxu0 %v6638_v55  ;;  %v2671_v55 = vrot.slane %v2670_v58, 4  ;;  %v9687_v58 = vld [vmem:[%s8953_s20 + $0xa8] sm:$0xff]  ;;  %v2745_v14 = vshll.u32 %v6668_v10, 16  ;;  %v8644_v10 = vld [vmem:[%s8934_s27 + $0x320] sm:$0xff]  }
  0xe2   : > { %v2684_v59 = vor.u32 %v2683_v30, %v2680_v13  ;;  %v2695_v47 = vrot.slane %v2694_v62, 4  ;;  %v2742_v30 = vor.u32 %v2741_v40, %v2737_v46  ;;  %v6671_v62 = vld [vmem:[%s8953_s20 + $0xb0] sm:$0xff] }
  0xe3   : > { %1517 = vmatmul.mubr.bf16.gmra.mrb[84].mxu1 %v6539_v60  ;;  %v2702_v60 = vshrl.u32 %v9623_v24, 16  ;;  %v2676_v7 = vsel %vm8978_vm2, %v2671_v55, %v2675_v23  ;;  %v8610_v55 = vld [vmem:[%s8934_s27 + $0x280] sm:$0xff]  }
  0xe4   : > { %1524 = vmatprep.mubr.bf16.mxu1 %v6542_v33  ;;  %v2705_v33 = vshll.u32 %v9623_v24, 16  ;;  %v6818_v4 = vcombine.high %v2666_v50, %v2676_v7  ;;  %v6817_v39 = vcombine.low %v2666_v50, %v2676_v7  ;;  %v8617_v50 = vld [vmem:[%s8934_s27 + $0x2c8] sm:$0xff]  }
  0xe5   : > { %v2704_v29 = vrot.slane %v2702_v60, 4  ;;  %v2755_v60 = vrot.slane %v2753_v2, 5 }
  0xe6   : > { %v2707_v61 = vrot.slane %v2705_v33, 5 }
  0xe8   : > { %2074 = vmatmul.mubr.bf16.gmra.mrb[88].mxu0 %v6637_v41  ;;  %v2715_v41 = vshrl.u32 %v9632_v25, 16  ;;  %v2708_v5 = vor.u32 %v2707_v61, %v2704_v29  ;;  %v9715_v29 = vld [vmem:[%s8953_s20 + $0xc0] sm:$0xff]  ;;  %v8635_v61 = vld [vmem:[%s8934_s27 + $0x358] sm:$0xff]  }
  0xe9   : > { %2081 = vmatprep.mubr.bf16.mxu0 %v6640_v8  ;;  %v2685_v8 = vrot.slane %v2684_v59, 4  ;;  %v2752_v59 = vrot.slane %v2750_v17, 4  ;;  %v2777_v32 = vshll.u32 %v9715_v29, 16 }
  0xea   : > { %v2717_v63 = vrot.slane %v2715_v41, 4  ;;  %v2709_v3 = vrot.slane %v2708_v5, 4  ;;  %v2743_v41 = vrot.slane %v2742_v30, 4  ;;  %v2769_v5 = vshll.u32 %v6671_v62, 16 }
  0xeb   : > { %1525 = vmatmul.mubr.bf16.gmra.mrb[88].mxu1 %v6541_v56  ;;  %v9666_v0 = vsel %vm8978_vm2, %v2685_v8, %v2689_v18  ;;  %v2726_v56 = vshrl.u32 %v9653_v1, 16  ;;  %v8627_v18 = vld [vmem:[%s8934_s27 + $0x350] sm:$0xff]  }
  0xec   : > { %1532 = vmatprep.mubr.bf16.mxu1 %v6544_v11  ;;  %v2700_v11 = vsel %vm8978_vm2, %v2695_v47, %v2699_v26  ;;  %v2718_v31 = vor.u32 %v2717_v63, %v2713_v6  ;;  %v9695_v20 = vsel %vm8978_vm2, %v2709_v3, %v2713_v6  ;;  %v8618_v47 = vld [vmem:[%s8934_s27 + $0x288] sm:$0xff]   ;;  %v6739_v6 = vcombine.low %v9603_v35, %v9606_v12  ;;  %v8636_v35 = vld [vmem:[%s8934_s27 + $0x318] sm:$0xff]  }
  0xed   : > { %v6820_v22 = vcombine.high %v9666_v0, %v2700_v11  ;;  %v2728_v51 = vrot.slane %v2726_v56, 4  ;;  %v6819_v21 = vcombine.low %v9666_v0, %v2700_v11  ;;  %v9720_v26 = vld [vmem:[%s8953_s20 + $0xc8] sm:$0xff]  ;;  %v2756_v63 = vor.u32 %v2755_v60, %v2752_v59  ;;  %v8633_v3 = vld [vmem:[%s8934_s27 + $0x2d8] sm:$0xff]  }
  0xee   : > { %v2719_v57 = vrot.slane %v2718_v31, 4  ;;  %v2774_v56 = vshrl.u32 %v9715_v29, 16  ;;  %v2783_v31 = vshll.u32 %v9720_v26, 16  ;;  %v2787_v38 = vshrl.u32 %v9720_v26, 16  ;;  %v8652_v59 = vld [vmem:[%s8934_s27 + $0x328] sm:$0xff]  }
  0xef   : > { %v2732_v23 = vor.u32 %v2731_v49, %v2728_v51  ;;  %v9748_v49 = vld [vmem:[%s8953_s20 + $0xd0] sm:$0xff]  ;;  %v2771_v40 = vrot.slane %v2769_v5, 5 }
  0xf0   : > { %2082 = vmatmul.mubr.bf16.gmra.mrb[92].mxu0 %v6639_v15  ;;  %v6738_v15 = vcombine.high %v9586_v9, %v9589_v43  ;;  %v9700_v13 = vsel %vm8978_vm2, %v2719_v57, %v2723_v37  ;;  %v2759_v9 = vshll.u32 %v9687_v58, 16  ;;  %v2763_v43 = vshrl.u32 %v9687_v58, 16 }
  0xf1   : > { %3326 = vmatprep.mubr.bf16.mxu0 %v6818_v4  ;;  %v6822_v33 = vcombine.high %v9695_v20, %v9700_v13  ;;  %v2733_v7 = vrot.slane %v2732_v23, 4  ;;  %v2747_v4 = vrot.slane %v2745_v14, 5  ;;  %v2776_v57 = vrot.slane %v2774_v56, 4 }
  0xf2   : > { %v2761_v8 = vrot.slane %v2759_v9, 5  ;;  %v2765_v28 = vrot.slane %v2763_v43, 4  ;;  %v2779_v37 = vrot.slane %v2777_v32, 5  ;;  %v9754_v17 = vrot.slane %v2783_v31, 5  ;;  %v8649_v32 = vld [vmem:[%s8934_s27 + $0x2e8] sm:$0xff]   ;;  %v6677_v31 = vld [vmem:[%s8953_s20 + $0xf0] sm:$0xff] }
  0xf3   : > { %1533 = vmatmul.mubr.bf16.gmra.mrb[92].mxu1 %v6543_v44  ;;  %v8620_v44 = vld [vmem:[%s8934_s27 + $0x308] sm:$0xff]   ;;  %v9727_v0 = vsel %vm8978_vm2, %v2733_v7, %v2737_v46  ;;  %v9734_v12 = vsel %vm8978_vm2, %v2743_v41, %v2747_v4  ;;  %v2789_v2 = vrot.slane %v2787_v38, 4  ;;  %v6741_v23 = vcombine.low %v9623_v24, %v9632_v25  ;;  %v8659_v4 = vld [vmem:[%s8934_s27 + $0x370] sm:$0xff]  }
  0xf4   : > { %2492 = vmatprep.mubr.bf16.mxu1 %v6738_v15  ;;  %v2766_v11 = vor.u32 %v2765_v28, %v2761_v8  ;;  %v6742_v15 = vcombine.high %v9623_v24, %v9632_v25  ;;  %v6824_v51 = vcombine.high %v9727_v0, %v9734_v12  ;;  %v2793_v24 = vshll.u32 %v9748_v49, 16  ;;  %v8660_v38 = vld [vmem:[%s8934_s27 + $0x330] sm:$0xff]  }
  0xf5   : > { %v2790_v41 = vor.u32 %v2789_v2, %v9754_v17 }
  0xf6   : > { %v2767_v46 = vrot.slane %v2766_v11, 4 }
  0xf8   : > { %3327 = vmatmul.mubr.bf16.vlgmr.msra.gmra.mrb[96].mxu0 %v6817_v39  ;;  %v8626_v39 = vld [vmem:[%s8934_s27 + $0x290] sm:$0xff]  }
  0xf9   : > { %8100 = vmatpush3.bf16.msra.mxu0 %v8612_v48  ;;  %3334 = vmatprep.mubr.bf16.mxu0 %v6820_v22  ;;  %v6821_v48 = vcombine.low %v9695_v20, %v9700_v13  ;;  %v2757_v22 = vrot.slane %v2756_v63, 4  ;;  %v8651_v20 = vld [vmem:[%s8934_s27 + $0x368] sm:$0xff]  }
  0xfa   : > { %8101 = vmatprep.subr.bf16.mxu0 %v8619_v19  ;;  %v9751_v19 = vld [vmem:[%s8953_s20 + $0xe0] sm:$0xff] }
  0xfb   : > { %2493 = vmatmul.mubr.bf16.vlgmr.msra.gmra.mrb[96].mxu1 %v6737_v42  ;;  %v9757_v42 = vld [vmem:[%s8953_s20 + $0xe8] sm:$0xff]  ;;  %v9765_v30 = vsel %vm8978_vm2, %v2757_v22, %v2761_v8  ;;  %v2798_v9 = vshrl.u32 %v9751_v19, 16  ;;  %v2801_v43 = vshll.u32 %v9751_v19, 16 }
  0xfc   : > { %7988 = vmatpush3.bf16.msra.mxu1 %v8610_v55  ;;  %2500 = vmatprep.mubr.bf16.mxu1 %v6740_v52  ;;  %v2807_v25 = vshll.u32 %v9757_v42, 16  ;;  %v9805_v22 = vld [vmem:[%s8953_s20 + $0x108] sm:$0xff] }
  0xfd   : > { %8102 = vmatpush3.bf16.msra.mxu0 %v8620_v44  ;;  %7989 = vmatprep.subr.bf16.mxu1 %v8617_v50  ;;  %v8634_v44 = vld [vmem:[%s8934_s27 + $0x298] sm:$0xff]   ;;  %v2811_v50 = vshrl.u32 %v9757_v42, 16  ;;  %v2800_v5 = vrot.slane %v2798_v9, 4  ;;  %v2803_v56 = vrot.slane %v2801_v43, 5  ;;  %v2835_v9 = vshrl.u32 %v9805_v22, 16  ;;  %v8675_v43 = vld [vmem:[%s8934_s27 + $0x440] sm:$0xff]  }
  0xfe   : > { %8103 = vmatprep.subr.bf16.mxu0 %v8627_v18  ;;  %v8641_v18 = vld [vmem:[%s8934_s27 + $0x2e0] sm:$0xff]  }
 0x100   : > { %3335 = vmatmul.mubr.bf16.gmra.mrb[100].mxu0 %v6819_v21  ;;  %7990 = vmatpush3.bf16.msra.mxu1 %v8618_v47  ;;  %v2780_v21 = vor.u32 %v2779_v37, %v2776_v57  ;;  %v6823_v47 = vcombine.low %v9727_v0, %v9734_v12  ;;  %v9797_v0 = vrot.slane %v2807_v25, 5  ;;  %v2813_v12 = vrot.slane %v2811_v50, 4 }
 0x101   : > { %3342 = vmatprep.mubr.bf16.mxu0 %v6822_v33  ;;  %8104 = vmatpush3.bf16.msra.mxu0 %v8628_v54  ;;  %v9780_v54 = vsel %vm8978_vm2, %v2767_v46, %v2771_v40  ;;  %v2804_v57 = vor.u32 %v2803_v56, %v2800_v5  ;;  %v2817_v37 = vshll.u32 %v6677_v31, 16  ;;  %v2837_v5 = vrot.slane %v2835_v9, 4  ;;  %v9845_v56 = vld [vmem:[%s8953_s20 + $0x120] sm:$0xff] }
 0x102   : > { %8105 = vmatprep.subr.bf16.mxu0 %v8635_v61  ;;  %7991 = vmatprep.subr.bf16.mxu1 %v8625_v16  ;;  %v6744_v61 = vcombine.high %v9653_v1, %v9659_v36  ;;  %v2781_v11 = vrot.slane %v2780_v21, 4  ;;  %v2814_v2 = vor.u32 %v2813_v12, %v9797_v0  ;;  %v6825_v21 = vcombine.low %v9765_v30, %v9780_v54  ;;  %v9878_v9 = vld [vmem:[%s8953_s20 + $0x140] sm:$0xff] }
 0x103   : > { %2501 = vmatmul.mubr.bf16.gmra.mrb[100].mxu1 %v6739_v6  ;;  %v8642_v6 = vld [vmem:[%s8934_s27 + $0x2a0] sm:$0xff]  }
 0x104   : > { %2508 = vmatprep.mubr.bf16.mxu1 %v6742_v15  ;;  %7992 = vmatpush3.bf16.msra.mxu1 %v8626_v39  ;;  %v2795_v15 = vrot.slane %v2793_v24, 5  ;;  %v9801_v39 = vld [vmem:[%s8953_s20 + $0x100] sm:$0xff]  ;;  %v9814_v40 = vsel %vm8978_vm2, %v2781_v11, %v9754_v17  ;;  %v2831_v17 = vshll.u32 %v9805_v22, 16  ;;  %v8658_v24 = vld [vmem:[%s8934_s27 + $0x2b0] sm:$0xff]   ;;  %v6745_v11 = vcombine.low %v9679_v53, %v9687_v58 }
 0x105   : > { %8106 = vmatpush3.bf16.msra.mxu0 %v8636_v35  ;;  %7993 = vmatprep.subr.bf16.mxu1 %v8633_v3  ;;  %v6826_v35 = vcombine.high %v9765_v30, %v9780_v54  ;;  %v8650_v3 = vld [vmem:[%s8934_s27 + $0x2a8] sm:$0xff]   ;;  %v6680_v30 = vld [vmem:[%s8953_s20 + $0x110] sm:$0xff] }
 0x106   : > { %8107 = vmatprep.subr.bf16.mxu0 %v8643_v27  ;;  %v2791_v27 = vrot.slane %v2790_v41, 4  ;;  %v8665_v41 = vld [vmem:[%s8934_s27 + $0x2f8] sm:$0xff]  }
 0x108   : > { %3343 = vmatmul.mubr.bf16.gmra.mrb[104].mxu0 %v6821_v48  ;;  %7994 = vmatpush3.bf16.msra.mxu1 %v8634_v44  ;;  %v8667_v48 = vld [vmem:[%s8934_s27 + $0x378] sm:$0xff]  }
 0x109   : > { %3350 = vmatprep.mubr.bf16.mxu0 %v6824_v51  ;;  %8108 = vmatpush3.bf16.msra.mxu0 %v8644_v10  ;;  %v6743_v51 = vcombine.low %v9653_v1, %v9659_v36  ;;  %v8657_v10 = vld [vmem:[%s8934_s27 + $0x2f0] sm:$0xff]   ;;  %v2825_v1 = vshll.u32 %v9801_v39, 16  ;;  %v8668_v36 = vld [vmem:[%s8934_s27 + $0x338] sm:$0xff]  }
 0x10a   : > { %8109 = vmatprep.subr.bf16.mxu0 %v8651_v20  ;;  %7995 = vmatprep.subr.bf16.mxu1 %v8641_v18  ;;  %v2822_v20 = vshrl.u32 %v9801_v39, 16 }
 0x10b   : > { %v7443_v14 = vpop.f32.mrb[0].mxu0  ;;  %v7491_v13 = vpop.f32.mrb[0].mxu1  ;;  %2509 = vmatmul.mubr.bf16.gmra.mrb[104].mxu1 %v6741_v23 }
 0x10c   : > { %v7444_v55 = vpop.f32.mrb[1].mxu0  ;;  %v7492_v52 = vpop.f32.mrb[1].mxu1  ;;  %2516 = vmatprep.mubr.bf16.mxu1 %v6744_v61  ;;  %7996 = vmatpush3.bf16.msra.mxu1 %v8642_v6  ;;  %v2824_v54 = vrot.slane %v2822_v20, 4  ;;  %v2827_v61 = vrot.slane %v2825_v1, 5  ;;  %v2833_v6 = vrot.slane %v2831_v17, 5  ;;  %v6748_v20 = vcombine.high %v9715_v29, %v9720_v26 }
 0x10d   : > { %v9774_v60 = vadd.f32 %v7444_v55, %v7443_v14  ;;  %v9776_v33 = vadd.f32 %v7492_v52, %v7491_v13  ;;  %v7446_v7 = vpop.f32.mrb[2].mxu0  ;;  %v7494_v62 = vpop.f32.mrb[2].mxu1  ;;  %8110 = vmatpush3.bf16.msra.mxu0 %v8652_v59  ;;  %7997 = vmatprep.subr.bf16.mxu1 %v8649_v32  ;;  %v9824_v13 = vsel %vm8978_vm2, %v2791_v27, %v2795_v15  ;;  %v9848_v32 = vld [vmem:[%s8953_s20 + $0x128] sm:$0xff]  ;;  %v8673_v27 = vld [vmem:[%s8934_s27 + $0x3c0] sm:$0xff]  }
 0x10e   : > { %v7447_v8 = vpop.f32.mrb[3].mxu0  ;;  %v7495_v28 = vpop.f32.mrb[3].mxu1  ;;  %8111 = vmatprep.subr.bf16.mxu0 %v8659_v4  ;;  %v6746_v52 = vcombine.high %v9679_v53, %v9687_v58  ;;  %v2849_v53 = vshll.u32 %v9845_v56, 16 }
 0x10f   : > { %v9789_v63 = vadd.f32 %v7447_v8, %v7446_v7  ;;  %v9791_v16 = vadd.f32 %v7495_v28, %v7494_v62  ;;  %v2805_v7 = vrot.slane %v2804_v57, 4  ;;  %v2819_v62 = vrot.slane %v2817_v37, 5 }
 0x110   : > { %3351 = vmatmul.mubr.bf16.gmra.mrb[108].mxu0 %v6823_v47  ;;  %7998 = vmatpush3.bf16.msra.mxu1 %v8650_v3  ;;  %v6828_v8 = vcombine.high %v9814_v40, %v9824_v13  ;;  %v2815_v28 = vrot.slane %v2814_v2, 4  ;;  %v2828_v3 = vor.u32 %v2827_v61, %v2824_v54  ;;  %v2838_v57 = vor.u32 %v2837_v5, %v2833_v6 }
 0x111   : > { %3358 = vmatprep.mubr.bf16.mxu0 %v6826_v35  ;;  %8112 = vmatpush3.bf16.msra.mxu0 %v8660_v38  ;;  %v8666_v35 = vld [vmem:[%s8934_s27 + $0x2b8] sm:$0xff]   ;;  %v9856_v12 = vsel %vm8978_vm2, %v2805_v7, %v9797_v0  ;;  %v2841_v38 = vshll.u32 %v6680_v30, 16  ;;  %v2855_v37 = vshll.u32 %v9848_v32, 16  ;;  %v6747_v54 = vcombine.low %v9715_v29, %v9720_v26  ;;  %v6686_v26 = vld [vmem:[%s8953_s20 + $0x150] sm:$0xff] }
 0x112   : > { %8113 = vmatprep.subr.bf16.mxu0 %v8667_v48  ;;  %7999 = vmatprep.subr.bf16.mxu1 %v8657_v10  ;;  %v9861_v48 = vsel %vm8978_vm2, %v2815_v28, %v2819_v62  ;;  %v2859_v10 = vshrl.u32 %v9848_v32, 16  ;;  %v2839_v7 = vrot.slane %v2838_v57, 4  ;;  %v6683_v62 = vld [vmem:[%s8953_s20 + $0x130] sm:$0xff]  ;;  %v6750_v29 = vcombine.high %v9751_v19, %v9757_v42 }
 0x113   : > { %v7449_v49 = vpop.f32.mrb[4].mxu0  ;;  %v7497_v44 = vpop.f32.mrb[4].mxu1  ;;  %2517 = vmatmul.mubr.bf16.gmra.mrb[108].mxu1 %v6743_v51  ;;  %v2846_v51 = vshrl.u32 %v9845_v56, 16  ;;  %v2843_v17 = vrot.slane %v2841_v38, 5 }
 0x114   : > { %v7450_v46 = vpop.f32.mrb[5].mxu0  ;;  %v7498_v18 = vpop.f32.mrb[5].mxu1  ;;  %2524 = vmatprep.mubr.bf16.mxu1 %v6746_v52  ;;  %8000 = vmatpush3.bf16.msra.mxu1 %v8658_v24  ;;  %v9883_v24 = vld [vmem:[%s8953_s20 + $0x148] sm:$0xff] }
 0x115   : > { %v9820_v23 = vadd.f32 %v7450_v46, %v7449_v49  ;;  %v7452_v14 = vpop.f32.mrb[6].mxu0  ;;  %v9834_v25 = vadd.f32 %v7498_v18, %v7497_v44  ;;  %v7500_v50 = vpop.f32.mrb[6].mxu1  ;;  %8114 = vmatpush3.bf16.msra.mxu0 %v8668_v36  ;;  %8001 = vmatprep.subr.bf16.mxu1 %v8665_v41  ;;  %v6830_v18 = vcombine.high %v9856_v12, %v9861_v48  ;;  %v2848_v52 = vrot.slane %v2846_v51, 4 }
 0x116   : > { %v7453_v55 = vpop.f32.mrb[7].mxu0  ;;  %v7501_v4 = vpop.f32.mrb[7].mxu1  ;;  %8323 = vmatprep.subr.bf16.mxu0 %v8675_v43  ;;  %v2857_v41 = vrot.slane %v2855_v37, 5  ;;  %v2879_v28 = vshll.u32 %v9883_v24, 16  ;;  %v2883_v30 = vshrl.u32 %v9883_v24, 16  ;;  %v9902_v38 = vsel %vm8978_vm2, %v2839_v7, %v2843_v17  ;;  %v9912_v37 = vld [vmem:[%s8953_s20 + $0x160] sm:$0xff] }
 0x117   : > { %11771 = vst [vmem:[#allocation2_spill] sm:$0xff] %v9834_v25  ;;  %v9836_v59 = vadd.f32 %v7453_v55, %v7452_v14  ;;  %v9842_v47 = vadd.f32 %v7501_v4, %v7500_v50  ;;  %v6827_v14 = vcombine.low %v9814_v40, %v9824_v13  ;;  %v2829_v55 = vrot.slane %v2828_v3, 4 }
 0x118   : > { %3359 = vmatmul.mubr.bf16.gmra.mrb[112].mxu0 %v6825_v21  ;;  %8002 = vmatpush3.bf16.msra.mxu1 %v8666_v35  ;;  %v2851_v21 = vrot.slane %v2849_v53, 5  ;;  %v2861_v40 = vrot.slane %v2859_v10, 4  ;;  %v2870_v13 = vshrl.u32 %v9878_v9, 16  ;;  %v2873_v4 = vshll.u32 %v9878_v9, 16 }
 0x119   : > { %11772 = vst [vmem:[#allocation3_spill] sm:$0xff] %v9842_v47  ;;  %3366 = vmatprep.mubr.bf16.mxu0 %v6828_v8  ;;  %8211 = vmatprep.subr.bf16.mxu1 %v8673_v27  ;;  %v9896_v5 = vsel %vm8978_vm2, %v2829_v55, %v2833_v6  ;;  %v2865_v35 = vshll.u32 %v6683_v62, 16  ;;  %v2885_v57 = vrot.slane %v2883_v30, 4  ;;  %v6752_v30 = vcombine.high %v9801_v39, %v9805_v22 }
 0x11a   : > { %v2852_v27 = vor.u32 %v2851_v21, %v2848_v52  ;;  %v2872_v51 = vrot.slane %v2870_v13, 4  ;;  %v2875_v6 = vrot.slane %v2873_v4, 5  ;;  %v2897_v52 = vshll.u32 %v9912_v37, 16 }
 0x11b   : > { %v7455_v31 = vpop.f32.mrb[8].mxu0  ;;  %v7503_v58 = vpop.f32.mrb[8].mxu1  ;;  %2525 = vmatmul.mubr.bf16.gmra.mrb[112].mxu1 %v6745_v11  ;;  %v2867_v17 = vrot.slane %v2865_v35, 5  ;;  %v6831_v35 = vcombine.low %v9896_v5, %v9902_v38 }
 0x11c   : > { %v7456_v15 = vpop.f32.mrb[9].mxu0  ;;  %v7504_v46 = vpop.f32.mrb[9].mxu1  ;;  %2532 = vmatprep.mubr.bf16.mxu1 %v6748_v20 }
 0x11d   : > { %v9865_v49 = vadd.f32 %v7456_v15, %v7455_v31  ;;  %v7458_v0 = vpop.f32.mrb[10].mxu0  ;;  %v9871_v1 = vadd.f32 %v7504_v46, %v7503_v58  ;;  %v7506_v36 = vpop.f32.mrb[10].mxu1  ;;  %v2862_v15 = vor.u32 %v2861_v40, %v2857_v41  ;;  %v6829_v58 = vcombine.low %v9856_v12, %v9861_v48 }
 0x11e   : > { %v7459_v2 = vpop.f32.mrb[11].mxu0  ;;  %v7507_v43 = vpop.f32.mrb[11].mxu1  ;;  %v6832_v46 = vcombine.high %v9896_v5, %v9902_v38  ;;  %v2876_v12 = vor.u32 %v2875_v6, %v2872_v51  ;;  %v2894_v48 = vshrl.u32 %v9912_v37, 16 }
 0x11f   : > { %11773 = vst [vmem:[#allocation4_spill] sm:$0xff] %v9871_v1  ;;  %v9873_v44 = vadd.f32 %v7459_v2, %v7458_v0  ;;  %v9885_v50 = vadd.f32 %v7507_v43, %v7506_v36  ;;  %v2881_v0 = vrot.slane %v2879_v28, 5  ;;  %v9917_v2 = vld [vmem:[%s8953_s20 + $0x168] sm:$0xff]  ;;  %v2853_v36 = vrot.slane %v2852_v27, 4 }
 0x120   : > { %3367 = vmatmul.mubr.bf16.gmra.mrb[116].mxu0 %v6827_v14  ;;  %v2863_v14 = vrot.slane %v2862_v15, 4  ;;  %v2889_v43 = vshll.u32 %v6686_v26, 16  ;;  %v2903_v40 = vshll.u32 %v9917_v2, 16  ;;  %v2907_v13 = vshrl.u32 %v9917_v2, 16 }
 0x121   : > { %11774 = vst [vmem:[#allocation5_spill] sm:$0xff] %v9885_v50  ;;  %3374 = vmatprep.mubr.bf16.mxu0 %v6830_v18  ;;  %v2886_v62 = vor.u32 %v2885_v57, %v2881_v0  ;;  %v2877_v27 = vrot.slane %v2876_v12, 4 }
 0x122   : > { %v2891_v15 = vrot.slane %v2889_v43, 5  ;;  %v2905_v6 = vrot.slane %v2903_v40, 5  ;;  %v2909_v5 = vrot.slane %v2907_v13, 4 }
 0x123   : > { %v7461_v8 = vpop.f32.mrb[12].mxu0  ;;  %v7509_v10 = vpop.f32.mrb[12].mxu1  ;;  %2533 = vmatmul.mubr.bf16.gmra.mrb[116].mxu1 %v6747_v54  ;;  %v2887_v51 = vrot.slane %v2886_v62, 4  ;;  %v6751_v62 = vcombine.low %v9801_v39, %v9805_v22 }
 0x124   : > { %v7462_v61 = vpop.f32.mrb[13].mxu0  ;;  %v7510_v20 = vpop.f32.mrb[13].mxu1  ;;  %2540 = vmatprep.mubr.bf16.mxu1 %v6750_v29  ;;  %v2899_v29 = vrot.slane %v2897_v52, 5  ;;  %v2910_v12 = vor.u32 %v2909_v5, %v2905_v6 }
 0x125   : > { %v9898_v11 = vadd.f32 %v7462_v61, %v7461_v8  ;;  %v7464_v31 = vpop.f32.mrb[14].mxu0  ;;  %v9919_v18 = vadd.f32 %v7510_v20, %v7509_v10  ;;  %v7512_v55 = vpop.f32.mrb[14].mxu1  ;;  %v6749_v8 = vcombine.low %v9751_v19, %v9757_v42  ;;  %v9941_v19 = vsel %vm8978_vm2, %v2863_v14, %v2867_v17  ;;  %v9949_v10 = vld [vmem:[%s8953_s20 + $0x180] sm:$0xff] }
 0x126   : > { %v7465_v3 = vpop.f32.mrb[15].mxu0  ;;  %v7513_v21 = vpop.f32.mrb[15].mxu1  ;;  %v9958_v14 = vsel %vm8978_vm2, %v2877_v27, %v2881_v0  ;;  %v9962_v43 = vsel %vm8978_vm2, %v2887_v51, %v2891_v15  ;;  %v9984_v15 = vld [vmem:[%s8953_s20 + $0x1a8] sm:$0xff] }
 0x127   : > { %v9907_v53 = vadd.f32 %v7465_v3, %v7464_v31  ;;  %11775 = vst [vmem:[#allocation6_spill] sm:$0xff] %v9919_v18  ;;  %v9925_v4 = vadd.f32 %v7513_v21, %v7512_v55  ;;  %v9937_v31 = vsel %vm8978_vm2, %v2853_v36, %v2857_v41  ;;  %v2896_v3 = vrot.slane %v2894_v48, 4  ;;  %v10084_v18 = vld [vmem:[%s8953_s20 + $0x208] sm:$0xff] }
 0x128   : > { %3375 = vmatmul.mubr.bf16.gmra.mrb[120].mxu0 %v6829_v58  ;;  %v6834_v41 = vcombine.high %v9937_v31, %v9941_v19  ;;  %v6689_v58 = vld [vmem:[%s8953_s20 + $0x170] sm:$0xff]  ;;  %v2918_v21 = vshrl.u32 %v9949_v10, 16  ;;  %v6836_v27 = vcombine.high %v9958_v14, %v9962_v43 }
 0x129   : > { %11776 = vst [vmem:[#allocation7_spill] sm:$0xff] %v9925_v4  ;;  %3382 = vmatprep.mubr.bf16.mxu0 %v6832_v46  ;;  %v9952_v46 = vld [vmem:[%s8953_s20 + $0x188] sm:$0xff]  ;;  %v2900_v55 = vor.u32 %v2899_v29, %v2896_v3  ;;  %v2913_v48 = vshll.u32 %v6689_v58, 16  ;;  %v2911_v29 = vrot.slane %v2910_v12, 4  ;;  %v2955_v12 = vshrl.u32 %v9984_v15, 16 }
 0x12a   : > { %v2927_v0 = vshll.u32 %v9952_v46, 16  ;;  %v2931_v13 = vshrl.u32 %v9952_v46, 16  ;;  %v2920_v51 = vrot.slane %v2918_v21, 4 }
 0x12b   : > { %v7467_v7 = vpop.f32.mrb[16].mxu0  ;;  %v7515_v38 = vpop.f32.mrb[16].mxu1  ;;  %2541 = vmatmul.mubr.bf16.gmra.mrb[120].mxu1 %v6749_v8  ;;  %v2901_v39 = vrot.slane %v2900_v55, 4  ;;  %v2915_v22 = vrot.slane %v2913_v48, 5  ;;  %v2951_v55 = vshll.u32 %v9984_v15, 16 }
 0x12c   : > { %v7468_v28 = vpop.f32.mrb[17].mxu0  ;;  %v7516_v57 = vpop.f32.mrb[17].mxu1  ;;  %2548 = vmatprep.mubr.bf16.mxu1 %v6752_v30  ;;  %v6833_v30 = vcombine.low %v9937_v31, %v9941_v19  ;;  %v2933_v58 = vrot.slane %v2931_v13, 4 }
 0x12d   : > { %v9931_v54 = vadd.f32 %v7468_v28, %v7467_v7  ;;  %v7470_v61 = vpop.f32.mrb[18].mxu0  ;;  %v9954_v20 = vadd.f32 %v7516_v57, %v7515_v38  ;;  %v7518_v36 = vpop.f32.mrb[18].mxu1  ;;  %v2921_v7 = vshll.u32 %v9949_v10, 16  ;;  %v6754_v28 = vcombine.high %v9845_v56, %v9848_v32 }
 0x12e   : > { %v7471_v42 = vpop.f32.mrb[19].mxu0  ;;  %v7519_v17 = vpop.f32.mrb[19].mxu1  ;;  %v9986_v38 = vrot.slane %v2927_v0, 5 }
 0x12f   : > { %v9943_v26 = vadd.f32 %v7471_v42, %v7470_v61  ;;  %11777 = vst [vmem:[#allocation8_spill] sm:$0xff] %v9954_v20  ;;  %v9964_v52 = vadd.f32 %v7519_v17, %v7518_v36  ;;  %v9977_v61 = vld [vmem:[%s8953_s20 + $0x1a0] sm:$0xff]  ;;  %v2923_v5 = vrot.slane %v2921_v7, 5  ;;  %v6753_v7 = vcombine.low %v9845_v56, %v9848_v32 }
 0x130   : > { %3383 = vmatmul.mubr.bf16.gmra.mrb[124].mxu0 %v6831_v35  ;;  %v2942_v57 = vshrl.u32 %v9977_v61, 16  ;;  %v2945_v36 = vshll.u32 %v9977_v61, 16  ;;  %v2934_v56 = vor.u32 %v2933_v58, %v9986_v38  ;;  %v10023_v58 = vld [vmem:[%s8953_s20 + $0x1c8] sm:$0xff] }
 0x131   : > { %11778 = vst [vmem:[#allocation9_spill] sm:$0xff] %v9964_v52  ;;  %3390 = vmatprep.mubr.bf16.mxu0 %v6834_v41  ;;  %v6692_v41 = vld [vmem:[%s8953_s20 + $0x190] sm:$0xff]  ;;  %v2924_v13 = vor.u32 %v2923_v5, %v2920_v51  ;;  %v10016_v51 = vld [vmem:[%s8953_s20 + $0x1c0] sm:$0xff] }
 0x132   : > { %v2944_v32 = vrot.slane %v2942_v57, 4  ;;  %v10050_v52 = vld [vmem:[%s8953_s20 + $0x1e0] sm:$0xff] }
 0x133   : > { %v7473_v40 = vpop.f32.mrb[20].mxu0  ;;  %2549 = vmatmul.mubr.bf16.gmra.mrb[124].mxu1 %v6751_v62  ;;  %v7521_v31 = vpop.f32.mrb[20].mxu1  ;;  %v10001_v62 = vsel %vm8978_vm2, %v2901_v39, %v2905_v6  ;;  %v2957_v6 = vrot.slane %v2955_v12, 4 }
 0x134   : > { %v7474_v8 = vpop.f32.mrb[21].mxu0  ;;  %v7522_v17 = vpop.f32.mrb[21].mxu1  ;;  %2556 = vmatprep.mubr.bf16.mxu1 %v6754_v28 }
 0x135   : > { %v9979_v35 = vadd.f32 %v7474_v8, %v7473_v40  ;;  %v7476_v42 = vpop.f32.mrb[22].mxu0  ;;  %v9995_v48 = vadd.f32 %v7522_v17, %v7521_v31  ;;  %v7524_v21 = vpop.f32.mrb[22].mxu1  ;;  %v10005_v40 = vsel %vm8978_vm2, %v2911_v29, %v2915_v22  ;;  %v2937_v8 = vshll.u32 %v6692_v41, 16  ;;  %v6695_v29 = vld [vmem:[%s8953_s20 + $0x1b0] sm:$0xff] }
 0x136   : > { %v7477_v3 = vpop.f32.mrb[23].mxu0  ;;  %v7525_v0 = vpop.f32.mrb[23].mxu1  ;;  %v6835_v22 = vcombine.low %v9958_v14, %v9962_v43  ;;  %v6838_v41 = vcombine.high %v10001_v62, %v10005_v40  ;;  %v2925_v17 = vrot.slane %v2924_v13, 4  ;;  %v2975_v13 = vshll.u32 %v10023_v58, 16 }
 0x137   : > { %v9988_v19 = vadd.f32 %v7477_v3, %v7476_v42  ;;  %11779 = vst [vmem:[#allocation10_spill] sm:$0xff] %v9995_v48  ;;  %v10007_v28 = vadd.f32 %v7525_v0, %v7524_v21  ;;  %v2953_v3 = vrot.slane %v2951_v55, 5  ;;  %v2935_v55 = vrot.slane %v2934_v56, 4 }
 0x138   : > { %3391 = vmatmul.mubr.bf16.gmra.mrb[128].mxu0 %v6833_v30  ;;  %v2947_v30 = vrot.slane %v2945_v36, 5  ;;  %v2939_v12 = vrot.slane %v2937_v8, 5  ;;  %v2979_v8 = vshrl.u32 %v10023_v58, 16 }
 0x139   : > { %3398 = vmatprep.mubr.bf16.mxu0 %v6836_v27  ;;  %11780 = vst [vmem:[#allocation11_spill] sm:$0xff] %v10007_v28  ;;  %v6756_v27 = vcombine.high %v9878_v9, %v9883_v24  ;;  %v2958_v43 = vor.u32 %v2957_v6, %v2953_v3  ;;  %v2930_v6 = vsel %vm8978_vm2, %v2925_v17, %v9986_v38 }
 0x13a   : > { %v2948_v21 = vor.u32 %v2947_v30, %v2944_v32  ;;  %v6755_v32 = vcombine.low %v9878_v9, %v9883_v24 }
 0x13b   : > { %v7479_v42 = vpop.f32.mrb[24].mxu0  ;;  %2557 = vmatmul.mubr.bf16.gmra.mrb[128].mxu1 %v6753_v7  ;;  %v7527_v57 = vpop.f32.mrb[24].mxu1  ;;  %v2969_v7 = vshll.u32 %v10016_v51, 16  ;;  %v2959_v24 = vrot.slane %v2958_v43, 4 }
 0x13c   : > { %v7480_v39 = vpop.f32.mrb[25].mxu0  ;;  %v7528_v0 = vpop.f32.mrb[25].mxu1  ;;  %2564 = vmatprep.mubr.bf16.mxu1 %v6756_v27  ;;  %v6758_v27 = vcombine.high %v9912_v37, %v9917_v2  ;;  %v2949_v9 = vrot.slane %v2948_v21, 4 }
 0x13d   : > { %v10018_v5 = vadd.f32 %v7480_v39, %v7479_v42  ;;  %v7482_v31 = vpop.f32.mrb[26].mxu0  ;;  %v2961_v42 = vshll.u32 %v6695_v29, 16  ;;  %v2966_v39 = vshrl.u32 %v10016_v51, 16  ;;  %v10028_v28 = vadd.f32 %v7528_v0, %v7527_v57  ;;  %v7530_v48 = vpop.f32.mrb[26].mxu1  ;;  %v6698_v57 = vld [vmem:[%s8953_s20 + $0x1d0] sm:$0xff] }
 0x13e   : > { %v7483_v36 = vpop.f32.mrb[27].mxu0  ;;  %v7531_v56 = vpop.f32.mrb[27].mxu1  ;;  %v2971_v0 = vrot.slane %v2969_v7, 5  ;;  %v2985_v43 = vshll.u32 %v6698_v57, 16  ;;  %v2990_v7 = vshrl.u32 %v10050_v52, 16 }
 0x13f   : > { %v10025_v14 = vadd.f32 %v7483_v36, %v7482_v31  ;;  %11781 = vst [vmem:[#allocation12_spill] sm:$0xff] %v10028_v28  ;;  %v10035_v30 = vadd.f32 %v7531_v56, %v7530_v48  ;;  %v6837_v31 = vcombine.low %v10001_v62, %v10005_v40  ;;  %v2963_v48 = vrot.slane %v2961_v42, 5 }
 0x140   : > { %3399 = vmatmul.mubr.bf16.gmra.mrb[132].mxu0 %v6835_v22  ;;  %v2940_v22 = vsel %vm8978_vm2, %v2935_v55, %v2939_v12  ;;  %v2968_v36 = vrot.slane %v2966_v39, 4  ;;  %v2977_v56 = vrot.slane %v2975_v13, 5  ;;  %v10053_v12 = vld [vmem:[%s8953_s20 + $0x1e8] sm:$0xff]  ;;  %v10059_v40 = vsel %vm8978_vm2, %v2949_v9, %v2953_v3 }
 0x141   : > { %3406 = vmatprep.mubr.bf16.mxu0 %v6838_v41  ;;  %11782 = vst [vmem:[#allocation13_spill] sm:$0xff] %v10035_v30  ;;  %v2981_v30 = vrot.slane %v2979_v8, 4  ;;  %v6840_v17 = vcombine.high %v2930_v6, %v2940_v22  ;;  %v10063_v21 = vsel %vm8978_vm2, %v2959_v24, %v2963_v48  ;;  %v2993_v13 = vshll.u32 %v10050_v52, 16 }
 0x142   : > { %v2972_v42 = vor.u32 %v2971_v0, %v2968_v36  ;;  %v6760_v9 = vcombine.high %v9949_v10, %v9952_v46  ;;  %v6839_v48 = vcombine.low %v2930_v6, %v2940_v22  ;;  %v2987_v57 = vrot.slane %v2985_v43, 5  ;;  %v10081_v43 = vld [vmem:[%s8953_s20 + $0x200] sm:$0xff] }
 0x143   : > { %v7485_v29 = vpop.f32.mrb[28].mxu0  ;;  %2565 = vmatmul.mubr.bf16.gmra.mrb[132].mxu1 %v6755_v32  ;;  %v2982_v39 = vor.u32 %v2981_v30, %v2977_v56  ;;  %v2999_v32 = vshll.u32 %v10053_v12, 16 }
 0x144   : > { %v7486_v41 = vpop.f32.mrb[29].mxu0  ;;  %2572 = vmatprep.mubr.bf16.mxu1 %v6758_v27  ;;  %v3003_v27 = vshrl.u32 %v10053_v12, 16 }
 0x145   : > { %v10047_v28 = vadd.f32 %v7486_v41, %v7485_v29  ;;  %v7488_v38 = vpop.f32.mrb[30].mxu0  ;;  %v6757_v29 = vcombine.low %v9912_v37, %v9917_v2  ;;  %v6842_v41 = vcombine.high %v10059_v40, %v10063_v21  ;;  %v2992_v37 = vrot.slane %v2990_v7, 4 }
 0x146   : > { %v7489_v55 = vpop.f32.mrb[31].mxu0  ;;  %v7533_v8 = vpop.f32.mrb[28].mxu1  ;;  %v2995_v2 = vrot.slane %v2993_v13, 5  ;;  %v3005_v4 = vrot.slane %v3003_v27, 4  ;;  %v6759_v13 = vcombine.low %v9949_v10, %v9952_v46 }
 0x147   : > { %v10055_v62 = vadd.f32 %v7489_v55, %v7488_v38  ;;  %v7534_v3 = vpop.f32.mrb[29].mxu1  ;;  %v2973_v38 = vrot.slane %v2972_v42, 4 }
 0x148   : > { %3407 = vmatmul.mubr.bf16.gmra.mrb[136].mxu0 %v6837_v31  ;;  %v10073_v31 = vadd.f32 %v7534_v3, %v7533_v8  ;;  %v7536_v30 = vpop.f32.mrb[30].mxu1  ;;  %v6701_v3 = vld [vmem:[%s8953_s20 + $0x1f0] sm:$0xff]  ;;  %v2996_v42 = vor.u32 %v2995_v2, %v2992_v37 }
 0x149   : > { %3414 = vmatprep.mubr.bf16.mxu0 %v6840_v17  ;;  %v7537_v36 = vpop.f32.mrb[31].mxu1  ;;  %v2983_v17 = vrot.slane %v2982_v39, 4  ;;  %v3009_v39 = vshll.u32 %v6701_v3, 16 }
 0x14a   : > { %11783 = vst [vmem:[#allocation14_spill] sm:$0xff] %v10073_v31  ;;  %v10077_v55 = vadd.f32 %v7537_v36, %v7536_v30  ;;  %v3001_v31 = vrot.slane %v2999_v32, 5  ;;  %v10090_v32 = vsel %vm8978_vm2, %v2973_v38, %v2977_v56  ;;  %v3014_v30 = vshrl.u32 %v10081_v43, 16 }
 0x14b   : > { %v7667_v24 = vpop.f32.mrb[32].mxu0  ;;  %2573 = vmatmul.mubr.bf16.gmra.mrb[136].mxu1 %v6757_v29  ;;  %v10094_v27 = vsel %vm8978_vm2, %v2983_v17, %v2987_v57  ;;  %v3027_v36 = vshrl.u32 %v10084_v18, 16  ;;  %v6762_v56 = vcombine.high %v9977_v61, %v9984_v15  ;;  %v2997_v17 = vrot.slane %v2996_v42, 4  ;;  %v6704_v42 = vld [vmem:[%s8953_s20 + $0x210] sm:$0xff] }
 0x14c   : > { %v7668_v0 = vpop.f32.mrb[33].mxu0  ;;  %11784 = vst [vmem:[#allocation15_spill] sm:$0xff] %v10077_v55  ;;  %2580 = vmatprep.mubr.bf16.mxu1 %v6760_v9  ;;  %v3006_v29 = vor.u32 %v3005_v4, %v3001_v31  ;;  %v6841_v4 = vcombine.low %v10059_v40, %v10063_v21  ;;  %v6844_v57 = vcombine.high %v10090_v32, %v10094_v27  ;;  %v3011_v37 = vrot.slane %v3009_v39, 5 }
 0x14d   : > { %v7669_v20 = vadd.f32 %v7668_v0, %v7667_v24  ;;  %v7670_v8 = vpop.f32.mrb[34].mxu0  ;;  %v3017_v24 = vshll.u32 %v10081_v43, 16  ;;  %v3016_v55 = vrot.slane %v3014_v30, 4  ;;  %v3029_v47 = vrot.slane %v3027_v36, 4 }
 0x14e   : > { %v7671_v6 = vpop.f32.mrb[35].mxu0  ;;  %v7555_v7 = vpop.f32.mrb[32].mxu1 }
 0x14f   : > { %v7672_v22 = vadd.f32 %v7671_v6, %v7670_v8  ;;  %v7556_v9 = vpop.f32.mrb[33].mxu1  ;;  %v3019_v50 = vrot.slane %v3017_v24, 5 }
 0x150   : > { %3415 = vmatmul.mubr.bf16.gmra.mrb[140].mxu0 %v6839_v48  ;;  %v3023_v48 = vshll.u32 %v10084_v18, 16  ;;  %v7557_v10 = vadd.f32 %v7556_v9, %v7555_v7  ;;  %v7558_v46 = vpop.f32.mrb[34].mxu1  ;;  %v3007_v7 = vrot.slane %v3006_v29, 4  ;;  %v6761_v29 = vcombine.low %v9977_v61, %v9984_v15 }
 0x151   : > { %3422 = vmatprep.mubr.bf16.mxu0 %v6842_v41  ;;  %v7559_v0 = vpop.f32.mrb[35].mxu1  ;;  %v3020_v24 = vor.u32 %v3019_v50, %v3016_v55  ;;  %v6843_v61 = vcombine.low %v10090_v32, %v10094_v27  ;;  %v6763_v27 = vcombine.low %v10016_v51, %v10023_v58 }
 0x152   : > { %v1415_v2 = vadd.f32 %v7557_v10, %v9774_v60  ;;  %v7560_v8 = vadd.f32 %v7559_v0, %v7558_v46  ;;  %v3025_v1 = vrot.slane %v3023_v48, 5  ;;  %v3033_v48 = vshll.u32 %v6704_v42, 16 }
 0x153   : > { %v7673_v41 = vpop.f32.mrb[36].mxu0  ;;  %2581 = vmatmul.mubr.bf16.gmra.mrb[140].mxu1 %v6759_v13  ;;  %v3002_v13 = vsel %vm8978_vm2, %v2997_v17, %v3001_v31  ;;  %v3021_v50 = vrot.slane %v3020_v24, 4 }
 0x154   : > { %v7674_v38 = vpop.f32.mrb[37].mxu0  ;;  %v10107_v25 = vadd.f32 %v7669_v20, %v1415_v2  ;;  %v1418_v40 = vadd.f32 %v7560_v8, %v9789_v63  ;;  %2588 = vmatprep.mubr.bf16.mxu1 %v6762_v56  ;;  %v3012_v20 = vsel %vm8978_vm2, %v3007_v7, %v3011_v37  ;;  %v3030_v63 = vor.u32 %v3029_v47, %v3025_v1 }
 0x155   : > { %v7675_v3 = vadd.f32 %v7674_v38, %v7673_v41  ;;  %v7676_v6 = vpop.f32.mrb[38].mxu0 }
 0x156   : > { %v7677_v9 = vpop.f32.mrb[39].mxu0  ;;  %v10111_v39 = vadd.f32 %v7672_v22, %v1418_v40  ;;  %v7561_v60 = vpop.f32.mrb[36].mxu1  ;;  %v6764_v22 = vcombine.high %v10016_v51, %v10023_v58  ;;  %v3031_v55 = vrot.slane %v3030_v63, 4  ;;  %v6766_v40 = vcombine.high %v10050_v52, %v10053_v12 }
 0x157   : > { %v7678_v21 = vadd.f32 %v7677_v9, %v7676_v6  ;;  %v7562_v30 = vpop.f32.mrb[37].mxu1  ;;  %v3026_v6 = vsel %vm8978_vm2, %v3021_v50, %v3025_v1 }
 0x158   : > { %3423 = vmatmul.mubr.bf16.gmra.mrb[144].mxu0 %v6841_v4  ;;  %v7563_v36 = vadd.f32 %v7562_v30, %v7561_v60  ;;  %v7564_v10 = vpop.f32.mrb[38].mxu1  ;;  %v6846_v4 = vcombine.high %v3002_v13, %v3012_v20  ;;  %v6845_v60 = vcombine.low %v3002_v13, %v3012_v20 }
 0x159   : > { %3430 = vmatprep.mubr.bf16.mxu0 %v6844_v57  ;;  %v7565_v41 = vpop.f32.mrb[39].mxu1  ;;  %v3035_v57 = vrot.slane %v3033_v48, 5 }
 0x15a   : > { %v1423_v15 = vadd.f32 %v7563_v36, %v9820_v23  ;;  %v7566_v31 = vadd.f32 %v7565_v41, %v7564_v10  ;;  %v8751_v10 = vld [vmem:[%s8953_s20 + $0x28] sm:$0xff]  ;;  %v10147_v41 = vld [vmem:[%s8953_s20 + $0x40] sm:$0xff] }
 0x15b   : > { %v7679_v46 = vpop.f32.mrb[40].mxu0  ;;  %2589 = vmatmul.mubr.bf16.gmra.mrb[144].mxu1 %v6761_v29  ;;  %v3505_v13 = vrot.slane %v8751_v10, 5 }
 0x15c   : > { %v7680_v56 = vpop.f32.mrb[41].mxu0  ;;  %v10124_v17 = vadd.f32 %v7675_v3, %v1423_v15  ;;  %v1426_v37 = vadd.f32 %v7566_v31, %v9836_v59  ;;  %2596 = vmatprep.mubr.bf16.mxu1 %v6764_v22  ;;  %v3036_v3 = vsel %vm8978_vm2, %v3031_v55, %v3035_v57  ;;  %v6765_v22 = vcombine.low %v10050_v52, %v10053_v12  ;;  %v8753_v57 = vld [vmem:[%s8953_s20 + $0x30] sm:$0xff] }
 0x15d   : > { %v7681_v0 = vadd.f32 %v7680_v56, %v7679_v46  ;;  %v7682_v38 = vpop.f32.mrb[42].mxu0  ;;  %v6848_v1 = vcombine.high %v3026_v6, %v3036_v3  ;;  %v10150_v56 = vld [vmem:[%s8953_s20 + $0x48] sm:$0xff]  ;;  %v6768_v31 = vcombine.high %v10081_v43, %v10084_v18  ;;  %v3507_v55 = vrot.slane %v3505_v13, 4 }
 0x15e   : > { %v7683_v47 = vpop.f32.mrb[43].mxu0  ;;  %v10127_v8 = vadd.f32 %v7678_v21, %v1426_v37  ;;  %v7567_v32 = vpop.f32.mrb[40].mxu1  ;;  %v3508_v37 = vrot.slane %v8753_v57, 5  ;;  %v7041_v10 = vcombine.low %v10147_v41, %v10150_v56 }
 0x15f   : > { %v7684_v2 = vadd.f32 %v7683_v47, %v7682_v38  ;;  %v7568_v23 = vpop.f32.mrb[41].mxu1  ;;  %v8752_v47 = vld [vmem:[%s8953_s20 + $0x20] sm:$0xff] }
 0x160   : > { %3431 = vmatmul.mubr.bf16.gmra.mrb[148].mxu0 %v6843_v61  ;;  %v7569_v7 = vadd.f32 %v7568_v23, %v7567_v32  ;;  %v7570_v9 = vpop.f32.mrb[42].mxu1  ;;  %v6865_v50 = vrot.slane %v8752_v47, 9  ;;  %v7042_v23 = vcombine.high %v10147_v41, %v10150_v56 }
 0x161   : > { %3438 = vmatprep.mubr.bf16.mxu0 %v6846_v4  ;;  %v7571_v21 = vpop.f32.mrb[43].mxu1  ;;  %v6847_v4 = vcombine.low %v3026_v6, %v3036_v3 }
 0x162   : > { %v1431_v29 = vadd.f32 %v7569_v7, %v9865_v49  ;;  %v7572_v30 = vadd.f32 %v7571_v21, %v7570_v9  ;;  %v10168_v9 = vsel %vm9250_vm5, %v3507_v55, %v3508_v37  ;;  %v8757_v37 = vld [vmem:[%s8953_s20 + $0x68] sm:$0xff] }
 0x163   : > { %v7685_v59 = vpop.f32.mrb[44].mxu0  ;;  %2597 = vmatmul.mubr.bf16.gmra.mrb[148].mxu1 %v6763_v27 }
 0x164   : > { %v7686_v42 = vpop.f32.mrb[45].mxu0  ;;  %v10138_v63 = vadd.f32 %v7681_v0, %v1431_v29  ;;  %v1434_v48 = vadd.f32 %v7572_v30, %v9873_v44  ;;  %2604 = vmatprep.mubr.bf16.mxu1 %v6766_v40  ;;  %v10176_v29 = vld [vmem:[%s8953_s20 + $0x60] sm:$0xff]  ;;  %v10179_v30 = vld [vmem:[%s8953_s20 + $0x68] sm:$0xff] }
 0x165   : > { %v7687_v51 = vadd.f32 %v7686_v42, %v7685_v59  ;;  %v7688_v58 = vpop.f32.mrb[46].mxu0  ;;  %v8754_v59 = vld [vmem:[%s8953_s20 + $0x48] sm:$0xff] }
 0x166   : > { %v7689_v24 = vpop.f32.mrb[47].mxu0  ;;  %v10142_v20 = vadd.f32 %v7684_v2, %v1434_v48  ;;  %v7573_v49 = vpop.f32.mrb[44].mxu1  ;;  %v3512_v40 = vrot.slane %v8754_v59, 5  ;;  %v8691_v59 = vld [vmem:[%s8934_s27 + $0x450] sm:$0xff]  }
 0x167   : > { %v7690_v36 = vadd.f32 %v7689_v24, %v7688_v58  ;;  %v7574_v46 = vpop.f32.mrb[45].mxu1 }
 0x168   : > { %3439 = vmatmul.mubr.bf16.gmra.mrb[152].mxu0 %v6845_v60  ;;  %v7575_v44 = vadd.f32 %v7574_v46, %v7573_v49  ;;  %v7576_v61 = vpop.f32.mrb[46].mxu1  ;;  %v6767_v60 = vcombine.low %v10081_v43, %v10084_v18  ;;  %v3514_v18 = vrot.slane %v3512_v40, 4  ;;  %v8756_v43 = vld [vmem:[%s8953_s20 + $0x50] sm:$0xff] }
 0x169   : > { %3446 = vmatprep.mubr.bf16.mxu0 %v6848_v1  ;;  %v7577_v0 = vpop.f32.mrb[47].mxu1  ;;  %v3515_v46 = vrot.slane %v8756_v43, 5 }
 0x16a   : > { %v1439_v52 = vadd.f32 %v7575_v44, %v9898_v11  ;;  %v7578_v12 = vadd.f32 %v7577_v0, %v7576_v61  ;;  %v10164_v11 = vsel %vm9250_vm5, %v6865_v50, %v3505_v13  ;;  %v8755_v13 = vld [vmem:[%s8953_s20 + $0x40] sm:$0xff]  ;;  %v7044_v0 = vcombine.high %v10176_v29, %v10179_v30 }
 0x16b   : > { %v7691_v15 = vpop.f32.mrb[48].mxu0  ;;  %2605 = vmatmul.mubr.bf16.gmra.mrb[152].mxu1 %v6765_v22  ;;  %v6914_v24 = vcombine.high %v10164_v11, %v10168_v9  ;;  %v6866_v49 = vrot.slane %v8755_v13, 9  ;;  %v10201_v57 = vsel %vm9250_vm5, %v3514_v18, %v3515_v46 }
 0x16c   : > { %v7692_v38 = vpop.f32.mrb[49].mxu0  ;;  %v10159_v7 = vadd.f32 %v7687_v51, %v1439_v52  ;;  %v1442_v6 = vadd.f32 %v7578_v12, %v9907_v53  ;;  %2612 = vmatprep.mubr.bf16.mxu1 %v6768_v31  ;;  %v8676_v31 = vld [vmem:[%s8934_s27 + $0x400] sm:$0xff]   ;;  %v3519_v52 = vrot.slane %v8757_v37, 5 }
 0x16d   : > { %v7693_v2 = vadd.f32 %v7692_v38, %v7691_v15  ;;  %v7694_v32 = vpop.f32.mrb[50].mxu0 }
 0x16e   : > { %v7695_v27 = vpop.f32.mrb[51].mxu0  ;;  %v10171_v21 = vadd.f32 %v7690_v36, %v1442_v6  ;;  %v7579_v42 = vpop.f32.mrb[48].mxu1  ;;  %v10213_v6 = vld [vmem:[%s8953_s20 + $0x88] sm:$0xff] }
 0x16f   : > { %v7696_v3 = vadd.f32 %v7695_v27, %v7694_v32  ;;  %v7580_v53 = vpop.f32.mrb[49].mxu1  ;;  %v10210_v27 = vld [vmem:[%s8953_s20 + $0x80] sm:$0xff] }
 0x170   : > { %3447 = vmatmul.mubr.bf16.gmra.mrb[156].mxu0 %v6847_v4  ;;  %v7581_v51 = vadd.f32 %v7580_v53, %v7579_v42  ;;  %v7582_v58 = vpop.f32.mrb[50].mxu1  ;;  %v8683_v4 = vld [vmem:[%s8934_s27 + $0x448] sm:$0xff]   ;;  %v8674_v42 = vld [vmem:[%s8934_s27 + $0x380] sm:$0xff]   ;;  %v7046_v46 = vcombine.high %v10210_v27, %v10213_v6 }
 0x171   : > { %4435 = vmatprep.mubr.bf16.mxu0 %v7042_v23  ;;  %v7583_v48 = vpop.f32.mrb[51].mxu1  ;;  %v6913_v23 = vcombine.low %v10164_v11, %v10168_v9  ;;  %v7043_v11 = vcombine.low %v10176_v29, %v10179_v30  ;;  %v8758_v9 = vld [vmem:[%s8953_s20 + $0x60] sm:$0xff]  ;;  %v8699_v30 = vld [vmem:[%s8934_s27 + $0x458] sm:$0xff]  }
 0x172   : > { %v1447_v22 = vadd.f32 %v7581_v51, %v9931_v54  ;;  %v7584_v44 = vadd.f32 %v7583_v48, %v7582_v58  ;;  %v10197_v54 = vsel %vm9250_vm5, %v6866_v49, %v3512_v40  ;;  %v8759_v48 = vld [vmem:[%s8953_s20 + $0x70] sm:$0xff] }
 0x173   : > { %v7697_v1 = vpop.f32.mrb[52].mxu0  ;;  %2613 = vmatmul.mubr.bf16.gmra.mrb[156].mxu1 %v6767_v60  ;;  %v6916_v60 = vcombine.high %v10197_v54, %v10201_v57 }
 0x174   : > { %v7698_v36 = vpop.f32.mrb[53].mxu0  ;;  %v10192_v47 = vadd.f32 %v7693_v2, %v1447_v22  ;;  %v1450_v50 = vadd.f32 %v7584_v44, %v9943_v26  ;;  %3904 = vmatprep.mubr.bf16.mxu1 %v6914_v24  ;;  %v8684_v26 = vld [vmem:[%s8934_s27 + $0x408] sm:$0xff]   ;;  %v3521_v24 = vrot.slane %v3519_v52, 4  ;;  %v8692_v22 = vld [vmem:[%s8934_s27 + $0x410] sm:$0xff]  }
 0x175   : > { %v7699_v61 = vadd.f32 %v7698_v36, %v7697_v1  ;;  %v7700_v15 = vpop.f32.mrb[54].mxu0  ;;  %v6867_v1 = vrot.slane %v8758_v9, 9  ;;  %v3522_v36 = vrot.slane %v8759_v48, 5  ;;  %v8762_v9 = vld [vmem:[%s8953_s20 + $0x90] sm:$0xff] }
 0x176   : > { %v7701_v38 = vpop.f32.mrb[55].mxu0  ;;  %v10204_v12 = vadd.f32 %v7696_v3, %v1450_v50  ;;  %v7585_v2 = vpop.f32.mrb[52].mxu1 }
 0x177   : > { %v7702_v55 = vadd.f32 %v7701_v38, %v7700_v15  ;;  %v7586_v32 = vpop.f32.mrb[53].mxu1  ;;  %v10239_v38 = vsel %vm9250_vm5, %v3521_v24, %v3522_v36  ;;  %v8697_v24 = vld [vmem:[%s8934_s27 + $0x3d8] sm:$0xff]  }
 0x178   : > { %4436 = vmatmul.mubr.bf16.vlgmr.msra.gmra.mrb[160].mxu0 %v7041_v10  ;;  %v7587_v40 = vadd.f32 %v7586_v32, %v7585_v2  ;;  %v7588_v3 = vpop.f32.mrb[54].mxu1  ;;  %v8681_v10 = vld [vmem:[%s8934_s27 + $0x3c8] sm:$0xff]   ;;  %v8700_v2 = vld [vmem:[%s8934_s27 + $0x418] sm:$0xff]   ;;  %v10249_v32 = vld [vmem:[%s8953_s20 + $0xa0] sm:$0xff] }
 0x179   : > { %8324 = vmatpush3.bf16.msra.mxu0 %v8676_v31  ;;  %4443 = vmatprep.mubr.bf16.mxu0 %v7044_v0  ;;  %v7589_v51 = vpop.f32.mrb[55].mxu1  ;;  %v8682_v31 = vld [vmem:[%s8934_s27 + $0x388] sm:$0xff]   ;;  %v10235_v0 = vsel %vm9250_vm5, %v6867_v1, %v3519_v52  ;;  %v6915_v52 = vcombine.low %v10197_v54, %v10201_v57  ;;  %v7045_v54 = vcombine.low %v10210_v27, %v10213_v6  ;;  %v8761_v57 = vld [vmem:[%s8953_s20 + $0x80] sm:$0xff]  ;;  %v3529_v1 = vrot.slane %v8762_v9, 5 }
 0x17a   : > { %8325 = vmatprep.subr.bf16.mxu0 %v8683_v4  ;;  %v1455_v13 = vadd.f32 %v7587_v40, %v9979_v35  ;;  %v7590_v49 = vadd.f32 %v7589_v51, %v7588_v3  ;;  %v8689_v4 = vld [vmem:[%s8934_s27 + $0x3d0] sm:$0xff]   ;;  %v8708_v27 = vld [vmem:[%s8934_s27 + $0x420] sm:$0xff]  }
 0x17b   : > { %v7703_v53 = vpop.f32.mrb[56].mxu0  ;;  %3905 = vmatmul.mubr.bf16.vlgmr.msra.gmra.mrb[160].mxu1 %v6913_v23  ;;  %v10252_v23 = vld [vmem:[%s8953_s20 + $0xa8] sm:$0xff] }
 0x17c   : > { %v7704_v58 = vpop.f32.mrb[57].mxu0  ;;  %v10229_v44 = vadd.f32 %v7699_v61, %v1455_v13  ;;  %v1458_v15 = vadd.f32 %v7590_v49, %v9988_v19  ;;  %8212 = vmatpush3.bf16.msra.mxu1 %v8674_v42  ;;  %3912 = vmatprep.mubr.bf16.mxu1 %v6916_v60  ;;  %v8760_v61 = vld [vmem:[%s8953_s20 + $0x88] sm:$0xff]  ;;  %v6918_v42 = vcombine.high %v10235_v0, %v10239_v38 }
 0x17d   : > { %v7705_v18 = vadd.f32 %v7704_v58, %v7703_v53  ;;  %v7706_v43 = vpop.f32.mrb[58].mxu0  ;;  %8326 = vmatpush3.bf16.msra.mxu0 %v8684_v26  ;;  %8213 = vmatprep.subr.bf16.mxu1 %v8681_v10  ;;  %v3526_v19 = vrot.slane %v8760_v61, 5  ;;  %v8690_v53 = vld [vmem:[%s8934_s27 + $0x390] sm:$0xff]   ;;  %v6868_v58 = vrot.slane %v8761_v57, 9  ;;  %v7048_v49 = vcombine.high %v10249_v32, %v10252_v23 }
 0x17e   : > { %v7707_v29 = vpop.f32.mrb[59].mxu0  ;;  %8327 = vmatprep.subr.bf16.mxu0 %v8691_v59  ;;  %v10243_v50 = vadd.f32 %v7702_v55, %v1458_v15  ;;  %v7591_v37 = vpop.f32.mrb[56].mxu1  ;;  %v8707_v59 = vld [vmem:[%s8934_s27 + $0x460] sm:$0xff]   ;;  %v8765_v57 = vld [vmem:[%s8953_s20 + $0xb0] sm:$0xff] }
 0x17f   : > { %v7708_v35 = vadd.f32 %v7707_v29, %v7706_v43  ;;  %v7592_v26 = vpop.f32.mrb[57].mxu1  ;;  %v8715_v43 = vld [vmem:[%s8934_s27 + $0x468] sm:$0xff]   ;;  %v8698_v29 = vld [vmem:[%s8934_s27 + $0x398] sm:$0xff]  }
 0x180   : > { %4444 = vmatmul.mubr.bf16.gmra.mrb[164].mxu0 %v7043_v11  ;;  %v7593_v55 = vadd.f32 %v7592_v26, %v7591_v37  ;;  %v7594_v40 = vpop.f32.mrb[58].mxu1  ;;  %8214 = vmatpush3.bf16.msra.mxu1 %v8682_v31  ;;  %v3528_v11 = vrot.slane %v3526_v19, 4  ;;  %v8716_v37 = vld [vmem:[%s8934_s27 + $0x428] sm:$0xff]   ;;  %v10288_v26 = vld [vmem:[%s8953_s20 + $0xc0] sm:$0xff] }
 0x181   : > { %4451 = vmatprep.mubr.bf16.mxu0 %v7046_v46  ;;  %8328 = vmatpush3.bf16.msra.mxu0 %v8692_v22  ;;  %v7595_v60 = vpop.f32.mrb[59].mxu1 }
 0x182   : > { %8329 = vmatprep.subr.bf16.mxu0 %v8699_v30  ;;  %8215 = vmatprep.subr.bf16.mxu1 %v8689_v4  ;;  %v1463_v48 = vadd.f32 %v7593_v55, %v10018_v5  ;;  %v7596_v36 = vadd.f32 %v7595_v60, %v7594_v40  ;;  %v10274_v30 = vsel %vm9250_vm5, %v6868_v58, %v3526_v19  ;;  %v3536_v58 = vrot.slane %v8765_v57, 5 }
 0x183   : > { %v7709_v3 = vpop.f32.mrb[60].mxu0  ;;  %3913 = vmatmul.mubr.bf16.gmra.mrb[164].mxu1 %v6915_v52  ;;  %v10278_v15 = vsel %vm9250_vm5, %v3528_v11, %v3529_v1  ;;  %v6917_v19 = vcombine.low %v10235_v0, %v10239_v38  ;;  %v10291_v52 = vld [vmem:[%s8953_s20 + $0xc8] sm:$0xff]  ;;  %v7047_v0 = vcombine.low %v10249_v32, %v10252_v23  ;;  %v8764_v38 = vld [vmem:[%s8953_s20 + $0xa0] sm:$0xff]  ;;  %v8724_v32 = vld [vmem:[%s8934_s27 + $0x430] sm:$0xff]  }
 0x184   : > { %v7710_v51 = vpop.f32.mrb[61].mxu0  ;;  %v10268_v46 = vadd.f32 %v7705_v18, %v1463_v48  ;;  %v1466_v22 = vadd.f32 %v7596_v36, %v10025_v14  ;;  %3920 = vmatprep.mubr.bf16.mxu1 %v6918_v42  ;;  %8216 = vmatpush3.bf16.msra.mxu1 %v8690_v53  ;;  %v8763_v18 = vld [vmem:[%s8953_s20 + $0xa8] sm:$0xff]  ;;  %v8705_v14 = vld [vmem:[%s8934_s27 + $0x3e0] sm:$0xff]   ;;  %v7050_v36 = vcombine.high %v10288_v26, %v10291_v52 }
 0x185   : > { %v7711_v10 = vadd.f32 %v7710_v51, %v7709_v3  ;;  %v7712_v13 = vpop.f32.mrb[62].mxu0  ;;  %8330 = vmatpush3.bf16.msra.mxu0 %v8700_v2  ;;  %v3533_v31 = vrot.slane %v8763_v18, 5  ;;  %8217 = vmatprep.subr.bf16.mxu1 %v8697_v24  ;;  %v6920_v3 = vcombine.high %v10274_v30, %v10278_v15  ;;  %v8706_v42 = vld [vmem:[%s8934_s27 + $0x3a0] sm:$0xff]   ;;  %v6869_v51 = vrot.slane %v8764_v38, 9  ;;  %v8713_v11 = vld [vmem:[%s8934_s27 + $0x3e8] sm:$0xff]  }
 0x186   : > { %v7713_v6 = vpop.f32.mrb[63].mxu0  ;;  %8331 = vmatprep.subr.bf16.mxu0 %v8707_v59  ;;  %v10282_v61 = vadd.f32 %v7708_v35, %v1466_v22  ;;  %v7597_v4 = vpop.f32.mrb[60].mxu1  ;;  %v8723_v59 = vld [vmem:[%s8934_s27 + $0x470] sm:$0xff]  }
 0x187   : > { %v7714_v5 = vadd.f32 %v7713_v6, %v7712_v13  ;;  %v7598_v2 = vpop.f32.mrb[61].mxu1  ;;  %v8731_v13 = vld [vmem:[%s8934_s27 + $0x478] sm:$0xff]   ;;  %v8714_v6 = vld [vmem:[%s8934_s27 + $0x3a8] sm:$0xff]  }
 0x188   : > { %4452 = vmatmul.mubr.bf16.gmra.mrb[168].mxu0 %v7045_v54  ;;  %v7599_v35 = vadd.f32 %v7598_v2, %v7597_v4  ;;  %v7600_v55 = vpop.f32.mrb[62].mxu1  ;;  %8218 = vmatpush3.bf16.msra.mxu1 %v8698_v29  ;;  %v3535_v54 = vrot.slane %v3533_v31, 4  ;;  %v8732_v4 = vld [vmem:[%s8934_s27 + $0x438] sm:$0xff]   ;;  %v10327_v2 = vld [vmem:[%s8953_s20 + $0xe0] sm:$0xff] }
 0x189   : > { %4459 = vmatprep.mubr.bf16.mxu0 %v7048_v49  ;;  %8332 = vmatpush3.bf16.msra.mxu0 %v8708_v27  ;;  %v7601_v53 = vpop.f32.mrb[63].mxu1 }
 0x18a   : > { %8333 = vmatprep.subr.bf16.mxu0 %v8715_v43  ;;  %8219 = vmatprep.subr.bf16.mxu1 %v8705_v14  ;;  %v1471_v9 = vadd.f32 %v7599_v35, %v10047_v28  ;;  %v7602_v1 = vadd.f32 %v7601_v53, %v7600_v55  ;;  %v10313_v43 = vsel %vm9250_vm5, %v6869_v51, %v3533_v31  ;;  %v8729_v51 = vld [vmem:[%s8934_s27 + $0x3f8] sm:$0xff]  }
 0x18b   : > { %v7715_v40 = vpop.f32.mrb[64].mxu0  ;;  %3921 = vmatmul.mubr.bf16.gmra.mrb[168].mxu1 %v6917_v19  ;;  %v10317_v22 = vsel %vm9250_vm5, %v3535_v54, %v3536_v58  ;;  %v6919_v31 = vcombine.low %v10274_v30, %v10278_v15  ;;  %v10330_v19 = vld [vmem:[%s8953_s20 + $0xe8] sm:$0xff]  ;;  %v7049_v30 = vcombine.low %v10288_v26, %v10291_v52  ;;  %v8767_v15 = vld [vmem:[%s8953_s20 + $0xc0] sm:$0xff] }
 0x18c   : > { %v7716_v60 = vpop.f32.mrb[65].mxu0  ;;  %v10307_v49 = vadd.f32 %v7711_v10, %v1471_v9  ;;  %v1474_v27 = vadd.f32 %v7602_v1, %v10055_v62  ;;  %3928 = vmatprep.mubr.bf16.mxu1 %v6920_v3  ;;  %8220 = vmatpush3.bf16.msra.mxu1 %v8706_v42  ;;  %v8766_v10 = vld [vmem:[%s8953_s20 + $0xc8] sm:$0xff]  ;;  %v8721_v62 = vld [vmem:[%s8934_s27 + $0x3f0] sm:$0xff]   ;;  %v6922_v55 = vcombine.high %v10313_v43, %v10317_v22  ;;  %v6870_v53 = vrot.slane %v8767_v15, 9 }
 0x18d   : > { %v7717_v24 = vadd.f32 %v7716_v60, %v7715_v40  ;;  %v7718_v48 = vpop.f32.mrb[66].mxu0  ;;  %8334 = vmatpush3.bf16.msra.mxu0 %v8716_v37  ;;  %v3540_v29 = vrot.slane %v8766_v10, 5  ;;  %8221 = vmatprep.subr.bf16.mxu1 %v8713_v11  ;;  %v8722_v40 = vld [vmem:[%s8934_s27 + $0x3b0] sm:$0xff]   ;;  %v7052_v9 = vcombine.high %v10327_v2, %v10330_v19  ;;  %v6979_v10 = vld [vmem:[%s8953_s20 + $0x100] sm:$0xff] }
 0x18e   : > { %v7719_v23 = vpop.f32.mrb[67].mxu0  ;;  %8335 = vmatprep.subr.bf16.mxu0 %v8723_v59  ;;  %v10321_v18 = vadd.f32 %v7714_v5, %v1474_v27  ;;  %v7603_v14 = vpop.f32.mrb[64].mxu1 }
 0x18f   : > { %v7720_v28 = vadd.f32 %v7719_v23, %v7718_v48  ;;  %v7604_v37 = vpop.f32.mrb[65].mxu1  ;;  %v3542_v60 = vrot.slane %v3540_v29, 4  ;;  %v8769_v23 = vld [vmem:[%s8953_s20 + $0xe8] sm:$0xff] }
 0x190   : > { %4460 = vmatmul.mubr.bf16.gmra.mrb[172].mxu0 %v7047_v0  ;;  %v7605_v59 = vadd.f32 %v7604_v37, %v7603_v14  ;;  %v7606_v35 = vpop.f32.mrb[66].mxu1  ;;  %8222 = vmatpush3.bf16.msra.mxu1 %v8714_v6  ;;  %v8768_v0 = vld [vmem:[%s8953_s20 + $0xd0] sm:$0xff]  ;;  %v6921_v6 = vcombine.low %v10313_v43, %v10317_v22  ;;  %v11785_v22 = vld [vmem:[#allocation2_spill] sm:$0xff] }
 0x191   : > { %4467 = vmatprep.mubr.bf16.mxu0 %v7050_v36  ;;  %8336 = vmatpush3.bf16.msra.mxu0 %v8724_v32  ;;  %v7607_v3 = vpop.f32.mrb[67].mxu1  ;;  %v3543_v38 = vrot.slane %v8768_v0, 5  ;;  %v10349_v36 = vsel %vm9250_vm5, %v6870_v53, %v3540_v29  ;;  %v6980_v29 = vld [vmem:[%s8953_s20 + $0x108] sm:$0xff] }
 0x192   : > { %8337 = vmatprep.subr.bf16.mxu0 %v8731_v13  ;;  %8223 = vmatprep.subr.bf16.mxu1 %v8721_v62  ;;  %v1479_v54 = vadd.f32 %v7605_v59, %v9776_v33  ;;  %v7608_v57 = vadd.f32 %v7607_v3, %v7606_v35  ;;  %v8730_v33 = vld [vmem:[%s8934_s27 + $0x3b8] sm:$0xff]   ;;  %v8770_v35 = vld [vmem:[%s8953_s20 + $0xe0] sm:$0xff]  ;;  %v7054_v53 = vcombine.high %v6979_v10, %v6980_v29 }
 0x193   : > { %v7721_v5 = vpop.f32.mrb[68].mxu0  ;;  %3929 = vmatmul.mubr.bf16.gmra.mrb[172].mxu1 %v6919_v31  ;;  %v10353_v32 = vsel %vm9250_vm5, %v3542_v60, %v3543_v38  ;;  %v11787_v38 = vld [vmem:[#allocation3_spill] sm:$0xff] }
 0x194   : > { %v7722_v42 = vpop.f32.mrb[69].mxu0  ;;  %v10343_v52 = vadd.f32 %v7717_v24, %v1479_v54  ;;  %v1482_v1 = vadd.f32 %v7608_v57, %v9791_v16  ;;  %3936 = vmatprep.mubr.bf16.mxu1 %v6922_v55  ;;  %8224 = vmatpush3.bf16.msra.mxu1 %v8722_v40  ;;  %v3547_v24 = vrot.slane %v8769_v23, 5  ;;  %v6924_v37 = vcombine.high %v10349_v36, %v10353_v32  ;;  %v8771_v40 = vld [vmem:[%s8953_s20 + $0xf0] sm:$0xff]  ;;  %v8772_v57 = vld [vmem:[%s8953_s20 + $0x108] sm:$0xff] }
 0x195   : > { %v7723_v58 = vadd.f32 %v7722_v42, %v7721_v5  ;;  %v7724_v11 = vpop.f32.mrb[70].mxu0  ;;  %8338 = vmatpush3.bf16.msra.mxu0 %v8732_v4  ;;  %8225 = vmatprep.subr.bf16.mxu1 %v8729_v51  ;;  %v6871_v5 = vrot.slane %v8770_v35, 9  ;;  %v3550_v43 = vrot.slane %v8771_v40, 5  ;;  %v6983_v23 = vld [vmem:[%s8953_s20 + $0x128] sm:$0xff]  ;;  %v11789_v35 = vld [vmem:[#allocation4_spill] sm:$0xff] }
 0x196   : > { %v7725_v26 = vpop.f32.mrb[71].mxu0  ;;  %v10356_v16 = vadd.f32 %v7720_v28, %v1482_v1  ;;  %v7609_v13 = vpop.f32.mrb[68].mxu1  ;;  %v7051_v28 = vcombine.low %v10327_v2, %v10330_v19  ;;  %v3549_v55 = vrot.slane %v3547_v24, 4  ;;  %v6923_v1 = vcombine.low %v10349_v36, %v10353_v32 }
 0x197   : > { %v7726_v48 = vadd.f32 %v7725_v26, %v7724_v11  ;;  %v7610_v27 = vpop.f32.mrb[69].mxu1  ;;  %v10374_v51 = vsel %vm9250_vm5, %v6871_v5, %v3547_v24  ;;  %v3554_v11 = vrot.slane %v8772_v57, 5 }
 0x198   : > { %4468 = vmatmul.mubr.bf16.gmra.mrb[176].mxu0 %v7049_v30  ;;  %v7611_v62 = vadd.f32 %v7610_v27, %v7609_v13  ;;  %v7612_v14 = vpop.f32.mrb[70].mxu1  ;;  %8226 = vmatpush3.bf16.msra.mxu1 %v8730_v33  ;;  %v3551_v54 = vsel %vm9250_vm5, %v3549_v55, %v3550_v43  ;;  %v6982_v33 = vld [vmem:[%s8953_s20 + $0x120] sm:$0xff] }
 0x199   : > { %4475 = vmatprep.mubr.bf16.mxu0 %v7052_v9  ;;  %v7613_v31 = vpop.f32.mrb[71].mxu1  ;;  %v7056_v40 = vcombine.high %v6982_v33, %v6983_v23  ;;  %v6925_v57 = vcombine.low %v10374_v51, %v3551_v54 }
 0x19a   : > { %v1487_v3 = vadd.f32 %v7611_v62, %v11785_v22  ;;  %v7614_v42 = vadd.f32 %v7613_v31, %v7612_v14  ;;  %v3556_v31 = vrot.slane %v3554_v11, 4 }
 0x19b   : > { %v7727_v4 = vpop.f32.mrb[72].mxu0  ;;  %3937 = vmatmul.mubr.bf16.gmra.mrb[176].mxu1 %v6921_v6  ;;  %v6926_v6 = vcombine.high %v10374_v51, %v3551_v54 }
 0x19c   : > { %v7728_v59 = vpop.f32.mrb[73].mxu0  ;;  %v10369_v0 = vadd.f32 %v7723_v58, %v1487_v3  ;;  %v1490_v2 = vadd.f32 %v7614_v42, %v11787_v38  ;;  %3944 = vmatprep.mubr.bf16.mxu1 %v6924_v37  ;;  %v8773_v37 = vld [vmem:[%s8953_s20 + $0x100] sm:$0xff]  ;;  %v11791_v3 = vld [vmem:[#allocation5_spill] sm:$0xff] }
 0x19d   : > { %v7729_v30 = vadd.f32 %v7728_v59, %v7727_v4  ;;  %v7730_v15 = vpop.f32.mrb[74].mxu0  ;;  %v7053_v4 = vcombine.low %v6979_v10, %v6980_v29  ;;  %v8774_v59 = vld [vmem:[%s8953_s20 + $0x110] sm:$0xff] }
 0x19e   : > { %v7731_v60 = vpop.f32.mrb[75].mxu0  ;;  %11786 = vst [vmem:[#allocation2_spill] sm:$0xff] %v10369_v0  ;;  %v10379_v9 = vadd.f32 %v7726_v48, %v1490_v2  ;;  %v7615_v26 = vpop.f32.mrb[72].mxu1  ;;  %v6872_v48 = vrot.slane %v8773_v37, 9  ;;  %v8777_v37 = vld [vmem:[%s8953_s20 + $0x130] sm:$0xff] }
 0x19f   : > { %v7732_v19 = vadd.f32 %v7731_v60, %v7730_v15  ;;  %v7616_v58 = vpop.f32.mrb[73].mxu1 }
 0x1a0   : > { %4476 = vmatmul.mubr.bf16.gmra.mrb[180].mxu0 %v7051_v28  ;;  %11788 = vst [vmem:[#allocation3_spill] sm:$0xff] %v10379_v9  ;;  %v7617_v13 = vadd.f32 %v7616_v58, %v7615_v26  ;;  %v7618_v24 = vpop.f32.mrb[74].mxu1  ;;  %v3557_v28 = vrot.slane %v8774_v59, 5  ;;  %v10394_v42 = vsel %vm9250_vm5, %v6872_v48, %v3554_v11  ;;  %v6985_v26 = vld [vmem:[%s8953_s20 + $0x140] sm:$0xff]  ;;  %v6986_v58 = vld [vmem:[%s8953_s20 + $0x148] sm:$0xff]  ;;  %v3564_v48 = vrot.slane %v8777_v37, 5 }
 0x1a1   : > { %4483 = vmatprep.mubr.bf16.mxu0 %v7054_v53  ;;  %v7619_v62 = vpop.f32.mrb[75].mxu1  ;;  %v8775_v53 = vld [vmem:[%s8953_s20 + $0x128] sm:$0xff] }
 0x1a2   : > { %v1495_v5 = vadd.f32 %v7617_v13, %v11789_v35  ;;  %v7620_v55 = vadd.f32 %v7619_v62, %v7618_v24  ;;  %v3558_v15 = vsel %vm9250_vm5, %v3556_v31, %v3557_v28  ;;  %v3561_v60 = vrot.slane %v8775_v53, 5  ;;  %v11793_v31 = vld [vmem:[#allocation6_spill] sm:$0xff] }
 0x1a3   : > { %v7733_v27 = vpop.f32.mrb[76].mxu0  ;;  %3945 = vmatmul.mubr.bf16.gmra.mrb[180].mxu1 %v6923_v1  ;;  %v6928_v24 = vcombine.high %v10394_v42, %v3558_v15  ;;  %v7055_v62 = vcombine.low %v6982_v33, %v6983_v23  ;;  %v7058_v35 = vcombine.high %v6985_v26, %v6986_v58 }
 0x1a4   : > { %v7734_v14 = vpop.f32.mrb[77].mxu0  ;;  %v10389_v22 = vadd.f32 %v7729_v30, %v1495_v5  ;;  %v1498_v10 = vadd.f32 %v7620_v55, %v11791_v3  ;;  %3952 = vmatprep.mubr.bf16.mxu1 %v6926_v6  ;;  %v8778_v3 = vld [vmem:[%s8953_s20 + $0x148] sm:$0xff] }
 0x1a5   : > { %v7735_v36 = vadd.f32 %v7734_v14, %v7733_v27  ;;  %v7736_v32 = vpop.f32.mrb[78].mxu0  ;;  %v8776_v14 = vld [vmem:[%s8953_s20 + $0x120] sm:$0xff] }
 0x1a6   : > { %v7737_v43 = vpop.f32.mrb[79].mxu0  ;;  %11790 = vst [vmem:[#allocation4_spill] sm:$0xff] %v10389_v22  ;;  %v10399_v38 = vadd.f32 %v7732_v19, %v1498_v10  ;;  %v7621_v2 = vpop.f32.mrb[76].mxu1  ;;  %v3563_v19 = vrot.slane %v3561_v60, 4  ;;  %v3568_v10 = vrot.slane %v8778_v3, 5  ;;  %v8781_v3 = vld [vmem:[%s8953_s20 + $0x168] sm:$0xff] }
 0x1a7   : > { %v7738_v29 = vadd.f32 %v7737_v43, %v7736_v32  ;;  %v7622_v30 = vpop.f32.mrb[77].mxu1  ;;  %v11795_v32 = vld [vmem:[#allocation7_spill] sm:$0xff] }
 0x1a8   : > { %4484 = vmatmul.mubr.bf16.gmra.mrb[184].mxu0 %v7053_v4  ;;  %11792 = vst [vmem:[#allocation5_spill] sm:$0xff] %v10399_v38  ;;  %v7623_v1 = vadd.f32 %v7622_v30, %v7621_v2  ;;  %v7624_v13 = vpop.f32.mrb[78].mxu1  ;;  %v6873_v4 = vrot.slane %v8776_v14, 9  ;;  %v3565_v43 = vsel %vm9250_vm5, %v3563_v19, %v3564_v48  ;;  %v6927_v30 = vcombine.low %v10394_v42, %v3558_v15  ;;  %v8779_v14 = vld [vmem:[%s8953_s20 + $0x140] sm:$0xff]  ;;  %v8780_v19 = vld [vmem:[%s8953_s20 + $0x150] sm:$0xff] }
 0x1a9   : > { %4491 = vmatprep.mubr.bf16.mxu0 %v7056_v40  ;;  %v7625_v27 = vpop.f32.mrb[79].mxu1  ;;  %v3571_v37 = vrot.slane %v8780_v19, 5  ;;  %v11797_v48 = vld [vmem:[#allocation8_spill] sm:$0xff] }
 0x1aa   : > { %v1503_v59 = vadd.f32 %v7623_v1, %v11793_v31  ;;  %v7626_v28 = vadd.f32 %v7625_v27, %v7624_v13  ;;  %v10413_v40 = vsel %vm9250_vm5, %v6873_v4, %v3561_v60  ;;  %v6989_v1 = vld [vmem:[%s8953_s20 + $0x168] sm:$0xff]  ;;  %v6874_v4 = vrot.slane %v8779_v14, 9 }
 0x1ab   : > { %v7739_v11 = vpop.f32.mrb[80].mxu0  ;;  %3953 = vmatmul.mubr.bf16.gmra.mrb[184].mxu1 %v6925_v57  ;;  %v6988_v57 = vld [vmem:[%s8953_s20 + $0x160] sm:$0xff] }
 0x1ac   : > { %v7740_v6 = vpop.f32.mrb[81].mxu0  ;;  %v10408_v55 = vadd.f32 %v7735_v36, %v1503_v59  ;;  %v1506_v33 = vadd.f32 %v7626_v28, %v11795_v32  ;;  %3960 = vmatprep.mubr.bf16.mxu1 %v6928_v24  ;;  %v6930_v24 = vcombine.high %v10413_v40, %v3565_v43  ;;  %v7060_v28 = vcombine.high %v6988_v57, %v6989_v1 }
 0x1ad   : > { %v7741_v51 = vadd.f32 %v7740_v6, %v7739_v11  ;;  %v7742_v54 = vpop.f32.mrb[82].mxu0  ;;  %v10432_v32 = vsel %vm9250_vm5, %v6874_v4, %v3568_v10  ;;  %v8782_v4 = vld [vmem:[%s8953_s20 + $0x160] sm:$0xff] }
 0x1ae   : > { %v7743_v5 = vpop.f32.mrb[83].mxu0  ;;  %11794 = vst [vmem:[#allocation6_spill] sm:$0xff] %v10408_v55  ;;  %v10418_v53 = vadd.f32 %v7738_v29, %v1506_v33  ;;  %v7627_v2 = vpop.f32.mrb[80].mxu1  ;;  %v3570_v29 = vrot.slane %v3568_v10, 4 }
 0x1af   : > { %v7744_v23 = vadd.f32 %v7743_v5, %v7742_v54  ;;  %v7628_v36 = vpop.f32.mrb[81].mxu1  ;;  %v11799_v5 = vld [vmem:[#allocation9_spill] sm:$0xff] }
 0x1b0   : > { %4492 = vmatmul.mubr.bf16.gmra.mrb[188].mxu0 %v7055_v62  ;;  %11796 = vst [vmem:[#allocation7_spill] sm:$0xff] %v10418_v53  ;;  %v7629_v13 = vadd.f32 %v7628_v36, %v7627_v2  ;;  %v7630_v11 = vpop.f32.mrb[82].mxu1  ;;  %v7057_v62 = vcombine.low %v6985_v26, %v6986_v58  ;;  %v10436_v33 = vsel %vm9250_vm5, %v3570_v29, %v3571_v37  ;;  %v3575_v2 = vrot.slane %v8781_v3, 5  ;;  %v8783_v37 = vld [vmem:[%s8953_s20 + $0x170] sm:$0xff] }
 0x1b1   : > { %4499 = vmatprep.mubr.bf16.mxu0 %v7058_v35  ;;  %v7631_v27 = vpop.f32.mrb[83].mxu1  ;;  %v6875_v29 = vrot.slane %v8782_v4, 9 }
 0x1b2   : > { %v1511_v31 = vadd.f32 %v7629_v13, %v11797_v48  ;;  %v7632_v59 = vadd.f32 %v7631_v27, %v7630_v11  ;;  %v6929_v13 = vcombine.low %v10413_v40, %v3565_v43  ;;  %v10443_v11 = vld [vmem:[%s8953_s20 + $0x180] sm:$0xff]  ;;  %v3577_v19 = vrot.slane %v3575_v2, 4 }
 0x1b3   : > { %v7745_v60 = vpop.f32.mrb[84].mxu0  ;;  %3961 = vmatmul.mubr.bf16.gmra.mrb[188].mxu1 %v6927_v30  ;;  %v3578_v48 = vrot.slane %v8783_v37, 5  ;;  %v11801_v40 = vld [vmem:[#allocation10_spill] sm:$0xff]  ;;  %v10460_v3 = vsel %vm9250_vm5, %v6875_v29, %v3575_v2  ;;  %v10475_v2 = vld [vmem:[%s8953_s20 + $0x1a8] sm:$0xff] }
 0x1b4   : > { %v7746_v6 = vpop.f32.mrb[85].mxu0  ;;  %v10427_v35 = vadd.f32 %v7741_v51, %v1511_v31  ;;  %v1514_v26 = vadd.f32 %v7632_v59, %v11799_v5  ;;  %3968 = vmatprep.mubr.bf16.mxu1 %v6930_v24 }
 0x1b5   : > { %v7747_v42 = vadd.f32 %v7746_v6, %v7745_v60  ;;  %v7748_v15 = vpop.f32.mrb[86].mxu0  ;;  %v10446_v60 = vld [vmem:[%s8953_s20 + $0x188] sm:$0xff]  ;;  %v6932_v6 = vcombine.high %v10432_v32, %v10436_v33 }
 0x1b6   : > { %v7749_v54 = vpop.f32.mrb[87].mxu0  ;;  %11798 = vst [vmem:[#allocation8_spill] sm:$0xff] %v10427_v35  ;;  %v10439_v36 = vadd.f32 %v7744_v23, %v1514_v26  ;;  %v7633_v51 = vpop.f32.mrb[84].mxu1  ;;  %v7059_v23 = vcombine.low %v6988_v57, %v6989_v1  ;;  %v11803_v57 = vld [vmem:[#allocation11_spill] sm:$0xff] }
 0x1b7   : > { %v7750_v58 = vadd.f32 %v7749_v54, %v7748_v15  ;;  %v7634_v30 = vpop.f32.mrb[85].mxu1 }
 0x1b8   : > { %4500 = vmatmul.mubr.bf16.gmra.mrb[192].mxu0 %v7057_v62  ;;  %11800 = vst [vmem:[#allocation9_spill] sm:$0xff] %v10439_v36  ;;  %v7635_v10 = vadd.f32 %v7634_v30, %v7633_v51  ;;  %v7636_v24 = vpop.f32.mrb[86].mxu1  ;;  %v10464_v51 = vsel %vm9250_vm5, %v3577_v19, %v3578_v48  ;;  %v8784_v30 = vld [vmem:[%s8953_s20 + $0x188] sm:$0xff]  ;;  %v7061_v48 = vcombine.low %v10443_v11, %v10446_v60 }
 0x1b9   : > { %4507 = vmatprep.mubr.bf16.mxu0 %v7060_v28  ;;  %v7637_v62 = vpop.f32.mrb[87].mxu1  ;;  %v7062_v28 = vcombine.high %v10443_v11, %v10446_v60 }
 0x1ba   : > { %v1519_v43 = vadd.f32 %v7635_v10, %v11801_v40  ;;  %v7638_v31 = vadd.f32 %v7637_v62, %v7636_v24  ;;  %v8785_v62 = vld [vmem:[%s8953_s20 + $0x1a8] sm:$0xff]  ;;  %v8786_v40 = vld [vmem:[%s8953_s20 + $0x180] sm:$0xff] }
 0x1bb   : > { %v7751_v27 = vpop.f32.mrb[88].mxu0  ;;  %3969 = vmatmul.mubr.bf16.gmra.mrb[192].mxu1 %v6929_v13  ;;  %v3582_v13 = vrot.slane %v8784_v30, 5 }
 0x1bc   : > { %v7752_v14 = vpop.f32.mrb[89].mxu0  ;;  %v10455_v5 = vadd.f32 %v7747_v42, %v1519_v43  ;;  %v1522_v1 = vadd.f32 %v7638_v31, %v11803_v57  ;;  %3976 = vmatprep.mubr.bf16.mxu1 %v6932_v6  ;;  %v10472_v6 = vld [vmem:[%s8953_s20 + $0x1a0] sm:$0xff]  ;;  %v8787_v43 = vld [vmem:[%s8953_s20 + $0x190] sm:$0xff] }
 0x1bd   : > { %v7753_v59 = vadd.f32 %v7752_v14, %v7751_v27  ;;  %v7754_v15 = vpop.f32.mrb[90].mxu0  ;;  %v6931_v27 = vcombine.low %v10432_v32, %v10436_v33  ;;  %v3589_v14 = vrot.slane %v8785_v62, 5  ;;  %v6876_v32 = vrot.slane %v8786_v40, 9  ;;  %v11807_v40 = vld [vmem:[#allocation13_spill] sm:$0xff] }
 0x1be   : > { %v7755_v54 = vpop.f32.mrb[91].mxu0  ;;  %11802 = vst [vmem:[#allocation10_spill] sm:$0xff] %v10455_v5  ;;  %v10467_v10 = vadd.f32 %v7750_v58, %v1522_v1  ;;  %v7639_v42 = vpop.f32.mrb[88].mxu1  ;;  %v6934_v58 = vcombine.high %v10460_v3, %v10464_v51  ;;  %v3584_v33 = vrot.slane %v3582_v13, 4  ;;  %v3585_v31 = vrot.slane %v8787_v43, 5  ;;  %v8798_v5 = vld [vmem:[%s8953_s20 + $0x210] sm:$0xff] }
 0x1bf   : > { %v7756_v26 = vadd.f32 %v7755_v54, %v7754_v15  ;;  %v7640_v24 = vpop.f32.mrb[89].mxu1  ;;  %v11805_v15 = vld [vmem:[#allocation12_spill] sm:$0xff]  ;;  %v7064_v30 = vcombine.high %v10472_v6, %v10475_v2  ;;  %v3591_v60 = vrot.slane %v3589_v14, 4  ;;  %v3613_v36 = vrot.slane %v8798_v5, 5 }
 0x1c0   : > { %4508 = vmatmul.mubr.bf16.gmra.mrb[196].mxu0 %v7059_v23  ;;  %11804 = vst [vmem:[#allocation11_spill] sm:$0xff] %v10467_v10  ;;  %v7641_v23 = vadd.f32 %v7640_v24, %v7639_v42  ;;  %v7642_v4 = vpop.f32.mrb[90].mxu1  ;;  %v8788_v24 = vld [vmem:[%s8953_s20 + $0x1a0] sm:$0xff] }
 0x1c1   : > { %4515 = vmatprep.mubr.bf16.mxu0 %v7062_v28  ;;  %v7643_v19 = vpop.f32.mrb[91].mxu1  ;;  %v6877_v11 = vrot.slane %v8788_v24, 9 }
 0x1c2   : > { %v1527_v28 = vadd.f32 %v7641_v23, %v11805_v15  ;;  %v7644_v54 = vadd.f32 %v7643_v19, %v7642_v4  ;;  %v8789_v23 = vld [vmem:[%s8953_s20 + $0x1b0] sm:$0xff]  ;;  %v10506_v15 = vld [vmem:[%s8953_s20 + $0x1c8] sm:$0xff] }
 0x1c3   : > { %v7757_v29 = vpop.f32.mrb[92].mxu0  ;;  %3977 = vmatmul.mubr.bf16.gmra.mrb[196].mxu1 %v6931_v27  ;;  %v3592_v4 = vrot.slane %v8789_v23, 5  ;;  %v10498_v27 = vsel %vm9250_vm5, %v3584_v33, %v3585_v31 }
 0x1c4   : > { %v7758_v37 = vpop.f32.mrb[93].mxu0  ;;  %v10488_v62 = vadd.f32 %v7753_v59, %v1527_v28  ;;  %v1530_v10 = vadd.f32 %v7644_v54, %v11807_v40  ;;  %3984 = vmatprep.mubr.bf16.mxu1 %v6934_v58  ;;  %v10503_v59 = vld [vmem:[%s8953_s20 + $0x1c0] sm:$0xff] }
 0x1c5   : > { %v7759_v57 = vadd.f32 %v7758_v37, %v7757_v29  ;;  %v7760_v1 = vpop.f32.mrb[94].mxu0  ;;  %v10494_v29 = vsel %vm9250_vm5, %v6876_v32, %v3582_v13 }
 0x1c6   : > { %v7761_v42 = vpop.f32.mrb[95].mxu0  ;;  %11806 = vst [vmem:[#allocation12_spill] sm:$0xff] %v10488_v62  ;;  %v10500_v19 = vadd.f32 %v7756_v26, %v1530_v10  ;;  %v7645_v37 = vpop.f32.mrb[92].mxu1  ;;  %v6936_v33 = vcombine.high %v10494_v29, %v10498_v27  ;;  %v10514_v26 = vsel %vm9250_vm5, %v6877_v11, %v3589_v14  ;;  %v10518_v10 = vsel %vm9250_vm5, %v3591_v60, %v3592_v4  ;;  %v8790_v11 = vld [vmem:[%s8953_s20 + $0x1c8] sm:$0xff] }
 0x1c7   : > { %v7762_v43 = vadd.f32 %v7761_v42, %v7760_v1  ;;  %v7646_v58 = vpop.f32.mrb[93].mxu1  ;;  %v11809_v1 = vld [vmem:[#allocation14_spill] sm:$0xff]  ;;  %v3596_v40 = vrot.slane %v8790_v11, 5  ;;  %v6935_v23 = vcombine.low %v10494_v29, %v10498_v27  ;;  %v8793_v27 = vld [vmem:[%s8953_s20 + $0x208] sm:$0xff] }
 0x1c8   : > { %4516 = vmatmul.mubr.bf16.gmra.mrb[200].mxu0 %v7061_v48  ;;  %11808 = vst [vmem:[#allocation13_spill] sm:$0xff] %v10500_v19  ;;  %v6933_v48 = vcombine.low %v10460_v3, %v10464_v51  ;;  %v7647_v28 = vadd.f32 %v7646_v58, %v7645_v37  ;;  %v7648_v13 = vpop.f32.mrb[94].mxu1  ;;  %v7063_v3 = vcombine.low %v10472_v6, %v10475_v2  ;;  %v8791_v2 = vld [vmem:[%s8953_s20 + $0x1e8] sm:$0xff]  ;;  %v10550_v11 = vld [vmem:[%s8953_s20 + $0x1e0] sm:$0xff] }
 0x1c9   : > { %4523 = vmatprep.mubr.bf16.mxu0 %v7064_v30  ;;  %v7649_v31 = vpop.f32.mrb[95].mxu1  ;;  %v7066_v51 = vcombine.high %v10503_v59, %v10506_v15  ;;  %v6938_v6 = vcombine.high %v10514_v26, %v10518_v10  ;;  %v3603_v4 = vrot.slane %v8791_v2, 5  ;;  %v11811_v58 = vld [vmem:[#allocation15_spill] sm:$0xff] }
 0x1ca   : > { %v1535_v30 = vadd.f32 %v7647_v28, %v11809_v1  ;;  %v7650_v42 = vadd.f32 %v7649_v31, %v7648_v13  ;;  %v3610_v31 = vrot.slane %v8793_v27, 5  ;;  %v10553_v2 = vld [vmem:[%s8953_s20 + $0x1e8] sm:$0xff] }
 0x1cb   : > { %v7891_v32 = vpop.f32.mrb[96].mxu0  ;;  %3985 = vmatmul.mubr.bf16.gmra.mrb[200].mxu1 %v6933_v48 }
 0x1cc   : > { %v7892_v54 = vpop.f32.mrb[97].mxu0  ;;  %v10533_v37 = vadd.f32 %v7759_v57, %v1535_v30  ;;  %v1538_v28 = vadd.f32 %v7650_v42, %v11811_v58  ;;  %3992 = vmatprep.mubr.bf16.mxu1 %v6936_v33  ;;  %v4597_v57 = vshrl.u32 %v10147_v41, 16  ;;  %v7065_v33 = vcombine.low %v10503_v59, %v10506_v15  ;;  %v8795_v58 = vld [vmem:[%s8953_s20 + $0x1e0] sm:$0xff] }
 0x1cd   : > { %v10525_v24 = vadd.f32 %v7892_v54, %v7891_v32  ;;  %v7894_v14 = vpop.f32.mrb[98].mxu0  ;;  %v8792_v32 = vld [vmem:[%s8953_s20 + $0x1c0] sm:$0xff]  ;;  %v4600_v54 = vshll.u32 %v10147_v41, 16  ;;  %v3598_v42 = vrot.slane %v3596_v40, 4  ;;  %v3605_v41 = vrot.slane %v3603_v4, 4 }
 0x1ce   : > { %v7895_v60 = vpop.f32.mrb[99].mxu0  ;;  %11810 = vst [vmem:[#allocation14_spill] sm:$0xff] %v10533_v37  ;;  %v6878_v48 = vrot.slane %v8792_v32, 9  ;;  %v10544_v1 = vadd.f32 %v7762_v43, %v1538_v28  ;;  %v7779_v30 = vpop.f32.mrb[96].mxu1  ;;  %v6879_v32 = vrot.slane %v8795_v58, 9  ;;  %v8796_v43 = vld [vmem:[%s8953_s20 + $0x1f0] sm:$0xff] }
 0x1cf   : > { %v10536_v13 = vadd.f32 %v7895_v60, %v7894_v14  ;;  %v7780_v60 = vpop.f32.mrb[97].mxu1  ;;  %v3606_v28 = vrot.slane %v8796_v43, 5  ;;  %v4610_v37 = vshrl.u32 %v10150_v56, 16  ;;  %v3612_v58 = vrot.slane %v3610_v31, 4 }
 0x1d0   : > { %4524 = vmatmul.mubr.bf16.gmra.mrb[204].mxu0 %v7063_v3  ;;  %11812 = vst [vmem:[#allocation15_spill] sm:$0xff] %v10544_v1  ;;  %v8794_v3 = vld [vmem:[%s8953_s20 + $0x1d0] sm:$0xff]  ;;  %v7781_v27 = vadd.f32 %v7780_v60, %v7779_v30  ;;  %v7782_v29 = vpop.f32.mrb[98].mxu1  ;;  %v10560_v15 = vsel %vm9250_vm5, %v6878_v48, %v3596_v40  ;;  %v4599_v43 = vrot.slane %v4597_v57, 4  ;;  %v4602_v35 = vrot.slane %v4600_v54, 5  ;;  %v10590_v57 = vld [vmem:[%s8953_s20 + $0x200] sm:$0xff] }
 0x1d1   : > { %4531 = vmatprep.mubr.bf16.mxu0 %v7066_v51  ;;  %v3599_v14 = vrot.slane %v8794_v3, 5  ;;  %v4606_v51 = vshll.u32 %v10150_v56, 16  ;;  %v8797_v3 = vld [vmem:[%s8953_s20 + $0x200] sm:$0xff]  ;;  %v7783_v19 = vpop.f32.mrb[99].mxu1  ;;  %v7068_v48 = vcombine.high %v10550_v11, %v10553_v2  ;;  %v10577_v5 = vsel %vm9250_vm5, %v6879_v32, %v3603_v4  ;;  %v10593_v54 = vld [vmem:[%s8953_s20 + $0x208] sm:$0xff] }
 0x1d2   : > { %v6880_v1 = vrot.slane %v8797_v3, 9  ;;  %v2621_v30 = vadd.f32 %v7781_v27, %v10107_v25  ;;  %v7784_v60 = vadd.f32 %v7783_v19, %v7782_v29  ;;  %v10569_v3 = vld [vmem:[%s8953_s20 + $0x50] sm:$0xff]  ;;  %v10581_v25 = vsel %vm9250_vm5, %v3605_v41, %v3606_v28  ;;  %v8799_v41 = vld [vmem:[%s8953_s20 + $0x48] sm:$0xff] }
 0x1d3   : > { %v7897_v59 = vpop.f32.mrb[100].mxu0  ;;  %3993 = vmatmul.mubr.bf16.gmra.mrb[204].mxu1 %v6935_v23  ;;  %v10573_v55 = vsel %vm9250_vm5, %v3598_v42, %v3599_v14  ;;  %v4612_v42 = vrot.slane %v4610_v37, 4  ;;  %v10601_v14 = vsel %vm9250_vm5, %v3612_v58, %v3613_v36  ;;  %v7070_v36 = vcombine.high %v10590_v57, %v10593_v54 }
 0x1d4   : > { %v7898_v62 = vpop.f32.mrb[101].mxu0  ;;  %v10586_v19 = vadd.f32 %v10525_v24, %v2621_v30  ;;  %v2622_v23 = vadd.f32 %v7784_v60, %v10111_v39  ;;  %4000 = vmatprep.mubr.bf16.mxu1 %v6938_v6  ;;  %v10597_v4 = vsel %vm9250_vm5, %v6880_v1, %v3610_v31  ;;  %v4603_v24 = vor.u32 %v4602_v35, %v4599_v43 }
 0x1d5   : > { %v7899_v53 = vadd.f32 %v7898_v62, %v7897_v59  ;;  %v7900_v40 = vpop.f32.mrb[102].mxu0  ;;  %v10583_v62 = vrot.slane %v4606_v51, 5  ;;  %v4616_v39 = vshll.u32 %v10569_v3, 16  ;;  %v6940_v37 = vcombine.high %v10560_v15, %v10573_v55 }
 0x1d6   : > { %v7901_v56 = vpop.f32.mrb[103].mxu0  ;;  %11813 = vst [vmem:[#allocation16_spill] sm:$0xff] %v10586_v19  ;;  %v10605_v6 = vadd.f32 %v10536_v13, %v2622_v23  ;;  %v7785_v32 = vpop.f32.mrb[100].mxu1  ;;  %v7067_v31 = vcombine.low %v10550_v11, %v10553_v2  ;;  %v5448_v28 = vrot.slane %v8799_v41, 5  ;;  %v4604_v60 = vrot.slane %v4603_v24, 4  ;;  %v10632_v11 = vld [vmem:[%s8953_s20 + $0x220] sm:$0xff] }
 0x1d7   : > { %v7902_v29 = vadd.f32 %v7901_v56, %v7900_v40  ;;  %v7786_v1 = vpop.f32.mrb[101].mxu1  ;;  %v4613_v58 = vor.u32 %v4612_v42, %v10583_v62  ;;  %v4618_v40 = vrot.slane %v4616_v39, 5  ;;  %v10635_v2 = vld [vmem:[%s8953_s20 + $0x228] sm:$0xff]  ;;  %v11815_v39 = vcombine.low %v10514_v26, %v10518_v10 }
 0x1d8   : > { %4532 = vmatmul.mubr.bf16.gmra.mrb[208].mxu0 %v7065_v33  ;;  %11814 = vst [vmem:[#allocation17_spill] sm:$0xff] %v10605_v6  ;;  %v7787_v51 = vadd.f32 %v7786_v1, %v7785_v32  ;;  %v7788_v27 = vpop.f32.mrb[102].mxu1  ;;  %v10638_v42 = vld [vmem:[%s8953_s20 + $0x68] sm:$0xff]  ;;  %v8802_v33 = vld [vmem:[%s8953_s20 + $0x40] sm:$0xff]  ;;  %v5450_v19 = vrot.slane %v5448_v28, 4  ;;  %v7072_v26 = vcombine.high %v10632_v11, %v10635_v2 }
 0x1d9   : > { %4539 = vmatprep.mubr.bf16.mxu0 %v7068_v48  ;;  %v7789_v43 = vpop.f32.mrb[103].mxu1  ;;  %v10626_v48 = vld [vmem:[%s8953_s20 + $0x60] sm:$0xff]  ;;  %v4630_v24 = vshll.u32 %v10638_v42, 16  ;;  %v7169_v6 = vrot.slane %v8802_v33, 9 }
 0x1da   : > { %v4621_v56 = vshrl.u32 %v10626_v48, 16  ;;  %v4624_v23 = vshll.u32 %v10626_v48, 16  ;;  %v2623_v32 = vadd.f32 %v7787_v51, %v10124_v17  ;;  %v7790_v1 = vadd.f32 %v7789_v43, %v7788_v27 }
 0x1db   : > { %v7903_v59 = vpop.f32.mrb[104].mxu0  ;;  %4001 = vmatmul.mubr.bf16.gmra.mrb[208].mxu1 %v11815_v39  ;;  %v5451_v17 = vrot.slane %v10569_v3, 5  ;;  %v4634_v51 = vshrl.u32 %v10638_v42, 16 }
 0x1dc   : > { %v7904_v30 = vpop.f32.mrb[105].mxu0  ;;  %v10647_v27 = vadd.f32 %v7899_v53, %v2623_v32  ;;  %4008 = vmatprep.mubr.bf16.mxu1 %v6940_v37  ;;  %v4623_v33 = vrot.slane %v4621_v56, 4  ;;  %v4626_v3 = vrot.slane %v4624_v23, 5  ;;  %v10661_v53 = vsel %vm8978_vm2, %v4604_v60, %v10583_v62  ;;  %v6966_v37 = vld [vmem:[%s8953_s20 + $0x70] sm:$0xff] }
 0x1dd   : > { %v7905_v41 = vadd.f32 %v7904_v30, %v7903_v59  ;;  %v7906_v13 = vpop.f32.mrb[106].mxu0  ;;  %v2624_v59 = vadd.f32 %v7790_v1, %v10127_v8  ;;  %v4614_v30 = vrot.slane %v4613_v58, 4  ;;  %v5455_v58 = vrot.slane %v10638_v42, 5  ;;  %v10685_v8 = vld [vmem:[%s8953_s20 + $0x88] sm:$0xff] }
 0x1de   : > { %v7907_v35 = vpop.f32.mrb[107].mxu0  ;;  %11816 = vst [vmem:[#allocation18_spill] sm:$0xff] %v10647_v27  ;;  %v7791_v38 = vpop.f32.mrb[104].mxu1  ;;  %v10678_v60 = vsel %vm9250_vm5, %v7169_v6, %v5448_v28  ;;  %v10682_v42 = vsel %vm9250_vm5, %v5450_v19, %v5451_v17  ;;  %v4640_v10 = vshll.u32 %v6966_v37, 16  ;;  %v11818_v19 = vcombine.low %v10560_v15, %v10573_v55 }
 0x1df   : > { %v7908_v43 = vadd.f32 %v7907_v35, %v7906_v13  ;;  %v10654_v39 = vadd.f32 %v7902_v29, %v2624_v59  ;;  %v7792_v35 = vpop.f32.mrb[105].mxu1  ;;  %v4636_v13 = vrot.slane %v4634_v51, 4  ;;  %v10668_v29 = vld [vmem:[%s8953_s20 + $0x80] sm:$0xff]  ;;  %v10674_v62 = vsel %vm8978_vm2, %v4614_v30, %v4618_v40 }
 0x1e0   : > { %4540 = vmatmul.mubr.bf16.gmra.mrb[212].mxu0 %v7067_v31  ;;  %v10664_v31 = vrot.slane %v4630_v24, 5  ;;  %v4648_v56 = vshll.u32 %v10668_v29, 16  ;;  %v7793_v23 = vadd.f32 %v7792_v35, %v7791_v38  ;;  %v7794_v32 = vpop.f32.mrb[106].mxu1  ;;  %v4627_v59 = vor.u32 %v4626_v3, %v4623_v33 }
 0x1e1   : > { %11817 = vst [vmem:[#allocation19_spill] sm:$0xff] %v10654_v39  ;;  %4547 = vmatprep.mubr.bf16.mxu0 %v7070_v36  ;;  %v4645_v36 = vshrl.u32 %v10668_v29, 16  ;;  %v7795_v24 = vpop.f32.mrb[107].mxu1  ;;  %v4654_v38 = vshll.u32 %v10685_v8, 16  ;;  %v4658_v35 = vshrl.u32 %v10685_v8, 16  ;;  %v7170_v39 = vrot.slane %v10626_v48, 9 }
 0x1e2   : > { %v2625_v40 = vadd.f32 %v7793_v23, %v10138_v63  ;;  %v7796_v30 = vadd.f32 %v7795_v24, %v7794_v32  ;;  %v4637_v33 = vor.u32 %v4636_v13, %v10664_v31  ;;  %v5457_v3 = vrot.slane %v5455_v58, 4 }
 0x1e3   : > { %v7909_v1 = vpop.f32.mrb[108].mxu0  ;;  %4009 = vmatmul.mubr.bf16.gmra.mrb[212].mxu1 %v11818_v19  ;;  %v4647_v27 = vrot.slane %v4645_v36, 4  ;;  %v4650_v22 = vrot.slane %v4648_v56, 5  ;;  %v11820_v32 = vcombine.high %v10577_v5, %v10581_v25  ;;  %v5458_v48 = vrot.slane %v6966_v37, 5 }
 0x1e4   : > { %v7910_v51 = vpop.f32.mrb[109].mxu0  ;;  %v10695_v9 = vadd.f32 %v7905_v41, %v2625_v40  ;;  %v2626_v63 = vadd.f32 %v7796_v30, %v10142_v20  ;;  %v11821_v55 = vcombine.low %v10590_v57, %v10593_v54  ;;  %v7218_v41 = vcombine.high %v10678_v60, %v10682_v42 }
 0x1e5   : > { %v7911_v6 = vadd.f32 %v7910_v51, %v7909_v1  ;;  %v7912_v28 = vpop.f32.mrb[110].mxu0  ;;  %4016 = vmatprep.mubr.bf16.mxu1 %v11820_v32  ;;  %v10702_v1 = vld [vmem:[%s8953_s20 + $0x90] sm:$0xff]  ;;  %v10711_v13 = vrot.slane %v4654_v38, 5  ;;  %v4660_v20 = vrot.slane %v4658_v35, 4  ;;  %v4628_v24 = vrot.slane %v4627_v59, 4 }
 0x1e6   : > { %v7913_v17 = vpop.f32.mrb[111].mxu0  ;;  %11819 = vst [vmem:[#allocation20_spill] sm:$0xff] %v10695_v9  ;;  %v10713_v36 = vadd.f32 %v7908_v43, %v2626_v63  ;;  %v7797_v56 = vpop.f32.mrb[108].mxu1  ;;  %v4642_v57 = vrot.slane %v4640_v10, 5  ;;  %v10719_v51 = vsel %vm9250_vm5, %v7170_v39, %v5455_v58  ;;  %v4651_v40 = vor.u32 %v4650_v22, %v4647_v27  ;;  %v10728_v10 = vld [vmem:[%s8953_s20 + $0xa0] sm:$0xff]  ;;  %v10745_v9 = vld [vmem:[%s8953_s20 + $0xb0] sm:$0xff] }
 0x1e7   : > { %v7914_v23 = vadd.f32 %v7913_v17, %v7912_v28  ;;  %v7798_v54 = vpop.f32.mrb[109].mxu1  ;;  %v4664_v38 = vshll.u32 %v10702_v1, 16  ;;  %v5462_v43 = vrot.slane %v10685_v8, 5  ;;  %v10725_v19 = vsel %vm9250_vm5, %v5457_v3, %v5458_v48  ;;  %v10734_v8 = vld [vmem:[%s8953_s20 + $0xa8] sm:$0xff] }
 0x1e8   : > { %4548 = vmatmul.mubr.bf16.gmra.mrb[216].mxu0 %v11821_v55  ;;  %11822 = vst [vmem:[#allocation21_spill] sm:$0xff] %v10713_v36  ;;  %v7799_v35 = vadd.f32 %v7798_v54, %v7797_v56  ;;  %v7800_v30 = vpop.f32.mrb[110].mxu1  ;;  %v4669_v59 = vshrl.u32 %v10728_v10, 16  ;;  %v4661_v22 = vor.u32 %v4660_v20, %v10711_v13  ;;  %v4672_v27 = vshll.u32 %v10728_v10, 16 }
 0x1e9   : > { %4555 = vmatprep.mubr.bf16.mxu0 %v7072_v26  ;;  %v4638_v26 = vrot.slane %v4637_v33, 4  ;;  %v7801_v17 = vpop.f32.mrb[111].mxu1  ;;  %v4678_v58 = vshll.u32 %v10734_v8, 16  ;;  %v4682_v33 = vshrl.u32 %v10734_v8, 16  ;;  %v7171_v55 = vrot.slane %v10668_v29, 9 }
 0x1ea   : > { %v2627_v3 = vadd.f32 %v7799_v35, %v10159_v7  ;;  %v7802_v63 = vadd.f32 %v7801_v17, %v7800_v30  ;;  %v11823_v56 = vcombine.low %v10577_v5, %v10581_v25  ;;  %v4652_v54 = vrot.slane %v4651_v40, 4 }
 0x1eb   : > { %v7915_v28 = vpop.f32.mrb[112].mxu0  ;;  %v4666_v37 = vrot.slane %v4664_v38, 5  ;;  %v5464_v15 = vrot.slane %v5462_v43, 4  ;;  %v5465_v36 = vrot.slane %v10702_v1, 5  ;;  %v11824_v29 = vcombine.high %v10597_v4, %v10601_v14 }
 0x1ec   : > { %v7916_v39 = vpop.f32.mrb[113].mxu0  ;;  %4017 = vmatmul.mubr.bf16.gmra.mrb[216].mxu1 %v11823_v56  ;;  %v10747_v0 = vadd.f32 %v7911_v6, %v2627_v3  ;;  %v2628_v7 = vadd.f32 %v7802_v63, %v10171_v21  ;;  %v4671_v30 = vrot.slane %v4669_v59, 4  ;;  %v11825_v5 = vcombine.low %v10632_v11, %v10635_v2 }
 0x1ed   : > { %v7917_v32 = vadd.f32 %v7916_v39, %v7915_v28  ;;  %v7918_v48 = vpop.f32.mrb[114].mxu0  ;;  %4024 = vmatprep.mubr.bf16.mxu1 %v11824_v29  ;;  %v4662_v25 = vrot.slane %v4661_v22, 4  ;;  %v4674_v40 = vrot.slane %v4672_v27, 5  ;;  %v10756_v1 = vrot.slane %v4678_v58, 5 }
 0x1ee   : > { %v7919_v20 = vpop.f32.mrb[115].mxu0  ;;  %v4684_v38 = vrot.slane %v4682_v33, 4  ;;  %v10758_v6 = vadd.f32 %v7914_v23, %v2628_v7  ;;  %v7803_v28 = vpop.f32.mrb[112].mxu1  ;;  %v7122_v21 = vcombine.high %v10661_v53, %v10674_v62  ;;  %v10765_v59 = vsel %vm8978_vm2, %v4628_v24, %v10664_v31 }
 0x1ef   : > { %v7920_v35 = vadd.f32 %v7919_v20, %v7918_v48  ;;  %v4688_v11 = vshll.u32 %v10745_v9, 16  ;;  %v7804_v2 = vpop.f32.mrb[113].mxu1  ;;  %v10770_v17 = vsel %vm8978_vm2, %v4638_v26, %v4642_v57  ;;  %v7220_v23 = vcombine.high %v10719_v51, %v10725_v19 }
 0x1f0   : > { %4556 = vmatmul.mubr.bf16.gmra.mrb[220].mxu0 %v11825_v5  ;;  %v10776_v39 = vsel %vm9250_vm5, %v7171_v55, %v5462_v43  ;;  %v7805_v31 = vadd.f32 %v7804_v2, %v7803_v28  ;;  %v7806_v24 = vpop.f32.mrb[114].mxu1  ;;  %v10785_v58 = vsel %vm8978_vm2, %v4652_v54, %v10711_v13  ;;  %v10789_v57 = vsel %vm9250_vm5, %v5464_v15, %v5465_v36  ;;  %v10804_v5 = vld [vmem:[%s8953_s20 + $0xc8] sm:$0xff] }
 0x1f1   : > { %5847 = vmatprep.mubr.bf16.mxu0 %v7218_v41  ;;  %v10779_v41 = vld [vmem:[%s8953_s20 + $0xc0] sm:$0xff]  ;;  %v7807_v43 = vpop.f32.mrb[115].mxu1  ;;  %v10794_v3 = vsel %vm8978_vm2, %v4662_v25, %v4666_v37  ;;  %v4675_v63 = vor.u32 %v4674_v40, %v4671_v30  ;;  %v4685_v48 = vor.u32 %v4684_v38, %v10756_v1  ;;  %v5469_v55 = vrot.slane %v10734_v8, 5 }
 0x1f2   : > { %v4693_v22 = vshrl.u32 %v10779_v41, 16  ;;  %v4696_v26 = vshll.u32 %v10779_v41, 16  ;;  %v2629_v13 = vadd.f32 %v7805_v31, %v10192_v47  ;;  %v7808_v56 = vadd.f32 %v7807_v43, %v7806_v24 }
 0x1f3   : > { %v7921_v27 = vpop.f32.mrb[116].mxu0  ;;  %v4690_v36 = vrot.slane %v4688_v11, 5  ;;  %v11826_v54 = vcombine.low %v10597_v4, %v10601_v14  ;;  %v7172_v29 = vrot.slane %v10728_v10, 9  ;;  %v4702_v30 = vshll.u32 %v10804_v5, 16 }
 0x1f4   : > { %v7922_v33 = vpop.f32.mrb[117].mxu0  ;;  %v4695_v37 = vrot.slane %v4693_v22, 4  ;;  %v4706_v8 = vshrl.u32 %v10804_v5, 16  ;;  %v10808_v25 = vadd.f32 %v7917_v32, %v2629_v13  ;;  %v2630_v47 = vadd.f32 %v7808_v56, %v10204_v12 }
 0x1f5   : > { %v7923_v20 = vadd.f32 %v7922_v33, %v7921_v27  ;;  %v7924_v15 = vpop.f32.mrb[118].mxu0  ;;  %4025 = vmatmul.mubr.bf16.gmra.mrb[220].mxu1 %v11826_v54  ;;  %v4698_v38 = vrot.slane %v4696_v26, 5  ;;  %v11827_v4 = vcombine.low %v10678_v60, %v10682_v42  ;;  %v4676_v14 = vrot.slane %v4675_v63, 4  ;;  %v10824_v60 = vld [vmem:[%s8953_s20 + $0xd0] sm:$0xff] }
 0x1f6   : > { %v7925_v7 = vpop.f32.mrb[119].mxu0  ;;  %5269 = vmatprep.mubr.bf16.mxu1 %v7122_v21  ;;  %v4686_v10 = vrot.slane %v4685_v48, 4  ;;  %v5471_v28 = vrot.slane %v5469_v55, 4  ;;  %v5472_v11 = vrot.slane %v10745_v9, 5  ;;  %v10815_v2 = vadd.f32 %v7920_v35, %v2630_v47  ;;  %v7809_v22 = vpop.f32.mrb[116].mxu1  ;;  %v10857_v47 = vld [vmem:[%s8953_s20 + $0xe0] sm:$0xff] }
 0x1f7   : > { %v7926_v40 = vadd.f32 %v7925_v7, %v7924_v15  ;;  %v7124_v32 = vcombine.high %v10765_v59, %v10770_v17  ;;  %v7123_v12 = vcombine.low %v10765_v59, %v10770_v17  ;;  %v7219_v21 = vcombine.low %v10719_v51, %v10725_v19  ;;  %v7810_v42 = vpop.f32.mrb[117].mxu1 }
 0x1f8   : > { %5848 = vmatmul.mubr.bf16.vlgmr.msra.gmra.mrb[224].mxu0 %v11827_v4  ;;  %v7222_v31 = vcombine.high %v10776_v39, %v10789_v57  ;;  %v7221_v9 = vcombine.low %v10776_v39, %v10789_v57  ;;  %v4704_v35 = vrot.slane %v4702_v30, 5  ;;  %v4708_v24 = vrot.slane %v4706_v8, 4  ;;  %v7812_v26 = vpop.f32.mrb[118].mxu1 }
 0x1f9   : > { %5855 = vmatprep.mubr.bf16.mxu0 %v7220_v23  ;;  %v7811_v27 = vadd.f32 %v7810_v42, %v7809_v22  ;;  %v7126_v43 = vcombine.high %v10785_v58, %v10794_v3  ;;  %v10834_v51 = vsel %vm9250_vm5, %v7172_v29, %v5469_v55  ;;  %v4699_v19 = vor.u32 %v4698_v38, %v4695_v37  ;;  %v7813_v33 = vpop.f32.mrb[119].mxu1 }
 0x1fa   : > { %v10839_v48 = vsel %vm8978_vm2, %v4676_v14, %v10756_v1  ;;  %v10843_v13 = vsel %vm8978_vm2, %v4686_v10, %v4690_v36  ;;  %v10847_v56 = vsel %vm9250_vm5, %v5471_v28, %v5472_v11  ;;  %v4712_v55 = vshll.u32 %v10824_v60, 16 }
 0x1fb   : > { %v7927_v23 = vpop.f32.mrb[120].mxu0  ;;  %v2631_v15 = vadd.f32 %v7811_v27, %v10229_v44  ;;  %v7814_v54 = vadd.f32 %v7813_v33, %v7812_v26  ;;  %v5476_v37 = vrot.slane %v10804_v5, 5  ;;  %v11828_v1 = vcombine.low %v10661_v53, %v10674_v62 }
 0x1fc   : > { %v7928_v63 = vpop.f32.mrb[121].mxu0  ;;  %v4709_v30 = vor.u32 %v4708_v24, %v4704_v35  ;;  %v7173_v8 = vrot.slane %v10779_v41, 9  ;;  %v4717_v38 = vshrl.u32 %v10857_v47, 16  ;;  %v4720_v44 = vshll.u32 %v10857_v47, 16  ;;  %v10869_v41 = vld [vmem:[%s8953_s20 + $0xe8] sm:$0xff] }
 0x1fd   : > { %v7929_v7 = vadd.f32 %v7928_v63, %v7927_v23  ;;  %v7930_v29 = vpop.f32.mrb[122].mxu0  ;;  %5270 = vmatmul.mubr.bf16.vlgmr.msra.gmra.mrb[224].mxu1 %v11828_v1  ;;  %v10861_v4 = vadd.f32 %v7923_v20, %v2631_v15  ;;  %v2632_v14 = vadd.f32 %v7814_v54, %v10243_v50  ;;  %v4700_v10 = vrot.slane %v4699_v19, 4 }
 0x1fe   : > { %v7931_v36 = vpop.f32.mrb[123].mxu0  ;;  %5277 = vmatprep.mubr.bf16.mxu1 %v7124_v32  ;;  %v7125_v53 = vcombine.low %v10785_v58, %v10794_v3  ;;  %v7128_v62 = vcombine.high %v10839_v48, %v10843_v13  ;;  %v4726_v28 = vshll.u32 %v10869_v41, 16  ;;  %v4730_v11 = vshrl.u32 %v10869_v41, 16  ;;  %v7815_v22 = vpop.f32.mrb[120].mxu1 }
 0x1ff   : > { %v7932_v5 = vadd.f32 %v7931_v36, %v7930_v29  ;;  %v10873_v20 = vadd.f32 %v7926_v40, %v2632_v14  ;;  %v7224_v50 = vcombine.high %v10834_v51, %v10847_v56  ;;  %v5478_v32 = vrot.slane %v5476_v37, 4  ;;  %v7816_v42 = vpop.f32.mrb[121].mxu1  ;;  %v10892_v36 = vld [vmem:[%s8953_s20 + $0x100] sm:$0xff] }
 0x200   : > { %5856 = vmatmul.mubr.bf16.gmra.mrb[228].mxu0 %v7219_v21  ;;  %v5479_v21 = vrot.slane %v10824_v60, 5  ;;  %v4710_v24 = vrot.slane %v4709_v30, 4  ;;  %v4714_v27 = vrot.slane %v4712_v55, 5  ;;  %v4719_v26 = vrot.slane %v4717_v38, 4  ;;  %v7818_v33 = vpop.f32.mrb[122].mxu1  ;;  %v10889_v60 = vld [vmem:[%s8953_s20 + $0xf0] sm:$0xff] }
 0x201   : > { %5863 = vmatprep.mubr.bf16.mxu0 %v7222_v31  ;;  %v4722_v23 = vrot.slane %v4720_v44, 5  ;;  %v7817_v19 = vadd.f32 %v7816_v42, %v7815_v22  ;;  %v7127_v40 = vcombine.low %v10839_v48, %v10843_v13  ;;  %v10882_v31 = vsel %vm8978_vm2, %v4700_v10, %v4704_v35  ;;  %v7819_v54 = vpop.f32.mrb[123].mxu1  ;;  %v10909_v22 = vld [vmem:[%s8953_s20 + $0x108] sm:$0xff] }
 0x202   : > { %v10886_v15 = vsel %vm9250_vm5, %v7173_v8, %v5476_v37  ;;  %v4728_v29 = vrot.slane %v4726_v28, 5  ;;  %v4732_v1 = vrot.slane %v4730_v11, 4  ;;  %v4741_v30 = vshrl.u32 %v10892_v36, 16 }
 0x203   : > { %v7933_v63 = vpop.f32.mrb[124].mxu0  ;;  %v4744_v38 = vshll.u32 %v10892_v36, 16  ;;  %v2633_v35 = vadd.f32 %v7817_v19, %v10268_v46  ;;  %v7820_v44 = vadd.f32 %v7819_v54, %v7818_v33  ;;  %v10899_v37 = vsel %vm9250_vm5, %v5478_v32, %v5479_v21 }
 0x204   : > { %v7934_v55 = vpop.f32.mrb[125].mxu0  ;;  %v10906_v28 = vsel %vm8978_vm2, %v4710_v24, %v4714_v27  ;;  %v4723_v11 = vor.u32 %v4722_v23, %v4719_v26  ;;  %v4750_v46 = vshll.u32 %v10909_v22, 16  ;;  %v4754_v42 = vshrl.u32 %v10909_v22, 16 }
 0x205   : > { %v7935_v14 = vadd.f32 %v7934_v55, %v7933_v63  ;;  %v7936_v10 = vpop.f32.mrb[126].mxu0  ;;  %5278 = vmatmul.mubr.bf16.gmra.mrb[228].mxu1 %v7123_v12  ;;  %v10913_v19 = vadd.f32 %v7929_v7, %v2633_v35  ;;  %v2634_v32 = vadd.f32 %v7820_v44, %v10282_v61  ;;  %v4736_v59 = vshll.u32 %v10889_v60, 16  ;;  %v6981_v55 = vld [vmem:[%s8953_s20 + $0x110] sm:$0xff] }
 0x206   : > { %v7937_v8 = vpop.f32.mrb[127].mxu0  ;;  %5285 = vmatprep.mubr.bf16.mxu1 %v7126_v43  ;;  %v4733_v17 = vor.u32 %v4732_v1, %v4728_v29  ;;  %v5483_v12 = vrot.slane %v10869_v41, 5  ;;  %v4743_v24 = vrot.slane %v4741_v30, 4  ;;  %v4746_v27 = vrot.slane %v4744_v38, 5  ;;  %v7821_v26 = vpop.f32.mrb[124].mxu1 }
 0x207   : > { %v7938_v21 = vadd.f32 %v7937_v8, %v7936_v10  ;;  %v10924_v7 = vadd.f32 %v7932_v5, %v2634_v32  ;;  %v7223_v61 = vcombine.low %v10834_v51, %v10847_v56  ;;  %v7226_v43 = vcombine.high %v10886_v15, %v10899_v37  ;;  %v7822_v57 = vpop.f32.mrb[125].mxu1 }
 0x208   : > { %5864 = vmatmul.mubr.bf16.gmra.mrb[232].mxu0 %v7221_v9  ;;  %v7225_v39 = vcombine.low %v10886_v15, %v10899_v37  ;;  %v7130_v9 = vcombine.high %v10882_v31, %v10906_v28  ;;  %v4724_v41 = vrot.slane %v4723_v11, 4  ;;  %v4752_v23 = vrot.slane %v4750_v46, 5  ;;  %v7824_v63 = vpop.f32.mrb[126].mxu1 }
 0x209   : > { %5871 = vmatprep.mubr.bf16.mxu0 %v7224_v50  ;;  %v4756_v5 = vrot.slane %v4754_v42, 4  ;;  %v7823_v33 = vadd.f32 %v7822_v57, %v7821_v26  ;;  %v7129_v50 = vcombine.low %v10882_v31, %v10906_v28  ;;  %v7174_v51 = vrot.slane %v10857_v47, 9  ;;  %v7825_v1 = vpop.f32.mrb[127].mxu1  ;;  %v10949_v26 = vld [vmem:[%s8953_s20 + $0x120] sm:$0xff] }
 0x20a   : > { %v5486_v56 = vrot.slane %v10889_v60, 5  ;;  %v4734_v38 = vrot.slane %v4733_v17, 4  ;;  %v4738_v35 = vrot.slane %v4736_v59, 5  ;;  %v5485_v44 = vrot.slane %v5483_v12, 4 }
 0x20b   : > { %v7939_v54 = vpop.f32.mrb[128].mxu0  ;;  %v4747_v10 = vor.u32 %v4746_v27, %v4743_v24  ;;  %v2635_v8 = vadd.f32 %v7823_v33, %v10307_v49  ;;  %v7826_v11 = vadd.f32 %v7825_v1, %v7824_v63  ;;  %v5490_v32 = vrot.slane %v10909_v22, 5  ;;  %v8814_v63 = vld [vmem:[%s8953_s20 + $0x128] sm:$0xff] }
 0x20c   : > { %v7940_v30 = vpop.f32.mrb[129].mxu0  ;;  %v10946_v60 = vsel %vm8978_vm2, %v4724_v41, %v4728_v29  ;;  %v4757_v17 = vor.u32 %v4756_v5, %v4752_v23  ;;  %v4760_v59 = vshll.u32 %v6981_v55, 16  ;;  %v4765_v49 = vshrl.u32 %v10949_v26, 16 }
 0x20d   : > { %v7941_v46 = vadd.f32 %v7940_v30, %v7939_v54  ;;  %v7942_v42 = vpop.f32.mrb[130].mxu0  ;;  %5286 = vmatmul.mubr.bf16.gmra.mrb[232].mxu1 %v7125_v53  ;;  %v10952_v24 = vadd.f32 %v7935_v14, %v2635_v8  ;;  %v2636_v27 = vadd.f32 %v7826_v11, %v10321_v18  ;;  %v4768_v58 = vshll.u32 %v10949_v26, 16  ;;  %v6984_v30 = vld [vmem:[%s8953_s20 + $0x130] sm:$0xff] }
 0x20e   : > { %v7943_v47 = vpop.f32.mrb[131].mxu0  ;;  %5293 = vmatprep.mubr.bf16.mxu1 %v7128_v62  ;;  %v10961_v3 = vsel %vm9250_vm5, %v7174_v51, %v5483_v12  ;;  %v10965_v53 = vsel %vm9250_vm5, %v5485_v44, %v5486_v56  ;;  %v4748_v29 = vrot.slane %v4747_v10, 4  ;;  %v7175_v18 = vrot.slane %v10892_v36, 9  ;;  %v7827_v57 = vpop.f32.mrb[128].mxu1 }
 0x20f   : > { %v7944_v22 = vadd.f32 %v7943_v47, %v7942_v42  ;;  %v10968_v14 = vadd.f32 %v7938_v21, %v2636_v27  ;;  %v10972_v62 = vsel %vm8978_vm2, %v4734_v38, %v4738_v35  ;;  %v5493_v41 = vrot.slane %v6981_v55, 5  ;;  %v7828_v12 = vpop.f32.mrb[129].mxu1 }
 0x210   : > { %5872 = vmatmul.mubr.bf16.gmra.mrb[236].mxu0 %v7223_v61  ;;  %v5492_v61 = vrot.slane %v5490_v32, 4  ;;  %v4758_v5 = vrot.slane %v4757_v17, 4  ;;  %v4762_v33 = vrot.slane %v4760_v59, 5  ;;  %v4774_v54 = vshll.u32 %v8814_v63, 16  ;;  %v7830_v1 = vpop.f32.mrb[130].mxu1 }
 0x211   : > { %5879 = vmatprep.mubr.bf16.mxu0 %v7226_v43  ;;  %v4778_v51 = vshrl.u32 %v8814_v63, 16  ;;  %v7829_v56 = vadd.f32 %v7828_v12, %v7827_v57  ;;  %v7228_v21 = vcombine.high %v10961_v3, %v10965_v53  ;;  %v4767_v43 = vrot.slane %v4765_v49, 4  ;;  %v7831_v10 = vpop.f32.mrb[131].mxu1 }
 0x212   : > { %v4770_v44 = vrot.slane %v4768_v58, 5  ;;  %v7227_v55 = vcombine.low %v10961_v3, %v10965_v53  ;;  %v10982_v35 = vsel %vm8978_vm2, %v4748_v29, %v4752_v23  ;;  %v10986_v8 = vsel %vm9250_vm5, %v7175_v18, %v5490_v32 }
 0x213   : > { %v7945_v36 = vpop.f32.mrb[132].mxu0  ;;  %v5497_v11 = vrot.slane %v8814_v63, 5  ;;  %v2637_v42 = vadd.f32 %v7829_v56, %v10343_v52  ;;  %v7832_v47 = vadd.f32 %v7831_v10, %v7830_v1  ;;  %v10991_v49 = vsel %vm9250_vm5, %v5492_v61, %v5493_v41  ;;  %v11013_v41 = vld [vmem:[%s8953_s20 + $0x140] sm:$0xff] }
 0x214   : > { %v7946_v38 = vpop.f32.mrb[133].mxu0  ;;  %v10998_v32 = vsel %vm8978_vm2, %v4758_v5, %v4762_v33  ;;  %v11000_v27 = vrot.slane %v4774_v54, 5  ;;  %v4780_v52 = vrot.slane %v4778_v51, 4  ;;  %v4784_v58 = vshll.u32 %v6984_v30, 16  ;;  %v11027_v33 = vld [vmem:[%s8953_s20 + $0x148] sm:$0xff] }
 0x215   : > { %v7947_v17 = vadd.f32 %v7946_v38, %v7945_v36  ;;  %v7948_v59 = vpop.f32.mrb[134].mxu0  ;;  %5294 = vmatmul.mubr.bf16.gmra.mrb[236].mxu1 %v7127_v40  ;;  %v11002_v29 = vadd.f32 %v7941_v46, %v2637_v42  ;;  %v2638_v18 = vadd.f32 %v7832_v47, %v10356_v16  ;;  %v4771_v48 = vor.u32 %v4770_v44, %v4767_v43  ;;  %v11829_v47 = vld [vmem:[#allocation2_spill] sm:$0xff] }
 0x216   : > { %v7949_v23 = vpop.f32.mrb[135].mxu0  ;;  %5301 = vmatprep.mubr.bf16.mxu1 %v7130_v9  ;;  %v7176_v13 = vrot.slane %v10949_v26, 9  ;;  %v5499_v40 = vrot.slane %v5497_v11, 4  ;;  %v5500_v61 = vrot.slane %v6984_v30, 5  ;;  %v4789_v46 = vshrl.u32 %v11013_v41, 16  ;;  %v7833_v12 = vpop.f32.mrb[132].mxu1 }
 0x217   : > { %v7950_v57 = vadd.f32 %v7949_v23, %v7948_v59  ;;  %v11016_v16 = vadd.f32 %v7944_v22, %v2638_v18  ;;  %v7132_v9 = vcombine.high %v10946_v60, %v10972_v62  ;;  %v7131_v15 = vcombine.low %v10946_v60, %v10972_v62 }
 0x218   : > { %5880 = vmatmul.mubr.bf16.gmra.mrb[240].mxu0 %v7225_v39  ;;  %v4792_v37 = vshll.u32 %v11013_v41, 16  ;;  %v7834_v39 = vpop.f32.mrb[133].mxu1  ;;  %v7230_v26 = vcombine.high %v10986_v8, %v10991_v49  ;;  %v4781_v5 = vor.u32 %v4780_v52, %v11000_v27  ;;  %v4798_v22 = vshll.u32 %v11027_v33, 16 }
 0x219   : > { %5887 = vmatprep.mubr.bf16.mxu0 %v7228_v21  ;;  %v4802_v63 = vshrl.u32 %v11027_v33, 16  ;;  %v7835_v54 = vadd.f32 %v7834_v39, %v7833_v12  ;;  %v7836_v51 = vpop.f32.mrb[134].mxu1  ;;  %v7134_v1 = vcombine.high %v10982_v35, %v10998_v32  ;;  %v4772_v21 = vrot.slane %v4771_v48, 4  ;;  %v11830_v39 = vld [vmem:[#allocation3_spill] sm:$0xff] }
 0x21a   : > { %v7837_v30 = vpop.f32.mrb[135].mxu1  ;;  %v4786_v44 = vrot.slane %v4784_v58, 5  ;;  %v11037_v10 = vsel %vm9250_vm5, %v7176_v13, %v5497_v11  ;;  %v11041_v38 = vsel %vm9250_vm5, %v5499_v40, %v5500_v61  ;;  %v4791_v42 = vrot.slane %v4789_v46, 4  ;;  %v11050_v40 = vld [vmem:[%s8953_s20 + $0x160] sm:$0xff] }
 0x21b   : > { %v7951_v56 = vpop.f32.mrb[136].mxu0  ;;  %v2639_v59 = vadd.f32 %v7835_v54, %v11829_v47  ;;  %v7838_v23 = vadd.f32 %v7837_v30, %v7836_v51  ;;  %v4794_v48 = vrot.slane %v4792_v37, 5  ;;  %v4782_v11 = vrot.slane %v4781_v5, 4  ;;  %v6987_v37 = vld [vmem:[%s8953_s20 + $0x150] sm:$0xff]  ;;  %v11065_v5 = vld [vmem:[%s8953_s20 + $0x168] sm:$0xff] }
 0x21c   : > { %v7952_v43 = vpop.f32.mrb[137].mxu0  ;;  %v11047_v13 = vrot.slane %v4798_v22, 5  ;;  %v4804_v12 = vrot.slane %v4802_v63, 4  ;;  %v4813_v61 = vshrl.u32 %v11050_v40, 16  ;;  %v4816_v31 = vshll.u32 %v11050_v40, 16 }
 0x21d   : > { %v7953_v52 = vadd.f32 %v7952_v43, %v7951_v56  ;;  %v7954_v18 = vpop.f32.mrb[138].mxu0  ;;  %5302 = vmatmul.mubr.bf16.gmra.mrb[240].mxu1 %v7129_v50  ;;  %v11053_v46 = vadd.f32 %v7947_v17, %v2639_v59  ;;  %v2640_v54 = vadd.f32 %v7838_v23, %v11830_v39  ;;  %v5504_v50 = vrot.slane %v11027_v33, 5 }
 0x21e   : > { %v7955_v58 = vpop.f32.mrb[139].mxu0  ;;  %5309 = vmatprep.mubr.bf16.mxu1 %v7132_v9  ;;  %v4822_v17 = vshll.u32 %v11065_v5, 16  ;;  %v4826_v22 = vshrl.u32 %v11065_v5, 16  ;;  %v7839_v63 = vpop.f32.mrb[136].mxu1  ;;  %v11074_v3 = vsel %vm8978_vm2, %v4772_v21, %v11000_v27  ;;  %v7232_v53 = vcombine.high %v11037_v10, %v11041_v38  ;;  %v11087_v21 = vld [vmem:[%s8953_s20 + $0x170] sm:$0xff] }
 0x21f   : > { %v7956_v51 = vadd.f32 %v7955_v58, %v7954_v18  ;;  %v11069_v9 = vadd.f32 %v7950_v57, %v2640_v54  ;;  %v7840_v33 = vpop.f32.mrb[137].mxu1  ;;  %v11080_v56 = vsel %vm8978_vm2, %v4782_v11, %v4786_v44  ;;  %v4805_v30 = vor.u32 %v4804_v12, %v11047_v13  ;;  %v11831_v54 = vld [vmem:[#allocation4_spill] sm:$0xff] }
 0x220   : > { %5888 = vmatmul.mubr.bf16.gmra.mrb[244].mxu0 %v7227_v55  ;;  %v4795_v55 = vor.u32 %v4794_v48, %v4791_v42  ;;  %v7841_v43 = vadd.f32 %v7840_v33, %v7839_v63  ;;  %v7842_v47 = vpop.f32.mrb[138].mxu1  ;;  %v7177_v27 = vrot.slane %v11013_v41, 9  ;;  %v4815_v23 = vrot.slane %v4813_v61, 4 }
 0x221   : > { %5895 = vmatprep.mubr.bf16.mxu0 %v7230_v26  ;;  %v4808_v26 = vshll.u32 %v6987_v37, 16  ;;  %v4818_v42 = vrot.slane %v4816_v31, 5  ;;  %v7843_v18 = vpop.f32.mrb[139].mxu1  ;;  %v5506_v58 = vrot.slane %v5504_v50, 4  ;;  %v5507_v44 = vrot.slane %v6987_v37, 5 }
 0x222   : > { %v11089_v11 = vrot.slane %v4822_v17, 5  ;;  %v4828_v39 = vrot.slane %v4826_v22, 4  ;;  %v2641_v57 = vadd.f32 %v7841_v43, %v11831_v54  ;;  %v7844_v12 = vadd.f32 %v7843_v18, %v7842_v47  ;;  %v11833_v22 = vld [vmem:[#allocation5_spill] sm:$0xff] }
 0x223   : > { %v7957_v59 = vpop.f32.mrb[140].mxu0  ;;  %v4796_v33 = vrot.slane %v4795_v55, 4  ;;  %v7136_v61 = vcombine.high %v11074_v3, %v11080_v56  ;;  %v4806_v31 = vrot.slane %v4805_v30, 4  ;;  %v4810_v36 = vrot.slane %v4808_v26, 5 }
 0x224   : > { %v7958_v48 = vpop.f32.mrb[141].mxu0  ;;  %v4832_v37 = vshll.u32 %v11087_v21, 16  ;;  %v11098_v17 = vadd.f32 %v7953_v52, %v2641_v57  ;;  %v2642_v43 = vadd.f32 %v7844_v12, %v11833_v22  ;;  %v4819_v60 = vor.u32 %v4818_v42, %v4815_v23 }
 0x225   : > { %v7959_v28 = vadd.f32 %v7958_v48, %v7957_v59  ;;  %v7960_v63 = vpop.f32.mrb[142].mxu0  ;;  %5310 = vmatmul.mubr.bf16.gmra.mrb[244].mxu1 %v7131_v15  ;;  %v11834_v62 = vcombine.low %v10986_v8, %v10991_v49  ;;  %v11109_v15 = vsel %vm9250_vm5, %v7177_v27, %v5504_v50  ;;  %v11113_v52 = vsel %vm9250_vm5, %v5506_v58, %v5507_v44  ;;  %v11127_v50 = vld [vmem:[%s8953_s20 + $0x180] sm:$0xff] }
 0x226   : > { %v7961_v41 = vpop.f32.mrb[143].mxu0  ;;  %11832 = vst [vmem:[#allocation2_spill] sm:$0xff] %v11098_v17  ;;  %5317 = vmatprep.mubr.bf16.mxu1 %v7134_v1  ;;  %v4829_v55 = vor.u32 %v4828_v39, %v11089_v11  ;;  %v5511_v57 = vrot.slane %v11065_v5, 5  ;;  %v11117_v30 = vadd.f32 %v7956_v51, %v2642_v43  ;;  %v7845_v1 = vpop.f32.mrb[140].mxu1  ;;  %v11124_v49 = vsel %vm8978_vm2, %v4796_v33, %v11047_v13 }
 0x227   : > { %v7962_v47 = vadd.f32 %v7961_v41, %v7960_v63  ;;  %v4837_v26 = vshrl.u32 %v11127_v50, 16  ;;  %v7846_v59 = vpop.f32.mrb[141].mxu1  ;;  %v11132_v5 = vsel %vm8978_vm2, %v4806_v31, %v4810_v36  ;;  %v4840_v51 = vshll.u32 %v11127_v50, 16  ;;  %v11836_v41 = vld [vmem:[#allocation6_spill] sm:$0xff] }
 0x228   : > { %5896 = vmatmul.mubr.bf16.gmra.mrb[248].mxu0 %v11834_v62  ;;  %11835 = vst [vmem:[#allocation3_spill] sm:$0xff] %v11117_v30  ;;  %v7847_v42 = vadd.f32 %v7846_v59, %v7845_v1  ;;  %v7848_v13 = vpop.f32.mrb[142].mxu1  ;;  %v7234_v48 = vcombine.high %v11109_v15, %v11113_v52  ;;  %v4820_v58 = vrot.slane %v4819_v60, 4  ;;  %v4834_v44 = vrot.slane %v4832_v37, 5  ;;  %v6993_v60 = vld [vmem:[%s8953_s20 + $0x190] sm:$0xff] }
 0x229   : > { %5903 = vmatprep.mubr.bf16.mxu0 %v7232_v53  ;;  %v11136_v53 = vld [vmem:[%s8953_s20 + $0x188] sm:$0xff]  ;;  %v7849_v39 = vpop.f32.mrb[143].mxu1  ;;  %v4830_v54 = vrot.slane %v4829_v55, 4  ;;  %v7178_v12 = vrot.slane %v11050_v40, 9  ;;  %v5513_v63 = vrot.slane %v5511_v57, 4  ;;  %v5514_v33 = vrot.slane %v11087_v21, 5 }
 0x22a   : > { %v4846_v27 = vshll.u32 %v11136_v53, 16  ;;  %v4850_v23 = vshrl.u32 %v11136_v53, 16  ;;  %v2643_v31 = vadd.f32 %v7847_v42, %v11836_v41  ;;  %v7850_v22 = vadd.f32 %v7849_v39, %v7848_v13  ;;  %v11152_v40 = vld [vmem:[%s8953_s20 + $0x1a0] sm:$0xff]  ;;  %v11839_v42 = vld [vmem:[#allocation7_spill] sm:$0xff] }
 0x22b   : > { %v7963_v18 = vpop.f32.mrb[144].mxu0  ;;  %v4839_v1 = vrot.slane %v4837_v26, 4  ;;  %v11837_v59 = vcombine.low %v10982_v35, %v10998_v32  ;;  %v4842_v8 = vrot.slane %v4840_v51, 5  ;;  %v4861_v21 = vshrl.u32 %v11152_v40, 16 }
 0x22c   : > { %v7964_v36 = vpop.f32.mrb[145].mxu0  ;;  %v11149_v30 = vrot.slane %v4846_v27, 5  ;;  %v4852_v55 = vrot.slane %v4850_v23, 4  ;;  %v11155_v17 = vadd.f32 %v7959_v28, %v2643_v31  ;;  %v2644_v13 = vadd.f32 %v7850_v22, %v11839_v42 }
 0x22d   : > { %v7965_v43 = vadd.f32 %v7964_v36, %v7963_v18  ;;  %v7966_v62 = vpop.f32.mrb[146].mxu0  ;;  %5318 = vmatmul.mubr.bf16.gmra.mrb[248].mxu1 %v11837_v59  ;;  %v4864_v35 = vshll.u32 %v11152_v40, 16  ;;  %v11840_v32 = vcombine.low %v11037_v10, %v11041_v38  ;;  %v7138_v26 = vcombine.high %v11124_v49, %v11132_v5  ;;  %v11842_v59 = vld [vmem:[#allocation8_spill] sm:$0xff] }
 0x22e   : > { %v7967_v37 = vpop.f32.mrb[147].mxu0  ;;  %11838 = vst [vmem:[#allocation4_spill] sm:$0xff] %v11155_v17  ;;  %5325 = vmatprep.mubr.bf16.mxu1 %v7136_v61  ;;  %v7233_v51 = vcombine.low %v11109_v15, %v11113_v52  ;;  %v11169_v28 = vsel %vm8978_vm2, %v4820_v58, %v11089_v11  ;;  %v5518_v61 = vrot.slane %v11136_v53, 5  ;;  %v11172_v27 = vadd.f32 %v7962_v47, %v2644_v13  ;;  %v7851_v23 = vpop.f32.mrb[144].mxu1  ;;  %v11184_v58 = vld [vmem:[%s8953_s20 + $0x1a8] sm:$0xff] }
 0x22f   : > { %v7968_v18 = vadd.f32 %v7967_v37, %v7966_v62  ;;  %v11176_v10 = vsel %vm9250_vm5, %v7178_v12, %v5511_v57  ;;  %v11180_v38 = vsel %vm9250_vm5, %v5513_v63, %v5514_v33  ;;  %v4856_v15 = vshll.u32 %v6993_v60, 16  ;;  %v7852_v52 = vpop.f32.mrb[145].mxu1 }
 0x230   : > { %5904 = vmatmul.mubr.bf16.gmra.mrb[252].mxu0 %v11840_v32  ;;  %11841 = vst [vmem:[#allocation5_spill] sm:$0xff] %v11172_v27  ;;  %v4843_v39 = vor.u32 %v4842_v8, %v4839_v1  ;;  %v4853_v11 = vor.u32 %v4852_v55, %v11149_v30  ;;  %v4870_v47 = vshll.u32 %v11184_v58, 16  ;;  %v4874_v53 = vshrl.u32 %v11184_v58, 16  ;;  %v7854_v36 = vpop.f32.mrb[146].mxu1 }
 0x231   : > { %5911 = vmatprep.mubr.bf16.mxu0 %v7234_v48  ;;  %v7853_v48 = vadd.f32 %v7852_v52, %v7851_v23  ;;  %v11190_v57 = vsel %vm8978_vm2, %v4830_v54, %v4834_v44  ;;  %v4863_v12 = vrot.slane %v4861_v21, 4  ;;  %v4866_v63 = vrot.slane %v4864_v35, 5  ;;  %v7855_v33 = vpop.f32.mrb[147].mxu1 }
 0x232   : > { %v7236_v8 = vcombine.high %v11176_v10, %v11180_v38  ;;  %v7179_v22 = vrot.slane %v11127_v50, 9  ;;  %v5520_v62 = vrot.slane %v5518_v61, 4  ;;  %v5521_v1 = vrot.slane %v6993_v60, 5  ;;  %v11844_v50 = vld [vmem:[#allocation9_spill] sm:$0xff] }
 0x233   : > { %v7969_v41 = vpop.f32.mrb[148].mxu0  ;;  %v2645_v37 = vadd.f32 %v7853_v48, %v11842_v59  ;;  %v7856_v55 = vadd.f32 %v7855_v33, %v7854_v36  ;;  %v4858_v32 = vrot.slane %v4856_v15, 5  ;;  %v11843_v44 = vcombine.low %v11074_v3, %v11080_v56  ;;  %v6996_v48 = vld [vmem:[%s8953_s20 + $0x1b0] sm:$0xff]  ;;  %v11845_v59 = vld [vmem:[#allocation10_spill] sm:$0xff] }
 0x234   : > { %v7970_v31 = vpop.f32.mrb[149].mxu0  ;;  %v4844_v21 = vrot.slane %v4843_v39, 4  ;;  %v4854_v35 = vrot.slane %v4853_v11, 4  ;;  %v4872_v23 = vrot.slane %v4870_v47, 5  ;;  %v4876_v52 = vrot.slane %v4874_v53, 4 }
 0x235   : > { %v7971_v42 = vadd.f32 %v7970_v31, %v7969_v41  ;;  %v7972_v13 = vpop.f32.mrb[150].mxu0  ;;  %5326 = vmatmul.mubr.bf16.gmra.mrb[252].mxu1 %v11843_v44  ;;  %v11199_v27 = vadd.f32 %v7965_v43, %v2645_v37  ;;  %v2646_v60 = vadd.f32 %v7856_v55, %v11844_v50  ;;  %v4867_v36 = vor.u32 %v4866_v63, %v4863_v12  ;;  %v8824_v44 = vld [vmem:[%s8953_s20 + $0x1c8] sm:$0xff] }
 0x236   : > { %v7973_v54 = vpop.f32.mrb[151].mxu0  ;;  %5333 = vmatprep.mubr.bf16.mxu1 %v7138_v26  ;;  %v7137_v15 = vcombine.low %v11124_v49, %v11132_v5  ;;  %v11207_v3 = vsel %vm9250_vm5, %v7179_v22, %v5518_v61  ;;  %v11211_v56 = vsel %vm9250_vm5, %v5520_v62, %v5521_v1  ;;  %v5525_v43 = vrot.slane %v11184_v58, 5  ;;  %v7857_v11 = vpop.f32.mrb[148].mxu1  ;;  %v8823_v22 = vld [vmem:[%s8953_s20 + $0x1c0] sm:$0xff] }
 0x237   : > { %v7974_v17 = vadd.f32 %v7973_v54, %v7972_v13  ;;  %v11214_v39 = vadd.f32 %v7968_v18, %v2646_v60  ;;  %v7139_v26 = vcombine.low %v11169_v28, %v11190_v57  ;;  %v7140_v49 = vcombine.high %v11169_v28, %v11190_v57  ;;  %v7002_v28 = vld [vmem:[%s8953_s20 + $0x1f0] sm:$0xff] }
 0x238   : > { %5912 = vmatmul.mubr.bf16.gmra.mrb[0].mxu0 %v7233_v51  ;;  %v7235_v5 = vcombine.low %v11176_v10, %v11180_v38  ;;  %v7858_v51 = vpop.f32.mrb[149].mxu1  ;;  %v11225_v61 = vsel %vm8978_vm2, %v4844_v21, %v11149_v30  ;;  %v11229_v18 = vsel %vm8978_vm2, %v4854_v35, %v4858_v32  ;;  %v4877_v58 = vor.u32 %v4876_v52, %v4872_v23 }
 0x239   : > { %5919 = vmatprep.mubr.bf16.mxu0 %v7236_v8  ;;  %v4880_v47 = vshll.u32 %v6996_v48, 16  ;;  %v7859_v53 = vadd.f32 %v7858_v51, %v7857_v11  ;;  %v7860_v41 = vpop.f32.mrb[150].mxu1  ;;  %v7238_v10 = vcombine.high %v11207_v3, %v11211_v56  ;;  %v4868_v38 = vrot.slane %v4867_v36, 4 }
 0x23a   : > { %v7180_v63 = vrot.slane %v11152_v40, 9  ;;  %v7861_v33 = vpop.f32.mrb[151].mxu1  ;;  %v5527_v30 = vrot.slane %v5525_v43, 4  ;;  %v5528_v8 = vrot.slane %v6996_v48, 5  ;;  %v4885_v62 = vshrl.u32 %v8823_v22, 16  ;;  %v11847_v48 = vld [vmem:[#allocation11_spill] sm:$0xff] }
 0x23b   : > { %v7975_v12 = vpop.f32.mrb[152].mxu0  ;;  %v4888_v1 = vshll.u32 %v8823_v22, 16  ;;  %v2647_v37 = vadd.f32 %v7859_v53, %v11845_v59  ;;  %v7862_v55 = vadd.f32 %v7861_v33, %v7860_v41  ;;  %v4894_v54 = vshll.u32 %v8824_v44, 16  ;;  %v11262_v33 = vld [vmem:[%s8953_s20 + $0x1e0] sm:$0xff] }
 0x23c   : > { %v7976_v31 = vpop.f32.mrb[153].mxu0  ;;  %v7237_v35 = vcombine.low %v11207_v3, %v11211_v56  ;;  %v4878_v40 = vrot.slane %v4877_v58, 4  ;;  %v4882_v52 = vrot.slane %v4880_v47, 5  ;;  %v4898_v50 = vshrl.u32 %v8824_v44, 16 }
 0x23d   : > { %v7977_v13 = vadd.f32 %v7976_v31, %v7975_v12  ;;  %v7978_v32 = vpop.f32.mrb[154].mxu0  ;;  %5334 = vmatmul.mubr.bf16.gmra.mrb[0].mxu1 %v7137_v15  ;;  %v11239_v60 = vadd.f32 %v7971_v42, %v2647_v37  ;;  %v2648_v36 = vadd.f32 %v7862_v55, %v11847_v48  ;;  %v5532_v51 = vrot.slane %v8824_v44, 5  ;;  %v11273_v55 = vld [vmem:[%s8953_s20 + $0x1e8] sm:$0xff] }
 0x23e   : > { %v7979_v21 = vpop.f32.mrb[155].mxu0  ;;  %5341 = vmatprep.mubr.bf16.mxu1 %v7140_v49  ;;  %v7142_v15 = vcombine.high %v11225_v61, %v11229_v18  ;;  %v11246_v53 = vsel %vm8978_vm2, %v4868_v38, %v4872_v23  ;;  %v11250_v3 = vsel %vm9250_vm5, %v7180_v63, %v5525_v43  ;;  %v4887_v42 = vrot.slane %v4885_v62, 4  ;;  %v7863_v58 = vpop.f32.mrb[152].mxu1 }
 0x23f   : > { %11846 = vst [vmem:[#allocation6_spill] sm:$0xff] %v11239_v60  ;;  %v7980_v11 = vadd.f32 %v7979_v21, %v7978_v32  ;;  %v11252_v56 = vadd.f32 %v7974_v17, %v2648_v36  ;;  %v11256_v49 = vsel %vm9250_vm5, %v5527_v30, %v5528_v8  ;;  %v4890_v47 = vrot.slane %v4888_v1, 5  ;;  %v7864_v12 = vpop.f32.mrb[153].mxu1 }
 0x240   : > { %5920 = vmatmul.mubr.bf16.gmra.mrb[4].mxu0 %v7235_v5  ;;  %v6999_v5 = vld [vmem:[%s8953_s20 + $0x1d0] sm:$0xff]  ;;  %v11259_v41 = vrot.slane %v4894_v54, 5  ;;  %v4900_v23 = vrot.slane %v4898_v50, 4  ;;  %v7181_v38 = vrot.slane %v8823_v22, 9  ;;  %v4909_v43 = vshrl.u32 %v11262_v33, 16 }
 0x241   : > { %11848 = vst [vmem:[#allocation7_spill] sm:$0xff] %v11252_v56  ;;  %5927 = vmatprep.mubr.bf16.mxu0 %v7238_v10  ;;  %v4912_v17 = vshll.u32 %v11262_v33, 16  ;;  %v7865_v63 = vadd.f32 %v7864_v12, %v7863_v58  ;;  %v7866_v10 = vpop.f32.mrb[154].mxu1  ;;  %v11268_v30 = vsel %vm8978_vm2, %v4878_v40, %v4882_v52  ;;  %v5534_v8 = vrot.slane %v5532_v51, 4  ;;  %v11849_v54 = vld [vmem:[#allocation12_spill] sm:$0xff] }
 0x242   : > { %v5535_v62 = vrot.slane %v6999_v5, 5  ;;  %v7867_v1 = vpop.f32.mrb[155].mxu1  ;;  %v7240_v22 = vcombine.high %v11250_v3, %v11256_v49  ;;  %v4904_v37 = vshll.u32 %v6999_v5, 16  ;;  %v4918_v32 = vshll.u32 %v11273_v55, 16 }
 0x243   : > { %v7981_v31 = vpop.f32.mrb[156].mxu0  ;;  %v4922_v44 = vshrl.u32 %v11273_v55, 16  ;;  %v2649_v21 = vadd.f32 %v7865_v63, %v11849_v54  ;;  %v7868_v50 = vadd.f32 %v7867_v1, %v7866_v10  ;;  %v4891_v48 = vor.u32 %v4890_v47, %v4887_v42  ;;  %v11850_v63 = vld [vmem:[#allocation13_spill] sm:$0xff]  ;;  %v11310_v54 = vld [vmem:[%s8953_s20 + $0x200] sm:$0xff] }
 0x244   : > { %v7982_v59 = vpop.f32.mrb[157].mxu0  ;;  %v4901_v58 = vor.u32 %v4900_v23, %v11259_v41  ;;  %v11284_v5 = vsel %vm9250_vm5, %v7181_v38, %v5532_v51  ;;  %v4911_v12 = vrot.slane %v4909_v43, 4  ;;  %v4914_v56 = vrot.slane %v4912_v17, 5 }
 0x245   : > { %v7983_v40 = vadd.f32 %v7982_v59, %v7981_v31  ;;  %v7984_v52 = vpop.f32.mrb[158].mxu0  ;;  %5342 = vmatmul.mubr.bf16.gmra.mrb[4].mxu1 %v7139_v26  ;;  %v11286_v60 = vadd.f32 %v7977_v13, %v2649_v21  ;;  %v2650_v10 = vadd.f32 %v7868_v50, %v11850_v63  ;;  %v11291_v42 = vsel %vm9250_vm5, %v5534_v8, %v5535_v62  ;;  %v11851_v21 = vld [vmem:[#allocation14_spill] sm:$0xff]  ;;  %v11325_v63 = vld [vmem:[%s8953_s20 + $0x208] sm:$0xff] }
 0x246   : > { %v7985_v36 = vpop.f32.mrb[159].mxu0  ;;  %5349 = vmatprep.mubr.bf16.mxu1 %v7142_v15  ;;  %v11294_v57 = vrot.slane %v4918_v32, 5  ;;  %v4924_v26 = vrot.slane %v4922_v44, 4  ;;  %v5539_v51 = vrot.slane %v11273_v55, 5  ;;  %v7869_v23 = vpop.f32.mrb[156].mxu1  ;;  %v7141_v13 = vcombine.low %v11225_v61, %v11229_v18 }
 0x247   : > { %v7986_v31 = vadd.f32 %v7985_v36, %v7984_v52  ;;  %v11297_v47 = vadd.f32 %v7980_v11, %v2650_v10  ;;  %v7144_v15 = vcombine.high %v11246_v53, %v11268_v30  ;;  %v7239_v38 = vcombine.low %v11250_v3, %v11256_v49 }
 0x248   : > { %5928 = vmatmul.mubr.bf16.gmra.mrb[8].mxu0 %v7237_v35  ;;  %v7870_v35 = vpop.f32.mrb[157].mxu1  ;;  %v4892_v43 = vrot.slane %v4891_v48, 4  ;;  %v4902_v17 = vrot.slane %v4901_v58, 4  ;;  %v4906_v8 = vrot.slane %v4904_v37, 5  ;;  %v7242_v11 = vcombine.high %v11284_v5, %v11291_v42 }
 0x249   : > { %5935 = vmatprep.mubr.bf16.mxu0 %v7240_v22  ;;  %v7871_v62 = vadd.f32 %v7870_v35, %v7869_v23  ;;  %v7872_v1 = vpop.f32.mrb[158].mxu1  ;;  %v4915_v55 = vor.u32 %v4914_v56, %v4911_v12  ;;  %v4928_v61 = vshll.u32 %v7002_v28, 16  ;;  %v7182_v18 = vrot.slane %v11262_v33, 9 }
 0x24a   : > { %v7873_v32 = vpop.f32.mrb[159].mxu1  ;;  %v4925_v3 = vor.u32 %v4924_v26, %v11294_v57  ;;  %v5541_v49 = vrot.slane %v5539_v51, 4  ;;  %v5542_v22 = vrot.slane %v7002_v28, 5  ;;  %v4933_v37 = vshrl.u32 %v11310_v54, 16  ;;  %v11852_v26 = vld [vmem:[#allocation15_spill] sm:$0xff] }
 0x24b   : > { %v8115_v59 = vpop.f32.mrb[160].mxu0  ;;  %v2651_v50 = vadd.f32 %v7871_v62, %v11851_v21  ;;  %v7874_v52 = vadd.f32 %v7873_v32, %v7872_v1  ;;  %v4936_v56 = vshll.u32 %v11310_v54, 16  ;;  %v11318_v58 = vsel %vm8978_vm2, %v4892_v43, %v11259_v41 }
 0x24c   : > { %v8116_v44 = vpop.f32.mrb[161].mxu0  ;;  %v11322_v12 = vsel %vm8978_vm2, %v4902_v17, %v4906_v8  ;;  %v4942_v10 = vshll.u32 %v11325_v63, 16  ;;  %v4916_v62 = vrot.slane %v4915_v55, 4  ;;  %v4926_v41 = vrot.slane %v4925_v3, 4 }
 0x24d   : > { %v8117_v48 = vadd.f32 %v8116_v44, %v8115_v59  ;;  %v8118_v36 = vpop.f32.mrb[162].mxu0  ;;  %5350 = vmatmul.mubr.bf16.gmra.mrb[8].mxu1 %v7141_v13  ;;  %v11328_v28 = vadd.f32 %v7983_v40, %v2651_v50  ;;  %v2652_v23 = vadd.f32 %v7874_v52, %v11852_v26  ;;  %v4946_v13 = vshrl.u32 %v11325_v63, 16  ;;  %v11853_v50 = vld [vmem:[#allocation16_spill] sm:$0xff] }
 0x24e   : > { %v8119_v33 = vpop.f32.mrb[163].mxu0  ;;  %5357 = vmatprep.mubr.bf16.mxu1 %v7144_v15  ;;  %v4930_v43 = vrot.slane %v4928_v61, 5  ;;  %v11334_v17 = vsel %vm9250_vm5, %v7182_v18, %v5539_v51  ;;  %v8003_v1 = vpop.f32.mrb[160].mxu1  ;;  %v11340_v40 = vsel %vm9250_vm5, %v5541_v49, %v5542_v22  ;;  %v4935_v15 = vrot.slane %v4933_v37, 4  ;;  %v7005_v18 = vld [vmem:[%s8953_s20 + $0x210] sm:$0xff] }
 0x24f   : > { %v8120_v35 = vadd.f32 %v8119_v33, %v8118_v36  ;;  %v11336_v8 = vadd.f32 %v7986_v31, %v2652_v23  ;;  %v4938_v59 = vrot.slane %v4936_v56, 5  ;;  %v8004_v32 = vpop.f32.mrb[161].mxu1  ;;  %v5546_v55 = vrot.slane %v11325_v63, 5 }
 0x250   : > { %5936 = vmatmul.mubr.bf16.gmra.mrb[12].mxu0 %v7239_v38  ;;  %v7143_v38 = vcombine.low %v11246_v53, %v11268_v30  ;;  %v8005_v61 = vadd.f32 %v8004_v32, %v8003_v1  ;;  %v8006_v44 = vpop.f32.mrb[162].mxu1  ;;  %v7146_v31 = vcombine.high %v11318_v58, %v11322_v12  ;;  %v4948_v3 = vrot.slane %v4946_v13, 4  ;;  %v11854_v13 = vld [vmem:[#allocation17_spill] sm:$0xff]  ;;  %v8829_v1 = vld [vmem:[%s8953_s20 + $0x220] sm:$0xff] }
 0x251   : > { %5943 = vmatprep.mubr.bf16.mxu0 %v7242_v11  ;;  %v11348_v11 = vrot.slane %v4942_v10, 5  ;;  %v8007_v49 = vpop.f32.mrb[163].mxu1  ;;  %v7241_v37 = vcombine.low %v11284_v5, %v11291_v42  ;;  %v11355_v53 = vsel %vm8978_vm2, %v4916_v62, %v11294_v57  ;;  %v11359_v30 = vsel %vm8978_vm2, %v4926_v41, %v4930_v43 }
 0x252   : > { %v7244_v21 = vcombine.high %v11334_v17, %v11340_v40  ;;  %v4033_v52 = vadd.f32 %v8005_v61, %v11853_v50  ;;  %v8008_v36 = vadd.f32 %v8007_v49, %v8006_v44  ;;  %v4939_v63 = vor.u32 %v4938_v59, %v4935_v15  ;;  %v8830_v59 = vld [vmem:[%s8953_s20 + $0x228] sm:$0xff] }
 0x253   : > { %v8121_v51 = vpop.f32.mrb[164].mxu0  ;;  %v4952_v42 = vshll.u32 %v7005_v18, 16  ;;  %v7183_v57 = vrot.slane %v11310_v54, 9  ;;  %v5548_v10 = vrot.slane %v5546_v55, 4  ;;  %v5549_v26 = vrot.slane %v7005_v18, 5 }
 0x254   : > { %v8122_v22 = vpop.f32.mrb[165].mxu0  ;;  %v11365_v23 = vadd.f32 %v8117_v48, %v4033_v52  ;;  %v4034_v62 = vadd.f32 %v8008_v36, %v11854_v13  ;;  %v4949_v43 = vor.u32 %v4948_v3, %v11348_v11  ;;  %v4957_v32 = vshrl.u32 %v8829_v1, 16 }
 0x255   : > { %v8123_v56 = vadd.f32 %v8122_v22, %v8121_v51  ;;  %v8124_v33 = vpop.f32.mrb[166].mxu0  ;;  %5358 = vmatmul.mubr.bf16.gmra.mrb[12].mxu1 %v7143_v38  ;;  %v4960_v15 = vshll.u32 %v8829_v1, 16  ;;  %v4966_v38 = vshll.u32 %v8830_v59, 16  ;;  %v4970_v61 = vshrl.u32 %v8830_v59, 16 }
 0x256   : > { %v8125_v5 = vpop.f32.mrb[167].mxu0  ;;  %5365 = vmatprep.mubr.bf16.mxu1 %v7146_v31  ;;  %v11371_v44 = vadd.f32 %v8120_v35, %v4034_v62  ;;  %v8009_v54 = vpop.f32.mrb[164].mxu1  ;;  %v7145_v48 = vcombine.low %v11318_v58, %v11322_v12  ;;  %v7243_v51 = vcombine.low %v11334_v17, %v11340_v40  ;;  %v7148_v18 = vcombine.high %v11355_v53, %v11359_v30 }
 0x257   : > { %v8126_v41 = vadd.f32 %v8125_v5, %v8124_v33  ;;  %v8010_v31 = vpop.f32.mrb[165].mxu1  ;;  %v11381_v3 = vsel %vm9250_vm5, %v7183_v57, %v5546_v55  ;;  %v11385_v35 = vsel %vm9250_vm5, %v5548_v10, %v5549_v26  ;;  %v5553_v49 = vrot.slane %v8830_v59, 5  ;;  %v11855_v55 = vld [vmem:[#allocation18_spill] sm:$0xff]  ;;  %v7008_v59 = vld [vmem:[%s8953_s20 + $0x230] sm:$0xff] }
 0x258   : > { %5944 = vmatmul.mubr.bf16.gmra.mrb[16].mxu0 %v7241_v37  ;;  %v8011_v22 = vadd.f32 %v8010_v31, %v8009_v54  ;;  %v8012_v37 = vpop.f32.mrb[166].mxu1  ;;  %v4940_v12 = vrot.slane %v4939_v63, 4  ;;  %v4950_v17 = vrot.slane %v4949_v43, 4  ;;  %v4954_v40 = vrot.slane %v4952_v42, 5 }
 0x259   : > { %5951 = vmatprep.mubr.bf16.mxu0 %v7244_v21  ;;  %v8013_v21 = vpop.f32.mrb[167].mxu1  ;;  %v4959_v52 = vrot.slane %v4957_v32, 4  ;;  %v4962_v36 = vrot.slane %v4960_v15, 5  ;;  %v4968_v33 = vrot.slane %v4966_v38, 5  ;;  %v4972_v5 = vrot.slane %v4970_v61, 4  ;;  %v11856_v32 = vld [vmem:[#allocation19_spill] sm:$0xff] }
 0x25a   : > { %v4035_v57 = vadd.f32 %v8011_v22, %v11855_v55  ;;  %v8014_v13 = vadd.f32 %v8013_v21, %v8012_v37  ;;  %v7246_v26 = vcombine.high %v11381_v3, %v11385_v35  ;;  %v7184_v63 = vrot.slane %v8829_v1, 9 }
 0x25b   : > { %v8127_v58 = vpop.f32.mrb[168].mxu0  ;;  %v5555_v43 = vrot.slane %v5553_v49, 4  ;;  %v5556_v42 = vrot.slane %v7008_v59, 5  ;;  %v4945_v61 = vsel %vm8978_vm2, %v4940_v12, %v11348_v11  ;;  %v4955_v22 = vsel %vm8978_vm2, %v4950_v17, %v4954_v40 }
 0x25c   : > { %v8128_v50 = vpop.f32.mrb[169].mxu0  ;;  %v11391_v31 = vadd.f32 %v8123_v56, %v4035_v57  ;;  %v4036_v15 = vadd.f32 %v8014_v13, %v11856_v32  ;;  %v4963_v37 = vor.u32 %v4962_v36, %v4959_v52  ;;  %v7150_v40 = vcombine.high %v4945_v61, %v4955_v22  ;;  %v11857_v13 = vld [vmem:[#allocation20_spill] sm:$0xff] }
 0x25d   : > { %v8129_v62 = vadd.f32 %v8128_v50, %v8127_v58  ;;  %v8130_v10 = vpop.f32.mrb[170].mxu0  ;;  %5366 = vmatmul.mubr.bf16.gmra.mrb[16].mxu1 %v7145_v48  ;;  %v4973_v48 = vor.u32 %v4972_v5, %v4968_v33  ;;  %v4976_v58 = vshll.u32 %v7008_v59, 16  ;;  %v7147_v50 = vcombine.low %v11355_v53, %v11359_v30 }
 0x25e   : > { %v8131_v54 = vpop.f32.mrb[171].mxu0  ;;  %5373 = vmatprep.mubr.bf16.mxu1 %v7148_v18  ;;  %v11399_v1 = vadd.f32 %v8126_v41, %v4036_v15  ;;  %v8015_v21 = vpop.f32.mrb[168].mxu1  ;;  %v5554_v18 = vsel %vm9250_vm5, %v7184_v63, %v5553_v49  ;;  %v5557_v11 = vsel %vm9250_vm5, %v5555_v43, %v5556_v42  ;;  %v7245_v41 = vcombine.low %v11381_v3, %v11385_v35 }
 0x25f   : > { %v8132_v38 = vadd.f32 %v8131_v54, %v8130_v10  ;;  %v8016_v56 = vpop.f32.mrb[169].mxu1  ;;  %v4964_v5 = vrot.slane %v4963_v37, 4  ;;  %v4974_v55 = vrot.slane %v4973_v48, 4  ;;  %v4978_v57 = vrot.slane %v4976_v58, 5  ;;  %v11858_v54 = vld [vmem:[#allocation21_spill] sm:$0xff] }
 0x260   : > { %5952 = vmatmul.mubr.bf16.gmra.mrb[20].mxu0 %v7243_v51  ;;  %v8017_v51 = vadd.f32 %v8016_v56, %v8015_v21  ;;  %v8018_v12 = vpop.f32.mrb[170].mxu1  ;;  %v7149_v37 = vcombine.low %v4945_v61, %v4955_v22 }
 0x261   : > { %5959 = vmatprep.mubr.bf16.mxu0 %v7246_v26  ;;  %v8019_v52 = vpop.f32.mrb[171].mxu1  ;;  %v7248_v26 = vcombine.high %v5554_v18, %v5557_v11  ;;  %v4969_v3 = vsel %vm8978_vm2, %v4964_v5, %v4968_v33  ;;  %v4979_v35 = vsel %vm8978_vm2, %v4974_v55, %v4978_v57 }
 0x262   : > { %v4037_v53 = vadd.f32 %v8017_v51, %v11857_v13  ;;  %v8020_v30 = vadd.f32 %v8019_v52, %v8018_v12  ;;  %v7152_v21 = vcombine.high %v4969_v3, %v4979_v35  ;;  %v7247_v51 = vcombine.low %v5554_v18, %v5557_v11 }
 0x263   : > { %v8133_v17 = vpop.f32.mrb[172].mxu0  ;;  %v7151_v5 = vcombine.low %v4969_v3, %v4979_v35 }
 0x264   : > { %v8134_v36 = vpop.f32.mrb[173].mxu0  ;;  %v11410_v59 = vadd.f32 %v8129_v62, %v4037_v53  ;;  %v4038_v63 = vadd.f32 %v8020_v30, %v11858_v54 }
 0x265   : > { %v8135_v10 = vadd.f32 %v8134_v36, %v8133_v17  ;;  %v8136_v49 = vpop.f32.mrb[174].mxu0  ;;  %5374 = vmatmul.mubr.bf16.gmra.mrb[20].mxu1 %v7147_v50 }
 0x266   : > { %v8137_v45 = vpop.f32.mrb[175].mxu0  ;;  %5381 = vmatprep.mubr.bf16.mxu1 %v7150_v40  ;;  %v11417_v42 = vadd.f32 %v8132_v38, %v4038_v63  ;;  %v8021_v32 = vpop.f32.mrb[172].mxu1 }
 0x267   : > { %v8138_v43 = vadd.f32 %v8137_v45, %v8136_v49  ;;  %v8022_v15 = vpop.f32.mrb[173].mxu1 }
 0x268   : > { %5960 = vmatmul.mubr.bf16.gmra.mrb[24].mxu0 %v7245_v41  ;;  %v8023_v48 = vadd.f32 %v8022_v15, %v8021_v32  ;;  %v8024_v62 = vpop.f32.mrb[174].mxu1 }
 0x269   : > { %5967 = vmatprep.mubr.bf16.mxu0 %v7248_v26  ;;  %v8025_v56 = vpop.f32.mrb[175].mxu1 }
 0x26a   : > { %v4039_v12 = vadd.f32 %v8023_v48, %v10747_v0  ;;  %v8026_v17 = vadd.f32 %v8025_v56, %v8024_v62 }
 0x26b   : > { %v8139_v58 = vpop.f32.mrb[176].mxu0 }
 0x26c   : > { %v8140_v50 = vpop.f32.mrb[177].mxu0  ;;  %v11420_v38 = vadd.f32 %v8135_v10, %v4039_v12  ;;  %v4040_v52 = vadd.f32 %v8026_v17, %v10758_v6 }
 0x26d   : > { %v8141_v33 = vadd.f32 %v8140_v50, %v8139_v58  ;;  %v8142_v40 = vpop.f32.mrb[178].mxu0  ;;  %5382 = vmatmul.mubr.bf16.gmra.mrb[24].mxu1 %v7149_v37 }
 0x26e   : > { %v8143_v34 = vpop.f32.mrb[179].mxu0  ;;  %5389 = vmatprep.mubr.bf16.mxu1 %v7152_v21  ;;  %v11423_v61 = vadd.f32 %v8138_v43, %v4040_v52  ;;  %v8027_v22 = vpop.f32.mrb[176].mxu1 }
 0x26f   : > { %v8144_v36 = vadd.f32 %v8143_v34, %v8142_v40  ;;  %v8028_v41 = vpop.f32.mrb[177].mxu1 }
 0x270   : > { %5968 = vmatmul.mubr.bf16.gmra.mrb[28].mxu0 %v7247_v51  ;;  %v8029_v18 = vadd.f32 %v8028_v41, %v8027_v22  ;;  %v8030_v11 = vpop.f32.mrb[178].mxu1 }
 0x271   : > { %v8031_v55 = vpop.f32.mrb[179].mxu1 }
 0x272   : > { %v4041_v13 = vadd.f32 %v8029_v18, %v10808_v25  ;;  %v8032_v53 = vadd.f32 %v8031_v55, %v8030_v11 }
 0x273   : > { %v8145_v0 = vpop.f32.mrb[180].mxu0 }
 0x274   : > { %v8146_v57 = vpop.f32.mrb[181].mxu0  ;;  %v11426_v49 = vadd.f32 %v8141_v33, %v4041_v13  ;;  %v4042_v26 = vadd.f32 %v8032_v53, %v10815_v2 }
 0x275   : > { %v8147_v30 = vadd.f32 %v8146_v57, %v8145_v0  ;;  %v8148_v10 = vpop.f32.mrb[182].mxu0  ;;  %5390 = vmatmul.mubr.bf16.gmra.mrb[28].mxu1 %v7151_v5 }
 0x276   : > { %v8149_v6 = vpop.f32.mrb[183].mxu0  ;;  %v11429_v54 = vadd.f32 %v8144_v36, %v4042_v26  ;;  %v8033_v63 = vpop.f32.mrb[180].mxu1 }
 0x277   : > { %v8150_v45 = vadd.f32 %v8149_v6, %v8148_v10  ;;  %v8034_v43 = vpop.f32.mrb[181].mxu1 }
 0x278   : > { %v8035_v3 = vadd.f32 %v8034_v43, %v8033_v63  ;;  %v8036_v35 = vpop.f32.mrb[182].mxu1 }
 0x279   : > { %v8037_v15 = vpop.f32.mrb[183].mxu1 }
 0x27a   : > { %v4043_v25 = vadd.f32 %v8035_v3, %v10861_v4  ;;  %v8038_v48 = vadd.f32 %v8037_v15, %v8036_v35 }
 0x27b   : > { %v8151_v32 = vpop.f32.mrb[184].mxu0 }
 0x27c   : > { %v8152_v37 = vpop.f32.mrb[185].mxu0  ;;  %v11432_v56 = vadd.f32 %v8147_v30, %v4043_v25  ;;  %v4044_v2 = vadd.f32 %v8038_v48, %v10873_v20 }
 0x27d   : > { %v8153_v62 = vadd.f32 %v8152_v37, %v8151_v32  ;;  %v8154_v58 = vpop.f32.mrb[186].mxu0 }
 0x27e   : > { %v8155_v21 = vpop.f32.mrb[187].mxu0  ;;  %v11435_v51 = vadd.f32 %v8150_v45, %v4044_v2  ;;  %v8039_v12 = vpop.f32.mrb[184].mxu1 }
 0x27f   : > { %v8156_v50 = vadd.f32 %v8155_v21, %v8154_v58  ;;  %v8040_v17 = vpop.f32.mrb[185].mxu1 }
 0x280   : > { %v8041_v33 = vadd.f32 %v8040_v17, %v8039_v12  ;;  %v8042_v40 = vpop.f32.mrb[186].mxu1 }
 0x281   : > { %v8043_v52 = vpop.f32.mrb[187].mxu1 }
 0x282   : > { %v4045_v4 = vadd.f32 %v8041_v33, %v10913_v19  ;;  %v8044_v22 = vadd.f32 %v8043_v52, %v8042_v40 }
 0x283   : > { %v8157_v34 = vpop.f32.mrb[188].mxu0 }
 0x284   : > { %v8158_v36 = vpop.f32.mrb[189].mxu0  ;;  %v11438_v11 = vadd.f32 %v8153_v62, %v4045_v4  ;;  %v4046_v20 = vadd.f32 %v8044_v22, %v10924_v7 }
 0x285   : > { %v8159_v41 = vadd.f32 %v8158_v36, %v8157_v34  ;;  %v8160_v5 = vpop.f32.mrb[190].mxu0 }
 0x286   : > { %v8161_v18 = vpop.f32.mrb[191].mxu0  ;;  %v11441_v55 = vadd.f32 %v8156_v50, %v4046_v20  ;;  %v8045_v57 = vpop.f32.mrb[188].mxu1 }
 0x287   : > { %v8162_v0 = vadd.f32 %v8161_v18, %v8160_v5  ;;  %v8046_v13 = vpop.f32.mrb[189].mxu1 }
 0x288   : > { %v8047_v53 = vadd.f32 %v8046_v13, %v8045_v57  ;;  %v8048_v30 = vpop.f32.mrb[190].mxu1 }
 0x289   : > { %v8049_v6 = vpop.f32.mrb[191].mxu1 }
 0x28a   : > { %v4047_v19 = vadd.f32 %v8047_v53, %v10952_v24  ;;  %v8050_v45 = vadd.f32 %v8049_v6, %v8048_v30 }
 0x28b   : > { %v8163_v10 = vpop.f32.mrb[192].mxu0 }
 0x28c   : > { %v8164_v26 = vpop.f32.mrb[193].mxu0  ;;  %v11444_v35 = vadd.f32 %v8159_v41, %v4047_v19  ;;  %v4048_v7 = vadd.f32 %v8050_v45, %v10968_v14 }
 0x28d   : > { %v8165_v63 = vadd.f32 %v8164_v26, %v8163_v10  ;;  %v8166_v43 = vpop.f32.mrb[194].mxu0 }
 0x28e   : > { %v8167_v3 = vpop.f32.mrb[195].mxu0  ;;  %v11447_v15 = vadd.f32 %v8162_v0, %v4048_v7  ;;  %v8051_v37 = vpop.f32.mrb[192].mxu1 }
 0x28f   : > { %v8168_v32 = vadd.f32 %v8167_v3, %v8166_v43  ;;  %v8052_v25 = vpop.f32.mrb[193].mxu1 }
 0x290   : > { %v8053_v48 = vadd.f32 %v8052_v25, %v8051_v37  ;;  %v8054_v62 = vpop.f32.mrb[194].mxu1 }
 0x291   : > { %v8055_v21 = vpop.f32.mrb[195].mxu1 }
 0x292   : > { %v4049_v24 = vadd.f32 %v8053_v48, %v11002_v29  ;;  %v8056_v50 = vadd.f32 %v8055_v21, %v8054_v62  ;;  %v11860_v21 = vld [vmem:[#allocation3_spill] sm:$0xff] }
 0x293   : > { %v8169_v58 = vpop.f32.mrb[196].mxu0 }
 0x294   : > { %v8170_v2 = vpop.f32.mrb[197].mxu0  ;;  %v11450_v40 = vadd.f32 %v8165_v63, %v4049_v24  ;;  %v4050_v14 = vadd.f32 %v8056_v50, %v11016_v16 }
 0x295   : > { %v8171_v12 = vadd.f32 %v8170_v2, %v8169_v58  ;;  %v8172_v17 = vpop.f32.mrb[198].mxu0 }
 0x296   : > { %v8173_v33 = vpop.f32.mrb[199].mxu0  ;;  %v11453_v52 = vadd.f32 %v8168_v32, %v4050_v14  ;;  %v8057_v36 = vpop.f32.mrb[196].mxu1  ;;  %v11859_v32 = vld [vmem:[#allocation2_spill] sm:$0xff] }
 0x297   : > { %v8174_v34 = vadd.f32 %v8173_v33, %v8172_v17  ;;  %v8058_v4 = vpop.f32.mrb[197].mxu1 }
 0x298   : > { %v8059_v22 = vadd.f32 %v8058_v4, %v8057_v36  ;;  %v8060_v41 = vpop.f32.mrb[198].mxu1  ;;  %v11861_v4 = vld [vmem:[#allocation4_spill] sm:$0xff] }
 0x299   : > { %v8061_v18 = vpop.f32.mrb[199].mxu1 }
 0x29a   : > { %v4051_v29 = vadd.f32 %v8059_v22, %v11053_v46  ;;  %v8062_v0 = vadd.f32 %v8061_v18, %v8060_v41 }
 0x29b   : > { %v8175_v5 = vpop.f32.mrb[200].mxu0 }
 0x29c   : > { %v8176_v20 = vpop.f32.mrb[201].mxu0  ;;  %v11456_v30 = vadd.f32 %v8171_v12, %v4051_v29  ;;  %v4052_v16 = vadd.f32 %v8062_v0, %v11069_v9  ;;  %v11862_v0 = vld [vmem:[#allocation5_spill] sm:$0xff] }
 0x29d   : > { %v8177_v57 = vadd.f32 %v8176_v20, %v8175_v5  ;;  %v8178_v13 = vpop.f32.mrb[202].mxu0 }
 0x29e   : > { %v8179_v53 = vpop.f32.mrb[203].mxu0  ;;  %v11459_v6 = vadd.f32 %v8174_v34, %v4052_v16  ;;  %v8063_v26 = vpop.f32.mrb[200].mxu1 }
 0x29f   : > { %v8180_v10 = vadd.f32 %v8179_v53, %v8178_v13  ;;  %v8064_v19 = vpop.f32.mrb[201].mxu1 }
 0x2a0   : > { %v8065_v45 = vadd.f32 %v8064_v19, %v8063_v26  ;;  %v8066_v63 = vpop.f32.mrb[202].mxu1 }
 0x2a1   : > { %v8067_v3 = vpop.f32.mrb[203].mxu1 }
 0x2a2   : > { %v4053_v46 = vadd.f32 %v8065_v45, %v11859_v32  ;;  %v8068_v37 = vadd.f32 %v8067_v3, %v8066_v63 }
 0x2a3   : > { %v8181_v43 = vpop.f32.mrb[204].mxu0 }
 0x2a4   : > { %v8182_v7 = vpop.f32.mrb[205].mxu0  ;;  %v11462_v58 = vadd.f32 %v8177_v57, %v4053_v46  ;;  %v4054_v9 = vadd.f32 %v8068_v37, %v11860_v21 }
 0x2a5   : > { %v8183_v25 = vadd.f32 %v8182_v7, %v8181_v43  ;;  %v8184_v48 = vpop.f32.mrb[206].mxu0 }
 0x2a6   : > { %v8185_v62 = vpop.f32.mrb[207].mxu0  ;;  %v11465_v24 = vadd.f32 %v8180_v10, %v4054_v9  ;;  %v8069_v50 = vpop.f32.mrb[204].mxu1 }
 0x2a7   : > { %v8186_v2 = vadd.f32 %v8185_v62, %v8184_v48  ;;  %v8070_v12 = vpop.f32.mrb[205].mxu1 }
 0x2a8   : > { %v8071_v17 = vadd.f32 %v8070_v12, %v8069_v50  ;;  %v8072_v33 = vpop.f32.mrb[206].mxu1 }
 0x2a9   : > { %v8073_v34 = vpop.f32.mrb[207].mxu1 }
 0x2aa   : > { %v4055_v22 = vadd.f32 %v8071_v17, %v11861_v4  ;;  %v8074_v41 = vadd.f32 %v8073_v34, %v8072_v33  ;;  %v11863_v34 = vld [vmem:[#allocation6_spill] sm:$0xff] }
 0x2ab   : > { %v8187_v14 = vpop.f32.mrb[208].mxu0 }
 0x2ac   : > { %v8188_v36 = vpop.f32.mrb[209].mxu0  ;;  %v11468_v29 = vadd.f32 %v8183_v25, %v4055_v22  ;;  %v4056_v57 = vadd.f32 %v8074_v41, %v11862_v0 }
 0x2ad   : > { %v8189_v5 = vadd.f32 %v8188_v36, %v8187_v14  ;;  %v8190_v18 = vpop.f32.mrb[210].mxu0 }
 0x2ae   : > { %v8191_v20 = vpop.f32.mrb[211].mxu0  ;;  %v11471_v53 = vadd.f32 %v8186_v2, %v4056_v57  ;;  %v8075_v16 = vpop.f32.mrb[208].mxu1 }
 0x2af   : > { %v8192_v13 = vadd.f32 %v8191_v20, %v8190_v18  ;;  %v8076_v10 = vpop.f32.mrb[209].mxu1  ;;  %v11864_v18 = vld [vmem:[#allocation7_spill] sm:$0xff] }
 0x2b0   : > { %v8077_v26 = vadd.f32 %v8076_v10, %v8075_v16  ;;  %v8078_v19 = vpop.f32.mrb[210].mxu1 }
 0x2b1   : > { %v8079_v63 = vpop.f32.mrb[211].mxu1 }
 0x2b2   : > { %v4057_v3 = vadd.f32 %v8077_v26, %v11199_v27  ;;  %v8080_v7 = vadd.f32 %v8079_v63, %v8078_v19 }
 0x2b3   : > { %v8193_v45 = vpop.f32.mrb[212].mxu0 }
 0x2b4   : > { %v8194_v43 = vpop.f32.mrb[213].mxu0  ;;  %v11474_v25 = vadd.f32 %v8189_v5, %v4057_v3  ;;  %v4058_v48 = vadd.f32 %v8080_v7, %v11214_v39 }
 0x2b5   : > { %v8195_v32 = vadd.f32 %v8194_v43, %v8193_v45  ;;  %v8196_v46 = vpop.f32.mrb[214].mxu0 }
 0x2b6   : > { %v8197_v37 = vpop.f32.mrb[215].mxu0  ;;  %v11477_v21 = vadd.f32 %v8192_v13, %v4058_v48  ;;  %v8081_v9 = vpop.f32.mrb[212].mxu1 }
 0x2b7   : > { %v8198_v62 = vadd.f32 %v8197_v37, %v8196_v46  ;;  %v8082_v2 = vpop.f32.mrb[213].mxu1 }
 0x2b8   : > { %v8083_v50 = vadd.f32 %v8082_v2, %v8081_v9  ;;  %v8084_v12 = vpop.f32.mrb[214].mxu1 }
 0x2b9   : > { %v8085_v33 = vpop.f32.mrb[215].mxu1 }
 0x2ba   : > { %v4059_v27 = vadd.f32 %v8083_v50, %v11863_v34  ;;  %v8086_v36 = vadd.f32 %v8085_v33, %v8084_v12 }
 0x2bb   : > { %v8199_v17 = vpop.f32.mrb[216].mxu0 }
 0x2bc   : > { %v8200_v14 = vpop.f32.mrb[217].mxu0  ;;  %v11480_v5 = vadd.f32 %v8195_v32, %v4059_v27  ;;  %v4060_v39 = vadd.f32 %v8086_v36, %v11864_v18 }
 0x2bd   : > { %v8201_v4 = vadd.f32 %v8200_v14, %v8199_v17  ;;  %v8202_v22 = vpop.f32.mrb[218].mxu0 }
 0x2be   : > { %v8203_v41 = vpop.f32.mrb[219].mxu0  ;;  %v11483_v0 = vadd.f32 %v8198_v62, %v4060_v39 }
 0x2bf   : > { %v8204_v20 = vadd.f32 %v8203_v41, %v8202_v22  ;;  %v8087_v57 = vpop.f32.mrb[216].mxu1 }
 0x2c0   : > { %v8088_v13 = vpop.f32.mrb[217].mxu1 }
 0x2c1   : > { %v8089_v16 = vadd.f32 %v8088_v13, %v8087_v57  ;;  %v8090_v10 = vpop.f32.mrb[218].mxu1 }
 0x2c2   : > { %v8091_v19 = vpop.f32.mrb[219].mxu1 }
 0x2c3   : > { %v8205_v26 = vpop.f32.mrb[220].mxu0  ;;  %v4061_v63 = vadd.f32 %v8089_v16, %v11286_v60  ;;  %v8092_v43 = vadd.f32 %v8091_v19, %v8090_v10 }
 0x2c4   : > { %v8206_v45 = vpop.f32.mrb[221].mxu0 }
 0x2c5   : > { %v8207_v3 = vadd.f32 %v8206_v45, %v8205_v26  ;;  %v8208_v7 = vpop.f32.mrb[222].mxu0  ;;  %v11486_v32 = vadd.f32 %v8201_v4, %v4061_v63  ;;  %v4062_v37 = vadd.f32 %v8092_v43, %v11297_v47 }
 0x2c6   : > { %v8209_v46 = vpop.f32.mrb[223].mxu0 }
 0x2c7   : > { %v8210_v48 = vadd.f32 %v8209_v46, %v8208_v7  ;;  %v11489_v62 = vadd.f32 %v8204_v20, %v4062_v37 }
 0x2c8   : > { %v8093_v9 = vpop.f32.mrb[220].mxu1 }
 0x2c9   : > { %v8094_v2 = vpop.f32.mrb[221].mxu1 }
 0x2ca   : > { %v8095_v50 = vadd.f32 %v8094_v2, %v8093_v9  ;;  %v8096_v12 = vpop.f32.mrb[222].mxu1 }
 0x2cb   : > { %v8339_v17 = vpop.f32.mrb[224].mxu0  ;;  %v8097_v33 = vpop.f32.mrb[223].mxu1 }
 0x2cc   : > { %v8340_v14 = vpop.f32.mrb[225].mxu0  ;;  %v4063_v60 = vadd.f32 %v8095_v50, %v11328_v28  ;;  %v8098_v34 = vadd.f32 %v8097_v33, %v8096_v12 }
 0x2cd   : > { %v8341_v27 = vadd.f32 %v8340_v14, %v8339_v17  ;;  %v8342_v36 = vpop.f32.mrb[226].mxu0 }
 0x2ce   : > { %v8343_v22 = vpop.f32.mrb[227].mxu0  ;;  %v11492_v4 = vadd.f32 %v8207_v3, %v4063_v60  ;;  %v4064_v47 = vadd.f32 %v8098_v34, %v11336_v8 }
 0x2cf   : > { %v8344_v41 = vadd.f32 %v8343_v22, %v8342_v36 }
 0x2d0   : > { %v11495_v18 = vadd.f32 %v8210_v48, %v4064_v47  ;;  %v8227_v39 = vpop.f32.mrb[224].mxu1 }
 0x2d1   : > { %v8228_v20 = vpop.f32.mrb[225].mxu1 }
 0x2d2   : > { %v8229_v57 = vadd.f32 %v8228_v20, %v8227_v39  ;;  %v8230_v13 = vpop.f32.mrb[226].mxu1 }
 0x2d3   : > { %v8345_v16 = vpop.f32.mrb[228].mxu0  ;;  %v8231_v10 = vpop.f32.mrb[227].mxu1 }
 0x2d4   : > { %v8346_v26 = vpop.f32.mrb[229].mxu0  ;;  %v5398_v28 = vadd.f32 %v8229_v57, %v11365_v23  ;;  %v8232_v19 = vadd.f32 %v8231_v10, %v8230_v13 }
 0x2d5   : > { %v8347_v45 = vadd.f32 %v8346_v26, %v8345_v16  ;;  %v8348_v63 = vpop.f32.mrb[230].mxu0 }
 0x2d6   : > { %v8349_v43 = vpop.f32.mrb[231].mxu0  ;;  %v11498_v3 = vadd.f32 %v8341_v27, %v5398_v28  ;;  %v5399_v8 = vadd.f32 %v8232_v19, %v11371_v44 }
 0x2d7   : > { %v8350_v7 = vadd.f32 %v8349_v43, %v8348_v63 }
 0x2d8   : > { %v11501_v46 = vadd.f32 %v8344_v41, %v5399_v8  ;;  %v8233_v37 = vpop.f32.mrb[228].mxu1 }
 0x2d9   : > { %v8234_v48 = vpop.f32.mrb[229].mxu1 }
 0x2da   : > { %v8235_v9 = vadd.f32 %v8234_v48, %v8233_v37  ;;  %v8236_v2 = vpop.f32.mrb[230].mxu1 }
 0x2db   : > { %v8351_v50 = vpop.f32.mrb[232].mxu0  ;;  %v8237_v12 = vpop.f32.mrb[231].mxu1 }
 0x2dc   : > { %v8352_v17 = vpop.f32.mrb[233].mxu0  ;;  %v5400_v23 = vadd.f32 %v8235_v9, %v11391_v31  ;;  %v8238_v33 = vadd.f32 %v8237_v12, %v8236_v2 }
 0x2dd   : > { %v8353_v14 = vadd.f32 %v8352_v17, %v8351_v50  ;;  %v8354_v60 = vpop.f32.mrb[234].mxu0 }
 0x2de   : > { %v8355_v34 = vpop.f32.mrb[235].mxu0  ;;  %v11504_v27 = vadd.f32 %v8347_v45, %v5400_v23  ;;  %v5401_v44 = vadd.f32 %v8238_v33, %v11399_v1 }
 0x2df   : > { %v8356_v36 = vadd.f32 %v8355_v34, %v8354_v60 }
 0x2e0   : > { %v11507_v22 = vadd.f32 %v8350_v7, %v5401_v44  ;;  %v8239_v47 = vpop.f32.mrb[232].mxu1 }
 0x2e1   : > { %v8240_v41 = vpop.f32.mrb[233].mxu1 }
 0x2e2   : > { %v8241_v39 = vadd.f32 %v8240_v41, %v8239_v47  ;;  %v8242_v20 = vpop.f32.mrb[234].mxu1 }
 0x2e3   : > { %v8357_v57 = vpop.f32.mrb[236].mxu0  ;;  %v8243_v13 = vpop.f32.mrb[235].mxu1 }
 0x2e4   : > { %v8358_v16 = vpop.f32.mrb[237].mxu0  ;;  %v5402_v31 = vadd.f32 %v8241_v39, %v11410_v59  ;;  %v8244_v10 = vadd.f32 %v8243_v13, %v8242_v20 }
 0x2e5   : > { %v8359_v26 = vadd.f32 %v8358_v16, %v8357_v57  ;;  %v8360_v28 = vpop.f32.mrb[238].mxu0 }
 0x2e6   : > { %v8361_v19 = vpop.f32.mrb[239].mxu0  ;;  %v11510_v45 = vadd.f32 %v8353_v14, %v5402_v31  ;;  %v5403_v1 = vadd.f32 %v8244_v10, %v11417_v42 }
 0x2e7   : > { %v8362_v63 = vadd.f32 %v8361_v19, %v8360_v28 }
 0x2e8   : > { %v11513_v43 = vadd.f32 %v8356_v36, %v5403_v1  ;;  %v8245_v8 = vpop.f32.mrb[236].mxu1 }
 0x2e9   : > { %v8246_v7 = vpop.f32.mrb[237].mxu1 }
 0x2ea   : > { %v8247_v37 = vadd.f32 %v8246_v7, %v8245_v8  ;;  %v8248_v48 = vpop.f32.mrb[238].mxu1 }
 0x2eb   : > { %v8363_v9 = vpop.f32.mrb[240].mxu0  ;;  %v8249_v2 = vpop.f32.mrb[239].mxu1 }
 0x2ec   : > { %v8364_v50 = vpop.f32.mrb[241].mxu0  ;;  %v5404_v59 = vadd.f32 %v8247_v37, %v11420_v38  ;;  %v8250_v12 = vadd.f32 %v8249_v2, %v8248_v48 }
 0x2ed   : > { %v8365_v17 = vadd.f32 %v8364_v50, %v8363_v9  ;;  %v8366_v23 = vpop.f32.mrb[242].mxu0 }
 0x2ee   : > { %v8367_v33 = vpop.f32.mrb[243].mxu0  ;;  %v11516_v14 = vadd.f32 %v8359_v26, %v5404_v59  ;;  %v5405_v42 = vadd.f32 %v8250_v12, %v11423_v61 }
 0x2ef   : > { %v8368_v60 = vadd.f32 %v8367_v33, %v8366_v23 }
 0x2f0   : > { %v11519_v34 = vadd.f32 %v8362_v63, %v5405_v42  ;;  %v8251_v44 = vpop.f32.mrb[240].mxu1 }
 0x2f1   : > { %v8252_v36 = vpop.f32.mrb[241].mxu1 }
 0x2f2   : > { %v8253_v47 = vadd.f32 %v8252_v36, %v8251_v44  ;;  %v8254_v41 = vpop.f32.mrb[242].mxu1 }
 0x2f3   : > { %v8369_v39 = vpop.f32.mrb[244].mxu0  ;;  %v8255_v20 = vpop.f32.mrb[243].mxu1 }
 0x2f4   : > { %v8370_v57 = vpop.f32.mrb[245].mxu0  ;;  %v5406_v38 = vadd.f32 %v8253_v47, %v11426_v49  ;;  %v8256_v13 = vadd.f32 %v8255_v20, %v8254_v41 }
 0x2f5   : > { %v8371_v16 = vadd.f32 %v8370_v57, %v8369_v39  ;;  %v8372_v31 = vpop.f32.mrb[246].mxu0 }
 0x2f6   : > { %v8373_v10 = vpop.f32.mrb[247].mxu0  ;;  %v11522_v26 = vadd.f32 %v8365_v17, %v5406_v38  ;;  %v5407_v61 = vadd.f32 %v8256_v13, %v11429_v54 }
 0x2f7   : > { %v8374_v28 = vadd.f32 %v8373_v10, %v8372_v31 }
 0x2f8   : > { %v11525_v19 = vadd.f32 %v8368_v60, %v5407_v61  ;;  %v8257_v1 = vpop.f32.mrb[244].mxu1 }
 0x2f9   : > { %v8258_v63 = vpop.f32.mrb[245].mxu1 }
 0x2fa   : > { %v8259_v8 = vadd.f32 %v8258_v63, %v8257_v1  ;;  %v8260_v7 = vpop.f32.mrb[246].mxu1 }
 0x2fb   : > { %v8375_v37 = vpop.f32.mrb[248].mxu0  ;;  %v8261_v48 = vpop.f32.mrb[247].mxu1 }
 0x2fc   : > { %v8376_v9 = vpop.f32.mrb[249].mxu0  ;;  %v5408_v49 = vadd.f32 %v8259_v8, %v11432_v56  ;;  %v8262_v2 = vadd.f32 %v8261_v48, %v8260_v7 }
 0x2fd   : > { %v8377_v50 = vadd.f32 %v8376_v9, %v8375_v37  ;;  %v8378_v59 = vpop.f32.mrb[250].mxu0 }
 0x2fe   : > { %v8379_v12 = vpop.f32.mrb[251].mxu0  ;;  %v11528_v17 = vadd.f32 %v8371_v16, %v5408_v49  ;;  %v5409_v54 = vadd.f32 %v8262_v2, %v11435_v51 }
 0x2ff   : > { %v8380_v23 = vadd.f32 %v8379_v12, %v8378_v59 }
 0x300   : > { %v11531_v33 = vadd.f32 %v8374_v28, %v5409_v54  ;;  %v8263_v42 = vpop.f32.mrb[248].mxu1 }
 0x301   : > { %v8264_v60 = vpop.f32.mrb[249].mxu1 }
 0x302   : > { %v8265_v44 = vadd.f32 %v8264_v60, %v8263_v42  ;;  %v8266_v36 = vpop.f32.mrb[250].mxu1 }
 0x303   : > { %v8381_v47 = vpop.f32.mrb[252].mxu0  ;;  %v8267_v41 = vpop.f32.mrb[251].mxu1 }
 0x304   : > { %v8382_v39 = vpop.f32.mrb[253].mxu0  ;;  %v5410_v56 = vadd.f32 %v8265_v44, %v11438_v11  ;;  %v8268_v20 = vadd.f32 %v8267_v41, %v8266_v36 }
 0x305   : > { %v8383_v57 = vadd.f32 %v8382_v39, %v8381_v47  ;;  %v8384_v38 = vpop.f32.mrb[254].mxu0 }
 0x306   : > { %v8385_v13 = vpop.f32.mrb[255].mxu0  ;;  %v11534_v16 = vadd.f32 %v8377_v50, %v5410_v56  ;;  %v5411_v51 = vadd.f32 %v8268_v20, %v11441_v55 }
 0x307   : > { %v8386_v31 = vadd.f32 %v8385_v13, %v8384_v38 }
 0x308   : > { %v11537_v10 = vadd.f32 %v8380_v23, %v5411_v51  ;;  %v8269_v61 = vpop.f32.mrb[252].mxu1 }
 0x309   : > { %v8270_v28 = vpop.f32.mrb[253].mxu1 }
 0x30a   : > { %v8271_v1 = vadd.f32 %v8270_v28, %v8269_v61  ;;  %v8272_v63 = vpop.f32.mrb[254].mxu1 }
 0x30b   : > { %v8387_v8 = vpop.f32.mrb[0].mxu0  ;;  %v8273_v7 = vpop.f32.mrb[255].mxu1 }
 0x30c   : > { %v8388_v37 = vpop.f32.mrb[1].mxu0  ;;  %v5412_v11 = vadd.f32 %v8271_v1, %v11444_v35  ;;  %v8274_v48 = vadd.f32 %v8273_v7, %v8272_v63 }
 0x30d   : > { %v8389_v9 = vadd.f32 %v8388_v37, %v8387_v8  ;;  %v8390_v49 = vpop.f32.mrb[2].mxu0 }
 0x30e   : > { %v8391_v2 = vpop.f32.mrb[3].mxu0  ;;  %v11540_v50 = vadd.f32 %v8383_v57, %v5412_v11  ;;  %v5413_v55 = vadd.f32 %v8274_v48, %v11447_v15 }
 0x30f   : > { %v8392_v59 = vadd.f32 %v8391_v2, %v8390_v49 }
 0x310   : > { %v11543_v12 = vadd.f32 %v8386_v31, %v5413_v55  ;;  %v8275_v54 = vpop.f32.mrb[0].mxu1 }
 0x311   : > { %v8276_v23 = vpop.f32.mrb[1].mxu1 }
 0x312   : > { %v8277_v42 = vadd.f32 %v8276_v23, %v8275_v54  ;;  %v8278_v60 = vpop.f32.mrb[2].mxu1 }
 0x313   : > { %v8393_v44 = vpop.f32.mrb[4].mxu0  ;;  %v8279_v36 = vpop.f32.mrb[3].mxu1 }
 0x314   : > { %v8394_v47 = vpop.f32.mrb[5].mxu0  ;;  %v5414_v35 = vadd.f32 %v8277_v42, %v11450_v40  ;;  %v8280_v41 = vadd.f32 %v8279_v36, %v8278_v60 }
 0x315   : > { %v8395_v39 = vadd.f32 %v8394_v47, %v8393_v44  ;;  %v8396_v56 = vpop.f32.mrb[6].mxu0 }
 0x316   : > { %v8397_v20 = vpop.f32.mrb[7].mxu0  ;;  %v11546_v57 = vadd.f32 %v8389_v9, %v5414_v35  ;;  %v5415_v15 = vadd.f32 %v8280_v41, %v11453_v52 }
 0x317   : > { %v8398_v38 = vadd.f32 %v8397_v20, %v8396_v56 }
 0x318   : > { %v11549_v13 = vadd.f32 %v8392_v59, %v5415_v15  ;;  %v8281_v51 = vpop.f32.mrb[4].mxu1 }
 0x319   : > { %v8282_v31 = vpop.f32.mrb[5].mxu1 }
 0x31a   : > { %v8283_v61 = vadd.f32 %v8282_v31, %v8281_v51  ;;  %v8284_v28 = vpop.f32.mrb[6].mxu1 }
 0x31b   : > { %v8399_v1 = vpop.f32.mrb[8].mxu0  ;;  %v8285_v63 = vpop.f32.mrb[7].mxu1 }
 0x31c   : > { %v8400_v8 = vpop.f32.mrb[9].mxu0  ;;  %v5416_v40 = vadd.f32 %v8283_v61, %v11456_v30  ;;  %v8286_v7 = vadd.f32 %v8285_v63, %v8284_v28 }
 0x31d   : > { %v8401_v37 = vadd.f32 %v8400_v8, %v8399_v1  ;;  %v8402_v11 = vpop.f32.mrb[10].mxu0 }
 0x31e   : > { %v8403_v48 = vpop.f32.mrb[11].mxu0  ;;  %v11552_v9 = vadd.f32 %v8395_v39, %v5416_v40  ;;  %v5417_v52 = vadd.f32 %v8286_v7, %v11459_v6 }
 0x31f   : > { %v8404_v49 = vadd.f32 %v8403_v48, %v8402_v11 }
 0x320   : > { %v11555_v2 = vadd.f32 %v8398_v38, %v5417_v52  ;;  %v8287_v55 = vpop.f32.mrb[8].mxu1 }
 0x321   : > { %v8288_v59 = vpop.f32.mrb[9].mxu1 }
 0x322   : > { %v8289_v54 = vadd.f32 %v8288_v59, %v8287_v55  ;;  %v8290_v23 = vpop.f32.mrb[10].mxu1 }
 0x323   : > { %v8405_v42 = vpop.f32.mrb[12].mxu0  ;;  %v8291_v60 = vpop.f32.mrb[11].mxu1 }
 0x324   : > { %v8406_v44 = vpop.f32.mrb[13].mxu0  ;;  %v5418_v30 = vadd.f32 %v8289_v54, %v11462_v58  ;;  %v8292_v36 = vadd.f32 %v8291_v60, %v8290_v23 }
 0x325   : > { %v8407_v47 = vadd.f32 %v8406_v44, %v8405_v42  ;;  %v8408_v35 = vpop.f32.mrb[14].mxu0 }
 0x326   : > { %v8409_v41 = vpop.f32.mrb[15].mxu0  ;;  %v11558_v39 = vadd.f32 %v8401_v37, %v5418_v30  ;;  %v5419_v6 = vadd.f32 %v8292_v36, %v11465_v24 }
 0x327   : > { %v8410_v56 = vadd.f32 %v8409_v41, %v8408_v35 }
 0x328   : > { %v11561_v20 = vadd.f32 %v8404_v49, %v5419_v6  ;;  %v8293_v15 = vpop.f32.mrb[12].mxu1 }
 0x329   : > { %v8294_v38 = vpop.f32.mrb[13].mxu1 }
 0x32a   : > { %v8295_v51 = vadd.f32 %v8294_v38, %v8293_v15  ;;  %v8296_v31 = vpop.f32.mrb[14].mxu1 }
 0x32b   : > { %v8411_v61 = vpop.f32.mrb[16].mxu0  ;;  %v8297_v28 = vpop.f32.mrb[15].mxu1 }
 0x32c   : > { %v8412_v1 = vpop.f32.mrb[17].mxu0  ;;  %v5420_v58 = vadd.f32 %v8295_v51, %v11468_v29  ;;  %v8298_v63 = vadd.f32 %v8297_v28, %v8296_v31 }
 0x32d   : > { %v8413_v8 = vadd.f32 %v8412_v1, %v8411_v61  ;;  %v8414_v40 = vpop.f32.mrb[18].mxu0 }
 0x32e   : > { %v8415_v7 = vpop.f32.mrb[19].mxu0  ;;  %v11564_v37 = vadd.f32 %v8407_v47, %v5420_v58  ;;  %v5421_v24 = vadd.f32 %v8298_v63, %v11471_v53 }
 0x32f   : > { %v8416_v11 = vadd.f32 %v8415_v7, %v8414_v40 }
 0x330   : > { %v11567_v48 = vadd.f32 %v8410_v56, %v5421_v24  ;;  %v8299_v52 = vpop.f32.mrb[16].mxu1 }
 0x331   : > { %v8300_v49 = vpop.f32.mrb[17].mxu1 }
 0x332   : > { %v8301_v55 = vadd.f32 %v8300_v49, %v8299_v52  ;;  %v8302_v59 = vpop.f32.mrb[18].mxu1 }
 0x333   : > { %v8417_v54 = vpop.f32.mrb[20].mxu0  ;;  %v8303_v23 = vpop.f32.mrb[19].mxu1 }
 0x334   : > { %v8418_v42 = vpop.f32.mrb[21].mxu0  ;;  %v5422_v29 = vadd.f32 %v8301_v55, %v11474_v25  ;;  %v8304_v60 = vadd.f32 %v8303_v23, %v8302_v59 }
 0x335   : > { %v8419_v44 = vadd.f32 %v8418_v42, %v8417_v54  ;;  %v8420_v30 = vpop.f32.mrb[22].mxu0 }
 0x336   : > { %v8421_v36 = vpop.f32.mrb[23].mxu0  ;;  %v11570_v47 = vadd.f32 %v8413_v8, %v5422_v29  ;;  %v5423_v53 = vadd.f32 %v8304_v60, %v11477_v21 }
 0x337   : > { %v8422_v35 = vadd.f32 %v8421_v36, %v8420_v30 }
 0x338   : > { %v11573_v41 = vadd.f32 %v8416_v11, %v5423_v53  ;;  %v8305_v6 = vpop.f32.mrb[20].mxu1 }
 0x339   : > { %v8306_v56 = vpop.f32.mrb[21].mxu1 }
 0x33a   : > { %v8307_v15 = vadd.f32 %v8306_v56, %v8305_v6  ;;  %v8308_v38 = vpop.f32.mrb[22].mxu1 }
 0x33b   : > { %v8423_v51 = vpop.f32.mrb[24].mxu0  ;;  %v8309_v31 = vpop.f32.mrb[23].mxu1 }
 0x33c   : > { %v8424_v61 = vpop.f32.mrb[25].mxu0  ;;  %v5424_v25 = vadd.f32 %v8307_v15, %v11480_v5  ;;  %v8310_v28 = vadd.f32 %v8309_v31, %v8308_v38 }
 0x33d   : > { %v8425_v1 = vadd.f32 %v8424_v61, %v8423_v51  ;;  %v8426_v58 = vpop.f32.mrb[26].mxu0 }
 0x33e   : > { %v8427_v63 = vpop.f32.mrb[27].mxu0  ;;  %v11576_v8 = vadd.f32 %v8419_v44, %v5424_v25  ;;  %v5425_v21 = vadd.f32 %v8310_v28, %v11483_v0 }
 0x33f   : > { %v8428_v40 = vadd.f32 %v8427_v63, %v8426_v58 }
 0x340   : > { %v11579_v7 = vadd.f32 %v8422_v35, %v5425_v21  ;;  %v8311_v24 = vpop.f32.mrb[24].mxu1 }
 0x341   : > { %v8312_v11 = vpop.f32.mrb[25].mxu1 }
 0x342   : > { %v8313_v52 = vadd.f32 %v8312_v11, %v8311_v24  ;;  %v8314_v49 = vpop.f32.mrb[26].mxu1 }
 0x343   : > { %v8429_v55 = vpop.f32.mrb[28].mxu0  ;;  %v8315_v59 = vpop.f32.mrb[27].mxu1 }
 0x344   : > { %v8430_v54 = vpop.f32.mrb[29].mxu0  ;;  %v5426_v5 = vadd.f32 %v8313_v52, %v11486_v32  ;;  %v8316_v23 = vadd.f32 %v8315_v59, %v8314_v49 }
 0x345   : > { %v8431_v42 = vadd.f32 %v8430_v54, %v8429_v55  ;;  %v8432_v29 = vpop.f32.mrb[30].mxu0 }
 0x346   : > { %v8433_v60 = vpop.f32.mrb[31].mxu0  ;;  %v11582_v44 = vadd.f32 %v8425_v1, %v5426_v5  ;;  %v5427_v0 = vadd.f32 %v8316_v23, %v11489_v62  ;;  %v8871_v62 = vmov (!%p7265_p7), 0.0  }
 0x347   : > { %v8434_v30 = vadd.f32 %v8433_v60, %v8432_v29  ;;  %6012 = vst [vmem:[%s8929_s24] sm:$0x3] (!%p7265_p7), %v8871_v62 }
 0x348   : > { %v11585_v36 = vadd.f32 %v8428_v40, %v5427_v0  ;;  %v8317_v53 = vpop.f32.mrb[28].mxu1 }
 0x349   : > { %v8318_v35 = vpop.f32.mrb[29].mxu1 }
 0x34a   : > { %v8319_v6 = vadd.f32 %v8318_v35, %v8317_v53  ;;  %v8320_v56 = vpop.f32.mrb[30].mxu1  ;;  %6011 = sbr.rel (%p7265_p7) target bundleno = 849 (0x351), region = 32 }
 0x34b   : > { %v8321_v15 = vpop.f32.mrb[31].mxu1 }
 0x34c   : > { %v5428_v38 = vadd.f32 %v8319_v6, %v11492_v4  ;;  %v8322_v51 = vadd.f32 %v8321_v15, %v8320_v56 }
 0x34e   : > { %v11588_v32 = vadd.f32 %v8431_v42, %v5428_v38  ;;  %v5429_v31 = vadd.f32 %v8322_v51, %v11495_v18 }
 0x350   : > { %v11591_v61 = vadd.f32 %v8434_v30, %v5429_v31 }
 0x351 PF: > { %v6013_v25 = vadd.f32 %v11501_v46, %v11498_v3  ;;  %v6050_v18 = vmul.f32 %v11498_v3, %v11498_v3  ;;  %v6051_v1 = vmul.f32 %v11501_v46, %v11501_v46  ;;  %v6052_v63 = vmul.f32 %v11504_v27, %v11504_v27 }
 0x352   : > { %v6053_v40 = vmul.f32 %v11507_v22, %v11507_v22  ;;  %v6054_v24 = vmul.f32 %v11510_v45, %v11510_v45  ;;  %v6055_v11 = vmul.f32 %v11513_v43, %v11513_v43  ;;  %v7335_v49 = vpack.c.bf16 %v11501_v46, %v11498_v3 }
 0x353   : > { %v6014_v28 = vadd.f32 %v6013_v25, %v11504_v27  ;;  %v6082_v52 = vadd.f32 %v6051_v1, %v6050_v18  ;;  %v7340_v59 = vpack.c.bf16 %v11507_v22, %v11504_v27  ;;  %v7345_v54 = vpack.c.bf16 %v11513_v43, %v11510_v45 }
 0x354   : > { %v7350_v5 = vpack.c.bf16 %v11519_v34, %v11516_v14  ;;  %7336 = vst [vmem:[%s8944_s9] sm:$0xff] %v7335_v49   ;;  %v7355_v42 = vpack.c.bf16 %v11525_v19, %v11522_v26  ;;  %v7360_v3 = vpack.c.bf16 %v11531_v33, %v11528_v17  ;;  %v7365_v46 = vpack.c.bf16 %v11537_v10, %v11534_v16 }
 0x355   : > { %v6015_v4 = vadd.f32 %v6014_v28, %v11507_v22  ;;  %v6083_v23 = vadd.f32 %v6082_v52, %v6052_v63  ;;  %7412 = vst [vmem:[%s8944_s9 + $0x8] sm:$0xff] %v7340_v59   ;;  %7413 = vst [vmem:[%s8944_s9 + $0x10] sm:$0xff] %v7345_v54   ;;  %v7370_v22 = vpack.c.bf16 %v11543_v12, %v11540_v50  ;;  %vm6120_vm6 = vcmask 1040384  }
 0x356   : > { %7414 = vst [vmem:[%s8944_s9 + $0x18] sm:$0xff] %v7350_v5   ;;  %7415 = vst [vmem:[%s8944_s9 + $0x20] sm:$0xff] %v7355_v42   ;;  %v7385_v60 = vpack.c.bf16 %v11561_v20, %v11558_v39  ;;  %v7390_v0 = vpack.c.bf16 %v11567_v48, %v11564_v37  ;;  %v7395_v30 = vpack.c.bf16 %v11573_v41, %v11570_v47 }
 0x357   : > { %v6016_v58 = vadd.f32 %v6015_v4, %v11510_v45  ;;  %v7375_v45 = vpack.c.bf16 %v11549_v13, %v11546_v57  ;;  %v6084_v29 = vadd.f32 %v6083_v23, %v6053_v40  ;;  %7416 = vst [vmem:[%s8944_s9 + $0x28] sm:$0xff] %v7360_v3   ;;  %7417 = vst [vmem:[%s8944_s9 + $0x30] sm:$0xff] %v7365_v46  }
 0x358   : > { %7418 = vst [vmem:[%s8944_s9 + $0x38] sm:$0xff] %v7370_v22   ;;  %v7400_v35 = vpack.c.bf16 %v11579_v7, %v11576_v8  ;;  %v7405_v6 = vpack.c.bf16 %v11585_v36, %v11582_v44  ;;  %v7410_v56 = vpack.c.bf16 %v11591_v61, %v11588_v32  ;;  %v6056_v15 = vmul.f32 %v11516_v14, %v11516_v14 }
 0x359   : > { %v6017_v21 = vadd.f32 %v6016_v58, %v11513_v43  ;;  %v7380_v43 = vpack.c.bf16 %v11555_v2, %v11552_v9  ;;  %7419 = vst [vmem:[%s8944_s9 + $0x40] sm:$0xff] %v7375_v45   ;;  %v6085_v38 = vadd.f32 %v6084_v29, %v6054_v24  ;;  %7421 = vst [vmem:[%s8944_s9 + $0x50] sm:$0xff] %v7385_v60  }
 0x35a   : > { %7422 = vst [vmem:[%s8944_s9 + $0x58] sm:$0xff] %v7390_v0   ;;  %7423 = vst [vmem:[%s8944_s9 + $0x60] sm:$0xff] %v7395_v30   ;;  %v6057_v31 = vmul.f32 %v11519_v34, %v11519_v34  ;;  %v6058_v28 = vmul.f32 %v11522_v26, %v11522_v26  ;;  %v6059_v18 = vmul.f32 %v11525_v19, %v11525_v19 }
 0x35b   : > { %v6018_v55 = vadd.f32 %v6017_v21, %v11516_v14  ;;  %7420 = vst [vmem:[%s8944_s9 + $0x48] sm:$0xff] %v7380_v43   ;;  %7424 = vst [vmem:[%s8944_s9 + $0x68] sm:$0xff] %v7400_v35   ;;  %v6086_v62 = vadd.f32 %v6085_v38, %v6055_v11  ;;  %v6060_v63 = vmul.f32 %v11528_v17, %v11528_v17 }
 0x35c   : > { %7425 = vst [vmem:[%s8944_s9 + $0x70] sm:$0xff] %v7405_v6   ;;  %7426 = vst [vmem:[%s8944_s9 + $0x78] sm:$0xff] %v7410_v56   ;;  %v6061_v40 = vmul.f32 %v11531_v33, %v11531_v33  ;;  %v6062_v11 = vmul.f32 %v11534_v16, %v11534_v16  ;;  %v6063_v49 = vmul.f32 %v11537_v10, %v11537_v10 }
 0x35d   : > { %v6019_v27 = vadd.f32 %v6018_v55, %v11519_v34  ;;  %v6087_v4 = vadd.f32 %v6086_v62, %v6056_v15  ;;  %v6064_v59 = vmul.f32 %v11540_v50, %v11540_v50  ;;  %v6065_v5 = vmul.f32 %v11543_v12, %v11543_v12 }
 0x35e   : > { %v6066_v42 = vmul.f32 %v11546_v57, %v11546_v57  ;;  %v6067_v46 = vmul.f32 %v11549_v13, %v11549_v13  ;;  %v6068_v22 = vmul.f32 %v11552_v9, %v11552_v9  ;;  %v6069_v43 = vmul.f32 %v11555_v2, %v11555_v2 }
 0x35f   : > { %v6020_v53 = vadd.f32 %v6019_v27, %v11522_v26  ;;  %v6088_v1 = vadd.f32 %v6087_v4, %v6057_v31  ;;  %v6070_v60 = vmul.f32 %v11558_v39, %v11558_v39  ;;  %v6071_v30 = vmul.f32 %v11561_v20, %v11561_v20 }
 0x360   : > { %v6072_v35 = vmul.f32 %v11564_v37, %v11564_v37  ;;  %v6073_v56 = vmul.f32 %v11567_v48, %v11567_v48  ;;  %v6074_v38 = vmul.f32 %v11570_v47, %v11570_v47  ;;  %v6075_v31 = vmul.f32 %v11573_v41, %v11573_v41 }
 0x361   : > { %v6021_v51 = vadd.f32 %v6020_v53, %v11525_v19  ;;  %v6089_v21 = vadd.f32 %v6088_v1, %v6058_v28  ;;  %v6077_v4 = vmul.f32 %v11579_v7, %v11579_v7 }
 0x363   : > { %v6022_v25 = vadd.f32 %v6021_v51, %v11528_v17  ;;  %v6090_v24 = vadd.f32 %v6089_v21, %v6059_v18  ;;  %v6078_v18 = vmul.f32 %v11582_v44, %v11582_v44  ;;  %v6080_v21 = vmul.f32 %v11588_v32, %v11588_v32 }
 0x365   : > { %v6023_v14 = vadd.f32 %v6022_v25, %v11531_v33  ;;  %v6091_v52 = vadd.f32 %v6090_v24, %v6060_v63  ;;  %v6076_v25 = vmul.f32 %v11576_v8, %v11576_v8 }
 0x367   : > { %v6024_v58 = vadd.f32 %v6023_v14, %v11534_v16  ;;  %v6092_v55 = vadd.f32 %v6091_v52, %v6061_v40 }
 0x369   : > { %v6025_v34 = vadd.f32 %v6024_v58, %v11537_v10  ;;  %v6093_v54 = vadd.f32 %v6092_v55, %v6062_v11  ;;  %v6079_v58 = vmul.f32 %v11585_v36, %v11585_v36 }
 0x36b   : > { %v6026_v26 = vadd.f32 %v6025_v34, %v11540_v50  ;;  %v6094_v23 = vadd.f32 %v6093_v54, %v6063_v49 }
 0x36d   : > { %v6027_v19 = vadd.f32 %v6026_v26, %v11543_v12  ;;  %v6095_v3 = vadd.f32 %v6094_v23, %v6064_v59 }
 0x36f   : > { %v6028_v17 = vadd.f32 %v6027_v19, %v11546_v57  ;;  %v6096_v27 = vadd.f32 %v6095_v3, %v6065_v5 }
 0x371   : > { %v6029_v33 = vadd.f32 %v6028_v17, %v11549_v13  ;;  %v6097_v45 = vadd.f32 %v6096_v27, %v6066_v42 }
 0x373   : > { %v6030_v16 = vadd.f32 %v6029_v33, %v11552_v9  ;;  %v6098_v29 = vadd.f32 %v6097_v45, %v6067_v46  ;;  %v6119_v33 = vld [vmem:[%s8929_s24] sm:$0x3] }
 0x375   : > { %v6031_v10 = vadd.f32 %v6030_v16, %v11555_v2  ;;  %v6099_v0 = vadd.f32 %v6098_v29, %v6068_v22 }
 0x377   : > { %v6032_v50 = vadd.f32 %v6031_v10, %v11558_v39  ;;  %v6100_v53 = vadd.f32 %v6099_v0, %v6069_v43 }
 0x379   : > { %v6033_v12 = vadd.f32 %v6032_v50, %v11561_v20  ;;  %v6101_v6 = vadd.f32 %v6100_v53, %v6070_v60 }
 0x37b   : > { %v6034_v57 = vadd.f32 %v6033_v12, %v11564_v37  ;;  %v6102_v15 = vadd.f32 %v6101_v6, %v6071_v30 }
 0x37d   : > { %v6035_v13 = vadd.f32 %v6034_v57, %v11567_v48  ;;  %v6103_v51 = vadd.f32 %v6102_v15, %v6072_v35 }
 0x37f   : > { %v6036_v9 = vadd.f32 %v6035_v13, %v11570_v47  ;;  %v6104_v62 = vadd.f32 %v6103_v51, %v6073_v56 }
 0x381   : > { %v6037_v2 = vadd.f32 %v6036_v9, %v11573_v41  ;;  %v6105_v28 = vadd.f32 %v6104_v62, %v6074_v38 }
 0x383   : > { %v6038_v39 = vadd.f32 %v6037_v2, %v11576_v8  ;;  %v6106_v14 = vadd.f32 %v6105_v28, %v6075_v31 }
 0x385   : > { %v6039_v20 = vadd.f32 %v6038_v39, %v11579_v7  ;;  %v6107_v1 = vadd.f32 %v6106_v14, %v6076_v25  ;;  %v6081_v7 = vmul.f32 %v11591_v61, %v11591_v61 }
 0x387   : > { %v6040_v37 = vadd.f32 %v6039_v20, %v11582_v44  ;;  %v6108_v63 = vadd.f32 %v6107_v1, %v6077_v4 }
 0x389   : > { %v6041_v48 = vadd.f32 %v6040_v37, %v11585_v36  ;;  %v6109_v34 = vadd.f32 %v6108_v63, %v6078_v18 }
 0x38b   : > { %v6042_v47 = vadd.f32 %v6041_v48, %v11588_v32  ;;  %v6110_v24 = vadd.f32 %v6109_v34, %v6079_v58 }
 0x38d   : > { %v6043_v41 = vadd.f32 %v6042_v47, %v11591_v61  ;;  %v6111_v44 = vadd.f32 %v6110_v24, %v6080_v21 }
 0x38f   : > { %v6044_v8 = vrot.slane %v6043_v41, 4  ;;  %v6112_v11 = vadd.f32 %v6111_v44, %v6081_v7 }
 0x391   : > { %v6045_v40 = vadd.f32 %v6044_v8, %v6043_v41  ;;  %v6113_v19 = vrot.slane %v6112_v11, 4 }
 0x393   : > { %v6046_v26 = vrot.slane %v6045_v40, 2  ;;  %v6114_v49 = vadd.f32 %v6113_v19, %v6112_v11 }
 0x395   : > { %v6047_v52 = vadd.f32 %v6046_v26, %v6045_v40  ;;  %v6115_v55 = vrot.slane %v6114_v49, 2 }
 0x397   : > { %v6048_v36 = vrot.slane %v6047_v52, 1  ;;  %v6116_v17 = vadd.f32 %v6115_v55, %v6114_v49 }
 0x399   : > { %v6049_v59 = vadd.f32 %v6048_v36, %v6047_v52  ;;  %v6117_v54 = vrot.slane %v6116_v17, 1 }
 0x39b   : > { %v6118_v32 = vadd.f32 %v6117_v54, %v6116_v17 }
 0x39d   : > { %v6121_v5 = vsel %vm6120_vm6, %v6049_v59, %v6118_v32 }
 0x39e   : > { %v6122_v23 = vadd.f32 %v6121_v5, %v6119_v33 }
 0x3a0   : > { %6123 = vst [vmem:[%s8929_s24] sm:$0x3] %v6122_v23 }
 0x3a1 PF: > { %s14_s16 = sadd.s32 1, %s8869_s16   ;;  %s11865_s12 = smov %s8861_s14 }
 0x3a2   : > { %p11_p8 = scmp.ge.s32.totalorder %s14_s16, 6   ;;  %s11866_s13 = smov %s8865_s15 }
 0x3a3   : > { %s11867_s14 = smov %s11870_s17  ;;  %s11868_s15 = smov %s11874_s18 }
 0x3a4   :  { %13 = sbr.rel (!%p11_p8) target bundleno = 3 (0x3), region = 87 }

</bundles_post_ra>
